<compile_context>
chip_gen: v6e
topology: v6e:2x2x1
jax: 0.10.0
libtpu: 0.0.40
codegen_flags: <defaults>
</compile_context>

<pallas_src>
import functools

import jax
import jax.numpy as jnp
import numpy as np
from jax.experimental import pallas as pl
from jax.experimental.pallas import tpu as pltpu


# ----------------------------------------------------------------------------
# Fused Pallas kernel (whole Bottleneck for one sample)
# ----------------------------------------------------------------------------

def _bottleneck_kernel(
    x_ref,
    w1_ref, t1_ref,
    c1a_ref, c1b_ref, ka1_ref, km1_ref,
    w2_ref, t2_ref,
    c2a_ref, c2b_ref, ka2_ref, km2_ref,
    w3_ref, t3_ref,
    o_ref,
    ypad_ref,
    *, W, pad_off):
    """Whole Bottleneck forward for one sample; all intermediates stay in VMEM."""
    HW = x_ref.shape[0]
    C = o_ref.shape[1]

    def cbam(y, wa_ref, wb_ref, ka_ref, km_ref):
        # -- channel attention: shared MLP over global avg & max pool --------
        avg = jnp.mean(y, axis=0, keepdims=True)                   # (1, C)
        mx = jnp.max(y, axis=0, keepdims=True)                     # (1, C)
        row = jax.lax.broadcasted_iota(jnp.int32, (2, C), 0)
        vm = jnp.where(row == 0, avg, mx)                          # (2, C) batched
        h = jnp.maximum(
            jnp.dot(vm, wa_ref[...], preferred_element_type=jnp.float32), 0.0)
        lg = jnp.dot(h, wb_ref[...], preferred_element_type=jnp.float32)
        catt = jax.nn.sigmoid(lg[0:1, :] + lg[1:2, :])             # (1, C)
        y = y * catt
        # -- spatial attention: 7x7 conv over [avg_c, max_c] applied as a ----
        # -- precomputed (HW, HW) linear operator (exact, zero-padded conv) --
        pavg = jnp.mean(y, axis=1, keepdims=True)                  # (HW, 1)
        pmax = jnp.max(y, axis=1, keepdims=True)                   # (HW, 1)
        sa = (jnp.dot(ka_ref[...], pavg, preferred_element_type=jnp.float32) +
              jnp.dot(km_ref[...], pmax, preferred_element_type=jnp.float32))
        return y * jax.nn.sigmoid(sa)

    # ---- 1x1 conv (BN scale folded into weights) + shift + ReLU -------------
    y = jnp.dot(x_ref[...], w1_ref[...], preferred_element_type=jnp.float32)
    y = jnp.maximum(y + t1_ref[...], 0.0)
    y = cbam(y, c1a_ref, c1b_ref, ka1_ref, km1_ref)

    # ---- 3x3 conv (pad=1) as 9 shifted matmuls from a flat padded scratch ---
    # Zero the pad regions only once; they are never overwritten afterwards.
    @pl.when(pl.program_id(0) == 0)
    def _():
        ypad_ref[pl.ds(0, pad_off), :] = jnp.zeros((pad_off, C), jnp.float32)
        ypad_ref[pl.ds(pad_off + HW, pad_off), :] = jnp.zeros(
            (pad_off, C), jnp.float32)

    ypad_ref[pl.ds(pad_off, HW), :] = y

    # Horizontal boundary masks (vertical OOB already reads the zero padding).
    col = jax.lax.broadcasted_iota(jnp.int32, (HW, 1), 0) % W
    mask_l = (col != 0).astype(jnp.float32)        # taps reading left neighbor
    mask_r = (col != W - 1).astype(jnp.float32)    # taps reading right neighbor

    acc = jnp.dot(y, w2_ref[4], preferred_element_type=jnp.float32)  # centre tap
    for t in range(9):
        if t == 4:
            continue
        di, dj = divmod(t, 3)
        shift = (di - 1) * W + (dj - 1)
        yt = ypad_ref[pl.ds(pad_off + shift, HW), :]
        if dj == 0:
            yt = yt * mask_l
        elif dj == 2:
            yt = yt * mask_r
        acc = acc + jnp.dot(yt, w2_ref[t], preferred_element_type=jnp.float32)
    y = jnp.maximum(acc + t2_ref[...], 0.0)
    y = cbam(y, c2a_ref, c2b_ref, ka2_ref, km2_ref)

    # ---- 1x1 conv (BN scale folded into weights) + shift + ReLU -------------
    y = jnp.dot(y, w3_ref[...], preferred_element_type=jnp.float32)
    o_ref[...] = jnp.maximum(y + t3_ref[...], 0.0)


# ----------------------------------------------------------------------------
# Parameter preparation (outside jit, one-time): fold conv bias + BN into the
# weights/shift, reshape conv weights, build the 7x7 spatial-conv operators.
# ----------------------------------------------------------------------------

def build_kernel_params(p, H, W):
    HW = H * W
    Cin = p["w1"].shape[2]
    C = p["w1"].shape[3]

    def fold(w_hwio, b, bn):
        scale = np.asarray(bn[0], np.float32)                    # (C,)
        shift = np.asarray(bn[1], np.float32) + np.asarray(b, np.float32) * scale
        w = np.asarray(w_hwio, np.float32) * scale               # fold BN scale
        return w, jnp.asarray(shift.reshape(1, C))

    def spatial_operators(sa_w):
        w = np.asarray(sa_w, np.float32)                         # (7, 7, 2, 1)
        k = w.shape[0]
        pad = k // 2
        ka = np.zeros((HW, HW), np.float32)
        km = np.zeros((HW, HW), np.float32)
        for hh in range(H):
            for ww in range(W):
                pidx = hh * W + ww
                for di in range(k):
                    for dj in range(k):
                        hs, ws = hh + di - pad, ww + dj - pad
                        if 0 <= hs < H and 0 <= ws < W:
                            q = hs * W + ws
                            ka[pidx, q] += w[di, dj, 0, 0]
                            km[pidx, q] += w[di, dj, 1, 0]
        return jnp.asarray(ka), jnp.asarray(km)

    w1, t1 = fold(p["w1"], p["b1"], p["bn1"])
    w2, t2 = fold(p["w2"], p["b2"], p["bn2"])
    w3, t3 = fold(p["w3"], p["b3"], p["bn3"])
    ka1, km1 = spatial_operators(p["cbam1"]["sa_w"])
    ka2, km2 = spatial_operators(p["cbam2"]["sa_w"])

    return dict(
        w1=jnp.asarray(w1).reshape(Cin, C), t1=t1,
        ca1_w1=jnp.asarray(p["cbam1"]["ca_w1"]),
        ca1_w2=jnp.asarray(p["cbam1"]["ca_w2"]),
        ka1=ka1, km1=km1,
        w2=jnp.asarray(w2).reshape(9, C, C), t2=t2,
        ca2_w1=jnp.asarray(p["cbam2"]["ca_w1"]),
        ca2_w2=jnp.asarray(p["cbam2"]["ca_w2"]),
        ka2=ka2, km2=km2,
        w3=jnp.asarray(w3).reshape(C, C), t3=t3,
    )


# ----------------------------------------------------------------------------
# Forward wrapper (single fused pallas_call)
# ----------------------------------------------------------------------------

@jax.jit
def bottleneck_forward(x_nchw, kp):
    N, Cin, H, W = x_nchw.shape
    HW = H * W
    C = kp["w1"].shape[1]
    pad_off = -(-(W + 1) // 8) * 8           # flat-pad offset, multiple of 8

    x = jnp.transpose(x_nchw, (0, 2, 3, 1)).reshape(N, HW, Cin)   # NCHW -> (N,HW,Cin)

    def rep2(a):
        return pl.BlockSpec(a.shape, lambda n: (0, 0))

    def rep3(a):
        return pl.BlockSpec(a.shape, lambda n: (0, 0, 0))

    kernel = functools.partial(_bottleneck_kernel, W=W, pad_off=pad_off)

    out = pl.pallas_call(
        kernel,
        out_shape=jax.ShapeDtypeStruct((N, HW, C), jnp.float32),
        grid=(N,),
        in_specs=[
            pl.BlockSpec((None, HW, Cin), lambda n: (n, 0, 0)),
            rep2(kp["w1"]), rep2(kp["t1"]),
            rep2(kp["ca1_w1"]), rep2(kp["ca1_w2"]),
            rep2(kp["ka1"]), rep2(kp["km1"]),
            rep3(kp["w2"]), rep2(kp["t2"]),
            rep2(kp["ca2_w1"]), rep2(kp["ca2_w2"]),
            rep2(kp["ka2"]), rep2(kp["km2"]),
            rep2(kp["w3"]), rep2(kp["t3"]),
        ],
        out_specs=pl.BlockSpec((None, HW, C), lambda n: (n, 0, 0)),
        scratch_shapes=[pltpu.VMEM((HW + 2 * pad_off, C), jnp.float32)],
        compiler_params=pltpu.CompilerParams(
            dimension_semantics=("parallel",)),
    )(x, kp["w1"], kp["t1"],
      kp["ca1_w1"], kp["ca1_w2"], kp["ka1"], kp["km1"],
      kp["w2"], kp["t2"],
      kp["ca2_w1"], kp["ca2_w2"], kp["ka2"], kp["km2"],
      kp["w3"], kp["t3"])

    return jnp.transpose(out.reshape(N, H, W, C), (0, 3, 1, 2))   # -> NCHW


# ----------------------------------------------------------------------------
# Deterministic parameter construction (synthetic, BN folded to scale/shift)
# ----------------------------------------------------------------------------

def init_params(key, cin, c, ch):
    ks = iter(jax.random.split(key, 64))

    def w(shape, s=0.1):
        return s * jax.random.normal(next(ks), shape, jnp.float32)

    def bn():
        gamma = 0.5 + jax.random.uniform(next(ks), (c,), jnp.float32)
        beta = 0.1 * jax.random.normal(next(ks), (c,), jnp.float32)
        mean = 0.1 * jax.random.normal(next(ks), (c,), jnp.float32)
        var = 0.5 + jax.random.uniform(next(ks), (c,), jnp.float32)
        scale = gamma * jax.lax.rsqrt(var + 1e-5)
        shift = beta - mean * scale
        return scale, shift

    def cbam_p():
        return dict(ca_w1=w((c, ch)), ca_w2=w((ch, c)), sa_w=w((7, 7, 2, 1)))

    p = {}
    p["w1"], p["b1"], p["bn1"] = w((1, 1, cin, c)), w((c,), 0.05), bn()
    p["cbam1"] = cbam_p()
    p["w2"], p["b2"], p["bn2"] = w((3, 3, c, c)), w((c,), 0.05), bn()
    p["cbam2"] = cbam_p()
    p["w3"], p["b3"], p["bn3"] = w((1, 1, c, c)), w((c,), 0.05), bn()
    return p


# ----------------------------------------------------------------------------
# Pure-JAX reference (for verification)
# ----------------------------------------------------------------------------

def ref_forward(x_nchw, p):
    x = jnp.transpose(x_nchw, (0, 2, 3, 1))

    def conv(y, w_hwio, b, pad):
        return jax.lax.conv_general_dilated(
            y, w_hwio, (1, 1), [(pad, pad), (pad, pad)],
            dimension_numbers=("NHWC", "HWIO", "NHWC")) + b

    def bn_relu(y, bn):
        sc, sh = bn
        return jnp.maximum(y * sc + sh, 0.0)

    def cbam(y, cp):
        avg = jnp.mean(y, axis=(1, 2))
        mx = jnp.max(y, axis=(1, 2))
        mlp = lambda v: jnp.maximum(v @ cp["ca_w1"], 0.0) @ cp["ca_w2"]
        ca = jax.nn.sigmoid(mlp(avg) + mlp(mx))[:, None, None, :]
        y = y * ca
        pooled = jnp.stack([jnp.mean(y, -1), jnp.max(y, -1)], axis=-1)
        sa = jax.lax.conv_general_dilated(
            pooled, cp["sa_w"], (1, 1), [(3, 3), (3, 3)],
            dimension_numbers=("NHWC", "HWIO", "NHWC"))
        return y * jax.nn.sigmoid(sa)

    y = bn_relu(conv(x, p["w1"], p["b1"], 0), p["bn1"])
    y = cbam(y, p["cbam1"])
    y = bn_relu(conv(y, p["w2"], p["b2"], 1), p["bn2"])
    y = cbam(y, p["cbam2"])
    y = bn_relu(conv(y, p["w3"], p["b3"], 0), p["bn3"])
    return jnp.transpose(y, (0, 3, 1, 2))


# ----------------------------------------------------------------------------
# Main
# ----------------------------------------------------------------------------

if __name__ == "__main__":
    N, Cin, H, W = 2, 4, 16, 16
    Cout, Chid = 16, 4           # CBAM hidden = Cout // 4

    key = jax.random.PRNGKey(0)
    kx, kp = jax.random.split(key)
    x = jax.random.normal(kx, (N, Cin, H, W), jnp.float32)
    params = init_params(kp, Cin, Cout, Chid)
    kernel_params = build_kernel_params(params, H, W)

    out = jax.block_until_ready(bottleneck_forward(x, kernel_params))

    ref = jax.block_until_ready(ref_forward(x, params))
    np.testing.assert_allclose(np.asarray(out), np.asarray(ref),
                               rtol=2e-3, atol=2e-3)

    print("KERNEL_OK")
</pallas_src>

<mosaic_0001>
module attributes {stable_mosaic.version = 11 : i64} {
  func.func @_bottleneck_kernel(%arg0: i32, %arg1: memref<1x256x4xf32, #tpu.memory_space<vmem>>, %arg2: memref<4x16xf32, #tpu.memory_space<vmem>>, %arg3: memref<1x16xf32, #tpu.memory_space<vmem>>, %arg4: memref<16x4xf32, #tpu.memory_space<vmem>>, %arg5: memref<4x16xf32, #tpu.memory_space<vmem>>, %arg6: memref<256x256xf32, #tpu.memory_space<vmem>>, %arg7: memref<256x256xf32, #tpu.memory_space<vmem>>, %arg8: memref<9x16x16xf32, #tpu.memory_space<vmem>>, %arg9: memref<1x16xf32, #tpu.memory_space<vmem>>, %arg10: memref<16x4xf32, #tpu.memory_space<vmem>>, %arg11: memref<4x16xf32, #tpu.memory_space<vmem>>, %arg12: memref<256x256xf32, #tpu.memory_space<vmem>>, %arg13: memref<256x256xf32, #tpu.memory_space<vmem>>, %arg14: memref<16x16xf32, #tpu.memory_space<vmem>>, %arg15: memref<1x16xf32, #tpu.memory_space<vmem>>, %arg16: memref<1x256x16xf32, #tpu.memory_space<vmem>>, %arg17: memref<304x16xf32, #tpu.memory_space<vmem>>) attributes {dimension_semantics = [#tpu.dimension_semantics<parallel>], iteration_bounds = array<i64: 2>, scalar_prefetch = 0 : i64, scratch_operands = 1 : i64, tpu.core_type = #tpu.core_type<tc>, window_params = [{transform_indices = @transform_0, window_bounds = array<i64: 1, 256, 4>}, {pipeline_mode = #tpu.pipeline_mode<synchronous>, transform_indices = @transform_1, window_bounds = array<i64: 4, 16>}, {pipeline_mode = #tpu.pipeline_mode<synchronous>, transform_indices = @transform_2, window_bounds = array<i64: 1, 16>}, {pipeline_mode = #tpu.pipeline_mode<synchronous>, transform_indices = @transform_3, window_bounds = array<i64: 16, 4>}, {pipeline_mode = #tpu.pipeline_mode<synchronous>, transform_indices = @transform_4, window_bounds = array<i64: 4, 16>}, {pipeline_mode = #tpu.pipeline_mode<synchronous>, transform_indices = @transform_5, window_bounds = array<i64: 256, 256>}, {pipeline_mode = #tpu.pipeline_mode<synchronous>, transform_indices = @transform_6, window_bounds = array<i64: 256, 256>}, {pipeline_mode = #tpu.pipeline_mode<synchronous>, transform_indices = @transform_7, window_bounds = array<i64: 9, 16, 16>}, {pipeline_mode = #tpu.pipeline_mode<synchronous>, transform_indices = @transform_8, window_bounds = array<i64: 1, 16>}, {pipeline_mode = #tpu.pipeline_mode<synchronous>, transform_indices = @transform_9, window_bounds = array<i64: 16, 4>}, {pipeline_mode = #tpu.pipeline_mode<synchronous>, transform_indices = @transform_10, window_bounds = array<i64: 4, 16>}, {pipeline_mode = #tpu.pipeline_mode<synchronous>, transform_indices = @transform_11, window_bounds = array<i64: 256, 256>}, {pipeline_mode = #tpu.pipeline_mode<synchronous>, transform_indices = @transform_12, window_bounds = array<i64: 256, 256>}, {pipeline_mode = #tpu.pipeline_mode<synchronous>, transform_indices = @transform_13, window_bounds = array<i64: 16, 16>}, {pipeline_mode = #tpu.pipeline_mode<synchronous>, transform_indices = @transform_14, window_bounds = array<i64: 1, 16>}, {transform_indices = @transform_15, window_bounds = array<i64: 1, 256, 16>}]} {
    %c0 = arith.constant 0 : index
    %c0_0 = arith.constant 0 : index
    %c0_1 = arith.constant 0 : index
    %0 = vector.load %arg1[%c0, %c0_0, %c0_1] : memref<1x256x4xf32, #tpu.memory_space<vmem>>, vector<1x256x4xf32>
    %1 = vector.shape_cast %0 : vector<1x256x4xf32> to vector<256x4xf32>
    %c0_2 = arith.constant 0 : index
    %c0_3 = arith.constant 0 : index
    %2 = vector.load %arg2[%c0_2, %c0_3] : memref<4x16xf32, #tpu.memory_space<vmem>>, vector<4x16xf32>
    %cst = arith.constant dense<0.000000e+00> : vector<256x16xf32>
    %3 = tpu.matmul %1, %2, %cst {dimension_numbers = #tpu.dot_dimension_numbers<[1], [0], [0], [1], [0, 0, 1, 1], [], []>} : vector<256x4xf32>, vector<4x16xf32>, vector<256x16xf32> -> vector<256x16xf32>
    %c0_4 = arith.constant 0 : index
    %c0_5 = arith.constant 0 : index
    %4 = vector.load %arg3[%c0_4, %c0_5] : memref<1x16xf32, #tpu.memory_space<vmem>>, vector<1x16xf32>
    %5 = vector.broadcast %4 : vector<1x16xf32> to vector<256x16xf32>
    %6 = arith.addf %3, %5 : vector<256x16xf32>
    %cst_6 = arith.constant 0.000000e+00 : f32
    %7 = vector.broadcast %cst_6 : f32 to vector<256x16xf32>
    %8 = arith.maximumf %6, %7 : vector<256x16xf32>
    %cst_7 = arith.constant dense<0.000000e+00> : vector<16xf32>
    %9 = vector.multi_reduction <add>, %8, %cst_7 [0] : vector<256x16xf32> to vector<16xf32>
    %10 = vector.shape_cast %9 : vector<16xf32> to vector<1x16xf32>
    %cst_8 = arith.constant 2.560000e+02 : f32
    %11 = vector.broadcast %cst_8 : f32 to vector<1x16xf32>
    %12 = arith.divf %10, %11 : vector<1x16xf32>
    %cst_9 = arith.constant dense<0xFF800000> : vector<16xf32>
    %13 = vector.multi_reduction <maximumf>, %8, %cst_9 [0] : vector<256x16xf32> to vector<16xf32>
    %14 = vector.shape_cast %13 : vector<16xf32> to vector<1x16xf32>
    %15 = tpu.iota {dimensions = array<i32: 0>} : vector<2x16xi32>
    %c0_i32 = arith.constant 0 : i32
    %16 = vector.broadcast %c0_i32 : i32 to vector<2x16xi32>
    %17 = arith.cmpi eq, %15, %16 : vector<2x16xi32>
    %18 = vector.shape_cast %12 : vector<1x16xf32> to vector<1x16xf32>
    %19 = vector.broadcast %18 : vector<1x16xf32> to vector<2x16xf32>
    %20 = vector.shape_cast %14 : vector<1x16xf32> to vector<1x16xf32>
    %21 = vector.broadcast %20 : vector<1x16xf32> to vector<2x16xf32>
    %22 = arith.select %17, %19, %21 : vector<2x16xi1>, vector<2x16xf32>
    %c0_10 = arith.constant 0 : index
    %c0_11 = arith.constant 0 : index
    %23 = vector.load %arg4[%c0_10, %c0_11] : memref<16x4xf32, #tpu.memory_space<vmem>>, vector<16x4xf32>
    %cst_12 = arith.constant dense<0.000000e+00> : vector<2x4xf32>
    %24 = tpu.matmul %22, %23, %cst_12 {dimension_numbers = #tpu.dot_dimension_numbers<[1], [0], [0], [1], [0, 0, 1, 1], [], []>} : vector<2x16xf32>, vector<16x4xf32>, vector<2x4xf32> -> vector<2x4xf32>
    %cst_13 = arith.constant 0.000000e+00 : f32
    %25 = vector.broadcast %cst_13 : f32 to vector<2x4xf32>
    %26 = arith.maximumf %24, %25 : vector<2x4xf32>
    %c0_14 = arith.constant 0 : index
    %c0_15 = arith.constant 0 : index
    %27 = vector.load %arg5[%c0_14, %c0_15] : memref<4x16xf32, #tpu.memory_space<vmem>>, vector<4x16xf32>
    %cst_16 = arith.constant dense<0.000000e+00> : vector<2x16xf32>
    %28 = tpu.matmul %26, %27, %cst_16 {dimension_numbers = #tpu.dot_dimension_numbers<[1], [0], [0], [1], [0, 0, 1, 1], [], []>} : vector<2x4xf32>, vector<4x16xf32>, vector<2x16xf32> -> vector<2x16xf32>
    %29 = vector.extract_strided_slice %28 {offsets = [0, 0], sizes = [1, 16], strides = [1, 1]} : vector<2x16xf32> to vector<1x16xf32>
    %30 = vector.extract_strided_slice %28 {offsets = [1, 0], sizes = [1, 16], strides = [1, 1]} : vector<2x16xf32> to vector<1x16xf32>
    %31 = arith.addf %29, %30 : vector<1x16xf32>
    %32 = arith.negf %31 : vector<1x16xf32>
    %33 = math.exp %32 : vector<1x16xf32>
    %cst_17 = arith.constant 1.000000e+00 : f32
    %34 = vector.broadcast %cst_17 : f32 to vector<1x16xf32>
    %35 = arith.addf %34, %33 : vector<1x16xf32>
    %36 = arith.divf %34, %35 : vector<1x16xf32>
    %37 = vector.broadcast %36 : vector<1x16xf32> to vector<256x16xf32>
    %38 = arith.mulf %8, %37 : vector<256x16xf32>
    %cst_18 = arith.constant dense<0.000000e+00> : vector<256xf32>
    %39 = vector.multi_reduction <add>, %38, %cst_18 [1] : vector<256x16xf32> to vector<256xf32>
    %40 = vector.shape_cast %39 : vector<256xf32> to vector<256x1xf32>
    %cst_19 = arith.constant 1.600000e+01 : f32
    %41 = vector.broadcast %cst_19 : f32 to vector<256x1xf32>
    %42 = arith.divf %40, %41 : vector<256x1xf32>
    %cst_20 = arith.constant dense<0xFF800000> : vector<256xf32>
    %43 = vector.multi_reduction <maximumf>, %38, %cst_20 [1] : vector<256x16xf32> to vector<256xf32>
    %44 = vector.shape_cast %43 : vector<256xf32> to vector<256x1xf32>
    %c0_21 = arith.constant 0 : index
    %c0_22 = arith.constant 0 : index
    %45 = vector.load %arg6[%c0_21, %c0_22] : memref<256x256xf32, #tpu.memory_space<vmem>>, vector<256x256xf32>
    %cst_23 = arith.constant dense<0.000000e+00> : vector<256x1xf32>
    %46 = tpu.matmul %45, %42, %cst_23 {dimension_numbers = #tpu.dot_dimension_numbers<[1], [0], [0], [1], [0, 0, 1, 1], [], []>} : vector<256x256xf32>, vector<256x1xf32>, vector<256x1xf32> -> vector<256x1xf32>
    %c0_24 = arith.constant 0 : index
    %c0_25 = arith.constant 0 : index
    %47 = vector.load %arg7[%c0_24, %c0_25] : memref<256x256xf32, #tpu.memory_space<vmem>>, vector<256x256xf32>
    %cst_26 = arith.constant dense<0.000000e+00> : vector<256x1xf32>
    %48 = tpu.matmul %47, %44, %cst_26 {dimension_numbers = #tpu.dot_dimension_numbers<[1], [0], [0], [1], [0, 0, 1, 1], [], []>} : vector<256x256xf32>, vector<256x1xf32>, vector<256x1xf32> -> vector<256x1xf32>
    %49 = arith.addf %46, %48 : vector<256x1xf32>
    %50 = arith.negf %49 : vector<256x1xf32>
    %51 = math.exp %50 : vector<256x1xf32>
    %cst_27 = arith.constant 1.000000e+00 : f32
    %52 = vector.broadcast %cst_27 : f32 to vector<256x1xf32>
    %53 = arith.addf %52, %51 : vector<256x1xf32>
    %54 = arith.divf %52, %53 : vector<256x1xf32>
    %55 = vector.broadcast %54 : vector<256x1xf32> to vector<256x16xf32>
    %56 = arith.mulf %38, %55 : vector<256x16xf32>
    %c0_i32_28 = arith.constant 0 : i32
    %57 = arith.cmpi eq, %arg0, %c0_i32_28 : i32
    %58 = arith.extui %57 : i1 to i32
    %c0_i32_29 = arith.constant 0 : i32
    %59 = arith.cmpi ne, %58, %c0_i32_29 : i32
    scf.if %59 {
      %cst_108 = arith.constant 0.000000e+00 : f32
      %204 = vector.broadcast %cst_108 : f32 to vector<24x16xf32>
      %c0_109 = arith.constant 0 : index
      %c0_110 = arith.constant 0 : index
      %205 = vector.load %arg17[%c0_109, %c0_110] : memref<304x16xf32, #tpu.memory_space<vmem>>, vector<24x16xf32>
      tpu.vector_store %arg17[%c0_109, %c0_110], %204 {strides = array<i32>} : memref<304x16xf32, #tpu.memory_space<vmem>>, vector<24x16xf32>,
      %cst_111 = arith.constant 0.000000e+00 : f32
      %206 = vector.broadcast %cst_111 : f32 to vector<24x16xf32>
      %c280 = arith.constant 280 : index
      %c0_112 = arith.constant 0 : index
      %207 = vector.load %arg17[%c280, %c0_112] : memref<304x16xf32, #tpu.memory_space<vmem>>, vector<24x16xf32>
      tpu.vector_store %arg17[%c280, %c0_112], %206 {strides = array<i32>} : memref<304x16xf32, #tpu.memory_space<vmem>>, vector<24x16xf32>,
    } else {
    }
    %c24 = arith.constant 24 : index
    %c0_30 = arith.constant 0 : index
    %60 = vector.load %arg17[%c24, %c0_30] : memref<304x16xf32, #tpu.memory_space<vmem>>, vector<256x16xf32>
    tpu.vector_store %arg17[%c24, %c0_30], %56 {strides = array<i32>} : memref<304x16xf32, #tpu.memory_space<vmem>>, vector<256x16xf32>,
    %61 = tpu.iota {dimensions = array<i32: 0>} : vector<256x1xi32>
    %c16_i32 = arith.constant 16 : i32
    %c0_i32_31 = arith.constant 0 : i32
    %62 = arith.cmpi eq, %c16_i32, %c0_i32_31 : i32
    %c1_i32 = arith.constant 1 : i32
    %63 = arith.select %62, %c1_i32, %c16_i32 : i32
    %64 = vector.broadcast %63 : i32 to vector<256x1xi32>
    %65 = arith.remsi %61, %64 : vector<256x1xi32>
    %c0_i32_32 = arith.constant 0 : i32
    %66 = vector.broadcast %c0_i32_32 : i32 to vector<256x1xi32>
    %67 = arith.cmpi ne, %65, %66 : vector<256x1xi32>
    %c0_i32_33 = arith.constant 0 : i32
    %68 = vector.broadcast %c0_i32_33 : i32 to vector<256x1xi32>
    %69 = arith.cmpi slt, %65, %68 : vector<256x1xi32>
    %c0_i32_34 = arith.constant 0 : i32
    %70 = arith.cmpi slt, %63, %c0_i32_34 : i32
    %71 = vector.broadcast %70 : i1 to vector<256x1xi1>
    %72 = vector.broadcast %71 : vector<256x1xi1> to vector<256x1xi1>
    %73 = arith.xori %69, %72 : vector<256x1xi1>
    %74 = arith.andi %73, %67 : vector<256x1xi1>
    %75 = vector.broadcast %63 : i32 to vector<256x1xi32>
    %76 = arith.addi %65, %75 : vector<256x1xi32>
    %77 = arith.select %74, %76, %65 : vector<256x1xi1>, vector<256x1xi32>
    %c0_i32_35 = arith.constant 0 : i32
    %78 = vector.broadcast %c0_i32_35 : i32 to vector<256x1xi32>
    %79 = arith.cmpi ne, %77, %78 : vector<256x1xi32>
    %80 = arith.extui %79 : vector<256x1xi1> to vector<256x1xi32>
    %81 = arith.sitofp %80 : vector<256x1xi32> to vector<256x1xf32>
    %c15_i32 = arith.constant 15 : i32
    %82 = vector.broadcast %c15_i32 : i32 to vector<256x1xi32>
    %83 = arith.cmpi ne, %77, %82 : vector<256x1xi32>
    %84 = arith.extui %83 : vector<256x1xi1> to vector<256x1xi32>
    %85 = arith.sitofp %84 : vector<256x1xi32> to vector<256x1xf32>
    %c4 = arith.constant 4 : index
    %c0_36 = arith.constant 0 : index
    %c0_37 = arith.constant 0 : index
    %86 = vector.load %arg8[%c4, %c0_36, %c0_37] : memref<9x16x16xf32, #tpu.memory_space<vmem>>, vector<1x16x16xf32>
    %87 = vector.shape_cast %86 : vector<1x16x16xf32> to vector<16x16xf32>
    %cst_38 = arith.constant dense<0.000000e+00> : vector<256x16xf32>
    %88 = tpu.matmul %56, %87, %cst_38 {dimension_numbers = #tpu.dot_dimension_numbers<[1], [0], [0], [1], [0, 0, 1, 1], [], []>} : vector<256x16xf32>, vector<16x16xf32>, vector<256x16xf32> -> vector<256x16xf32>
    %c7 = arith.constant 7 : index
    %c0_39 = arith.constant 0 : index
    %89 = vector.load %arg17[%c7, %c0_39] : memref<304x16xf32, #tpu.memory_space<vmem>>, vector<256x16xf32>
    %90 = vector.broadcast %81 : vector<256x1xf32> to vector<256x16xf32>
    %91 = arith.mulf %89, %90 : vector<256x16xf32>
    %c0_40 = arith.constant 0 : index
    %c0_41 = arith.constant 0 : index
    %c0_42 = arith.constant 0 : index
    %92 = vector.load %arg8[%c0_40, %c0_41, %c0_42] : memref<9x16x16xf32, #tpu.memory_space<vmem>>, vector<1x16x16xf32>
    %93 = vector.shape_cast %92 : vector<1x16x16xf32> to vector<16x16xf32>
    %cst_43 = arith.constant dense<0.000000e+00> : vector<256x16xf32>
    %94 = tpu.matmul %91, %93, %cst_43 {dimension_numbers = #tpu.dot_dimension_numbers<[1], [0], [0], [1], [0, 0, 1, 1], [], []>} : vector<256x16xf32>, vector<16x16xf32>, vector<256x16xf32> -> vector<256x16xf32>
    %95 = arith.addf %88, %94 : vector<256x16xf32>
    %c8 = arith.constant 8 : index
    %c0_44 = arith.constant 0 : index
    %96 = vector.load %arg17[%c8, %c0_44] : memref<304x16xf32, #tpu.memory_space<vmem>>, vector<256x16xf32>
    %c1 = arith.constant 1 : index
    %c0_45 = arith.constant 0 : index
    %c0_46 = arith.constant 0 : index
    %97 = vector.load %arg8[%c1, %c0_45, %c0_46] : memref<9x16x16xf32, #tpu.memory_space<vmem>>, vector<1x16x16xf32>
    %98 = vector.shape_cast %97 : vector<1x16x16xf32> to vector<16x16xf32>
    %cst_47 = arith.constant dense<0.000000e+00> : vector<256x16xf32>
    %99 = tpu.matmul %96, %98, %cst_47 {dimension_numbers = #tpu.dot_dimension_numbers<[1], [0], [0], [1], [0, 0, 1, 1], [], []>} : vector<256x16xf32>, vector<16x16xf32>, vector<256x16xf32> -> vector<256x16xf32>
    %100 = arith.addf %95, %99 : vector<256x16xf32>
    %c9 = arith.constant 9 : index
    %c0_48 = arith.constant 0 : index
    %101 = vector.load %arg17[%c9, %c0_48] : memref<304x16xf32, #tpu.memory_space<vmem>>, vector<256x16xf32>
    %102 = vector.broadcast %85 : vector<256x1xf32> to vector<256x16xf32>
    %103 = arith.mulf %101, %102 : vector<256x16xf32>
    %c2 = arith.constant 2 : index
    %c0_49 = arith.constant 0 : index
    %c0_50 = arith.constant 0 : index
    %104 = vector.load %arg8[%c2, %c0_49, %c0_50] : memref<9x16x16xf32, #tpu.memory_space<vmem>>, vector<1x16x16xf32>
    %105 = vector.shape_cast %104 : vector<1x16x16xf32> to vector<16x16xf32>
    %cst_51 = arith.constant dense<0.000000e+00> : vector<256x16xf32>
    %106 = tpu.matmul %103, %105, %cst_51 {dimension_numbers = #tpu.dot_dimension_numbers<[1], [0], [0], [1], [0, 0, 1, 1], [], []>} : vector<256x16xf32>, vector<16x16xf32>, vector<256x16xf32> -> vector<256x16xf32>
    %107 = arith.addf %100, %106 : vector<256x16xf32>
    %c23 = arith.constant 23 : index
    %c0_52 = arith.constant 0 : index
    %108 = vector.load %arg17[%c23, %c0_52] : memref<304x16xf32, #tpu.memory_space<vmem>>, vector<256x16xf32>
    %109 = vector.broadcast %81 : vector<256x1xf32> to vector<256x16xf32>
    %110 = arith.mulf %108, %109 : vector<256x16xf32>
    %c3 = arith.constant 3 : index
    %c0_53 = arith.constant 0 : index
    %c0_54 = arith.constant 0 : index
    %111 = vector.load %arg8[%c3, %c0_53, %c0_54] : memref<9x16x16xf32, #tpu.memory_space<vmem>>, vector<1x16x16xf32>
    %112 = vector.shape_cast %111 : vector<1x16x16xf32> to vector<16x16xf32>
    %cst_55 = arith.constant dense<0.000000e+00> : vector<256x16xf32>
    %113 = tpu.matmul %110, %112, %cst_55 {dimension_numbers = #tpu.dot_dimension_numbers<[1], [0], [0], [1], [0, 0, 1, 1], [], []>} : vector<256x16xf32>, vector<16x16xf32>, vector<256x16xf32> -> vector<256x16xf32>
    %114 = arith.addf %107, %113 : vector<256x16xf32>
    %c25 = arith.constant 25 : index
    %c0_56 = arith.constant 0 : index
    %115 = vector.load %arg17[%c25, %c0_56] : memref<304x16xf32, #tpu.memory_space<vmem>>, vector<256x16xf32>
    %116 = vector.broadcast %85 : vector<256x1xf32> to vector<256x16xf32>
    %117 = arith.mulf %115, %116 : vector<256x16xf32>
    %c5 = arith.constant 5 : index
    %c0_57 = arith.constant 0 : index
    %c0_58 = arith.constant 0 : index
    %118 = vector.load %arg8[%c5, %c0_57, %c0_58] : memref<9x16x16xf32, #tpu.memory_space<vmem>>, vector<1x16x16xf32>
    %119 = vector.shape_cast %118 : vector<1x16x16xf32> to vector<16x16xf32>
    %cst_59 = arith.constant dense<0.000000e+00> : vector<256x16xf32>
    %120 = tpu.matmul %117, %119, %cst_59 {dimension_numbers = #tpu.dot_dimension_numbers<[1], [0], [0], [1], [0, 0, 1, 1], [], []>} : vector<256x16xf32>, vector<16x16xf32>, vector<256x16xf32> -> vector<256x16xf32>
    %121 = arith.addf %114, %120 : vector<256x16xf32>
    %c39 = arith.constant 39 : index
    %c0_60 = arith.constant 0 : index
    %122 = vector.load %arg17[%c39, %c0_60] : memref<304x16xf32, #tpu.memory_space<vmem>>, vector<256x16xf32>
    %123 = vector.broadcast %81 : vector<256x1xf32> to vector<256x16xf32>
    %124 = arith.mulf %122, %123 : vector<256x16xf32>
    %c6 = arith.constant 6 : index
    %c0_61 = arith.constant 0 : index
    %c0_62 = arith.constant 0 : index
    %125 = vector.load %arg8[%c6, %c0_61, %c0_62] : memref<9x16x16xf32, #tpu.memory_space<vmem>>, vector<1x16x16xf32>
    %126 = vector.shape_cast %125 : vector<1x16x16xf32> to vector<16x16xf32>
    %cst_63 = arith.constant dense<0.000000e+00> : vector<256x16xf32>
    %127 = tpu.matmul %124, %126, %cst_63 {dimension_numbers = #tpu.dot_dimension_numbers<[1], [0], [0], [1], [0, 0, 1, 1], [], []>} : vector<256x16xf32>, vector<16x16xf32>, vector<256x16xf32> -> vector<256x16xf32>
    %128 = arith.addf %121, %127 : vector<256x16xf32>
    %c40 = arith.constant 40 : index
    %c0_64 = arith.constant 0 : index
    %129 = vector.load %arg17[%c40, %c0_64] : memref<304x16xf32, #tpu.memory_space<vmem>>, vector<256x16xf32>
    %c7_65 = arith.constant 7 : index
    %c0_66 = arith.constant 0 : index
    %c0_67 = arith.constant 0 : index
    %130 = vector.load %arg8[%c7_65, %c0_66, %c0_67] : memref<9x16x16xf32, #tpu.memory_space<vmem>>, vector<1x16x16xf32>
    %131 = vector.shape_cast %130 : vector<1x16x16xf32> to vector<16x16xf32>
    %cst_68 = arith.constant dense<0.000000e+00> : vector<256x16xf32>
    %132 = tpu.matmul %129, %131, %cst_68 {dimension_numbers = #tpu.dot_dimension_numbers<[1], [0], [0], [1], [0, 0, 1, 1], [], []>} : vector<256x16xf32>, vector<16x16xf32>, vector<256x16xf32> -> vector<256x16xf32>
    %133 = arith.addf %128, %132 : vector<256x16xf32>
    %c41 = arith.constant 41 : index
    %c0_69 = arith.constant 0 : index
    %134 = vector.load %arg17[%c41, %c0_69] : memref<304x16xf32, #tpu.memory_space<vmem>>, vector<256x16xf32>
    %135 = vector.broadcast %85 : vector<256x1xf32> to vector<256x16xf32>
    %136 = arith.mulf %134, %135 : vector<256x16xf32>
    %c8_70 = arith.constant 8 : index
    %c0_71 = arith.constant 0 : index
    %c0_72 = arith.constant 0 : index
    %137 = vector.load %arg8[%c8_70, %c0_71, %c0_72] : memref<9x16x16xf32, #tpu.memory_space<vmem>>, vector<1x16x16xf32>
    %138 = vector.shape_cast %137 : vector<1x16x16xf32> to vector<16x16xf32>
    %cst_73 = arith.constant dense<0.000000e+00> : vector<256x16xf32>
    %139 = tpu.matmul %136, %138, %cst_73 {dimension_numbers = #tpu.dot_dimension_numbers<[1], [0], [0], [1], [0, 0, 1, 1], [], []>} : vector<256x16xf32>, vector<16x16xf32>, vector<256x16xf32> -> vector<256x16xf32>
    %140 = arith.addf %133, %139 : vector<256x16xf32>
    %c0_74 = arith.constant 0 : index
    %c0_75 = arith.constant 0 : index
    %141 = vector.load %arg9[%c0_74, %c0_75] : memref<1x16xf32, #tpu.memory_space<vmem>>, vector<1x16xf32>
    %142 = vector.broadcast %141 : vector<1x16xf32> to vector<256x16xf32>
    %143 = arith.addf %140, %142 : vector<256x16xf32>
    %cst_76 = arith.constant 0.000000e+00 : f32
    %144 = vector.broadcast %cst_76 : f32 to vector<256x16xf32>
    %145 = arith.maximumf %143, %144 : vector<256x16xf32>
    %cst_77 = arith.constant dense<0.000000e+00> : vector<16xf32>
    %146 = vector.multi_reduction <add>, %145, %cst_77 [0] : vector<256x16xf32> to vector<16xf32>
    %147 = vector.shape_cast %146 : vector<16xf32> to vector<1x16xf32>
    %cst_78 = arith.constant 2.560000e+02 : f32
    %148 = vector.broadcast %cst_78 : f32 to vector<1x16xf32>
    %149 = arith.divf %147, %148 : vector<1x16xf32>
    %cst_79 = arith.constant dense<0xFF800000> : vector<16xf32>
    %150 = vector.multi_reduction <maximumf>, %145, %cst_79 [0] : vector<256x16xf32> to vector<16xf32>
    %151 = vector.shape_cast %150 : vector<16xf32> to vector<1x16xf32>
    %152 = tpu.iota {dimensions = array<i32: 0>} : vector<2x16xi32>
    %c0_i32_80 = arith.constant 0 : i32
    %153 = vector.broadcast %c0_i32_80 : i32 to vector<2x16xi32>
    %154 = arith.cmpi eq, %152, %153 : vector<2x16xi32>
    %155 = vector.shape_cast %149 : vector<1x16xf32> to vector<1x16xf32>
    %156 = vector.broadcast %155 : vector<1x16xf32> to vector<2x16xf32>
    %157 = vector.shape_cast %151 : vector<1x16xf32> to vector<1x16xf32>
    %158 = vector.broadcast %157 : vector<1x16xf32> to vector<2x16xf32>
    %159 = arith.select %154, %156, %158 : vector<2x16xi1>, vector<2x16xf32>
    %c0_81 = arith.constant 0 : index
    %c0_82 = arith.constant 0 : index
    %160 = vector.load %arg10[%c0_81, %c0_82] : memref<16x4xf32, #tpu.memory_space<vmem>>, vector<16x4xf32>
    %cst_83 = arith.constant dense<0.000000e+00> : vector<2x4xf32>
    %161 = tpu.matmul %159, %160, %cst_83 {dimension_numbers = #tpu.dot_dimension_numbers<[1], [0], [0], [1], [0, 0, 1, 1], [], []>} : vector<2x16xf32>, vector<16x4xf32>, vector<2x4xf32> -> vector<2x4xf32>
    %cst_84 = arith.constant 0.000000e+00 : f32
    %162 = vector.broadcast %cst_84 : f32 to vector<2x4xf32>
    %163 = arith.maximumf %161, %162 : vector<2x4xf32>
    %c0_85 = arith.constant 0 : index
    %c0_86 = arith.constant 0 : index
    %164 = vector.load %arg11[%c0_85, %c0_86] : memref<4x16xf32, #tpu.memory_space<vmem>>, vector<4x16xf32>
    %cst_87 = arith.constant dense<0.000000e+00> : vector<2x16xf32>
    %165 = tpu.matmul %163, %164, %cst_87 {dimension_numbers = #tpu.dot_dimension_numbers<[1], [0], [0], [1], [0, 0, 1, 1], [], []>} : vector<2x4xf32>, vector<4x16xf32>, vector<2x16xf32> -> vector<2x16xf32>
    %166 = vector.extract_strided_slice %165 {offsets = [0, 0], sizes = [1, 16], strides = [1, 1]} : vector<2x16xf32> to vector<1x16xf32>
    %167 = vector.extract_strided_slice %165 {offsets = [1, 0], sizes = [1, 16], strides = [1, 1]} : vector<2x16xf32> to vector<1x16xf32>
    %168 = arith.addf %166, %167 : vector<1x16xf32>
    %169 = arith.negf %168 : vector<1x16xf32>
    %170 = math.exp %169 : vector<1x16xf32>
    %cst_88 = arith.constant 1.000000e+00 : f32
    %171 = vector.broadcast %cst_88 : f32 to vector<1x16xf32>
    %172 = arith.addf %171, %170 : vector<1x16xf32>
    %173 = arith.divf %171, %172 : vector<1x16xf32>
    %174 = vector.broadcast %173 : vector<1x16xf32> to vector<256x16xf32>
    %175 = arith.mulf %145, %174 : vector<256x16xf32>
    %cst_89 = arith.constant dense<0.000000e+00> : vector<256xf32>
    %176 = vector.multi_reduction <add>, %175, %cst_89 [1] : vector<256x16xf32> to vector<256xf32>
    %177 = vector.shape_cast %176 : vector<256xf32> to vector<256x1xf32>
    %cst_90 = arith.constant 1.600000e+01 : f32
    %178 = vector.broadcast %cst_90 : f32 to vector<256x1xf32>
    %179 = arith.divf %177, %178 : vector<256x1xf32>
    %cst_91 = arith.constant dense<0xFF800000> : vector<256xf32>
    %180 = vector.multi_reduction <maximumf>, %175, %cst_91 [1] : vector<256x16xf32> to vector<256xf32>
    %181 = vector.shape_cast %180 : vector<256xf32> to vector<256x1xf32>
    %c0_92 = arith.constant 0 : index
    %c0_93 = arith.constant 0 : index
    %182 = vector.load %arg12[%c0_92, %c0_93] : memref<256x256xf32, #tpu.memory_space<vmem>>, vector<256x256xf32>
    %cst_94 = arith.constant dense<0.000000e+00> : vector<256x1xf32>
    %183 = tpu.matmul %182, %179, %cst_94 {dimension_numbers = #tpu.dot_dimension_numbers<[1], [0], [0], [1], [0, 0, 1, 1], [], []>} : vector<256x256xf32>, vector<256x1xf32>, vector<256x1xf32> -> vector<256x1xf32>
    %c0_95 = arith.constant 0 : index
    %c0_96 = arith.constant 0 : index
    %184 = vector.load %arg13[%c0_95, %c0_96] : memref<256x256xf32, #tpu.memory_space<vmem>>, vector<256x256xf32>
    %cst_97 = arith.constant dense<0.000000e+00> : vector<256x1xf32>
    %185 = tpu.matmul %184, %181, %cst_97 {dimension_numbers = #tpu.dot_dimension_numbers<[1], [0], [0], [1], [0, 0, 1, 1], [], []>} : vector<256x256xf32>, vector<256x1xf32>, vector<256x1xf32> -> vector<256x1xf32>
    %186 = arith.addf %183, %185 : vector<256x1xf32>
    %187 = arith.negf %186 : vector<256x1xf32>
    %188 = math.exp %187 : vector<256x1xf32>
    %cst_98 = arith.constant 1.000000e+00 : f32
    %189 = vector.broadcast %cst_98 : f32 to vector<256x1xf32>
    %190 = arith.addf %189, %188 : vector<256x1xf32>
    %191 = arith.divf %189, %190 : vector<256x1xf32>
    %192 = vector.broadcast %191 : vector<256x1xf32> to vector<256x16xf32>
    %193 = arith.mulf %175, %192 : vector<256x16xf32>
    %c0_99 = arith.constant 0 : index
    %c0_100 = arith.constant 0 : index
    %194 = vector.load %arg14[%c0_99, %c0_100] : memref<16x16xf32, #tpu.memory_space<vmem>>, vector<16x16xf32>
    %cst_101 = arith.constant dense<0.000000e+00> : vector<256x16xf32>
    %195 = tpu.matmul %193, %194, %cst_101 {dimension_numbers = #tpu.dot_dimension_numbers<[1], [0], [0], [1], [0, 0, 1, 1], [], []>} : vector<256x16xf32>, vector<16x16xf32>, vector<256x16xf32> -> vector<256x16xf32>
    %c0_102 = arith.constant 0 : index
    %c0_103 = arith.constant 0 : index
    %196 = vector.load %arg15[%c0_102, %c0_103] : memref<1x16xf32, #tpu.memory_space<vmem>>, vector<1x16xf32>
    %197 = vector.broadcast %196 : vector<1x16xf32> to vector<256x16xf32>
    %198 = arith.addf %195, %197 : vector<256x16xf32>
    %cst_104 = arith.constant 0.000000e+00 : f32
    %199 = vector.broadcast %cst_104 : f32 to vector<256x16xf32>
    %200 = arith.maximumf %198, %199 : vector<256x16xf32>
    %c0_105 = arith.constant 0 : index
    %c0_106 = arith.constant 0 : index
    %c0_107 = arith.constant 0 : index
    %201 = vector.load %arg16[%c0_105, %c0_106, %c0_107] : memref<1x256x16xf32, #tpu.memory_space<vmem>>, vector<1x256x16xf32>
    %202 = vector.shape_cast %201 : vector<1x256x16xf32> to vector<256x16xf32>
    %203 = vector.shape_cast %200 : vector<256x16xf32> to vector<1x256x16xf32>
    tpu.vector_store %arg16[%c0_105, %c0_106, %c0_107], %203 {strides = array<i32>} : memref<1x256x16xf32, #tpu.memory_space<vmem>>, vector<1x256x16xf32>,
    return
  }
  func.func @transform_0(%arg0: i32) -> (i32, i32, i32) {
    %c0_i32 = arith.constant 0 : i32
    %c0_i32_0 = arith.constant 0 : i32
    %c0_i32_1 = arith.constant 0 : i32
    return %arg0, %c0_i32, %c0_i32_0 : i32, i32, i32
  }
  func.func @transform_1(%arg0: i32) -> (i32, i32) {
    %c0_i32 = arith.constant 0 : i32
    %c0_i32_0 = arith.constant 0 : i32
    %c0_i32_1 = arith.constant 0 : i32
    return %c0_i32, %c0_i32_0 : i32, i32
  }
  func.func @transform_2(%arg0: i32) -> (i32, i32) {
    %c0_i32 = arith.constant 0 : i32
    %c0_i32_0 = arith.constant 0 : i32
    %c0_i32_1 = arith.constant 0 : i32
    return %c0_i32, %c0_i32_0 : i32, i32
  }
  func.func @transform_3(%arg0: i32) -> (i32, i32) {
    %c0_i32 = arith.constant 0 : i32
    %c0_i32_0 = arith.constant 0 : i32
    %c0_i32_1 = arith.constant 0 : i32
    return %c0_i32, %c0_i32_0 : i32, i32
  }
  func.func @transform_4(%arg0: i32) -> (i32, i32) {
    %c0_i32 = arith.constant 0 : i32
    %c0_i32_0 = arith.constant 0 : i32
    %c0_i32_1 = arith.constant 0 : i32
    return %c0_i32, %c0_i32_0 : i32, i32
  }
  func.func @transform_5(%arg0: i32) -> (i32, i32) {
    %c0_i32 = arith.constant 0 : i32
    %c0_i32_0 = arith.constant 0 : i32
    %c0_i32_1 = arith.constant 0 : i32
    return %c0_i32, %c0_i32_0 : i32, i32
  }
  func.func @transform_6(%arg0: i32) -> (i32, i32) {
    %c0_i32 = arith.constant 0 : i32
    %c0_i32_0 = arith.constant 0 : i32
    %c0_i32_1 = arith.constant 0 : i32
    return %c0_i32, %c0_i32_0 : i32, i32
  }
  func.func @transform_7(%arg0: i32) -> (i32, i32, i32) {
    %c0_i32 = arith.constant 0 : i32
    %c0_i32_0 = arith.constant 0 : i32
    %c0_i32_1 = arith.constant 0 : i32
    %c0_i32_2 = arith.constant 0 : i32
    return %c0_i32, %c0_i32_0, %c0_i32_1 : i32, i32, i32
  }
  func.func @transform_8(%arg0: i32) -> (i32, i32) {
    %c0_i32 = arith.constant 0 : i32
    %c0_i32_0 = arith.constant 0 : i32
    %c0_i32_1 = arith.constant 0 : i32
    return %c0_i32, %c0_i32_0 : i32, i32
  }
  func.func @transform_9(%arg0: i32) -> (i32, i32) {
    %c0_i32 = arith.constant 0 : i32
    %c0_i32_0 = arith.constant 0 : i32
    %c0_i32_1 = arith.constant 0 : i32
    return %c0_i32, %c0_i32_0 : i32, i32
  }
  func.func @transform_10(%arg0: i32) -> (i32, i32) {
    %c0_i32 = arith.constant 0 : i32
    %c0_i32_0 = arith.constant 0 : i32
    %c0_i32_1 = arith.constant 0 : i32
    return %c0_i32, %c0_i32_0 : i32, i32
  }
  func.func @transform_11(%arg0: i32) -> (i32, i32) {
    %c0_i32 = arith.constant 0 : i32
    %c0_i32_0 = arith.constant 0 : i32
    %c0_i32_1 = arith.constant 0 : i32
    return %c0_i32, %c0_i32_0 : i32, i32
  }
  func.func @transform_12(%arg0: i32) -> (i32, i32) {
    %c0_i32 = arith.constant 0 : i32
    %c0_i32_0 = arith.constant 0 : i32
    %c0_i32_1 = arith.constant 0 : i32
    return %c0_i32, %c0_i32_0 : i32, i32
  }
  func.func @transform_13(%arg0: i32) -> (i32, i32) {
    %c0_i32 = arith.constant 0 : i32
    %c0_i32_0 = arith.constant 0 : i32
    %c0_i32_1 = arith.constant 0 : i32
    return %c0_i32, %c0_i32_0 : i32, i32
  }
  func.func @transform_14(%arg0: i32) -> (i32, i32) {
    %c0_i32 = arith.constant 0 : i32
    %c0_i32_0 = arith.constant 0 : i32
    %c0_i32_1 = arith.constant 0 : i32
    return %c0_i32, %c0_i32_0 : i32, i32
  }
  func.func @transform_15(%arg0: i32) -> (i32, i32, i32) {
    %c0_i32 = arith.constant 0 : i32
    %c0_i32_0 = arith.constant 0 : i32
    %c0_i32_1 = arith.constant 0 : i32
    return %arg0, %c0_i32, %c0_i32_0 : i32, i32, i32
  }
}

</mosaic_0001>

<bundles_post_ra>
// kernel: bottleneck_forward.1
= control target key start
LH: loop header
LB: loop body
LE: loop exit
PB: predicated region body
PF: predicated region fallthrough
CT: control target
= control target key end

     0   :  { %20 = vsyncpa [#allocation4], 0  ;;  %s14182_s0 = inlined_call_operand.vmem [shape: f32[2,256,4], index: 0, kind: input, shape index: {}]   ;;  %s14183_s1 = inlined_call_operand.vmem [shape: f32[4,16], index: 1, kind: input, shape index: {}]   ;;  %s14184_s2 = inlined_call_operand.vmem [shape: f32[1,16], index: 2, kind: input, shape index: {}]   ;;  %s14185_s3 = inlined_call_operand.vmem [shape: f32[16,4], index: 3, kind: input, shape index: {}]   ;;  %s14186_s4 = inlined_call_operand.vmem [shape: f32[4,16], index: 4, kind: input, shape index: {}]   ;;  %s14187_s5 = inlined_call_operand.vmem [shape: f32[256,256], index: 5, kind: input, shape index: {}]   ;;  %s14188_s6 = inlined_call_operand.hbm [shape: f32[256,256], index: 6, kind: input, shape index: {}]   ;;  %s14189_s7 = inlined_call_operand.vmem [shape: f32[9,16,16], index: 7, kind: input, shape index: {}]   ;;  %s14190_s8 = inlined_call_operand.vmem [shape: f32[1,16], index: 8, kind: input, shape index: {}]   ;;  %s14191_s9 = inlined_call_operand.vmem [shape: f32[16,4], index: 9, kind: input, shape index: {}]   ;;  %s14192_s10 = inlined_call_operand.vmem [shape: f32[4,16], index: 10, kind: input, shape index: {}]   ;;  %s14193_s11 = inlined_call_operand.hbm [shape: f32[256,256], index: 11, kind: input, shape index: {}]   ;;  %s14194_s12 = inlined_call_operand.hbm [shape: f32[256,256], index: 12, kind: input, shape index: {}]   ;;  %s14195_s13 = inlined_call_operand.vmem [shape: f32[16,16], index: 13, kind: input, shape index: {}]   ;;  %s14196_s14 = inlined_call_operand.vmem [shape: f32[1,16], index: 14, kind: input, shape index: {}]   ;;  %s14197_s15 = inlined_call_operand.vmem [shape: f32[2,256,16], index: 15, kind: output, shape index: {}]  }
   0x1   :  { %21 = vsyncpa [#allocation6], 0  ;;  %s10753_s18 = smov 0  }
   0x2 LB: > { %s10759_s19 = sadd.s32 4294967295, %s10662_s18   ;;  %p8782_p0 = scmp.ge.s32.totalorder %s10662_s18, 1  ;;  %s10662_s18 = sphi %s10753_s18, %s27_s18  }
   0x3   : > { %p378_p1 = scmp.lt.s32.totalorder %s10662_s18, 3  ;;  %p10279_p3 = scmp.eq.s32.totalorder %s10759_s19, 0 }
   0x4   : > { %s10664_s21 = smov [#allocation5]   ;;  %s10665_s23 = smov [#allocation3]  }
   0x5   : > { %p10765_p4 = pnand %p8782_p0, %p378_p1  ;;  %s430_s22 = sshll.u32 %s10664_s21, 4  ;;  %s431_s22 = int_to_ptr.vmem [resolvable:$true] %s430_s22 }
   0x6   : > { %s405_s24 = sshll.u32 %s10665_s23, 4  ;;  %s10666_s26 = smov [#allocation7]   ;;  %s406_s24 = int_to_ptr.vmem [resolvable:$true] %s405_s24 }
   0x7   : > { %p10269_p5 = pneg %p10765_p4  ;;  %s443_s27 = sshll.u32 %s10666_s26, 4  ;;  %s10777_s27 = int_to_ptr.vmem [resolvable:$true] %s443_s27 }
   0x8   : > { %s10581_s28 = scalar_lea.vmem %s431_s22, 8192  ;;  %p10589_p11 = scmp.lt.s32.totalorder %s431_s22, %s431_s22 }
   0x9   : > { %p10773_p6 = pnand %p10279_p3, %p10269_p5  ;;  %p10582_p8 = scmp.ne.s32.totalorder %s431_s22, %s10581_s28 }
   0xa   : > { %p10590_p12 = scmp.lt.s32.totalorder %s10581_s28, %s10581_s28 }
   0xb   : > { %p10572_p7 = pneg %p10773_p6 }
   0xc   : > { %p10591_p13 = por %p10590_p12, %p10589_p11 }
   0xd   : > { %p10584_p9 = pnand %p10582_p8, %p10572_p7 }
   0xf   : > { %p10585_p10 = pneg %p10584_p9 }
  0x11   : > { %p10592_p0 = pnand %p10591_p13, %p10585_p10 }
  0x13   : > { %10595 = shalt.err (!%p10592_p0)
}
  0x14   : > { %s10667_s29 = smov 256   ;;  %s10668_s30 = smov 16  }
  0x15   : > { %10275 = dma.hbm_to_vmem [thread:$0]  (!%p10773_p6), %s14193_s11, 8192, %s431_s22, [#allocation6], %s10667_s29, %s10667_s29, %s10668_s30  }
  0x16   : > { %s10607_s21 = scalar_lea.vmem %s406_s24, 8192  ;;  %p10615_p9 = scmp.lt.s32.totalorder %s406_s24, %s406_s24 }
  0x17   : > { %p10608_p1 = scmp.ne.s32.totalorder %s406_s24, %s10607_s21  ;;  %p10616_p2 = scmp.lt.s32.totalorder %s10607_s21, %s10607_s21 }
  0x19   : > { %p10610_p5 = pnand %p10608_p1, %p10572_p7  ;;  %p10617_p11 = por %p10616_p2, %p10615_p9 }
  0x1b   : > { %p10611_p8 = pneg %p10610_p5 }
  0x1d   : > { %p10618_p10 = pnand %p10617_p11, %p10611_p8 }
  0x1f   : > { %10621 = shalt.err (!%p10618_p10)
}
  0x20   : > { %10272 = dma.hbm_to_vmem [thread:$0]  (!%p10773_p6), %s14188_s6, 8192, %s406_s24, [#allocation4], %s10667_s29, %s10667_s29, %s10668_s30  }
  0x21   : > { %s10633_s22 = scalar_lea.vmem %s10777_s27, 8192  ;;  %p10641_p2 = scmp.lt.s32.totalorder %s10777_s27, %s10777_s27 }
  0x22   : > { %p10634_p12 = scmp.ne.s32.totalorder %s10777_s27, %s10633_s22  ;;  %p10642_p1 = scmp.lt.s32.totalorder %s10633_s22, %s10633_s22 }
  0x24   : > { %p10636_p13 = pnand %p10634_p12, %p10572_p7  ;;  %p10643_p5 = por %p10642_p1, %p10641_p2 }
  0x26   : > { %p10637_p0 = pneg %p10636_p13 }
  0x28   : > { %p10644_p8 = pnand %p10643_p5, %p10637_p0 }
  0x2a   : > { %10647 = shalt.err (!%p10644_p8)
}
  0x2b   : > { %10278 = dma.hbm_to_vmem [thread:$0]  (!%p10773_p6), %s14194_s12, 8192, %s10777_s27, [#allocation6], %s10667_s29, %s10667_s29, %s10668_s30  }
  0x2c   : > { %473 = sbr.rel (%p10765_p4) target bundleno = 3408 (0xd50), region = 80 }
  0x31   : > { %10653 = dma.done.wait (%p10279_p3), [#allocation4], 8192  }
  0x32   : > { %10655 = vsyncadd (%p10279_p3), [#allocation4], 4294959104 }
  0x33   : > { %10657 = dma.done.wait (%p10279_p3), [#allocation6], 16384  }
  0x34   : > { %10659 = vsyncadd (%p10279_p3), [#allocation6], 4294950912  ;;  %p529_p7 = scmp.lt.s32.totalorder %s10759_s19, 1  ;;  %vm676_vm0 = vcmask 1043456   ;;  %vm579_vm1 = vcmask 31744   ;;  %v1083_v33 = vld [vmem:[%s14185_s3 + $0x8] sm:$0xff] }
  0x35   : > { %v571_v0 = vld [vmem:[%s14183_s1] sm:$0xf]  ;;  %v14199_v34 = vmov 0.0   ;;  %vm10670_vm2 = vmmov 0   ;;  %vm937_vm3 = vcmask 130048   ;;  %p14270_p3 = scmp.ne.s32.totalorder %s10759_s19, 0 }
  0x36   : > { %s530_s24 = scalar_select %p529_p7, %s10759_s19, 1  ;;  %9659 = vmatprep.subr.msk.mxu0 %vm676_vm0, %v571_v0  ;;  %9709 = vmatprep.subr.mxu1 %v14199_v34  ;;  %v1082_v35 = vld [vmem:[%s14185_s3] sm:$0xff] }
  0x37   : > { %9660 = vmatpush3.msk.msra.mxu0 %vm676_vm0, %v571_v0  ;;  %9713 = vmatprep.mubr.msk.f32.mxu1 %vm10670_vm2, %v14199_v34  ;;  %v10916_v36 = vld [vmem:[%s14184_s2] ss:$0 sm:$0xff] }
  0x38   : > { %s9274_s25 = sshll.u32 %s530_s24, 8  ;;  %9710 = vmatpush3.msra.mxu1 %v1083_v33  ;;  %1634 = vmatprep.subr.mxu0 %v14199_v34 }
  0x39   : > { %s10825_s29 = scalar_lea.vmem %s14182_s0, %s9274_s25  ;;  %s10830_s21 = scalar_lea.vmem %s14197_s15, %s9274_s25  ;;  %9711 = vmatprep.subr.mxu1 %v14199_v34 }
  0x3a   : > { %v539_v1 = vld [vmem:[%s10825_s29] sm:$0xff]  ;;  %v540_v2 = vld [vmem:[%s10825_s29 + $0x8] sm:$0xff]  ;;  %v541_v3 = vld [vmem:[%s10825_s29 + $0x10] sm:$0xff]  ;;  %9712 = vmatpush3.msra.mxu1 %v1082_v35 }
  0x3b   : > { %9661 = vmatprep.mubr.msk.f32.mxu0 %vm579_vm1, %v539_v1  ;;  %v542_v4 = vld [vmem:[%s10825_s29 + $0x18] sm:$0xff]  ;;  %v543_v5 = vld [vmem:[%s10825_s29 + $0x20] sm:$0xff]  ;;  %v544_v6 = vld [vmem:[%s10825_s29 + $0x28] sm:$0xff]  ;;  %9716 = vmatprep.subr.mxu1 %v14199_v34 }
  0x3c   : > { %9662 = vmatmul.mubr.msk.f32.vlgmr.msra.gmra.mxu0 %vm579_vm1, %v540_v2  ;;  %v545_v7 = vld [vmem:[%s10825_s29 + $0x30] sm:$0xff]  ;;  %v546_v8 = vld [vmem:[%s10825_s29 + $0x38] sm:$0xff]  ;;  %v547_v9 = vld [vmem:[%s10825_s29 + $0x40] sm:$0xff] }
  0x3d   : > { %9664 = vmatprep.mubr.msk.f32.mxu0 %vm579_vm1, %v541_v3  ;;  %v548_v10 = vld [vmem:[%s10825_s29 + $0x48] sm:$0xff]  ;;  %v549_v11 = vld [vmem:[%s10825_s29 + $0x50] sm:$0xff]  ;;  %v550_v12 = vld [vmem:[%s10825_s29 + $0x58] sm:$0xff] }
  0x3e   : > { %v551_v13 = vld [vmem:[%s10825_s29 + $0x60] sm:$0xff]  ;;  %v552_v14 = vld [vmem:[%s10825_s29 + $0x68] sm:$0xff]  ;;  %v553_v15 = vld [vmem:[%s10825_s29 + $0x70] sm:$0xff] }
  0x3f   : > { %v554_v16 = vld [vmem:[%s10825_s29 + $0x78] sm:$0xff]  ;;  %v555_v17 = vld [vmem:[%s10825_s29 + $0x80] sm:$0xff]  ;;  %v556_v18 = vld [vmem:[%s10825_s29 + $0x88] sm:$0xff] }
  0x40   : > { %9665 = vmatmul.mubr.msk.f32.gmra.mxu0 %vm579_vm1, %v542_v4  ;;  %v557_v19 = vld [vmem:[%s10825_s29 + $0x90] sm:$0xff]  ;;  %v558_v20 = vld [vmem:[%s10825_s29 + $0x98] sm:$0xff]  ;;  %v559_v21 = vld [vmem:[%s10825_s29 + $0xa0] sm:$0xff] }
  0x41   : > { %9667 = vmatprep.mubr.msk.f32.mxu0 %vm579_vm1, %v543_v5  ;;  %v560_v22 = vld [vmem:[%s10825_s29 + $0xa8] sm:$0xff]  ;;  %v561_v23 = vld [vmem:[%s10825_s29 + $0xb0] sm:$0xff]  ;;  %v562_v24 = vld [vmem:[%s10825_s29 + $0xb8] sm:$0xff] }
  0x42   : > { %v563_v25 = vld [vmem:[%s10825_s29 + $0xc0] sm:$0xff]  ;;  %v564_v26 = vld [vmem:[%s10825_s29 + $0xc8] sm:$0xff]  ;;  %v565_v27 = vld [vmem:[%s10825_s29 + $0xd0] sm:$0xff] }
  0x43   : > { %v566_v28 = vld [vmem:[%s10825_s29 + $0xd8] sm:$0xff]  ;;  %v567_v29 = vld [vmem:[%s10825_s29 + $0xe0] sm:$0xff]  ;;  %v568_v30 = vld [vmem:[%s10825_s29 + $0xe8] sm:$0xff] }
  0x44   : > { %9668 = vmatmul.mubr.msk.f32.gmra.mxu0 %vm579_vm1, %v544_v6  ;;  %v569_v31 = vld [vmem:[%s10825_s29 + $0xf0] sm:$0xff]  ;;  %v570_v32 = vld [vmem:[%s10825_s29 + $0xf8] sm:$0xff] }
  0x45   : > { %9670 = vmatprep.mubr.msk.f32.mxu0 %vm579_vm1, %v545_v7 }
  0x48   : > { %9671 = vmatmul.mubr.msk.f32.gmra.mxu0 %vm579_vm1, %v546_v8 }
  0x49   : > { %9673 = vmatprep.mubr.msk.f32.mxu0 %vm579_vm1, %v547_v9 }
  0x4c   : > { %9674 = vmatmul.mubr.msk.f32.gmra.mxu0 %vm579_vm1, %v548_v10 }
  0x4d   : > { %9676 = vmatprep.mubr.msk.f32.mxu0 %vm579_vm1, %v549_v11 }
  0x50   : > { %9677 = vmatmul.mubr.msk.f32.gmra.mxu0 %vm579_vm1, %v550_v12 }
  0x51   : > { %9679 = vmatprep.mubr.msk.f32.mxu0 %vm579_vm1, %v551_v13 }
  0x54   : > { %9680 = vmatmul.mubr.msk.f32.gmra.mxu0 %vm579_vm1, %v552_v14 }
  0x55   : > { %9682 = vmatprep.mubr.msk.f32.mxu0 %vm579_vm1, %v553_v15 }
  0x58   : > { %9683 = vmatmul.mubr.msk.f32.gmra.mxu0 %vm579_vm1, %v554_v16 }
  0x59   : > { %9685 = vmatprep.mubr.msk.f32.mxu0 %vm579_vm1, %v555_v17 }
  0x5c   : > { %9686 = vmatmul.mubr.msk.f32.gmra.mxu0 %vm579_vm1, %v556_v18 }
  0x5d   : > { %9688 = vmatprep.mubr.msk.f32.mxu0 %vm579_vm1, %v557_v19 }
  0x60   : > { %9689 = vmatmul.mubr.msk.f32.gmra.mxu0 %vm579_vm1, %v558_v20 }
  0x61   : > { %9691 = vmatprep.mubr.msk.f32.mxu0 %vm579_vm1, %v559_v21 }
  0x64   : > { %9692 = vmatmul.mubr.msk.f32.gmra.mxu0 %vm579_vm1, %v560_v22 }
  0x65   : > { %9694 = vmatprep.mubr.msk.f32.mxu0 %vm579_vm1, %v561_v23 }
  0x68   : > { %9695 = vmatmul.mubr.msk.f32.gmra.mxu0 %vm579_vm1, %v562_v24 }
  0x69   : > { %9697 = vmatprep.mubr.msk.f32.mxu0 %vm579_vm1, %v563_v25 }
  0x6c   : > { %9698 = vmatmul.mubr.msk.f32.gmra.mxu0 %vm579_vm1, %v564_v26 }
  0x6d   : > { %9700 = vmatprep.mubr.msk.f32.mxu0 %vm579_vm1, %v565_v27 }
  0x70   : > { %9701 = vmatmul.mubr.msk.f32.gmra.mxu0 %vm579_vm1, %v566_v28 }
  0x71   : > { %9703 = vmatprep.mubr.msk.f32.mxu0 %vm579_vm1, %v567_v29 }
  0x74   : > { %9704 = vmatmul.mubr.msk.f32.gmra.mxu0 %vm579_vm1, %v568_v30 }
  0x75   : > { %9706 = vmatprep.mubr.msk.f32.mxu0 %vm579_vm1, %v569_v31 }
  0x78   : > { %9707 = vmatmul.mubr.msk.f32.gmra.mxu0 %vm579_vm1, %v570_v32 }
  0xfc   : > { %v9663_v37 = vpop.f32.mrf.mxu0 }
  0xfd   : > { %v752_v38 = vadd.f32 %v9663_v37, %v10916_v36 }
  0xfe   : > { %v746_v39 = vpop.f32.mrf.mxu0 }
  0xff   : > { %v747_v40 = vadd.f32 %v10916_v36, %v746_v39  ;;  %v10920_v42 = vmax.f32 %v752_v38, 0.0 }
 0x100   : > { %v9666_v41 = vpop.f32.mrf.mxu0 }
 0x101   : > { %v10922_v43 = vmax.f32 %v747_v40, 0.0  ;;  %v762_v44 = vadd.f32 %v9666_v41, %v10916_v36  ;;  %v939_v49 = vsel %vm937_vm3, %v10920_v42, 0.0 }
 0x102   : > { %v756_v45 = vpop.f32.mrf.mxu0 }
 0x103   : > { %v938_v46 = vsel %vm937_vm3, %v10922_v43, 0.0  ;;  %v757_v47 = vadd.f32 %v10916_v36, %v756_v45  ;;  %v10930_v50 = vmax.f32 %v762_v44, 0.0 }
 0x104   : > { %v9669_v48 = vpop.f32.mrf.mxu0  ;;  %v940_v53 = vadd.f32 %v939_v49, %v938_v46 }
 0x105   : > { %v10932_v51 = vmax.f32 %v757_v47, 0.0  ;;  %v772_v52 = vadd.f32 %v9669_v48, %v10916_v36  ;;  %v943_v59 = vsel %vm937_vm3, %v10930_v50, 0.0 }
 0x106   : > { %v766_v54 = vpop.f32.mrf.mxu0 }
 0x107   : > { %v941_v55 = vsel %vm937_vm3, %v10932_v51, 0.0  ;;  %v767_v56 = vadd.f32 %v10916_v36, %v766_v54  ;;  %v10940_v60 = vmax.f32 %v772_v52, 0.0 }
 0x108   : > { %v942_v57 = vadd.f32 %v941_v55, %v940_v53  ;;  %v9672_v58 = vpop.f32.mrf.mxu0 }
 0x109   : > { %v10942_v61 = vmax.f32 %v767_v56, 0.0  ;;  %v782_v62 = vadd.f32 %v9672_v58, %v10916_v36  ;;  %v947_v5 = vsel %vm937_vm3, %v10940_v60, 0.0 }
 0x10a   : > { %v944_v63 = vadd.f32 %v943_v59, %v942_v57  ;;  %v776_v0 = vpop.f32.mrf.mxu0 }
 0x10b   : > { %v945_v1 = vsel %vm937_vm3, %v10942_v61, 0.0  ;;  %v777_v2 = vadd.f32 %v10916_v36, %v776_v0  ;;  %v10950_v6 = vmax.f32 %v782_v62, 0.0 }
 0x10c   : > { %v946_v3 = vadd.f32 %v945_v1, %v944_v63  ;;  %v9675_v4 = vpop.f32.mrf.mxu0 }
 0x10d   : > { %v10952_v7 = vmax.f32 %v777_v2, 0.0  ;;  %v792_v8 = vadd.f32 %v9675_v4, %v10916_v36  ;;  %v951_v15 = vsel %vm937_vm3, %v10950_v6, 0.0 }
 0x10e   : > { %v948_v9 = vadd.f32 %v947_v5, %v946_v3  ;;  %v786_v10 = vpop.f32.mrf.mxu0  ;;  %v1015_v5 = vsel %vm937_vm3, %v10940_v60, -inf }
 0x10f   : > { %v949_v11 = vsel %vm937_vm3, %v10952_v7, 0.0  ;;  %v787_v12 = vadd.f32 %v10916_v36, %v786_v10  ;;  %v10960_v16 = vmax.f32 %v792_v8, 0.0  ;;  %v1010_v10 = vsel %vm937_vm3, %v10920_v42, -inf }
 0x110   : > { %v950_v13 = vadd.f32 %v949_v11, %v948_v9  ;;  %v9678_v14 = vpop.f32.mrf.mxu0  ;;  %v1009_v11 = vsel %vm937_vm3, %v10922_v43, -inf }
 0x111   : > { %v10962_v17 = vmax.f32 %v787_v12, 0.0  ;;  %v802_v18 = vadd.f32 %v9678_v14, %v10916_v36  ;;  %v955_v25 = vsel %vm937_vm3, %v10960_v16, 0.0  ;;  %v1013_v12 = vsel %vm937_vm3, %v10942_v61, -inf }
 0x112   : > { %v952_v19 = vadd.f32 %v951_v15, %v950_v13  ;;  %v796_v20 = vpop.f32.mrf.mxu0 }
 0x113   : > { %v953_v21 = vsel %vm937_vm3, %v10962_v17, 0.0  ;;  %v797_v22 = vadd.f32 %v10916_v36, %v796_v20  ;;  %v10970_v26 = vmax.f32 %v802_v18, 0.0 }
 0x114   : > { %v954_v23 = vadd.f32 %v953_v21, %v952_v19  ;;  %v9681_v24 = vpop.f32.mrf.mxu0  ;;  %v1012_v21 = vsel %vm937_vm3, %v10930_v50, -inf }
 0x115   : > { %v10972_v27 = vmax.f32 %v797_v22, 0.0  ;;  %v812_v28 = vadd.f32 %v9681_v24, %v10916_v36  ;;  %v959_v37 = vsel %vm937_vm3, %v10970_v26, 0.0  ;;  %v1011_v22 = vsel %vm937_vm3, %v10932_v51, -inf }
 0x116   : > { %v956_v29 = vadd.f32 %v955_v25, %v954_v23  ;;  %v806_v30 = vpop.f32.mrf.mxu0  ;;  %v1016_v23 = vmax.f32 %v1010_v10, %v1015_v5 }
 0x117   : > { %v957_v31 = vsel %vm937_vm3, %v10972_v27, 0.0  ;;  %v807_v32 = vadd.f32 %v10916_v36, %v806_v30  ;;  %v10980_v38 = vmax.f32 %v812_v28, 0.0  ;;  %v1019_v28 = vsel %vm937_vm3, %v10950_v6, -inf }
 0x118   : > { %v958_v33 = vadd.f32 %v957_v31, %v956_v29  ;;  %v9684_v35 = vpop.f32.mrf.mxu0  ;;  %v1017_v29 = vsel %vm937_vm3, %v10952_v7, -inf }
 0x119   : > { %v10982_v39 = vmax.f32 %v807_v32, 0.0  ;;  %v822_v40 = vadd.f32 %v9684_v35, %v10916_v36  ;;  %v963_v49 = vsel %vm937_vm3, %v10980_v38, 0.0  ;;  %v1014_v32 = vmax.f32 %v1009_v11, %v1013_v12 }
 0x11a   : > { %v960_v41 = vadd.f32 %v959_v37, %v958_v33  ;;  %v816_v44 = vpop.f32.mrf.mxu0  ;;  %v1023_v33 = vsel %vm937_vm3, %v10960_v16, -inf  ;;  %v1021_v35 = vsel %vm937_vm3, %v10962_v17, -inf }
 0x11b   : > { %v961_v45 = vsel %vm937_vm3, %v10982_v39, 0.0  ;;  %v817_v46 = vadd.f32 %v10916_v36, %v816_v44  ;;  %v10990_v52 = vmax.f32 %v822_v40, 0.0 }
 0x11c   : > { %v962_v47 = vadd.f32 %v961_v45, %v960_v41  ;;  %v9687_v48 = vpop.f32.mrf.mxu0 }
 0x11d   : > { %v10992_v53 = vmax.f32 %v817_v46, 0.0  ;;  %v832_v54 = vadd.f32 %v9687_v48, %v10916_v36  ;;  %v967_v63 = vsel %vm937_vm3, %v10990_v52, 0.0  ;;  %v1018_v48 = vmax.f32 %v1011_v22, %v1017_v29 }
 0x11e   : > { %v964_v55 = vadd.f32 %v963_v49, %v962_v47  ;;  %v826_v56 = vpop.f32.mrf.mxu0  ;;  %v1020_v47 = vmax.f32 %v1012_v21, %v1019_v28  ;;  %v1027_v49 = vsel %vm937_vm3, %v10970_v26, -inf }
 0x11f   : > { %v965_v57 = vsel %vm937_vm3, %v10992_v53, 0.0  ;;  %v827_v58 = vadd.f32 %v10916_v36, %v826_v56  ;;  %v11000_v0 = vmax.f32 %v832_v54, 0.0  ;;  %v1025_v56 = vsel %vm937_vm3, %v10972_v27, -inf }
 0x120   : > { %v966_v59 = vadd.f32 %v965_v57, %v964_v55  ;;  %v9690_v62 = vpop.f32.mrf.mxu0  ;;  %v1031_v57 = vsel %vm937_vm3, %v10980_v38, -inf  ;;  %v1028_v11 = vmax.f32 %v1020_v47, %v1027_v49  ;;  %v1026_v12 = vmax.f32 %v1018_v48, %v1025_v56 }
 0x121   : > { %v11002_v1 = vmax.f32 %v827_v58, 0.0  ;;  %v842_v2 = vadd.f32 %v9690_v62, %v10916_v36  ;;  %v971_v15 = vsel %vm937_vm3, %v11000_v0, 0.0  ;;  %v1024_v62 = vmax.f32 %v1016_v23, %v1023_v33 }
 0x122   : > { %v968_v3 = vadd.f32 %v967_v63, %v966_v59  ;;  %v836_v4 = vpop.f32.mrf.mxu0  ;;  %v1022_v63 = vmax.f32 %v1014_v32, %v1021_v35  ;;  %v1033_v21 = vsel %vm937_vm3, %v10992_v53, -inf }
 0x123   : > { %v969_v8 = vsel %vm937_vm3, %v11002_v1, 0.0  ;;  %v837_v9 = vadd.f32 %v10916_v36, %v836_v4  ;;  %v11018_v18 = vmax.f32 %v842_v2, 0.0  ;;  %v1029_v2 = vsel %vm937_vm3, %v10982_v39, -inf }
 0x124   : > { %v970_v13 = vadd.f32 %v969_v8, %v968_v3  ;;  %v9693_v14 = vpop.f32.mrf.mxu0  ;;  %v1037_v28 = vsel %vm937_vm3, %v11002_v1, -inf }
 0x125   : > { %v11020_v19 = vmax.f32 %v837_v9, 0.0  ;;  %v852_v20 = vadd.f32 %v9693_v14, %v10916_v36  ;;  %v975_v41 = vsel %vm937_vm3, %v11018_v18, 0.0 }
 0x126   : > { %v972_v24 = vadd.f32 %v971_v15, %v970_v13  ;;  %v846_v25 = vpop.f32.mrf.mxu0  ;;  %v1032_v13 = vmax.f32 %v1024_v62, %v1031_v57 }
 0x127   : > { %v973_v30 = vsel %vm937_vm3, %v11020_v19, 0.0  ;;  %v847_v31 = vadd.f32 %v10916_v36, %v846_v25  ;;  %v11040_v44 = vmax.f32 %v852_v20, 0.0  ;;  %v1035_v20 = vsel %vm937_vm3, %v10990_v52, -inf }
 0x128   : > { %v974_v37 = vadd.f32 %v973_v30, %v972_v24  ;;  %v9696_v40 = vpop.f32.mrf.mxu0  ;;  %v1030_v24 = vmax.f32 %v1022_v63, %v1029_v2  ;;  %v1039_v25 = vsel %vm937_vm3, %v11000_v0, -inf  ;;  %v1041_v48 = vsel %vm937_vm3, %v11020_v19, -inf }
 0x129   : > { %v11042_v45 = vmax.f32 %v847_v31, 0.0  ;;  %v862_v46 = vadd.f32 %v9696_v40, %v10916_v36  ;;  %v979_v5 = vsel %vm937_vm3, %v11040_v44, 0.0  ;;  %v1034_v40 = vmax.f32 %v1026_v12, %v1033_v21 }
 0x12a   : > { %v976_v54 = vadd.f32 %v975_v41, %v974_v37  ;;  %v856_v55 = vpop.f32.mrf.mxu0  ;;  %v1036_v37 = vmax.f32 %v1028_v11, %v1035_v20  ;;  %v1043_v41 = vsel %vm937_vm3, %v11018_v18, -inf  ;;  %v1047_v49 = vsel %vm937_vm3, %v11040_v44, -inf }
 0x12b   : > { %v977_v58 = vsel %vm937_vm3, %v11042_v45, 0.0  ;;  %v857_v59 = vadd.f32 %v10916_v36, %v856_v55  ;;  %v11058_v8 = vmax.f32 %v862_v46, 0.0  ;;  %v1040_v56 = vmax.f32 %v1032_v13, %v1039_v25 }
 0x12c   : > { %v978_v3 = vadd.f32 %v977_v58, %v976_v54  ;;  %v9699_v4 = vpop.f32.mrf.mxu0  ;;  %v1038_v57 = vmax.f32 %v1030_v24, %v1037_v28  ;;  %v1045_v58 = vsel %vm937_vm3, %v11042_v45, -inf }
 0x12d   : > { %v11060_v9 = vmax.f32 %v857_v59, 0.0  ;;  %v872_v10 = vadd.f32 %v9699_v4, %v10916_v36  ;;  %v983_v31 = vsel %vm937_vm3, %v11058_v8, 0.0  ;;  %v1048_v11 = vmax.f32 %v1040_v56, %v1047_v49 }
 0x12e   : > { %v980_v14 = vadd.f32 %v979_v5, %v978_v3  ;;  %v866_v15 = vpop.f32.mrf.mxu0  ;;  %v1044_v5 = vmax.f32 %v1036_v37, %v1043_v41 }
 0x12f   : > { %v981_v22 = vsel %vm937_vm3, %v11060_v9, 0.0  ;;  %v867_v23 = vadd.f32 %v10916_v36, %v866_v15  ;;  %v11076_v32 = vmax.f32 %v872_v10, 0.0  ;;  %v1042_v10 = vmax.f32 %v1034_v40, %v1041_v48 }
 0x130   : > { %v982_v29 = vadd.f32 %v981_v22, %v980_v14  ;;  %v9702_v30 = vpop.f32.mrf.mxu0  ;;  %v1046_v14 = vmax.f32 %v1038_v57, %v1045_v58  ;;  %v1051_v15 = vsel %vm937_vm3, %v11058_v8, -inf  ;;  %v1049_v22 = vsel %vm937_vm3, %v11060_v9, -inf }
 0x131   : > { %v11078_v33 = vmax.f32 %v867_v23, 0.0  ;;  %v882_v35 = vadd.f32 %v9702_v30, %v10916_v36  ;;  %v987_v63 = vsel %vm937_vm3, %v11076_v32, 0.0  ;;  %v1055_v23 = vsel %vm937_vm3, %v11076_v32, -inf }
 0x132   : > { %v984_v46 = vadd.f32 %v983_v31, %v982_v29  ;;  %v876_v47 = vpop.f32.mrf.mxu0  ;;  %v1052_v37 = vmax.f32 %v1044_v5, %v1051_v15  ;;  %v1050_v56 = vmax.f32 %v1042_v10, %v1049_v22  ;;  %v1056_v57 = vmax.f32 %v1048_v11, %v1055_v23 }
 0x133   : > { %v985_v54 = vsel %vm937_vm3, %v11078_v33, 0.0  ;;  %v877_v55 = vadd.f32 %v10916_v36, %v876_v47  ;;  %v11094_v2 = vmax.f32 %v882_v35, 0.0  ;;  %v1053_v24 = vsel %vm937_vm3, %v11078_v33, -inf }
 0x134   : > { %v986_v59 = vadd.f32 %v985_v54, %v984_v46  ;;  %v9705_v62 = vpop.f32.mrf.mxu0  ;;  %v1054_v58 = vmax.f32 %v1046_v14, %v1053_v24 }
 0x135   : > { %v11096_v3 = vmax.f32 %v877_v55, 0.0  ;;  %v892_v4 = vadd.f32 %v9705_v62, %v10916_v36  ;;  %v991_v29 = vsel %vm937_vm3, %v11094_v2, 0.0  ;;  %v1059_v40 = vsel %vm937_vm3, %v11094_v2, -inf }
 0x136   : > { %v988_v12 = vadd.f32 %v987_v63, %v986_v59  ;;  %v886_v13 = vpop.f32.mrf.mxu0 }
 0x137   : > { %v989_v20 = vsel %vm937_vm3, %v11096_v3, 0.0  ;;  %v887_v21 = vadd.f32 %v10916_v36, %v886_v13  ;;  %v11112_v30 = vmax.f32 %v892_v4, 0.0  ;;  %v1057_v41 = vsel %vm937_vm3, %v11096_v3, -inf }
 0x138   : > { %v990_v25 = vadd.f32 %v989_v20, %v988_v12  ;;  %v9708_v28 = vpop.f32.mrf.mxu0  ;;  %v1060_v12 = vmax.f32 %v1052_v37, %v1059_v40  ;;  %v1058_v13 = vmax.f32 %v1050_v56, %v1057_v41  ;;  %v1078_v41 = vlaneseq }
 0x139   : > { %v11114_v31 = vmax.f32 %v887_v21, 0.0  ;;  %v902_v35 = vadd.f32 %v9708_v28, %v10916_v36  ;;  %v995_v62 = vsel %vm937_vm3, %v11112_v30, 0.0  ;;  %v1063_v63 = vsel %vm937_vm3, %v11112_v30, -inf }
 0x13a   : > { %v992_v46 = vadd.f32 %v991_v29, %v990_v25  ;;  %v896_v47 = vpop.f32.mrf.mxu0  ;;  %v1064_v11 = vmax.f32 %v1056_v57, %v1063_v63 }
 0x13b   : > { %v993_v48 = vsel %vm937_vm3, %v11114_v31, 0.0  ;;  %v1061_v49 = vsel %vm937_vm3, %v11114_v31, -inf  ;;  %v11125_v54 = vmax.f32 %v902_v35, 0.0  ;;  %v897_v55 = vadd.f32 %v10916_v36, %v896_v47 }
 0x13c   : > { %v994_v59 = vadd.f32 %v993_v48, %v992_v46  ;;  %v1062_v15 = vmax.f32 %v1054_v58, %v1061_v49 }
 0x13d   : > { %v1067_v4 = vsel %vm937_vm3, %v11125_v54, -inf  ;;  %v11134_v5 = vmax.f32 %v897_v55, 0.0  ;;  %v999_v23 = vsel %vm937_vm3, %v11125_v54, 0.0  ;;  %v11142_v55 = vshrl.u32 %v1078_v41, 7 }
 0x13e   : > { %v996_v20 = vadd.f32 %v995_v62, %v994_v59  ;;  %v1068_v14 = vmax.f32 %v1060_v12, %v1067_v4  ;;  %v1069_v24 = vmax.f32 %v1062_v15, %v1064_v11  ;;  %v1158_v12 = vld [vmem:[%s14186_s4] sm:$0xf] }
 0x13f   : > { %v997_v36 = vsel %vm937_vm3, %v11134_v5, 0.0  ;;  %v1065_v10 = vsel %vm937_vm3, %v11134_v5, -inf  ;;  %14269 = vst [vmem:[#allocation10_spill] sm:$0xff] %v11142_v55  ;;  %vm1080_vm4 = vcmp.eq.s32.totalorder %v11142_v55, 0 }
 0x140   : > { %v998_v21 = vadd.f32 %v997_v36, %v996_v20  ;;  %v1066_v22 = vmax.f32 %v1058_v13, %v1065_v10 }
 0x142   : > { %v1000_v25 = vadd.f32 %v999_v23, %v998_v21  ;;  %v1070_v28 = vmax.f32 %v1066_v22, %v1068_v14 }
 0x144   : > { %v1001_v29 = vrot.slane %v1000_v25, 4  ;;  %v1071_v35 = vmax.f32 %v1069_v24, %v1070_v28  ;;  %v14198_v24 = vsub.s32 0, %v11142_v55 }
 0x146   : > { %v1002_v37 = vadd.f32 %v1001_v29, %v1000_v25  ;;  %v1072_v40 = vrot.slane %v1071_v35, 4 }
 0x148   : > { %v1003_v46 = vrot.slane %v1002_v37, 2  ;;  %v1073_v47 = vmax.f32 %v1071_v35, %v1072_v40 }
 0x14a   : > { %v1004_v48 = vadd.f32 %v1003_v46, %v1002_v37  ;;  %v1074_v49 = vrot.slane %v1073_v47, 2 }
 0x14c   : > { %v1005_v56 = vrot.slane %v1004_v48, 1  ;;  %v1075_v57 = vmax.f32 %v1073_v47, %v1074_v49 }
 0x14e   : > { %v1006_v58 = vadd.f32 %v1005_v56, %v1004_v48  ;;  %v1076_v59 = vrot.slane %v1075_v57, 1 }
 0x150   : > { %v1008_v62 = vmul.f32 0.00390625, %v1006_v58  ;;  %v1077_v63 = vmax.f32 %v1075_v57, %v1076_v59 }
 0x152   : > { %v1081_v4 = vsel %vm1080_vm4, %v1008_v62, %v1077_v63 }
 0x153   : > { %9714 = vmatmul.mubr.msk.f32.vlgmr.msra.gmra.mxu1 %vm937_vm3, %v1081_v4 }
 0x154   : > { %9718 = vmatprep.mubr.msk.f32.mxu1 %vm10670_vm2, %v14199_v34  ;;  %9717 = vmatpush3.msk.msra.mxu1 %vm676_vm0, %v1158_v12 }
 0x155   : > { %1859 = vmatprep.subr.mxu1 %v14199_v34 }
 0x213   : > { %v1153_v13 = vpop.f32.mrf.mxu1 }
 0x214   : > { %v1157_v15 = vmax.f32 %v1153_v13, 0.0 }
 0x215   : > { %v9715_v20 = vpop.f32.mrf.mxu1 }
 0x216   : > { %9719 = vmatmul.mubr.msk.f32.vlgmr.msra.gmra.mxu1 %vm579_vm1, %v1157_v15 }
 0x2d6   : > { %v1231_v36 = vpop.f32.mrf.mxu1 }
 0x2d7   : > { %v1236_v10 = vrot.slane %v1231_v36, 1 }
 0x2d8   : > { %v9720_v11 = vpop.f32.mrf.mxu1 }
 0x2d9   : > { %v1238_v14 = vadd.f32 %v1236_v10, %v1231_v36 }
 0x2db   : > { %v8832_v21 = vmul.f32 -1.442695, %v1238_v14 }
 0x2dd   : > { %10304 = vpow2.f32 %v8832_v21 }
 0x2ea   : > { %v10305_v22 = vpop.eup %10304 }
 0x2eb   : > { %v1242_v23 = vadd.f32 1.0, %v10305_v22 }
 0x2ed   : > { %10306 = vrcp.f32 %v1242_v23 }
 0x2fa   : > { %v10307_v25 = vpop.eup %10306 }
 0x2fb   : > { %v11159_v28 = vrot.slane %v10307_v25, %v14198_v24 }
 0x2fd   : > { %v11163_v29 = vmul.f32 %v11159_v28, %v10990_v52  ;;  %v11171_v40 = vmul.f32 %v11159_v28, %v10992_v53  ;;  %v11175_v41 = vmul.f32 %v11159_v28, %v10980_v38  ;;  %v11183_v47 = vmul.f32 %v11159_v28, %v10982_v39 }
 0x2fe   : > { %v11191_v48 = vmul.f32 %v11159_v28, %v10970_v26  ;;  %v11199_v56 = vmul.f32 %v11159_v28, %v10972_v27  ;;  %v11207_v58 = vmul.f32 %v11159_v28, %v10960_v16  ;;  %v11215_v62 = vmul.f32 %v11159_v28, %v10962_v17 }
 0x2ff   : > { %v1455_v35 = vsel %vm937_vm3, %v11163_v29, -inf  ;;  %v1326_v37 = vsel %vm937_vm3, %v11163_v29, 0.0  ;;  %v1323_v52 = vsel %vm937_vm3, %v11171_v40, 0.0  ;;  %v1320_v46 = vsel %vm937_vm3, %v11175_v41, 0.0 }
 0x300   : > { %1456 = vmax.xlane.f32.xlu1 %v1455_v35  ;;  %1327 = vadd.xlane.f32.xlu0 %v1326_v37  ;;  %v1452_v53 = vsel %vm937_vm3, %v11171_v40, -inf  ;;  %v1317_v38 = vsel %vm937_vm3, %v11183_v47, 0.0  ;;  %v1449_v49 = vsel %vm937_vm3, %v11175_v41, -inf  ;;  %v1314_v39 = vsel %vm937_vm3, %v11191_v48, 0.0 }
 0x301   : > { %v1446_v57 = vsel %vm937_vm3, %v11183_v47, -inf  ;;  %v1311_v26 = vsel %vm937_vm3, %v11199_v56, 0.0  ;;  %v1443_v59 = vsel %vm937_vm3, %v11191_v48, -inf  ;;  %v1308_v27 = vsel %vm937_vm3, %v11207_v58, 0.0 }
 0x302   : > { %v1440_v63 = vsel %vm937_vm3, %v11199_v56, -inf  ;;  %v1305_v16 = vsel %vm937_vm3, %v11215_v62, 0.0  ;;  %v11223_v4 = vmul.f32 %v11159_v28, %v10950_v6  ;;  %v1437_v12 = vsel %vm937_vm3, %v11207_v58, -inf }
 0x303   : > { %v11231_v13 = vmul.f32 %v11159_v28, %v10952_v7  ;;  %v1434_v15 = vsel %vm937_vm3, %v11215_v62, -inf  ;;  %v11239_v20 = vmul.f32 %v11159_v28, %v10940_v60  ;;  %v11247_v10 = vmul.f32 %v11159_v28, %v10942_v61 }
 0x304   : > { %1324 = vadd.xlane.f32.xlu0 %v1323_v52  ;;  %1321 = vadd.xlane.f32.xlu1 %v1320_v46  ;;  %v1302_v17 = vsel %vm937_vm3, %v11223_v4, 0.0  ;;  %v1431_v36 = vsel %vm937_vm3, %v11223_v4, -inf  ;;  %v11255_v14 = vmul.f32 %v11159_v28, %v10930_v50  ;;  %v11263_v22 = vmul.f32 %v11159_v28, %v10932_v51 }
 0x305   : > { %v1299_v6 = vsel %vm937_vm3, %v11231_v13, 0.0  ;;  %v1296_v7 = vsel %vm937_vm3, %v11239_v20, 0.0  ;;  %v1428_v11 = vsel %vm937_vm3, %v11231_v13, -inf  ;;  %v1293_v60 = vsel %vm937_vm3, %v11247_v10, 0.0 }
 0x306   : > { %v1425_v21 = vsel %vm937_vm3, %v11239_v20, -inf  ;;  %v1290_v61 = vsel %vm937_vm3, %v11255_v14, 0.0  ;;  %v1422_v23 = vsel %vm937_vm3, %v11247_v10, -inf  ;;  %v1287_v50 = vsel %vm937_vm3, %v11263_v22, 0.0 }
 0x307   : > { %v11271_v25 = vmul.f32 %v11159_v28, %v10920_v42  ;;  %v1419_v35 = vsel %vm937_vm3, %v11255_v14, -inf  ;;  %v11279_v37 = vmul.f32 %v11159_v28, %v10922_v43  ;;  %v1416_v52 = vsel %vm937_vm3, %v11263_v22, -inf }
 0x308   : > { %1453 = vmax.xlane.f32.xlu0 %v1452_v53  ;;  %1318 = vadd.xlane.f32.xlu1 %v1317_v38  ;;  %v11287_v46 = vmul.f32 %v11159_v28, %v11125_v54  ;;  %v11295_v38 = vmul.f32 %v11159_v28, %v11134_v5 }
 0x309   : > { %v1284_v51 = vsel %vm937_vm3, %v11271_v25, 0.0  ;;  %v1281_v42 = vsel %vm937_vm3, %v11279_v37, 0.0  ;;  %v1413_v53 = vsel %vm937_vm3, %v11271_v25, -inf }
 0x30a   : > { %v1374_v43 = vsel %vm937_vm3, %v11287_v46, 0.0  ;;  %v1371_v54 = vsel %vm937_vm3, %v11295_v38, 0.0 }
 0x30c   : > { %1450 = vmax.xlane.f32.xlu0 %v1449_v49  ;;  %1315 = vadd.xlane.f32.xlu1 %v1314_v39  ;;  %v1410_v49 = vsel %vm937_vm3, %v11279_v37, -inf  ;;  %v11303_v39 = vmul.f32 %v11159_v28, %v11112_v30 }
 0x30e   : > { %v1368_v5 = vsel %vm937_vm3, %v11303_v39, 0.0 }
 0x310   : > { %1447 = vmax.xlane.f32.xlu0 %v1446_v57  ;;  %1312 = vadd.xlane.f32.xlu1 %v1311_v26  ;;  %v1503_v57 = vsel %vm937_vm3, %v11287_v46, -inf  ;;  %v11311_v26 = vmul.f32 %v11159_v28, %v11114_v31 }
 0x312   : > { %v1365_v30 = vsel %vm937_vm3, %v11311_v26, 0.0 }
 0x314   : > { %1444 = vmax.xlane.f32.xlu0 %v1443_v59  ;;  %1309 = vadd.xlane.f32.xlu1 %v1308_v27  ;;  %v1500_v59 = vsel %vm937_vm3, %v11295_v38, -inf  ;;  %v11319_v27 = vmul.f32 %v11159_v28, %v11094_v2 }
 0x316   : > { %v1362_v31 = vsel %vm937_vm3, %v11319_v27, 0.0 }
 0x318   : > { %1441 = vmax.xlane.f32.xlu0 %v1440_v63  ;;  %1306 = vadd.xlane.f32.xlu1 %v1305_v16  ;;  %v1497_v63 = vsel %vm937_vm3, %v11303_v39, -inf  ;;  %v11327_v16 = vmul.f32 %v11159_v28, %v11096_v3 }
 0x31a   : > { %v1359_v2 = vsel %vm937_vm3, %v11327_v16, 0.0 }
 0x31c   : > { %1438 = vmax.xlane.f32.xlu0 %v1437_v12  ;;  %1303 = vadd.xlane.f32.xlu1 %v1302_v17  ;;  %v1494_v12 = vsel %vm937_vm3, %v11311_v26, -inf  ;;  %v11335_v17 = vmul.f32 %v11159_v28, %v11076_v32 }
 0x31e   : > { %v1356_v3 = vsel %vm937_vm3, %v11335_v17, 0.0 }
 0x320   : > { %1435 = vmax.xlane.f32.xlu0 %v1434_v15  ;;  %1300 = vadd.xlane.f32.xlu1 %v1299_v6  ;;  %v1491_v15 = vsel %vm937_vm3, %v11319_v27, -inf  ;;  %v11343_v6 = vmul.f32 %v11159_v28, %v11078_v33 }
 0x322   : > { %v1353_v32 = vsel %vm937_vm3, %v11343_v6, 0.0 }
 0x324   : > { %1432 = vmax.xlane.f32.xlu0 %v1431_v36  ;;  %1297 = vadd.xlane.f32.xlu1 %v1296_v7  ;;  %v1488_v36 = vsel %vm937_vm3, %v11327_v16, -inf  ;;  %v11351_v7 = vmul.f32 %v11159_v28, %v11058_v8 }
 0x326   : > { %v1350_v33 = vsel %vm937_vm3, %v11351_v7, 0.0 }
 0x328   : > { %1429 = vmax.xlane.f32.xlu0 %v1428_v11  ;;  %1294 = vadd.xlane.f32.xlu1 %v1293_v60  ;;  %v1485_v11 = vsel %vm937_vm3, %v11335_v17, -inf  ;;  %v11359_v60 = vmul.f32 %v11159_v28, %v11060_v9 }
 0x32a   : > { %v1347_v8 = vsel %vm937_vm3, %v11359_v60, 0.0 }
 0x32c   : > { %1426 = vmax.xlane.f32.xlu0 %v1425_v21  ;;  %1291 = vadd.xlane.f32.xlu1 %v1290_v61  ;;  %v1482_v21 = vsel %vm937_vm3, %v11343_v6, -inf  ;;  %v11367_v61 = vmul.f32 %v11159_v28, %v11040_v44 }
 0x32e   : > { %v1344_v9 = vsel %vm937_vm3, %v11367_v61, 0.0 }
 0x330   : > { %1423 = vmax.xlane.f32.xlu0 %v1422_v23  ;;  %1288 = vadd.xlane.f32.xlu1 %v1287_v50  ;;  %v1479_v23 = vsel %vm937_vm3, %v11351_v7, -inf  ;;  %v11375_v50 = vmul.f32 %v11159_v28, %v11042_v45 }
 0x332   : > { %v1341_v44 = vsel %vm937_vm3, %v11375_v50, 0.0 }
 0x334   : > { %1420 = vmax.xlane.f32.xlu0 %v1419_v35  ;;  %1285 = vadd.xlane.f32.xlu1 %v1284_v51  ;;  %v1476_v35 = vsel %vm937_vm3, %v11359_v60, -inf  ;;  %v11383_v51 = vmul.f32 %v11159_v28, %v11018_v18 }
 0x336   : > { %v1338_v45 = vsel %vm937_vm3, %v11383_v51, 0.0 }
 0x338   : > { %1417 = vmax.xlane.f32.xlu0 %v1416_v52  ;;  %1282 = vadd.xlane.f32.xlu1 %v1281_v42  ;;  %v1473_v52 = vsel %vm937_vm3, %v11367_v61, -inf  ;;  %v11391_v42 = vmul.f32 %v11159_v28, %v11020_v19 }
 0x33a   : > { %v1335_v18 = vsel %vm937_vm3, %v11391_v42, 0.0 }
 0x33c   : > { %1414 = vmax.xlane.f32.xlu0 %v1413_v53  ;;  %1375 = vadd.xlane.f32.xlu1 %v1374_v43  ;;  %v1470_v53 = vsel %vm937_vm3, %v11375_v50, -inf  ;;  %v11399_v43 = vmul.f32 %v11159_v28, %v11000_v0 }
 0x33e   : > { %v1332_v19 = vsel %vm937_vm3, %v11399_v43, 0.0 }
 0x340   : > { %1411 = vmax.xlane.f32.xlu0 %v1410_v49  ;;  %1372 = vadd.xlane.f32.xlu1 %v1371_v54  ;;  %v1467_v49 = vsel %vm937_vm3, %v11383_v51, -inf  ;;  %v11407_v54 = vmul.f32 %v11159_v28, %v11002_v1  ;;  %v1507_v1 = vld [vmem:[%s14187_s5 + $0x8] sm:$0xff]  ;;  %v1571_v28 = vld [vmem:[#allocation3 + $0x8] sm:$0xff] }
 0x341   : > { %1923 = vmatprep.mubr.f32.mxu1 %v1507_v1  ;;  %1698 = vmatprep.mubr.f32.mxu0 %v1571_v28 }
 0x342   : > { %v1329_v0 = vsel %vm937_vm3, %v11407_v54, 0.0 }
 0x344   : > { %1504 = vmax.xlane.f32.xlu0 %v1503_v57  ;;  %1369 = vadd.xlane.f32.xlu1 %v1368_v5  ;;  %v1464_v57 = vsel %vm937_vm3, %v11391_v42, -inf  ;;  %v1461_v5 = vsel %vm937_vm3, %v11399_v43, -inf }
 0x348   : > { %1501 = vmax.xlane.f32.xlu0 %v1500_v59  ;;  %1366 = vadd.xlane.f32.xlu1 %v1365_v30  ;;  %v1458_v59 = vsel %vm937_vm3, %v11407_v54, -inf }
 0x34c   : > { %1498 = vmax.xlane.f32.xlu0 %v1497_v63  ;;  %1363 = vadd.xlane.f32.xlu1 %v1362_v31 }
 0x350   : > { %1495 = vmax.xlane.f32.xlu0 %v1494_v12  ;;  %1360 = vadd.xlane.f32.xlu1 %v1359_v2 }
 0x354   : > { %1492 = vmax.xlane.f32.xlu0 %v1491_v15  ;;  %1357 = vadd.xlane.f32.xlu1 %v1356_v3 }
 0x358   : > { %1489 = vmax.xlane.f32.xlu0 %v1488_v36  ;;  %1354 = vadd.xlane.f32.xlu1 %v1353_v32 }
 0x35c   : > { %1486 = vmax.xlane.f32.xlu0 %v1485_v11  ;;  %1351 = vadd.xlane.f32.xlu1 %v1350_v33 }
 0x360   : > { %1483 = vmax.xlane.f32.xlu0 %v1482_v21  ;;  %1348 = vadd.xlane.f32.xlu1 %v1347_v8 }
 0x364   : > { %1480 = vmax.xlane.f32.xlu0 %v1479_v23  ;;  %1345 = vadd.xlane.f32.xlu1 %v1344_v9 }
 0x368   : > { %1477 = vmax.xlane.f32.xlu0 %v1476_v35  ;;  %1342 = vadd.xlane.f32.xlu1 %v1341_v44 }
 0x36c   : > { %1474 = vmax.xlane.f32.xlu0 %v1473_v52  ;;  %1339 = vadd.xlane.f32.xlu1 %v1338_v45 }
 0x370   : > { %1471 = vmax.xlane.f32.xlu0 %v1470_v53  ;;  %1336 = vadd.xlane.f32.xlu1 %v1335_v18 }
 0x374   : > { %1468 = vmax.xlane.f32.xlu0 %v1467_v49  ;;  %1333 = vadd.xlane.f32.xlu1 %v1332_v19 }
 0x378   : > { %1465 = vmax.xlane.f32.xlu0 %v1464_v57  ;;  %1330 = vadd.xlane.f32.xlu1 %v1329_v0 }
 0x37c   : > { %1462 = vmax.xlane.f32.xlu0 %v1461_v5  ;;  %1459 = vmax.xlane.f32.xlu1 %v1458_v59 }
 0x389   : > { %v1457_v30 = vpop.xlane.xlu1 %1456  ;;  %v1328_v63 = vpop.xlane.xlu0 %1327 }
 0x38a   : > { %v1393_v31 = vmul.f32 0.0625, %v1328_v63  ;;  %1635 = vmatpush1.msra.mxu0 %v1457_v30 }
 0x38b   : > { %1636 = vmatprep.subr.mxu0 %v14199_v34 }
 0x38c   : > { %1860 = vmatpush1.msra.mxu1 %v1393_v31 }
 0x38d   : > { %v1325_v12 = vpop.xlane.xlu0 %1324  ;;  %v1322_v2 = vpop.xlane.xlu1 %1321  ;;  %1861 = vmatprep.subr.mxu1 %v14199_v34 }
 0x38e   : > { %v1392_v15 = vmul.f32 0.0625, %v1325_v12  ;;  %v1391_v3 = vmul.f32 0.0625, %v1322_v2 }
 0x390   : > { %1862 = vmatpush1.msra.mxu1 %v1392_v15 }
 0x391   : > { %1863 = vmatprep.subr.mxu1 %v14199_v34  ;;  %v1454_v36 = vpop.xlane.xlu0 %1453  ;;  %v1319_v32 = vpop.xlane.xlu1 %1318 }
 0x392   : > { %v1390_v11 = vmul.f32 0.0625, %v1319_v32  ;;  %1637 = vmatpush1.msra.mxu0 %v1454_v36  ;;  %1864 = vmatpush1.msra.mxu1 %v1391_v3 }
 0x393   : > { %1865 = vmatprep.subr.mxu1 %v14199_v34  ;;  %1638 = vmatprep.subr.mxu0 %v14199_v34 }
 0x394   : > { %1866 = vmatpush1.msra.mxu1 %v1390_v11 }
 0x395   : > { %v1451_v33 = vpop.xlane.xlu0 %1450  ;;  %v1316_v21 = vpop.xlane.xlu1 %1315  ;;  %1867 = vmatprep.subr.mxu1 %v14199_v34 }
 0x396   : > { %v1389_v8 = vmul.f32 0.0625, %v1316_v21  ;;  %1639 = vmatpush1.msra.mxu0 %v1451_v33 }
 0x397   : > { %1640 = vmatprep.subr.mxu0 %v14199_v34 }
 0x398   : > { %1868 = vmatpush1.msra.mxu1 %v1389_v8 }
 0x399   : > { %v1448_v23 = vpop.xlane.xlu0 %1447  ;;  %v1313_v9 = vpop.xlane.xlu1 %1312  ;;  %1869 = vmatprep.subr.mxu1 %v14199_v34 }
 0x39a   : > { %v1388_v35 = vmul.f32 0.0625, %v1313_v9  ;;  %1641 = vmatpush1.msra.mxu0 %v1448_v23 }
 0x39b   : > { %1642 = vmatprep.subr.mxu0 %v14199_v34 }
 0x39c   : > { %1870 = vmatpush1.msra.mxu1 %v1388_v35 }
 0x39d   : > { %v1445_v44 = vpop.xlane.xlu0 %1444  ;;  %v1310_v52 = vpop.xlane.xlu1 %1309  ;;  %1871 = vmatprep.subr.mxu1 %v14199_v34 }
 0x39e   : > { %v1387_v45 = vmul.f32 0.0625, %v1310_v52  ;;  %1643 = vmatpush1.msra.mxu0 %v1445_v44 }
 0x39f   : > { %1644 = vmatprep.subr.mxu0 %v14199_v34 }
 0x3a0   : > { %1872 = vmatpush1.msra.mxu1 %v1387_v45 }
 0x3a1   : > { %v1442_v53 = vpop.xlane.xlu0 %1441  ;;  %v1307_v18 = vpop.xlane.xlu1 %1306  ;;  %1873 = vmatprep.subr.mxu1 %v14199_v34 }
 0x3a2   : > { %v1386_v49 = vmul.f32 0.0625, %v1307_v18  ;;  %1645 = vmatpush1.msra.mxu0 %v1442_v53 }
 0x3a3   : > { %1646 = vmatprep.subr.mxu0 %v14199_v34 }
 0x3a4   : > { %1874 = vmatpush1.msra.mxu1 %v1386_v49 }
 0x3a5   : > { %v1439_v19 = vpop.xlane.xlu0 %1438  ;;  %v1304_v57 = vpop.xlane.xlu1 %1303  ;;  %1875 = vmatprep.subr.mxu1 %v14199_v34 }
 0x3a6   : > { %v1385_v0 = vmul.f32 0.0625, %v1304_v57  ;;  %1647 = vmatpush1.msra.mxu0 %v1439_v19 }
 0x3a7   : > { %1648 = vmatprep.subr.mxu0 %v14199_v34 }
 0x3a8   : > { %1876 = vmatpush1.msra.mxu1 %v1385_v0 }
 0x3a9   : > { %v1436_v5 = vpop.xlane.xlu0 %1435  ;;  %v1301_v59 = vpop.xlane.xlu1 %1300  ;;  %1877 = vmatprep.subr.mxu1 %v14199_v34 }
 0x3aa   : > { %v1384_v1 = vmul.f32 0.0625, %v1301_v59  ;;  %1649 = vmatpush1.msra.mxu0 %v1436_v5 }
 0x3ab   : > { %1650 = vmatprep.subr.mxu0 %v14199_v34 }
 0x3ac   : > { %1878 = vmatpush1.msra.mxu1 %v1384_v1 }
 0x3ad   : > { %v1433_v28 = vpop.xlane.xlu0 %1432  ;;  %v1298_v30 = vpop.xlane.xlu1 %1297  ;;  %1879 = vmatprep.subr.mxu1 %v14199_v34 }
 0x3ae   : > { %v1383_v63 = vmul.f32 0.0625, %v1298_v30  ;;  %1651 = vmatpush1.msra.mxu0 %v1433_v28 }
 0x3af   : > { %1652 = vmatprep.subr.mxu0 %v14199_v34 }
 0x3b0   : > { %1880 = vmatpush1.msra.mxu1 %v1383_v63 }
 0x3b1   : > { %v1430_v31 = vpop.xlane.xlu0 %1429  ;;  %v1295_v12 = vpop.xlane.xlu1 %1294  ;;  %1881 = vmatprep.subr.mxu1 %v14199_v34 }
 0x3b2   : > { %v1382_v2 = vmul.f32 0.0625, %v1295_v12  ;;  %1653 = vmatpush1.msra.mxu0 %v1430_v31 }
 0x3b3   : > { %1654 = vmatprep.subr.mxu0 %v14199_v34 }
 0x3b4   : > { %1882 = vmatpush1.msra.mxu1 %v1382_v2 }
 0x3b5   : > { %v1427_v15 = vpop.xlane.xlu0 %1426  ;;  %v1292_v3 = vpop.xlane.xlu1 %1291  ;;  %1883 = vmatprep.subr.mxu1 %v14199_v34 }
 0x3b6   : > { %v1381_v36 = vmul.f32 0.0625, %v1292_v3  ;;  %1655 = vmatpush1.msra.mxu0 %v1427_v15 }
 0x3b7   : > { %1656 = vmatprep.subr.mxu0 %v14199_v34 }
 0x3b8   : > { %1884 = vmatpush1.msra.mxu1 %v1381_v36 }
 0x3b9   : > { %v1424_v32 = vpop.xlane.xlu0 %1423  ;;  %v1289_v11 = vpop.xlane.xlu1 %1288  ;;  %1885 = vmatprep.subr.mxu1 %v14199_v34 }
 0x3ba   : > { %v1380_v33 = vmul.f32 0.0625, %v1289_v11  ;;  %1657 = vmatpush1.msra.mxu0 %v1424_v32 }
 0x3bb   : > { %1658 = vmatprep.subr.mxu0 %v14199_v34 }
 0x3bc   : > { %1886 = vmatpush1.msra.mxu1 %v1380_v33 }
 0x3bd   : > { %v1421_v21 = vpop.xlane.xlu0 %1420  ;;  %v1286_v8 = vpop.xlane.xlu1 %1285  ;;  %1887 = vmatprep.subr.mxu1 %v14199_v34 }
 0x3be   : > { %v1379_v23 = vmul.f32 0.0625, %v1286_v8  ;;  %1659 = vmatpush1.msra.mxu0 %v1421_v21 }
 0x3bf   : > { %1660 = vmatprep.subr.mxu0 %v14199_v34 }
 0x3c0   : > { %1888 = vmatpush1.msra.mxu1 %v1379_v23 }
 0x3c1   : > { %v1418_v9 = vpop.xlane.xlu0 %1417  ;;  %v1283_v35 = vpop.xlane.xlu1 %1282  ;;  %1889 = vmatprep.subr.mxu1 %v14199_v34 }
 0x3c2   : > { %v1378_v44 = vmul.f32 0.0625, %v1283_v35  ;;  %1661 = vmatpush1.msra.mxu0 %v1418_v9 }
 0x3c3   : > { %1662 = vmatprep.subr.mxu0 %v14199_v34 }
 0x3c4   : > { %1890 = vmatpush1.msra.mxu1 %v1378_v44 }
 0x3c5   : > { %v1415_v52 = vpop.xlane.xlu0 %1414  ;;  %v1376_v45 = vpop.xlane.xlu1 %1375  ;;  %1891 = vmatprep.subr.mxu1 %v14199_v34 }
 0x3c6   : > { %v1409_v53 = vmul.f32 0.0625, %v1376_v45  ;;  %1663 = vmatpush1.msra.mxu0 %v1415_v52 }
 0x3c7   : > { %1664 = vmatprep.subr.mxu0 %v14199_v34 }
 0x3c8   : > { %1892 = vmatpush2.msra.mxu1 %v1409_v53 }
 0x3c9   : > { %v1412_v18 = vpop.xlane.xlu0 %1411  ;;  %v1373_v49 = vpop.xlane.xlu1 %1372  ;;  %1893 = vmatprep.subr.mxu1 %v14199_v34 }
 0x3ca   : > { %v1408_v19 = vmul.f32 0.0625, %v1373_v49  ;;  %1665 = vmatpush1.msra.mxu0 %v1412_v18 }
 0x3cb   : > { %1666 = vmatprep.subr.mxu0 %v14199_v34 }
 0x3cc   : > { %1894 = vmatpush2.msra.mxu1 %v1408_v19 }
 0x3cd   : > { %v1505_v57 = vpop.xlane.xlu0 %1504  ;;  %v1370_v0 = vpop.xlane.xlu1 %1369  ;;  %1895 = vmatprep.subr.mxu1 %v14199_v34 }
 0x3ce   : > { %v1407_v5 = vmul.f32 0.0625, %v1370_v0  ;;  %1667 = vmatpush2.msra.mxu0 %v1505_v57 }
 0x3cf   : > { %1668 = vmatprep.subr.mxu0 %v14199_v34 }
 0x3d0   : > { %1896 = vmatpush2.msra.mxu1 %v1407_v5 }
 0x3d1   : > { %v1502_v59 = vpop.xlane.xlu0 %1501  ;;  %v1367_v1 = vpop.xlane.xlu1 %1366  ;;  %1897 = vmatprep.subr.mxu1 %v14199_v34 }
 0x3d2   : > { %v1406_v28 = vmul.f32 0.0625, %v1367_v1  ;;  %1669 = vmatpush2.msra.mxu0 %v1502_v59 }
 0x3d3   : > { %1670 = vmatprep.subr.mxu0 %v14199_v34 }
 0x3d4   : > { %1898 = vmatpush2.msra.mxu1 %v1406_v28 }
 0x3d5   : > { %v1499_v30 = vpop.xlane.xlu0 %1498  ;;  %v1364_v63 = vpop.xlane.xlu1 %1363  ;;  %1899 = vmatprep.subr.mxu1 %v14199_v34 }
 0x3d6   : > { %v1405_v31 = vmul.f32 0.0625, %v1364_v63  ;;  %1671 = vmatpush2.msra.mxu0 %v1499_v30 }
 0x3d7   : > { %1672 = vmatprep.subr.mxu0 %v14199_v34 }
 0x3d8   : > { %1900 = vmatpush2.msra.mxu1 %v1405_v31 }
 0x3d9   : > { %v1496_v12 = vpop.xlane.xlu0 %1495  ;;  %v1361_v2 = vpop.xlane.xlu1 %1360  ;;  %1901 = vmatprep.subr.mxu1 %v14199_v34 }
 0x3da   : > { %v1404_v15 = vmul.f32 0.0625, %v1361_v2  ;;  %1673 = vmatpush2.msra.mxu0 %v1496_v12 }
 0x3db   : > { %1674 = vmatprep.subr.mxu0 %v14199_v34 }
 0x3dc   : > { %1902 = vmatpush2.msra.mxu1 %v1404_v15 }
 0x3dd   : > { %v1493_v3 = vpop.xlane.xlu0 %1492  ;;  %v1358_v36 = vpop.xlane.xlu1 %1357  ;;  %1903 = vmatprep.subr.mxu1 %v14199_v34 }
 0x3de   : > { %v1403_v32 = vmul.f32 0.0625, %v1358_v36  ;;  %1675 = vmatpush2.msra.mxu0 %v1493_v3  ;;  %v1506_v36 = vld [vmem:[%s14187_s5] sm:$0xff] }
 0x3df   : > { %1676 = vmatprep.subr.mxu0 %v14199_v34 }
 0x3e0   : > { %1904 = vmatpush2.msra.mxu1 %v1403_v32  ;;  %v1509_v32 = vld [vmem:[%s14187_s5 + $0x18] sm:$0xff] }
 0x3e1   : > { %v1490_v11 = vpop.xlane.xlu0 %1489  ;;  %v1355_v33 = vpop.xlane.xlu1 %1354  ;;  %1905 = vmatprep.subr.mxu1 %v14199_v34 }
 0x3e2   : > { %v1402_v21 = vmul.f32 0.0625, %v1355_v33  ;;  %1677 = vmatpush2.msra.mxu0 %v1490_v11  ;;  %v1570_v33 = vld [vmem:[#allocation3] sm:$0xff] }
 0x3e3   : > { %1678 = vmatprep.subr.mxu0 %v14199_v34 }
 0x3e4   : > { %1906 = vmatpush2.msra.mxu1 %v1402_v21  ;;  %v1508_v21 = vld [vmem:[%s14187_s5 + $0x10] sm:$0xff] }
 0x3e5   : > { %v1487_v8 = vpop.xlane.xlu0 %1486  ;;  %v1352_v23 = vpop.xlane.xlu1 %1351  ;;  %1907 = vmatprep.subr.mxu1 %v14199_v34 }
 0x3e6   : > { %v1401_v9 = vmul.f32 0.0625, %v1352_v23  ;;  %1679 = vmatpush2.msra.mxu0 %v1487_v8  ;;  %v1573_v23 = vld [vmem:[#allocation3 + $0x18] sm:$0xff] }
 0x3e7   : > { %1680 = vmatprep.subr.mxu0 %v14199_v34 }
 0x3e8   : > { %1908 = vmatpush2.msra.mxu1 %v1401_v9  ;;  %v1511_v9 = vld [vmem:[%s14187_s5 + $0x28] sm:$0xff] }
 0x3e9   : > { %v1484_v35 = vpop.xlane.xlu0 %1483  ;;  %v1349_v44 = vpop.xlane.xlu1 %1348  ;;  %1909 = vmatprep.subr.mxu1 %v14199_v34 }
 0x3ea   : > { %v1400_v52 = vmul.f32 0.0625, %v1349_v44  ;;  %1681 = vmatpush2.msra.mxu0 %v1484_v35  ;;  %v1572_v35 = vld [vmem:[#allocation3 + $0x10] sm:$0xff] }
 0x3eb   : > { %1682 = vmatprep.subr.mxu0 %v14199_v34  ;;  %v1510_v44 = vld [vmem:[%s14187_s5 + $0x20] sm:$0xff] }
 0x3ec   : > { %1910 = vmatpush2.msra.mxu1 %v1400_v52  ;;  %v1575_v52 = vld [vmem:[#allocation3 + $0x28] sm:$0xff] }
 0x3ed   : > { %v1481_v45 = vpop.xlane.xlu0 %1480  ;;  %v1346_v53 = vpop.xlane.xlu1 %1345  ;;  %1911 = vmatprep.subr.mxu1 %v14199_v34 }
 0x3ee   : > { %v1399_v18 = vmul.f32 0.0625, %v1346_v53  ;;  %1683 = vmatpush2.msra.mxu0 %v1481_v45  ;;  %v1513_v45 = vld [vmem:[%s14187_s5 + $0x38] sm:$0xff]  ;;  %v1574_v53 = vld [vmem:[#allocation3 + $0x20] sm:$0xff] }
 0x3ef   : > { %1684 = vmatprep.subr.mxu0 %v14199_v34 }
 0x3f0   : > { %1912 = vmatpush2.msra.mxu1 %v1399_v18  ;;  %v1512_v18 = vld [vmem:[%s14187_s5 + $0x30] sm:$0xff] }
 0x3f1   : > { %v1478_v49 = vpop.xlane.xlu0 %1477  ;;  %v1343_v19 = vpop.xlane.xlu1 %1342  ;;  %1913 = vmatprep.subr.mxu1 %v14199_v34 }
 0x3f2   : > { %v1398_v57 = vmul.f32 0.0625, %v1343_v19  ;;  %1685 = vmatpush2.msra.mxu0 %v1478_v49  ;;  %v1577_v49 = vld [vmem:[#allocation3 + $0x38] sm:$0xff] }
 0x3f3   : > { %1686 = vmatprep.subr.mxu0 %v14199_v34  ;;  %v1515_v19 = vld [vmem:[%s14187_s5 + $0x48] sm:$0xff] }
 0x3f4   : > { %1914 = vmatpush2.msra.mxu1 %v1398_v57  ;;  %v1576_v57 = vld [vmem:[#allocation3 + $0x30] sm:$0xff] }
 0x3f5   : > { %v1475_v0 = vpop.xlane.xlu0 %1474  ;;  %v1340_v5 = vpop.xlane.xlu1 %1339  ;;  %1915 = vmatprep.subr.mxu1 %v14199_v34 }
 0x3f6   : > { %v1397_v59 = vmul.f32 0.0625, %v1340_v5  ;;  %1687 = vmatpush2.msra.mxu0 %v1475_v0  ;;  %v1514_v0 = vld [vmem:[%s14187_s5 + $0x40] sm:$0xff]  ;;  %v1579_v5 = vld [vmem:[#allocation3 + $0x48] sm:$0xff] }
 0x3f7   : > { %1688 = vmatprep.subr.mxu0 %v14199_v34 }
 0x3f8   : > { %1916 = vmatpush2.msra.mxu1 %v1397_v59  ;;  %v1517_v59 = vld [vmem:[%s14187_s5 + $0x58] sm:$0xff] }
 0x3f9   : > { %v1472_v1 = vpop.xlane.xlu0 %1471  ;;  %v1337_v28 = vpop.xlane.xlu1 %1336  ;;  %1917 = vmatprep.subr.mxu1 %v14199_v34 }
 0x3fa   : > { %v1396_v30 = vmul.f32 0.0625, %v1337_v28  ;;  %1689 = vmatpush2.msra.mxu0 %v1472_v1  ;;  %v1578_v1 = vld [vmem:[#allocation3 + $0x40] sm:$0xff] }
 0x3fb   : > { %1690 = vmatprep.subr.mxu0 %v14199_v34  ;;  %v1516_v28 = vld [vmem:[%s14187_s5 + $0x50] sm:$0xff] }
 0x3fc   : > { %1918 = vmatpush2.msra.mxu1 %v1396_v30  ;;  %v1581_v30 = vld [vmem:[#allocation3 + $0x58] sm:$0xff] }
 0x3fd   : > { %v1469_v63 = vpop.xlane.xlu0 %1468  ;;  %v1334_v31 = vpop.xlane.xlu1 %1333  ;;  %1919 = vmatprep.subr.mxu1 %v14199_v34 }
 0x3fe   : > { %v1395_v12 = vmul.f32 0.0625, %v1334_v31  ;;  %1691 = vmatpush2.msra.mxu0 %v1469_v63  ;;  %v1519_v63 = vld [vmem:[%s14187_s5 + $0x68] sm:$0xff]  ;;  %v1580_v31 = vld [vmem:[#allocation3 + $0x50] sm:$0xff] }
 0x3ff   : > { %1692 = vmatprep.subr.mxu0 %v14199_v34 }
 0x400   : > { %1920 = vmatpush2.msra.mxu1 %v1395_v12  ;;  %v1518_v12 = vld [vmem:[%s14187_s5 + $0x60] sm:$0xff] }
 0x401   : > { %v1466_v2 = vpop.xlane.xlu0 %1465  ;;  %v1331_v15 = vpop.xlane.xlu1 %1330  ;;  %1921 = vmatprep.subr.mxu1 %v14199_v34 }
 0x402   : > { %v1394_v3 = vmul.f32 0.0625, %v1331_v15  ;;  %1693 = vmatpush2.msra.mxu0 %v1466_v2  ;;  %v1583_v2 = vld [vmem:[#allocation3 + $0x68] sm:$0xff] }
 0x403   : > { %1694 = vmatprep.subr.mxu0 %v14199_v34  ;;  %v1521_v15 = vld [vmem:[%s14187_s5 + $0x78] sm:$0xff] }
 0x404   : > { %1922 = vmatpush2.msra.mxu1 %v1394_v3  ;;  %v1582_v3 = vld [vmem:[#allocation3 + $0x60] sm:$0xff] }
 0x405   : > { %v1463_v11 = vpop.xlane.xlu0 %1462  ;;  %1924 = vmatmul.mubr.f32.vlgmr.msra.gmra.mxu1 %v1506_v36  ;;  %v1460_v8 = vpop.xlane.xlu1 %1459  ;;  %v1520_v36 = vld [vmem:[%s14187_s5 + $0x70] sm:$0xff] }
 0x406   : > { %1695 = vmatpush2.msra.mxu0 %v1463_v11  ;;  %1928 = vmatprep.mubr.f32.mxu1 %v1509_v32  ;;  %v1585_v32 = vld [vmem:[#allocation3 + $0x78] sm:$0xff] }
 0x407   : > { %1696 = vmatprep.subr.mxu0 %v14199_v34  ;;  %v1523_v11 = vld [vmem:[%s14187_s5 + $0x88] sm:$0xff] }
 0x408   : > { %1697 = vmatpush2.msra.mxu0 %v1460_v8  ;;  %v1587_v8 = vld [vmem:[#allocation3 + $0x88] sm:$0xff] }
 0x409   : > { %1699 = vmatmul.mubr.f32.vlgmr.msra.gmra.mxu0 %v1570_v33  ;;  %1929 = vmatmul.mubr.f32.gmra.mxu1 %v1508_v21  ;;  %v1584_v33 = vld [vmem:[#allocation3 + $0x70] sm:$0xff] }
 0x40a   : > { %1703 = vmatprep.mubr.f32.mxu0 %v1573_v23  ;;  %1933 = vmatprep.mubr.f32.mxu1 %v1511_v9  ;;  %v1522_v21 = vld [vmem:[%s14187_s5 + $0x80] sm:$0xff]  ;;  %v1525_v23 = vld [vmem:[%s14187_s5 + $0x98] sm:$0xff]  ;;  %v1586_v9 = vld [vmem:[#allocation3 + $0x80] sm:$0xff] }
 0x40d   : > { %1704 = vmatmul.mubr.f32.gmra.mxu0 %v1572_v35  ;;  %1934 = vmatmul.mubr.f32.gmra.mxu1 %v1510_v44  ;;  %v1524_v35 = vld [vmem:[%s14187_s5 + $0x90] sm:$0xff]  ;;  %v1589_v44 = vld [vmem:[#allocation3 + $0x98] sm:$0xff] }
 0x40e   : > { %1708 = vmatprep.mubr.f32.mxu0 %v1575_v52  ;;  %1938 = vmatprep.mubr.f32.mxu1 %v1513_v45  ;;  %v1527_v52 = vld [vmem:[%s14187_s5 + $0xa8] sm:$0xff]  ;;  %v1588_v45 = vld [vmem:[#allocation3 + $0x90] sm:$0xff] }
 0x411   : > { %1709 = vmatmul.mubr.f32.gmra.mxu0 %v1574_v53  ;;  %1939 = vmatmul.mubr.f32.gmra.mxu1 %v1512_v18  ;;  %v1526_v53 = vld [vmem:[%s14187_s5 + $0xa0] sm:$0xff]  ;;  %v1591_v18 = vld [vmem:[#allocation3 + $0xa8] sm:$0xff] }
 0x412   : > { %1713 = vmatprep.mubr.f32.mxu0 %v1577_v49  ;;  %1943 = vmatprep.mubr.f32.mxu1 %v1515_v19  ;;  %v1529_v49 = vld [vmem:[%s14187_s5 + $0xb8] sm:$0xff]  ;;  %v1590_v19 = vld [vmem:[#allocation3 + $0xa0] sm:$0xff] }
 0x415   : > { %1714 = vmatmul.mubr.f32.gmra.mxu0 %v1576_v57  ;;  %1944 = vmatmul.mubr.f32.gmra.mxu1 %v1514_v0  ;;  %v1528_v57 = vld [vmem:[%s14187_s5 + $0xb0] sm:$0xff]  ;;  %v1593_v0 = vld [vmem:[#allocation3 + $0xb8] sm:$0xff] }
 0x416   : > { %1718 = vmatprep.mubr.f32.mxu0 %v1579_v5  ;;  %1948 = vmatprep.mubr.f32.mxu1 %v1517_v59  ;;  %v1531_v5 = vld [vmem:[%s14187_s5 + $0xc8] sm:$0xff]  ;;  %v1592_v59 = vld [vmem:[#allocation3 + $0xb0] sm:$0xff] }
 0x419   : > { %1719 = vmatmul.mubr.f32.gmra.mxu0 %v1578_v1  ;;  %1949 = vmatmul.mubr.f32.gmra.mxu1 %v1516_v28  ;;  %v1530_v1 = vld [vmem:[%s14187_s5 + $0xc0] sm:$0xff]  ;;  %v1595_v28 = vld [vmem:[#allocation3 + $0xc8] sm:$0xff] }
 0x41a   : > { %1723 = vmatprep.mubr.f32.mxu0 %v1581_v30  ;;  %1953 = vmatprep.mubr.f32.mxu1 %v1519_v63  ;;  %v1533_v30 = vld [vmem:[%s14187_s5 + $0xd8] sm:$0xff]  ;;  %v1594_v63 = vld [vmem:[#allocation3 + $0xc0] sm:$0xff] }
 0x41d   : > { %1724 = vmatmul.mubr.f32.gmra.mxu0 %v1580_v31  ;;  %1954 = vmatmul.mubr.f32.gmra.mxu1 %v1518_v12  ;;  %v1532_v31 = vld [vmem:[%s14187_s5 + $0xd0] sm:$0xff]  ;;  %v1597_v12 = vld [vmem:[#allocation3 + $0xd8] sm:$0xff] }
 0x41e   : > { %1728 = vmatprep.mubr.f32.mxu0 %v1583_v2  ;;  %1958 = vmatprep.mubr.f32.mxu1 %v1521_v15  ;;  %v1535_v2 = vld [vmem:[%s14187_s5 + $0xe8] sm:$0xff]  ;;  %v1596_v15 = vld [vmem:[#allocation3 + $0xd0] sm:$0xff] }
 0x421   : > { %1729 = vmatmul.mubr.f32.gmra.mxu0 %v1582_v3  ;;  %1959 = vmatmul.mubr.f32.gmra.mxu1 %v1520_v36  ;;  %v1534_v3 = vld [vmem:[%s14187_s5 + $0xe0] sm:$0xff]  ;;  %v1599_v36 = vld [vmem:[#allocation3 + $0xe8] sm:$0xff] }
 0x422   : > { %1733 = vmatprep.mubr.f32.mxu0 %v1585_v32  ;;  %1963 = vmatprep.mubr.f32.mxu1 %v1523_v11  ;;  %v1537_v32 = vld [vmem:[%s14187_s5 + $0xf8] sm:$0xff]  ;;  %v1598_v11 = vld [vmem:[#allocation3 + $0xe0] sm:$0xff] }
 0x425   : > { %1734 = vmatmul.mubr.f32.gmra.mxu0 %v1584_v33  ;;  %1964 = vmatmul.mubr.f32.gmra.mxu1 %v1522_v21  ;;  %v1536_v33 = vld [vmem:[%s14187_s5 + $0xf0] sm:$0xff]  ;;  %v1601_v21 = vld [vmem:[#allocation3 + $0xf8] sm:$0xff] }
 0x426   : > { %1738 = vmatprep.mubr.f32.mxu0 %v1587_v8  ;;  %1968 = vmatprep.mubr.f32.mxu1 %v1525_v23  ;;  %v1539_v8 = vld [vmem:[%s14187_s5 + $0x108] sm:$0xff]  ;;  %v1600_v23 = vld [vmem:[#allocation3 + $0xf0] sm:$0xff] }
 0x429   : > { %1739 = vmatmul.mubr.f32.gmra.mxu0 %v1586_v9  ;;  %1969 = vmatmul.mubr.f32.gmra.mxu1 %v1524_v35  ;;  %v1538_v9 = vld [vmem:[%s14187_s5 + $0x100] sm:$0xff]  ;;  %v1603_v35 = vld [vmem:[#allocation3 + $0x108] sm:$0xff] }
 0x42a   : > { %1743 = vmatprep.mubr.f32.mxu0 %v1589_v44  ;;  %1973 = vmatprep.mubr.f32.mxu1 %v1527_v52  ;;  %v1541_v44 = vld [vmem:[%s14187_s5 + $0x118] sm:$0xff]  ;;  %v1602_v52 = vld [vmem:[#allocation3 + $0x100] sm:$0xff] }
 0x42d   : > { %1744 = vmatmul.mubr.f32.gmra.mxu0 %v1588_v45  ;;  %1974 = vmatmul.mubr.f32.gmra.mxu1 %v1526_v53  ;;  %v1540_v45 = vld [vmem:[%s14187_s5 + $0x110] sm:$0xff]  ;;  %v1605_v53 = vld [vmem:[#allocation3 + $0x118] sm:$0xff] }
 0x42e   : > { %1748 = vmatprep.mubr.f32.mxu0 %v1591_v18  ;;  %1978 = vmatprep.mubr.f32.mxu1 %v1529_v49  ;;  %v1543_v18 = vld [vmem:[%s14187_s5 + $0x128] sm:$0xff]  ;;  %v1604_v49 = vld [vmem:[#allocation3 + $0x110] sm:$0xff] }
 0x431   : > { %1749 = vmatmul.mubr.f32.gmra.mxu0 %v1590_v19  ;;  %1979 = vmatmul.mubr.f32.gmra.mxu1 %v1528_v57  ;;  %v1542_v19 = vld [vmem:[%s14187_s5 + $0x120] sm:$0xff]  ;;  %v1607_v57 = vld [vmem:[#allocation3 + $0x128] sm:$0xff] }
 0x432   : > { %1753 = vmatprep.mubr.f32.mxu0 %v1593_v0  ;;  %1983 = vmatprep.mubr.f32.mxu1 %v1531_v5  ;;  %v1545_v0 = vld [vmem:[%s14187_s5 + $0x138] sm:$0xff]  ;;  %v1606_v5 = vld [vmem:[#allocation3 + $0x120] sm:$0xff] }
 0x435   : > { %1754 = vmatmul.mubr.f32.gmra.mxu0 %v1592_v59  ;;  %1984 = vmatmul.mubr.f32.gmra.mxu1 %v1530_v1  ;;  %v1544_v59 = vld [vmem:[%s14187_s5 + $0x130] sm:$0xff]  ;;  %v1609_v1 = vld [vmem:[#allocation3 + $0x138] sm:$0xff] }
 0x436   : > { %1758 = vmatprep.mubr.f32.mxu0 %v1595_v28  ;;  %1988 = vmatprep.mubr.f32.mxu1 %v1533_v30  ;;  %v1547_v28 = vld [vmem:[%s14187_s5 + $0x148] sm:$0xff]  ;;  %v1608_v30 = vld [vmem:[#allocation3 + $0x130] sm:$0xff] }
 0x439   : > { %1759 = vmatmul.mubr.f32.gmra.mxu0 %v1594_v63  ;;  %1989 = vmatmul.mubr.f32.gmra.mxu1 %v1532_v31  ;;  %v1546_v63 = vld [vmem:[%s14187_s5 + $0x140] sm:$0xff]  ;;  %v1611_v31 = vld [vmem:[#allocation3 + $0x148] sm:$0xff] }
 0x43a   : > { %1763 = vmatprep.mubr.f32.mxu0 %v1597_v12  ;;  %1993 = vmatprep.mubr.f32.mxu1 %v1535_v2  ;;  %v1549_v12 = vld [vmem:[%s14187_s5 + $0x158] sm:$0xff]  ;;  %v1610_v2 = vld [vmem:[#allocation3 + $0x140] sm:$0xff] }
 0x43d   : > { %1764 = vmatmul.mubr.f32.gmra.mxu0 %v1596_v15  ;;  %1994 = vmatmul.mubr.f32.gmra.mxu1 %v1534_v3  ;;  %v1548_v15 = vld [vmem:[%s14187_s5 + $0x150] sm:$0xff]  ;;  %v1613_v3 = vld [vmem:[#allocation3 + $0x158] sm:$0xff] }
 0x43e   : > { %1768 = vmatprep.mubr.f32.mxu0 %v1599_v36  ;;  %1998 = vmatprep.mubr.f32.mxu1 %v1537_v32  ;;  %v1551_v36 = vld [vmem:[%s14187_s5 + $0x168] sm:$0xff]  ;;  %v1612_v32 = vld [vmem:[#allocation3 + $0x150] sm:$0xff] }
 0x441   : > { %1769 = vmatmul.mubr.f32.gmra.mxu0 %v1598_v11  ;;  %1999 = vmatmul.mubr.f32.gmra.mxu1 %v1536_v33  ;;  %v1550_v11 = vld [vmem:[%s14187_s5 + $0x160] sm:$0xff]  ;;  %v1615_v33 = vld [vmem:[#allocation3 + $0x168] sm:$0xff] }
 0x442   : > { %1773 = vmatprep.mubr.f32.mxu0 %v1601_v21  ;;  %2003 = vmatprep.mubr.f32.mxu1 %v1539_v8  ;;  %v1553_v21 = vld [vmem:[%s14187_s5 + $0x178] sm:$0xff]  ;;  %v1614_v8 = vld [vmem:[#allocation3 + $0x160] sm:$0xff] }
 0x445   : > { %1774 = vmatmul.mubr.f32.gmra.mxu0 %v1600_v23  ;;  %2004 = vmatmul.mubr.f32.gmra.mxu1 %v1538_v9  ;;  %v1552_v23 = vld [vmem:[%s14187_s5 + $0x170] sm:$0xff]  ;;  %v1617_v9 = vld [vmem:[#allocation3 + $0x178] sm:$0xff] }
 0x446   : > { %1778 = vmatprep.mubr.f32.mxu0 %v1603_v35  ;;  %2008 = vmatprep.mubr.f32.mxu1 %v1541_v44  ;;  %v1555_v35 = vld [vmem:[%s14187_s5 + $0x188] sm:$0xff]  ;;  %v1616_v44 = vld [vmem:[#allocation3 + $0x170] sm:$0xff] }
 0x449   : > { %1779 = vmatmul.mubr.f32.gmra.mxu0 %v1602_v52  ;;  %2009 = vmatmul.mubr.f32.gmra.mxu1 %v1540_v45  ;;  %v1554_v52 = vld [vmem:[%s14187_s5 + $0x180] sm:$0xff]  ;;  %v1619_v45 = vld [vmem:[#allocation3 + $0x188] sm:$0xff] }
 0x44a   : > { %1783 = vmatprep.mubr.f32.mxu0 %v1605_v53  ;;  %2013 = vmatprep.mubr.f32.mxu1 %v1543_v18  ;;  %v1557_v53 = vld [vmem:[%s14187_s5 + $0x198] sm:$0xff]  ;;  %v1618_v18 = vld [vmem:[#allocation3 + $0x180] sm:$0xff] }
 0x44d   : > { %1784 = vmatmul.mubr.f32.gmra.mxu0 %v1604_v49  ;;  %2014 = vmatmul.mubr.f32.gmra.mxu1 %v1542_v19  ;;  %v1556_v49 = vld [vmem:[%s14187_s5 + $0x190] sm:$0xff]  ;;  %v1621_v19 = vld [vmem:[#allocation3 + $0x198] sm:$0xff] }
 0x44e   : > { %1788 = vmatprep.mubr.f32.mxu0 %v1607_v57  ;;  %2018 = vmatprep.mubr.f32.mxu1 %v1545_v0  ;;  %v1559_v57 = vld [vmem:[%s14187_s5 + $0x1a8] sm:$0xff]  ;;  %v1620_v0 = vld [vmem:[#allocation3 + $0x190] sm:$0xff] }
 0x451   : > { %1789 = vmatmul.mubr.f32.gmra.mxu0 %v1606_v5  ;;  %2019 = vmatmul.mubr.f32.gmra.mxu1 %v1544_v59  ;;  %v1558_v5 = vld [vmem:[%s14187_s5 + $0x1a0] sm:$0xff]  ;;  %v1623_v59 = vld [vmem:[#allocation3 + $0x1a8] sm:$0xff] }
 0x452   : > { %1793 = vmatprep.mubr.f32.mxu0 %v1609_v1  ;;  %2023 = vmatprep.mubr.f32.mxu1 %v1547_v28  ;;  %v1561_v1 = vld [vmem:[%s14187_s5 + $0x1b8] sm:$0xff]  ;;  %v1622_v28 = vld [vmem:[#allocation3 + $0x1a0] sm:$0xff] }
 0x455   : > { %1794 = vmatmul.mubr.f32.gmra.mxu0 %v1608_v30  ;;  %2024 = vmatmul.mubr.f32.gmra.mxu1 %v1546_v63  ;;  %v1560_v30 = vld [vmem:[%s14187_s5 + $0x1b0] sm:$0xff]  ;;  %v1625_v63 = vld [vmem:[#allocation3 + $0x1b8] sm:$0xff] }
 0x456   : > { %1798 = vmatprep.mubr.f32.mxu0 %v1611_v31  ;;  %2028 = vmatprep.mubr.f32.mxu1 %v1549_v12  ;;  %v1563_v31 = vld [vmem:[%s14187_s5 + $0x1c8] sm:$0xff]  ;;  %v1624_v12 = vld [vmem:[#allocation3 + $0x1b0] sm:$0xff] }
 0x459   : > { %1799 = vmatmul.mubr.f32.gmra.mxu0 %v1610_v2  ;;  %2029 = vmatmul.mubr.f32.gmra.mxu1 %v1548_v15  ;;  %v1562_v2 = vld [vmem:[%s14187_s5 + $0x1c0] sm:$0xff]  ;;  %v1627_v15 = vld [vmem:[#allocation3 + $0x1c8] sm:$0xff] }
 0x45a   : > { %1803 = vmatprep.mubr.f32.mxu0 %v1613_v3  ;;  %2033 = vmatprep.mubr.f32.mxu1 %v1551_v36  ;;  %v1565_v3 = vld [vmem:[%s14187_s5 + $0x1d8] sm:$0xff]  ;;  %v1626_v36 = vld [vmem:[#allocation3 + $0x1c0] sm:$0xff] }
 0x45d   : > { %1804 = vmatmul.mubr.f32.gmra.mxu0 %v1612_v32  ;;  %2034 = vmatmul.mubr.f32.gmra.mxu1 %v1550_v11  ;;  %v1564_v32 = vld [vmem:[%s14187_s5 + $0x1d0] sm:$0xff]  ;;  %v1629_v11 = vld [vmem:[#allocation3 + $0x1d8] sm:$0xff] }
 0x45e   : > { %1808 = vmatprep.mubr.f32.mxu0 %v1615_v33  ;;  %2038 = vmatprep.mubr.f32.mxu1 %v1553_v21  ;;  %v1567_v33 = vld [vmem:[%s14187_s5 + $0x1e8] sm:$0xff]  ;;  %v1628_v21 = vld [vmem:[#allocation3 + $0x1d0] sm:$0xff] }
 0x461   : > { %1809 = vmatmul.mubr.f32.gmra.mxu0 %v1614_v8  ;;  %2039 = vmatmul.mubr.f32.gmra.mxu1 %v1552_v23  ;;  %v1566_v8 = vld [vmem:[%s14187_s5 + $0x1e0] sm:$0xff]  ;;  %v1631_v23 = vld [vmem:[#allocation3 + $0x1e8] sm:$0xff] }
 0x462   : > { %1813 = vmatprep.mubr.f32.mxu0 %v1617_v9  ;;  %2043 = vmatprep.mubr.f32.mxu1 %v1555_v35  ;;  %v1569_v9 = vld [vmem:[%s14187_s5 + $0x1f8] sm:$0xff]  ;;  %v1630_v35 = vld [vmem:[#allocation3 + $0x1e0] sm:$0xff] }
 0x465   : > { %1814 = vmatmul.mubr.f32.gmra.mxu0 %v1616_v44  ;;  %2044 = vmatmul.mubr.f32.gmra.mxu1 %v1554_v52  ;;  %v1568_v44 = vld [vmem:[%s14187_s5 + $0x1f0] sm:$0xff]  ;;  %v1633_v52 = vld [vmem:[#allocation3 + $0x1f8] sm:$0xff] }
 0x466   : > { %1818 = vmatprep.mubr.f32.mxu0 %v1619_v45  ;;  %2048 = vmatprep.mubr.f32.mxu1 %v1557_v53  ;;  %v10671_v45 = vmov 0   ;;  %v1632_v53 = vld [vmem:[#allocation3 + $0x1f0] sm:$0xff] }
 0x467   : > { %10302 = vset.pattern.permute.xlu0 %v10671_v45  ;;  %10303 = vset.pattern.permute.xlu1 %v10671_v45 }
 0x469   : > { %1819 = vmatmul.mubr.f32.gmra.mxu0 %v1618_v18  ;;  %2049 = vmatmul.mubr.f32.gmra.mxu1 %v1556_v49 }
 0x46a   : > { %1823 = vmatprep.mubr.f32.mxu0 %v1621_v19  ;;  %2053 = vmatprep.mubr.f32.mxu1 %v1559_v57 }
 0x46d   : > { %1824 = vmatmul.mubr.f32.gmra.mxu0 %v1620_v0  ;;  %2054 = vmatmul.mubr.f32.gmra.mxu1 %v1558_v5 }
 0x46e   : > { %1828 = vmatprep.mubr.f32.mxu0 %v1623_v59  ;;  %2058 = vmatprep.mubr.f32.mxu1 %v1561_v1 }
 0x471   : > { %1829 = vmatmul.mubr.f32.gmra.mxu0 %v1622_v28  ;;  %2059 = vmatmul.mubr.f32.gmra.mxu1 %v1560_v30 }
 0x472   : > { %1833 = vmatprep.mubr.f32.mxu0 %v1625_v63  ;;  %2063 = vmatprep.mubr.f32.mxu1 %v1563_v31 }
 0x475   : > { %1834 = vmatmul.mubr.f32.gmra.mxu0 %v1624_v12  ;;  %2064 = vmatmul.mubr.f32.gmra.mxu1 %v1562_v2 }
 0x476   : > { %1838 = vmatprep.mubr.f32.mxu0 %v1627_v15  ;;  %2068 = vmatprep.mubr.f32.mxu1 %v1565_v3 }
 0x479   : > { %1839 = vmatmul.mubr.f32.gmra.mxu0 %v1626_v36  ;;  %2069 = vmatmul.mubr.f32.gmra.mxu1 %v1564_v32 }
 0x47a   : > { %1843 = vmatprep.mubr.f32.mxu0 %v1629_v11  ;;  %2073 = vmatprep.mubr.f32.mxu1 %v1567_v33 }
 0x47d   : > { %1844 = vmatmul.mubr.f32.gmra.mxu0 %v1628_v21  ;;  %2074 = vmatmul.mubr.f32.gmra.mxu1 %v1566_v8 }
 0x47e   : > { %1848 = vmatprep.mubr.f32.mxu0 %v1631_v23  ;;  %2078 = vmatprep.mubr.f32.mxu1 %v1569_v9 }
 0x481   : > { %1849 = vmatmul.mubr.f32.gmra.mxu0 %v1630_v35  ;;  %2079 = vmatmul.mubr.f32.gmra.mxu1 %v1568_v44 }
 0x482   : > { %1853 = vmatprep.mubr.f32.mxu0 %v1633_v52 }
 0x485   : > { %1854 = vmatmul.mubr.f32.gmra.mxu0 %v1632_v53 }
 0x4c5   : > { %v1925_v18 = vpop.f32.mrf.mxu1 }
 0x4c7   : > { %v1927_v49 = vpop.f32.mrf.mxu1 }
 0x4c9   : > { %v1700_v19 = vpop.f32.mrf.mxu0  ;;  %v1930_v57 = vpop.f32.mrf.mxu1 }
 0x4ca   : > { %v1926_v0 = vadd.f32 %v1925_v18, %v1700_v19 }
 0x4cb   : > { %v1702_v5 = vpop.f32.mrf.mxu0  ;;  %v1932_v59 = vpop.f32.mrf.mxu1 }
 0x4cc   : > { %v8833_v1 = vmul.f32 -1.442695, %v1926_v0 }
 0x4cd   : > { %v1705_v28 = vpop.f32.mrf.mxu0  ;;  %v1935_v30 = vpop.f32.mrf.mxu1 }
 0x4ce   : > { %10308 = vpow2.f32 %v8833_v1  ;;  %v1931_v63 = vadd.f32 %v1930_v57, %v1705_v28 }
 0x4cf   : > { %v1707_v31 = vpop.f32.mrf.mxu0  ;;  %v1937_v12 = vpop.f32.mrf.mxu1 }
 0x4d0   : > { %v8834_v2 = vmul.f32 -1.442695, %v1931_v63 }
 0x4d1   : > { %v1710_v15 = vpop.f32.mrf.mxu0  ;;  %v1940_v3 = vpop.f32.mrf.mxu1 }
 0x4d2   : > { %10310 = vpow2.f32 %v8834_v2  ;;  %v1936_v36 = vadd.f32 %v1935_v30, %v1710_v15 }
 0x4d3   : > { %v1712_v32 = vpop.f32.mrf.mxu0  ;;  %v1942_v11 = vpop.f32.mrf.mxu1 }
 0x4d4   : > { %v8835_v33 = vmul.f32 -1.442695, %v1936_v36 }
 0x4d5   : > { %v1715_v21 = vpop.f32.mrf.mxu0  ;;  %v1945_v8 = vpop.f32.mrf.mxu1 }
 0x4d6   : > { %10312 = vpow2.f32 %v8835_v33  ;;  %v1941_v23 = vadd.f32 %v1940_v3, %v1715_v21 }
 0x4d7   : > { %v1717_v9 = vpop.f32.mrf.mxu0  ;;  %v1947_v35 = vpop.f32.mrf.mxu1 }
 0x4d8   : > { %v8836_v44 = vmul.f32 -1.442695, %v1941_v23 }
 0x4d9   : > { %v1720_v52 = vpop.f32.mrf.mxu0  ;;  %v1950_v53 = vpop.f32.mrf.mxu1 }
 0x4da   : > { %10314 = vpow2.f32 %v8836_v44  ;;  %v1946_v18 = vadd.f32 %v1945_v8, %v1720_v52 }
 0x4db   : > { %v10309_v49 = vpop.eup %10308  ;;  %v1722_v19 = vpop.f32.mrf.mxu0 }
 0x4dc   : > { %v1952_v57 = vpop.f32.mrf.mxu1  ;;  %v2180_v0 = vadd.f32 1.0, %v10309_v49  ;;  %v8837_v5 = vmul.f32 -1.442695, %v1946_v18 }
 0x4dd   : > { %v1725_v59 = vpop.f32.mrf.mxu0 }
 0x4de   : > { %v1955_v1 = vpop.f32.mrf.mxu1  ;;  %10316 = vrcp.f32 %v2180_v0  ;;  %v1951_v28 = vadd.f32 %v1950_v53, %v1725_v59 }
 0x4df   : > { %v10311_v30 = vpop.eup %10310  ;;  %10318 = vpow2.f32 %v8837_v5  ;;  %v1727_v63 = vpop.f32.mrf.mxu0 }
 0x4e0   : > { %v1957_v31 = vpop.f32.mrf.mxu1  ;;  %v2181_v12 = vadd.f32 1.0, %v10311_v30  ;;  %v8838_v2 = vmul.f32 -1.442695, %v1951_v28 }
 0x4e1   : > { %v1730_v15 = vpop.f32.mrf.mxu0 }
 0x4e2   : > { %v1960_v3 = vpop.f32.mrf.mxu1  ;;  %10320 = vrcp.f32 %v2181_v12  ;;  %v1956_v36 = vadd.f32 %v1955_v1, %v1730_v15 }
 0x4e3   : > { %v10313_v32 = vpop.eup %10312  ;;  %10322 = vpow2.f32 %v8838_v2  ;;  %v1732_v11 = vpop.f32.mrf.mxu0 }
 0x4e4   : > { %v1962_v33 = vpop.f32.mrf.mxu1  ;;  %v2182_v21 = vadd.f32 1.0, %v10313_v32  ;;  %v8839_v8 = vmul.f32 -1.442695, %v1956_v36 }
 0x4e5   : > { %v1735_v23 = vpop.f32.mrf.mxu0 }
 0x4e6   : > { %v1965_v9 = vpop.f32.mrf.mxu1  ;;  %10324 = vrcp.f32 %v2182_v21  ;;  %v1961_v35 = vadd.f32 %v1960_v3, %v1735_v23 }
 0x4e7   : > { %v10315_v44 = vpop.eup %10314  ;;  %10326 = vpow2.f32 %v8839_v8  ;;  %v1737_v52 = vpop.f32.mrf.mxu0 }
 0x4e8   : > { %v1967_v53 = vpop.f32.mrf.mxu1  ;;  %v2183_v18 = vadd.f32 1.0, %v10315_v44  ;;  %v8840_v49 = vmul.f32 -1.442695, %v1961_v35 }
 0x4e9   : > { %v1740_v19 = vpop.f32.mrf.mxu0 }
 0x4ea   : > { %v1970_v57 = vpop.f32.mrf.mxu1  ;;  %10328 = vrcp.f32 %v2183_v18  ;;  %v1966_v0 = vadd.f32 %v1965_v9, %v1740_v19 }
 0x4eb   : > { %v10317_v5 = vpop.eup %10316  ;;  %10330 = vpow2.f32 %v8840_v49  ;;  %v1742_v59 = vpop.f32.mrf.mxu0 }
 0x4ec   : > { %v1972_v1 = vpop.f32.mrf.mxu1  ;;  %v10319_v28 = vpop.eup %10318  ;;  %v8841_v30 = vmul.f32 -1.442695, %v1966_v0  ;;  %2278 = vperm.xlu0 %10302, %v10317_v5  }
 0x4ed   : > { %v2184_v63 = vadd.f32 1.0, %v10319_v28  ;;  %v1745_v31 = vpop.f32.mrf.mxu0 }
 0x4ee   : > { %v1975_v12 = vpop.f32.mrf.mxu1  ;;  %10332 = vpow2.f32 %v8841_v30  ;;  %v1971_v2 = vadd.f32 %v1970_v57, %v1745_v31 }
 0x4ef   : > { %v10321_v15 = vpop.eup %10320  ;;  %10334 = vrcp.f32 %v2184_v63  ;;  %v1747_v3 = vpop.f32.mrf.mxu0 }
 0x4f0   : > { %v1977_v36 = vpop.f32.mrf.mxu1  ;;  %v10323_v32 = vpop.eup %10322  ;;  %v8842_v11 = vmul.f32 -1.442695, %v1971_v2  ;;  %2283 = vperm.xlu1 %10303, %v10321_v15  }
 0x4f1   : > { %v2185_v33 = vadd.f32 1.0, %v10323_v32  ;;  %v1750_v21 = vpop.f32.mrf.mxu0 }
 0x4f2   : > { %v1980_v8 = vpop.f32.mrf.mxu1  ;;  %10336 = vpow2.f32 %v8842_v11  ;;  %v1976_v23 = vadd.f32 %v1975_v12, %v1750_v21 }
 0x4f3   : > { %v10325_v9 = vpop.eup %10324  ;;  %10338 = vrcp.f32 %v2185_v33  ;;  %v1752_v35 = vpop.f32.mrf.mxu0 }
 0x4f4   : > { %v1982_v44 = vpop.f32.mrf.mxu1  ;;  %v10327_v52 = vpop.eup %10326  ;;  %v8843_v53 = vmul.f32 -1.442695, %v1976_v23  ;;  %2288 = vperm.xlu1 %10303, %v10325_v9  }
 0x4f5   : > { %v2186_v18 = vadd.f32 1.0, %v10327_v52  ;;  %v1755_v49 = vpop.f32.mrf.mxu0 }
 0x4f6   : > { %v1985_v19 = vpop.f32.mrf.mxu1  ;;  %10340 = vpow2.f32 %v8843_v53  ;;  %v1981_v57 = vadd.f32 %v1980_v8, %v1755_v49 }
 0x4f7   : > { %v10329_v0 = vpop.eup %10328  ;;  %10342 = vrcp.f32 %v2186_v18  ;;  %v1757_v5 = vpop.f32.mrf.mxu0 }
 0x4f8   : > { %v1987_v59 = vpop.f32.mrf.mxu1  ;;  %v10331_v1 = vpop.eup %10330  ;;  %v8844_v28 = vmul.f32 -1.442695, %v1981_v57  ;;  %2293 = vperm.xlu1 %10303, %v10329_v0  }
 0x4f9   : > { %v2187_v30 = vadd.f32 1.0, %v10331_v1  ;;  %v1760_v63 = vpop.f32.mrf.mxu0 }
 0x4fa   : > { %v1990_v31 = vpop.f32.mrf.mxu1  ;;  %10344 = vpow2.f32 %v8844_v28  ;;  %v1986_v12 = vadd.f32 %v1985_v19, %v1760_v63 }
 0x4fb   : > { %v10333_v2 = vpop.eup %10332  ;;  %10346 = vrcp.f32 %v2187_v30  ;;  %v1762_v15 = vpop.f32.mrf.mxu0 }
 0x4fc   : > { %v1992_v3 = vpop.f32.mrf.mxu1  ;;  %v10335_v36 = vpop.eup %10334  ;;  %v2188_v32 = vadd.f32 1.0, %v10333_v2  ;;  %v8845_v11 = vmul.f32 -1.442695, %v1986_v12 }
 0x4fd   : > { %2298 = vperm.xlu1 %10303, %v10335_v36   ;;  %v1765_v33 = vpop.f32.mrf.mxu0 }
 0x4fe   : > { %v1995_v21 = vpop.f32.mrf.mxu1  ;;  %10348 = vrcp.f32 %v2188_v32  ;;  %v1991_v8 = vadd.f32 %v1990_v31, %v1765_v33 }
 0x4ff   : > { %v10337_v23 = vpop.eup %10336  ;;  %10350 = vpow2.f32 %v8845_v11  ;;  %v1767_v9 = vpop.f32.mrf.mxu0 }
 0x500   : > { %v1997_v35 = vpop.f32.mrf.mxu1  ;;  %v10339_v44 = vpop.eup %10338  ;;  %v2189_v52 = vadd.f32 1.0, %v10337_v23  ;;  %v8846_v53 = vmul.f32 -1.442695, %v1991_v8 }
 0x501   : > { %2303 = vperm.xlu1 %10303, %v10339_v44   ;;  %v1770_v18 = vpop.f32.mrf.mxu0 }
 0x502   : > { %v2000_v49 = vpop.f32.mrf.mxu1  ;;  %10352 = vrcp.f32 %v2189_v52  ;;  %v1996_v19 = vadd.f32 %v1995_v21, %v1770_v18 }
 0x503   : > { %v10341_v57 = vpop.eup %10340  ;;  %10354 = vpow2.f32 %v8846_v53  ;;  %v1772_v0 = vpop.f32.mrf.mxu0 }
 0x504   : > { %v2002_v5 = vpop.f32.mrf.mxu1  ;;  %v10343_v59 = vpop.eup %10342  ;;  %v2190_v1 = vadd.f32 1.0, %v10341_v57  ;;  %v8847_v28 = vmul.f32 -1.442695, %v1996_v19 }
 0x505   : > { %2308 = vperm.xlu1 %10303, %v10343_v59   ;;  %v1775_v30 = vpop.f32.mrf.mxu0 }
 0x506   : > { %v2005_v63 = vpop.f32.mrf.mxu1  ;;  %10356 = vrcp.f32 %v2190_v1  ;;  %v2001_v31 = vadd.f32 %v2000_v49, %v1775_v30 }
 0x507   : > { %v10345_v12 = vpop.eup %10344  ;;  %10358 = vpow2.f32 %v8847_v28  ;;  %v1777_v2 = vpop.f32.mrf.mxu0 }
 0x508   : > { %v2007_v15 = vpop.f32.mrf.mxu1  ;;  %v10347_v3 = vpop.eup %10346  ;;  %v2191_v36 = vadd.f32 1.0, %v10345_v12  ;;  %v8848_v32 = vmul.f32 -1.442695, %v2001_v31 }
 0x509   : > { %2313 = vperm.xlu1 %10303, %v10347_v3   ;;  %v1780_v11 = vpop.f32.mrf.mxu0 }
 0x50a   : > { %v2010_v33 = vpop.f32.mrf.mxu1  ;;  %10360 = vrcp.f32 %v2191_v36  ;;  %v2006_v21 = vadd.f32 %v2005_v63, %v1780_v11 }
 0x50b   : > { %v10349_v8 = vpop.eup %10348  ;;  %10362 = vpow2.f32 %v8848_v32  ;;  %v1782_v23 = vpop.f32.mrf.mxu0 }
 0x50c   : > { %v2012_v9 = vpop.f32.mrf.mxu1  ;;  %v10351_v35 = vpop.eup %10350  ;;  %v8849_v44 = vmul.f32 -1.442695, %v2006_v21 }
 0x50d   : > { %v2192_v52 = vadd.f32 1.0, %v10351_v35  ;;  %2318 = vperm.xlu1 %10303, %v10349_v8   ;;  %v1785_v53 = vpop.f32.mrf.mxu0 }
 0x50e   : > { %v2015_v18 = vpop.f32.mrf.mxu1  ;;  %10364 = vpow2.f32 %v8849_v44  ;;  %v2011_v49 = vadd.f32 %v2010_v33, %v1785_v53 }
 0x50f   : > { %v10353_v19 = vpop.eup %10352  ;;  %10366 = vrcp.f32 %v2192_v52  ;;  %v1787_v57 = vpop.f32.mrf.mxu0 }
 0x510   : > { %v2017_v0 = vpop.f32.mrf.mxu1  ;;  %v10355_v5 = vpop.eup %10354  ;;  %v8850_v59 = vmul.f32 -1.442695, %v2011_v49  ;;  %2323 = vperm.xlu0 %10302, %v10353_v19  }
 0x511   : > { %v2193_v1 = vadd.f32 1.0, %v10355_v5  ;;  %v1790_v28 = vpop.f32.mrf.mxu0 }
 0x512   : > { %v2020_v30 = vpop.f32.mrf.mxu1  ;;  %10368 = vpow2.f32 %v8850_v59  ;;  %v2016_v63 = vadd.f32 %v2015_v18, %v1790_v28 }
 0x513   : > { %v10357_v31 = vpop.eup %10356  ;;  %10370 = vrcp.f32 %v2193_v1  ;;  %v1792_v12 = vpop.f32.mrf.mxu0 }
 0x514   : > { %v2022_v2 = vpop.f32.mrf.mxu1  ;;  %v10359_v15 = vpop.eup %10358  ;;  %v8851_v3 = vmul.f32 -1.442695, %v2016_v63  ;;  %2328 = vperm.xlu1 %10303, %v10357_v31  }
 0x515   : > { %v2194_v36 = vadd.f32 1.0, %v10359_v15  ;;  %v1795_v32 = vpop.f32.mrf.mxu0 }
 0x516   : > { %v2025_v11 = vpop.f32.mrf.mxu1  ;;  %10372 = vpow2.f32 %v8851_v3  ;;  %v2021_v33 = vadd.f32 %v2020_v30, %v1795_v32 }
 0x517   : > { %v10361_v21 = vpop.eup %10360  ;;  %10374 = vrcp.f32 %v2194_v36  ;;  %v1797_v8 = vpop.f32.mrf.mxu0 }
 0x518   : > { %v2027_v23 = vpop.f32.mrf.mxu1  ;;  %v10363_v9 = vpop.eup %10362  ;;  %v8852_v35 = vmul.f32 -1.442695, %v2021_v33  ;;  %2333 = vperm.xlu0 %10302, %v10361_v21  }
 0x519   : > { %v2195_v44 = vadd.f32 1.0, %v10363_v9  ;;  %v1800_v52 = vpop.f32.mrf.mxu0 }
 0x51a   : > { %v2030_v53 = vpop.f32.mrf.mxu1  ;;  %10376 = vpow2.f32 %v8852_v35  ;;  %v2026_v18 = vadd.f32 %v2025_v11, %v1800_v52 }
 0x51b   : > { %v10365_v49 = vpop.eup %10364  ;;  %10378 = vrcp.f32 %v2195_v44  ;;  %v1802_v19 = vpop.f32.mrf.mxu0 }
 0x51c   : > { %v2032_v57 = vpop.f32.mrf.mxu1  ;;  %v10367_v0 = vpop.eup %10366  ;;  %v2196_v5 = vadd.f32 1.0, %v10365_v49  ;;  %v8853_v59 = vmul.f32 -1.442695, %v2026_v18 }
 0x51d   : > { %2338 = vperm.xlu1 %10303, %v10367_v0   ;;  %v1805_v1 = vpop.f32.mrf.mxu0 }
 0x51e   : > { %v2035_v28 = vpop.f32.mrf.mxu1  ;;  %10380 = vrcp.f32 %v2196_v5  ;;  %v2031_v30 = vadd.f32 %v2030_v53, %v1805_v1 }
 0x51f   : > { %v10369_v63 = vpop.eup %10368  ;;  %10382 = vpow2.f32 %v8853_v59  ;;  %v1807_v31 = vpop.f32.mrf.mxu0 }
 0x520   : > { %v2037_v12 = vpop.f32.mrf.mxu1  ;;  %v10371_v2 = vpop.eup %10370  ;;  %v2197_v15 = vadd.f32 1.0, %v10369_v63  ;;  %v8854_v3 = vmul.f32 -1.442695, %v2031_v30 }
 0x521   : > { %2343 = vperm.xlu0 %10302, %v10371_v2   ;;  %v1810_v36 = vpop.f32.mrf.mxu0 }
 0x522   : > { %v2040_v32 = vpop.f32.mrf.mxu1  ;;  %10384 = vrcp.f32 %v2197_v15  ;;  %v2036_v11 = vadd.f32 %v2035_v28, %v1810_v36 }
 0x523   : > { %v10373_v33 = vpop.eup %10372  ;;  %10386 = vpow2.f32 %v8854_v3  ;;  %v1812_v21 = vpop.f32.mrf.mxu0 }
 0x524   : > { %v2042_v8 = vpop.f32.mrf.mxu1  ;;  %v10375_v23 = vpop.eup %10374  ;;  %v2198_v9 = vadd.f32 1.0, %v10373_v33  ;;  %v8855_v35 = vmul.f32 -1.442695, %v2036_v11 }
 0x525   : > { %2348 = vperm.xlu1 %10303, %v10375_v23   ;;  %v1815_v44 = vpop.f32.mrf.mxu0 }
 0x526   : > { %v2045_v52 = vpop.f32.mrf.mxu1  ;;  %10388 = vrcp.f32 %v2198_v9  ;;  %v2041_v53 = vadd.f32 %v2040_v32, %v1815_v44 }
 0x527   : > { %v10377_v18 = vpop.eup %10376  ;;  %10390 = vpow2.f32 %v8855_v35  ;;  %v1817_v49 = vpop.f32.mrf.mxu0 }
 0x528   : > { %v2047_v19 = vpop.f32.mrf.mxu1  ;;  %v10379_v57 = vpop.eup %10378  ;;  %v2199_v0 = vadd.f32 1.0, %v10377_v18  ;;  %v8856_v5 = vmul.f32 -1.442695, %v2041_v53 }
 0x529   : > { %2353 = vperm.xlu0 %10302, %v10379_v57   ;;  %v1820_v59 = vpop.f32.mrf.mxu0 }
 0x52a   : > { %v2050_v1 = vpop.f32.mrf.mxu1  ;;  %10392 = vrcp.f32 %v2199_v0  ;;  %v2046_v28 = vadd.f32 %v2045_v52, %v1820_v59 }
 0x52b   : > { %v10381_v30 = vpop.eup %10380  ;;  %10394 = vpow2.f32 %v8856_v5  ;;  %v1822_v63 = vpop.f32.mrf.mxu0 }
 0x52c   : > { %v2052_v31 = vpop.f32.mrf.mxu1  ;;  %v10383_v12 = vpop.eup %10382  ;;  %v8857_v2 = vmul.f32 -1.442695, %v2046_v28  ;;  %2358 = vperm.xlu1 %10303, %v10381_v30  }
 0x52d   : > { %v2200_v15 = vadd.f32 1.0, %v10383_v12  ;;  %v1825_v3 = vpop.f32.mrf.mxu0 }
 0x52e   : > { %v2055_v36 = vpop.f32.mrf.mxu1  ;;  %10396 = vpow2.f32 %v8857_v2  ;;  %v2051_v32 = vadd.f32 %v2050_v1, %v1825_v3 }
 0x52f   : > { %v10385_v11 = vpop.eup %10384  ;;  %10398 = vrcp.f32 %v2200_v15  ;;  %v1827_v33 = vpop.f32.mrf.mxu0 }
 0x530   : > { %v2057_v21 = vpop.f32.mrf.mxu1  ;;  %v10387_v8 = vpop.eup %10386  ;;  %v8858_v23 = vmul.f32 -1.442695, %v2051_v32  ;;  %2363 = vperm.xlu0 %10302, %v10385_v11  }
 0x531   : > { %v2201_v9 = vadd.f32 1.0, %v10387_v8  ;;  %v1830_v35 = vpop.f32.mrf.mxu0 }
 0x532   : > { %v2060_v44 = vpop.f32.mrf.mxu1  ;;  %10400 = vpow2.f32 %v8858_v23  ;;  %v2056_v52 = vadd.f32 %v2055_v36, %v1830_v35 }
 0x533   : > { %v10389_v53 = vpop.eup %10388  ;;  %10402 = vrcp.f32 %v2201_v9  ;;  %v1832_v18 = vpop.f32.mrf.mxu0 }
 0x534   : > { %v2062_v49 = vpop.f32.mrf.mxu1  ;;  %v10391_v19 = vpop.eup %10390  ;;  %v8859_v57 = vmul.f32 -1.442695, %v2056_v52  ;;  %2368 = vperm.xlu1 %10303, %v10389_v53  }
 0x535   : > { %v2202_v0 = vadd.f32 1.0, %v10391_v19  ;;  %v1835_v5 = vpop.f32.mrf.mxu0 }
 0x536   : > { %v2065_v59 = vpop.f32.mrf.mxu1  ;;  %10404 = vpow2.f32 %v8859_v57  ;;  %v2061_v1 = vadd.f32 %v2060_v44, %v1835_v5 }
 0x537   : > { %v10393_v28 = vpop.eup %10392  ;;  %10406 = vrcp.f32 %v2202_v0  ;;  %v1837_v30 = vpop.f32.mrf.mxu0 }
 0x538   : > { %v2067_v63 = vpop.f32.mrf.mxu1  ;;  %v10395_v31 = vpop.eup %10394  ;;  %v8860_v12 = vmul.f32 -1.442695, %v2061_v1  ;;  %2373 = vperm.xlu0 %10302, %v10393_v28  }
 0x539   : > { %v2203_v2 = vadd.f32 1.0, %v10395_v31  ;;  %v1840_v15 = vpop.f32.mrf.mxu0 }
 0x53a   : > { %v2070_v3 = vpop.f32.mrf.mxu1  ;;  %10408 = vpow2.f32 %v8860_v12  ;;  %v2066_v36 = vadd.f32 %v2065_v59, %v1840_v15 }
 0x53b   : > { %v10397_v32 = vpop.eup %10396  ;;  %10410 = vrcp.f32 %v2203_v2  ;;  %v1842_v11 = vpop.f32.mrf.mxu0 }
 0x53c   : > { %v2072_v33 = vpop.f32.mrf.mxu1  ;;  %v10399_v21 = vpop.eup %10398  ;;  %v2204_v8 = vadd.f32 1.0, %v10397_v32  ;;  %v8861_v23 = vmul.f32 -1.442695, %v2066_v36 }
 0x53d   : > { %2378 = vperm.xlu1 %10303, %v10399_v21   ;;  %v1845_v9 = vpop.f32.mrf.mxu0 }
 0x53e   : > { %v2075_v35 = vpop.f32.mrf.mxu1  ;;  %10412 = vrcp.f32 %v2204_v8  ;;  %v2071_v44 = vadd.f32 %v2070_v3, %v1845_v9 }
 0x53f   : > { %v10401_v52 = vpop.eup %10400  ;;  %10414 = vpow2.f32 %v8861_v23  ;;  %v1847_v53 = vpop.f32.mrf.mxu0 }
 0x540   : > { %v2077_v18 = vpop.f32.mrf.mxu1  ;;  %v10403_v49 = vpop.eup %10402  ;;  %v2205_v19 = vadd.f32 1.0, %v10401_v52  ;;  %v8862_v57 = vmul.f32 -1.442695, %v2071_v44 }
 0x541   : > { %2383 = vperm.xlu0 %10302, %v10403_v49   ;;  %v1850_v0 = vpop.f32.mrf.mxu0 }
 0x542   : > { %v2080_v5 = vpop.f32.mrf.mxu1  ;;  %10416 = vrcp.f32 %v2205_v19  ;;  %v2076_v59 = vadd.f32 %v2075_v35, %v1850_v0 }
 0x543   : > { %v10405_v1 = vpop.eup %10404  ;;  %10418 = vpow2.f32 %v8862_v57  ;;  %v1852_v28 = vpop.f32.mrf.mxu0 }
 0x544   : > { %v2082_v30 = vpop.f32.mrf.mxu1  ;;  %v10407_v63 = vpop.eup %10406  ;;  %v2206_v31 = vadd.f32 1.0, %v10405_v1  ;;  %v8863_v12 = vmul.f32 -1.442695, %v2076_v59 }
 0x545   : > { %2388 = vperm.xlu1 %10303, %v10407_v63   ;;  %v1855_v2 = vpop.f32.mrf.mxu0 }
 0x546   : > { %10420 = vrcp.f32 %v2206_v31  ;;  %v2081_v15 = vadd.f32 %v2080_v5, %v1855_v2 }
 0x547   : > { %v10409_v3 = vpop.eup %10408  ;;  %10422 = vpow2.f32 %v8863_v12  ;;  %v1857_v36 = vpop.f32.mrf.mxu0 }
 0x548   : > { %v10411_v32 = vpop.eup %10410  ;;  %v2207_v11 = vadd.f32 1.0, %v10409_v3  ;;  %v8864_v33 = vmul.f32 -1.442695, %v2081_v15 }
 0x549   : > { %2393 = vperm.xlu0 %10302, %v10411_v32  }
 0x54a   : > { %10424 = vrcp.f32 %v2207_v11 }
 0x54b   : > { %v10413_v21 = vpop.eup %10412  ;;  %10426 = vpow2.f32 %v8864_v33 }
 0x54c   : > { %v10415_v8 = vpop.eup %10414  ;;  %2398 = vperm.xlu1 %10303, %v10413_v21  }
 0x54d   : > { %v2208_v23 = vadd.f32 1.0, %v10415_v8 }
 0x54f   : > { %v10417_v9 = vpop.eup %10416  ;;  %10428 = vrcp.f32 %v2208_v23 }
 0x550   : > { %v10419_v35 = vpop.eup %10418  ;;  %2403 = vperm.xlu0 %10302, %v10417_v9  }
 0x551   : > { %v2209_v44 = vadd.f32 1.0, %v10419_v35 }
 0x553   : > { %v10421_v52 = vpop.eup %10420  ;;  %10430 = vrcp.f32 %v2209_v44 }
 0x554   : > { %v10423_v53 = vpop.eup %10422  ;;  %2408 = vperm.xlu1 %10303, %v10421_v52  }
 0x555   : > { %v2210_v18 = vadd.f32 1.0, %v10423_v53 }
 0x557   : > { %v10425_v49 = vpop.eup %10424  ;;  %10432 = vrcp.f32 %v2210_v18 }
 0x558   : > { %v10427_v19 = vpop.eup %10426  ;;  %2413 = vperm.xlu0 %10302, %v10425_v49  }
 0x559   : > { %v2211_v57 = vadd.f32 1.0, %v10427_v19 }
 0x55b   : > { %10434 = vrcp.f32 %v2211_v57 }
 0x55c   : > { %v10429_v0 = vpop.eup %10428 }
 0x55d   : > { %2418 = vperm.xlu1 %10303, %v10429_v0  }
 0x560   : > { %v10431_v5 = vpop.eup %10430 }
 0x561   : > { %2423 = vperm.xlu0 %10302, %v10431_v5  }
 0x564   : > { %v10433_v59 = vpop.eup %10432 }
 0x565   : > { %2428 = vperm.xlu1 %10303, %v10433_v59  }
 0x567   : > { %v2279_v1 = vpop.permute.xlu0 %2278 }
 0x568   : > { %v10435_v28 = vpop.eup %10434  ;;  %v11674_v30 = vmul.f32 %v2279_v1, %v11279_v37 }
 0x569   : > { %2433 = vperm.xlu0 %10302, %v10435_v28  }
 0x56b   : > { %v2284_v63 = vpop.permute.xlu1 %2283 }
 0x56c   : > { %v11677_v31 = vmul.f32 %v2284_v63, %v11271_v25 }
 0x56f   : > { %v2289_v12 = vpop.permute.xlu1 %2288 }
 0x570   : > { %v11680_v2 = vmul.f32 %v2289_v12, %v11263_v22 }
 0x573   : > { %v2294_v15 = vpop.permute.xlu1 %2293 }
 0x574   : > { %v11683_v3 = vmul.f32 %v2294_v15, %v11255_v14 }
 0x578   : > { %v2299_v36 = vpop.permute.xlu1 %2298 }
 0x579   : > { %v11686_v32 = vmul.f32 %v2299_v36, %v11247_v10 }
 0x57c   : > { %v2304_v11 = vpop.permute.xlu1 %2303 }
 0x57d   : > { %v11689_v37 = vmul.f32 %v2304_v11, %v11239_v20 }
 0x580   : > { %v2309_v33 = vpop.permute.xlu1 %2308 }
 0x581   : > { %v11692_v25 = vmul.f32 %v2309_v33, %v11231_v13 }
 0x584   : > { %v2314_v21 = vpop.permute.xlu1 %2313 }
 0x585   : > { %v11695_v22 = vmul.f32 %v2314_v21, %v11223_v4 }
 0x588   : > { %v2319_v8 = vpop.permute.xlu1 %2318 }
 0x589   : > { %v11698_v14 = vmul.f32 %v2319_v8, %v11215_v62 }
 0x58b   : > { %v2324_v23 = vpop.permute.xlu0 %2323 }
 0x58c   : > { %v11701_v10 = vmul.f32 %v2324_v23, %v11207_v58 }
 0x58f   : > { %v2329_v9 = vpop.permute.xlu1 %2328 }
 0x590   : > { %v11704_v20 = vmul.f32 %v2329_v9, %v11199_v56 }
 0x593   : > { %v2334_v35 = vpop.permute.xlu0 %2333 }
 0x594   : > { %v11707_v13 = vmul.f32 %v2334_v35, %v11191_v48 }
 0x598   : > { %v2339_v44 = vpop.permute.xlu1 %2338 }
 0x599   : > { %v11710_v4 = vmul.f32 %v2339_v44, %v11183_v47 }
 0x59c   : > { %v2344_v52 = vpop.permute.xlu0 %2343 }
 0x59d   : > { %v11713_v62 = vmul.f32 %v2344_v52, %v11175_v41 }
 0x5a0   : > { %v2349_v53 = vpop.permute.xlu1 %2348 }
 0x5a1   : > { %v11716_v58 = vmul.f32 %v2349_v53, %v11171_v40 }
 0x5a4   : > { %v2354_v18 = vpop.permute.xlu0 %2353 }
 0x5a5   : > { %v11719_v56 = vmul.f32 %v2354_v18, %v11163_v29 }
 0x5a7   : > { %v2359_v49 = vpop.permute.xlu1 %2358 }
 0x5a8   : > { %v11722_v48 = vmul.f32 %v2359_v49, %v11407_v54 }
 0x5ab   : > { %v2364_v19 = vpop.permute.xlu0 %2363 }
 0x5ac   : > { %v11725_v47 = vmul.f32 %v2364_v19, %v11399_v43 }
 0x5af   : > { %v2369_v57 = vpop.permute.xlu1 %2368 }
 0x5b0   : > { %v11728_v41 = vmul.f32 %v2369_v57, %v11391_v42 }
 0x5b3   : > { %v2374_v0 = vpop.permute.xlu0 %2373 }
 0x5b4   : > { %v11731_v40 = vmul.f32 %v2374_v0, %v11383_v51 }
 0x5b8   : > { %v2379_v5 = vpop.permute.xlu1 %2378 }
 0x5b9   : > { %v11734_v29 = vmul.f32 %v2379_v5, %v11375_v50 }
 0x5bc   : > { %v2384_v59 = vpop.permute.xlu0 %2383 }
 0x5bd   : > { %v11737_v54 = vmul.f32 %v2384_v59, %v11367_v61 }
 0x5c0   : > { %v2389_v1 = vpop.permute.xlu1 %2388 }
 0x5c1   : > { %v11740_v43 = vmul.f32 %v2389_v1, %v11359_v60 }
 0x5c4   : > { %v2394_v28 = vpop.permute.xlu0 %2393 }
 0x5c5   : > { %v11743_v42 = vmul.f32 %v2394_v28, %v11351_v7 }
 0x5c7   : > { %v2399_v63 = vpop.permute.xlu1 %2398 }
 0x5c8   : > { %v11746_v51 = vmul.f32 %v2399_v63, %v11343_v6 }
 0x5cb   : > { %v2404_v12 = vpop.permute.xlu0 %2403 }
 0x5cc   : > { %v11749_v50 = vmul.f32 %v2404_v12, %v11335_v17 }
 0x5cf   : > { %v2409_v15 = vpop.permute.xlu1 %2408 }
 0x5d0   : > { %v11752_v61 = vmul.f32 %v2409_v15, %v11327_v16 }
 0x5d3   : > { %v2414_v36 = vpop.permute.xlu0 %2413 }
 0x5d4   : > { %v11755_v60 = vmul.f32 %v2414_v36, %v11319_v27 }
 0x5d8   : > { %v2419_v11 = vpop.permute.xlu1 %2418 }
 0x5d9   : > { %v11758_v7 = vmul.f32 %v2419_v11, %v11311_v26 }
 0x5dc   : > { %v2424_v33 = vpop.permute.xlu0 %2423 }
 0x5dd   : > { %v11761_v6 = vmul.f32 %v2424_v33, %v11303_v39 }
 0x5e0   : > { %v2429_v21 = vpop.permute.xlu1 %2428 }
 0x5e1   : > { %v11764_v17 = vmul.f32 %v2429_v21, %v11295_v38  ;;  %2471 = sbr.rel (%p14270_p3) target bundleno = 1514 (0x5ea), region = 96 }
 0x5e4   : > { %v2434_v8 = vpop.permute.xlu0 %2433 }
 0x5e5   : > { %v11767_v16 = vmul.f32 %v2434_v8, %v11287_v46 }
 0x5e6   : > { %v10672_v27 = vmov 0.0  }
 0x5e7   : > { %2472 = vst.msk [vmem:[#allocation2] sm:$0xff] %vm937_vm3, %v10672_v27  ;;  %2473 = vst.msk [vmem:[#allocation2 + $0x8] sm:$0xff] %vm937_vm3, %v10672_v27 }
 0x5e8   : > { %2474 = vst.msk [vmem:[#allocation2 + $0x10] sm:$0xff] %vm937_vm3, %v10672_v27  ;;  %2475 = vst.msk [vmem:[#allocation2 + $0x118] sm:$0xff] %vm937_vm3, %v10672_v27 }
 0x5e9   : > { %2476 = vst.msk [vmem:[#allocation2 + $0x120] sm:$0xff] %vm937_vm3, %v10672_v27  ;;  %2477 = vst.msk [vmem:[#allocation2 + $0x128] sm:$0xff] %vm937_vm3, %v10672_v27 }
 0x5ea PF: > { %v3185_v46 = vld [vmem:[%s14189_s7 + $0x8] sm:$0xff]  ;;  %v3184_v38 = vld [vmem:[%s14189_s7] sm:$0xff]  ;;  %v2545_v39 = vand.u32 15, %v11142_v55  ;;  %2478 = vst.msk [vmem:[#allocation2 + $0x18] sm:$0xff] %vm937_vm3, %v11674_v30  ;;  %v2511_v26 = vadd.s32 16, %v11142_v55  ;;  %2495 = vst.msk [vmem:[#allocation2 + $0xa0] sm:$0xff] %vm937_vm3, %v11725_v47  ;;  %10436 = vset.pattern.permute.xlu0 %v10671_v45  ;;  %10437 = vset.pattern.permute.xlu1 %v10671_v45 }
 0x5eb   : > { %2496 = vst.msk [vmem:[#allocation2 + $0xa8] sm:$0xff] %vm937_vm3, %v11728_v41  ;;  %v2529_v23 = vadd.s32 160, %v11142_v55  ;;  %2479 = vst.msk [vmem:[#allocation2 + $0x20] sm:$0xff] %vm937_vm3, %v11677_v31  ;;  %9721 = vmatprep.subr.mxu0 %v3185_v46  ;;  %10253 = vmatprep.subr.mxu1 %v3185_v46  ;;  %v2513_v35 = vadd.s32 32, %v11142_v55  ;;  %v2531_v44 = vadd.s32 176, %v11142_v55  ;;  %v2515_v52 = vadd.s32 48, %v11142_v55 }
 0x5ec   : > { %2497 = vst.msk [vmem:[#allocation2 + $0xb0] sm:$0xff] %vm937_vm3, %v11731_v40  ;;  %2480 = vst.msk [vmem:[#allocation2 + $0x28] sm:$0xff] %vm937_vm3, %v11680_v2  ;;  %v2533_v53 = vadd.s32 192, %v11142_v55  ;;  %9722 = vmatpush3.msra.mxu0 %v3185_v46  ;;  %vm2925_vm5 = vcmp.ne.s32.totalorder %v2545_v39, 0  ;;  %v8965_v18 = vld [vmem:[%s14189_s7 + $0x18] sm:$0xff]  ;;  %10255 = vmatpush3.msra.mxu1 %v3185_v46  ;;  %v2559_v49 = vand.u32 15, %v2511_v26 }
 0x5ed   : > { %2498 = vst.msk [vmem:[#allocation2 + $0xb8] sm:$0xff] %vm937_vm3, %v11734_v29  ;;  %2481 = vst.msk [vmem:[#allocation2 + $0x30] sm:$0xff] %vm937_vm3, %v11683_v3  ;;  %v2685_v45 = vand.u32 15, %v2529_v23  ;;  %v11862_v19 = vld [vmem:[%s14189_s7 + $0x48] sm:$0xff]  ;;  %v2517_v57 = vadd.s32 64, %v11142_v55  ;;  %9723 = vmatprep.subr.mxu0 %v3184_v38  ;;  %v11866_v0 = vsel %vm2925_vm5, 1.0, %v14199_v34  ;;  %10254 = vmatprep.subr.mxu1 %v3184_v38 }
 0x5ee   : > { %2499 = vst.msk [vmem:[#allocation2 + $0xc0] sm:$0xff] %vm937_vm3, %v11737_v54  ;;  %2482 = vst.msk [vmem:[#allocation2 + $0x38] sm:$0xff] %vm937_vm3, %v11686_v32  ;;  %v3120_v9 = vld [vmem:[#allocation2 + $0x7] sm:$0xff]  ;;  %v2573_v5 = vand.u32 15, %v2513_v35  ;;  %v2699_v59 = vand.u32 15, %v2531_v44  ;;  %v2587_v1 = vand.u32 15, %v2515_v52  ;;  %9724 = vmatpush3.msra.mxu0 %v3184_v38  ;;  %10256 = vmatpush3.msra.mxu1 %v3184_v38 }
 0x5ef   : > { %2500 = vst.msk [vmem:[#allocation2 + $0xc8] sm:$0xff] %vm937_vm3, %v11740_v43  ;;  %2483 = vst.msk [vmem:[#allocation2 + $0x40] sm:$0xff] %vm937_vm3, %v11689_v37  ;;  %v3152_v28 = vmul.f32 %v11866_v0, %v3120_v9  ;;  %v3121_v63 = vld [vmem:[#allocation2 + $0xf] sm:$0xff]  ;;  %vm2927_vm6 = vcmp.ne.s32.totalorder %v2559_v49, 0  ;;  %vm2945_vm7 = vcmp.ne.s32.totalorder %v2685_v45, 0  ;;  %v2713_v12 = vand.u32 15, %v2533_v53  ;;  %9825 = vmatprep.subr.mxu0 %v8965_v18  ;;  %9773 = vmatprep.subr.mxu1 %v11862_v19 }
 0x5f0   : > { %2501 = vst.msk [vmem:[#allocation2 + $0xd0] sm:$0xff] %vm937_vm3, %v11743_v42  ;;  %2484 = vst.msk [vmem:[#allocation2 + $0x48] sm:$0xff] %vm937_vm3, %v11692_v25  ;;  %v11870_v15 = vsel %vm2927_vm6, 1.0, %v14199_v34  ;;  %v11873_v36 = vsel %vm2945_vm7, 1.0, %v14199_v34  ;;  %vm2929_vm8 = vcmp.ne.s32.totalorder %v2573_v5, 0  ;;  %vm2947_vm9 = vcmp.ne.s32.totalorder %v2699_v59, 0 }
 0x5f1   : > { %2502 = vst.msk [vmem:[#allocation2 + $0xd8] sm:$0xff] %vm937_vm3, %v11746_v51  ;;  %2485 = vst.msk [vmem:[#allocation2 + $0x50] sm:$0xff] %vm937_vm3, %v11695_v22  ;;  %9725 = vmatprep.mubr.msk.f32.mxu0 %vm937_vm3, %v3152_v28  ;;  %v11878_v11 = vsel %vm2929_vm8, 1.0, %v14199_v34  ;;  %v11881_v33 = vsel %vm2947_vm9, 1.0, %v14199_v34  ;;  %vm2931_vm10 = vcmp.ne.s32.totalorder %v2587_v1, 0  ;;  %vm11883_vm11 = vcmp.ne.s32.totalorder %v2713_v12, 0 }
 0x5f2   : > { %2503 = vst.msk [vmem:[#allocation2 + $0xe0] sm:$0xff] %vm937_vm3, %v11749_v50  ;;  %2486 = vst.msk [vmem:[#allocation2 + $0x58] sm:$0xff] %vm937_vm3, %v11698_v14  ;;  %v8964_v8 = vld [vmem:[%s14189_s7 + $0x10] sm:$0xff]  ;;  %9726 = vmatmul.mubr.msk.f32.vlgmr.msra.gmra.mxu0 %vm937_vm3, %v3121_v63  ;;  %v11891_v46 = vld [vmem:[#allocation2 + $0xa7] sm:$0xff]  ;;  %v11896_v39 = vsel %vm2931_vm10, 1.0, %v14199_v34  ;;  %v2601_v26 = vand.u32 15, %v2517_v57 }
 0x5f3   : > { %2504 = vst.msk [vmem:[#allocation2 + $0xe8] sm:$0xff] %vm937_vm3, %v11752_v61  ;;  %2487 = vst.msk [vmem:[#allocation2 + $0x60] sm:$0xff] %vm937_vm3, %v11701_v10  ;;  %v3122_v27 = vld [vmem:[#allocation2 + $0x17] sm:$0xff]  ;;  %v11893_v38 = vld [vmem:[#allocation2 + $0x1f] sm:$0xff]  ;;  %9826 = vmatpush3.msra.mxu0 %v8965_v18  ;;  %v3172_v9 = vmul.f32 %v11873_v36, %v11891_v46  ;;  %v2535_v53 = vadd.s32 208, %v11142_v55  ;;  %v2519_v49 = vadd.s32 80, %v11142_v55 }
 0x5f4   : > { %2505 = vst.msk [vmem:[#allocation2 + $0xf0] sm:$0xff] %vm937_vm3, %v11755_v60  ;;  %2488 = vst.msk [vmem:[#allocation2 + $0x68] sm:$0xff] %vm937_vm3, %v11704_v20  ;;  %v3154_v23 = vmul.f32 %v11870_v15, %v3122_v27  ;;  %v11901_v35 = vld [vmem:[#allocation2 + $0xaf] sm:$0xff]  ;;  %v11903_v44 = vld [vmem:[#allocation2 + $0x27] sm:$0xff]  ;;  %v11918_v5 = vsel %vm11883_vm11, 1.0, %v14199_v34  ;;  %v2537_v59 = vadd.s32 224, %v11142_v55  ;;  %9827 = vmatprep.subr.mxu0 %v8964_v8 }
 0x5f5   : > { %2506 = vst.msk [vmem:[#allocation2 + $0xf8] sm:$0xff] %vm937_vm3, %v11758_v7  ;;  %2489 = vst.msk [vmem:[#allocation2 + $0x70] sm:$0xff] %vm937_vm3, %v11707_v13  ;;  %v11905_v52 = vld [vmem:[#allocation2 + $0xb7] sm:$0xff]  ;;  %v3156_v45 = vmul.f32 %v11878_v11, %v11903_v44  ;;  %9755 = vmatprep.mubr.msk.f32.mxu1 %vm937_vm3, %v3172_v9  ;;  %vm11925_vm12 = vcmp.ne.s32.totalorder %v2601_v26, 0  ;;  %v2727_v63 = vand.u32 15, %v2535_v53  ;;  %v2615_v12 = vand.u32 15, %v2519_v49  ;;  %9828 = vmatpush3.msra.mxu0 %v8964_v8 }
 0x5f6   : > { %2507 = vst.msk [vmem:[#allocation2 + $0x100] sm:$0xff] %vm937_vm3, %v11761_v6  ;;  %2490 = vst.msk [vmem:[#allocation2 + $0x78] sm:$0xff] %vm937_vm3, %v11710_v4  ;;  %v3174_v18 = vmul.f32 %v11881_v33, %v11905_v52  ;;  %v11913_v57 = vld [vmem:[#allocation2 + $0x37] sm:$0xff]  ;;  %9728 = vmatprep.mubr.msk.f32.mxu0 %vm937_vm3, %v3154_v23  ;;  %v11923_v1 = vld [vmem:[#allocation2 + $0xc7] sm:$0xff]  ;;  %9756 = vmatmul.mubr.msk.f32.vlgmr.msra.gmra.mxu1 %vm937_vm3, %v11901_v35  ;;  %v2741_v21 = vand.u32 15, %v2537_v59  ;;  %v2521_v24 = vadd.s32 96, %v11142_v55 }
 0x5f7   : > { %2491 = vst.msk [vmem:[#allocation2 + $0x80] sm:$0xff] %vm937_vm3, %v11713_v62  ;;  %2492 = vst.msk [vmem:[#allocation2 + $0x88] sm:$0xff] %vm937_vm3, %v11716_v58  ;;  %9729 = vmatmul.mubr.msk.f32.gmra.mxu0 %vm937_vm3, %v11893_v38  ;;  %v2539_v23 = vadd.s32 240, %v11142_v55  ;;  %v8898_v26 = vld [vmem:[%s14189_s7 + $0x40] sm:$0xff]  ;;  %v11941_v9 = vld [vmem:[%s14189_s7 + $0x38] sm:$0xff]  ;;  %v3158_v59 = vmul.f32 %v11896_v39, %v11913_v57  ;;  %v3176_v34 = vmul.f32 %v11918_v5, %v11923_v1  ;;  %vm2951_vm13 = vcmp.ne.s32.totalorder %v2727_v63, 0 }
 0x5f8   : > { %2493 = vst.msk [vmem:[#allocation2 + $0x90] sm:$0xff] %vm937_vm3, %v11719_v56  ;;  %2494 = vst.msk [vmem:[#allocation2 + $0x98] sm:$0xff] %vm937_vm3, %v11722_v48  ;;  %9731 = vmatprep.mubr.msk.f32.mxu0 %vm937_vm3, %v3156_v45  ;;  %9758 = vmatprep.mubr.msk.f32.mxu1 %vm937_vm3, %v3174_v18  ;;  %v11945_v53 = vld [vmem:[#allocation2 + $0x2f] sm:$0xff]  ;;  %v11947_v49 = vld [vmem:[#allocation2 + $0xbf] sm:$0xff]  ;;  %vm11966_vm14 = vcmp.ne.s32.totalorder %v2615_v12, 0  ;;  %vm11970_vm15 = vcmp.ne.s32.totalorder %v2741_v21, 0 }
 0x5f9   : > { %2508 = vst.msk [vmem:[#allocation2 + $0x108] sm:$0xff] %vm937_vm3, %v11764_v17  ;;  %2509 = vst.msk [vmem:[#allocation2 + $0x110] sm:$0xff] %vm937_vm3, %v11767_v16  ;;  %v11963_v18 = vld [vmem:[#allocation2 + $0xd7] sm:$0xff]  ;;  %9774 = vmatpush3.msra.mxu1 %v11862_v19  ;;  %v2755_v28 = vand.u32 15, %v2539_v23  ;;  %9929 = vmatprep.subr.mxu0 %v11941_v9  ;;  %v11987_v19 = vld [vmem:[#allocation2 + $0x3f] sm:$0xff]  ;;  %v11996_v23 = vmul.f32 %v11866_v0, %v3122_v27  ;;  %v2510_v63 = vadd.s32 8, %v11142_v55 }
 0x5fa   : > { %14271 = vst [vmem:[#allocation11_spill] sm:$0xff] %v11866_v0  ;;  %14272 = vst [vmem:[#allocation12_spill] sm:$0xff] %v11873_v36  ;;  %v11958_v36 = vld [vmem:[#allocation2 + $0x47] sm:$0xff]  ;;  %9775 = vmatprep.subr.mxu1 %v8898_v26  ;;  %9759 = vmatmul.mubr.msk.f32.gmra.mxu1 %vm937_vm3, %v11947_v49  ;;  %v11989_v8 = vld [vmem:[#allocation2 + $0xcf] sm:$0xff]  ;;  %v2525_v0 = vadd.s32 128, %v11142_v55 }
 0x5fb   : > { %14273 = vst [vmem:[#allocation13_spill] sm:$0xff] %v11881_v33  ;;  %14276 = vst [vmem:[#allocation14_spill] sm:$0xff] %v11893_v38  ;;  %v14285_v33 = vmov 0.0   ;;  %9732 = vmatmul.mubr.msk.f32.gmra.mxu0 %vm937_vm3, %v11945_v53  ;;  %9761 = vmatprep.mubr.msk.f32.mxu1 %vm937_vm3, %v3176_v34  ;;  %vm12016_vm6 = vcmp.ne.s32.totalorder %v2755_v28, 0 }
 0x5fc   : > { %14277 = vst [vmem:[#allocation15_spill] sm:$0xff] %v11901_v35  ;;  %14278 = vst [vmem:[#allocation16_spill] sm:$0xff] %v11905_v52  ;;  %v11956_v35 = vsel %vm11925_vm12, 1.0, %v14285_v33  ;;  %v11961_v45 = vsel %vm2951_vm13, 1.0, %v14285_v33  ;;  %v2629_v52 = vand.u32 15, %v2521_v24  ;;  %v11983_v24 = vld [vmem:[%s14189_s7 + $0x28] sm:$0xff]  ;;  %9734 = vmatprep.mubr.msk.f32.mxu0 %vm937_vm3, %v3158_v59  ;;  %9776 = vmatpush3.msra.mxu1 %v8898_v26 }
 0x5fd   : > { %14279 = vst [vmem:[#allocation17_spill] sm:$0xff] %v11918_v5  ;;  %14280 = vst [vmem:[#allocation18_spill] sm:$0xff] %v11923_v1  ;;  %v2523_v5 = vadd.s32 112, %v11142_v55  ;;  %v3160_v12 = vmul.f32 %v11956_v35, %v11958_v36  ;;  %v3178_v21 = vmul.f32 %v11961_v45, %v11963_v18  ;;  %v12003_v59 = vld [vmem:[#allocation2 + $0x57] sm:$0xff]  ;;  %v12008_v34 = vsel %vm11970_vm15, 1.0, %v14285_v33  ;;  %v12010_v1 = vld [vmem:[#allocation2 + $0xe7] sm:$0xff]  ;;  %9877 = vmatprep.subr.mxu1 %v11983_v24 }
 0x5fe   : > { %14283 = vst [vmem:[#allocation19_spill] sm:$0xff] %v11945_v53  ;;  %14284 = vst [vmem:[#allocation20_spill] sm:$0xff] %v11947_v49  ;;  %v12001_v49 = vsel %vm11966_vm14, 1.0, %v14285_v33  ;;  %vm12012_vm5 = vcmp.ne.s32.totalorder %v2629_v52, 0  ;;  %9762 = vmatmul.mubr.msk.f32.gmra.mxu1 %vm937_vm3, %v11989_v8  ;;  %v12029_v52 = vld [vmem:[#allocation2 + $0x4f] sm:$0xff]  ;;  %v12031_v26 = vld [vmem:[#allocation2 + $0xdf] sm:$0xff]  ;;  %v3180_v28 = vmul.f32 %v12008_v34, %v12010_v1 }
 0x5ff   : > { %14286 = vst [vmem:[#allocation21_spill] sm:$0xff] %v11961_v45  ;;  %14287 = vst [vmem:[#allocation22_spill] sm:$0xff] %v11963_v18  ;;  %v2643_v38 = vand.u32 15, %v2523_v5  ;;  %9735 = vmatmul.mubr.msk.f32.gmra.mxu0 %vm937_vm3, %v11987_v19  ;;  %9764 = vmatprep.mubr.msk.f32.mxu1 %vm937_vm3, %v3178_v21  ;;  %v3162_v5 = vmul.f32 %v12001_v49, %v12003_v59  ;;  %v2552_v45 = vand.u32 15, %v2510_v63  ;;  %v12046_v21 = vld [vmem:[#allocation2 + $0x67] sm:$0xff]  ;;  %v2657_v63 = vand.u32 15, %v2525_v0 }
 0x600   : > { %14292 = vst [vmem:[#allocation23_spill] sm:$0xff] %v11987_v19  ;;  %14293 = vst [vmem:[#allocation24_spill] sm:$0xff] %v11989_v8  ;;  %9737 = vmatprep.mubr.msk.f32.mxu0 %vm937_vm3, %v3160_v12  ;;  %v12039_v18 = vmul.f32 %v11870_v15, %v11903_v44  ;;  %v12044_v12 = vsel %vm12012_vm5, 1.0, %v14285_v33  ;;  %v12051_v8 = vsel %vm12016_vm6, 1.0, %v14285_v33  ;;  %v12053_v19 = vld [vmem:[#allocation2 + $0xf7] sm:$0xff]  ;;  %v12062_v44 = vmul.f32 %v11878_v11, %v11913_v57  ;;  %v12066_v53 = vld [vmem:[#allocation2 + $0x5f] sm:$0xff] }
 0x601   : > { %14294 = vst [vmem:[#allocation25_spill] sm:$0xff] %v12008_v34  ;;  %14295 = vst [vmem:[#allocation26_spill] sm:$0xff] %v12010_v1  ;;  %vm2939_vm7 = vcmp.ne.s32.totalorder %v2643_v38, 0  ;;  %v2527_v34 = vadd.s32 144, %v11142_v55  ;;  %vm3022_vm8 = vcmp.ne.s32.totalorder %v2552_v45, 15  ;;  %v12068_v0 = vld [vmem:[#allocation2 + $0xef] sm:$0xff]  ;;  %v3164_v27 = vmul.f32 %v12044_v12, %v12046_v21 }
 0x602   : > { %14300 = vst [vmem:[#allocation27_spill] sm:$0xff] %v12029_v52  ;;  %14301 = vst [vmem:[#allocation28_spill] sm:$0xff] %v12031_v26  ;;  %9765 = vmatmul.mubr.msk.f32.gmra.mxu1 %vm937_vm3, %v12031_v26  ;;  %v3182_v38 = vmul.f32 %v12051_v8, %v12053_v19  ;;  %v12076_v45 = vmul.f32 %v11896_v39, %v11958_v36  ;;  %v12079_v26 = vsel %vm2939_vm7, 1.0, %v14285_v33  ;;  %vm2941_vm9 = vcmp.ne.s32.totalorder %v2657_v63, 0  ;;  %v12108_v63 = vld [vmem:[#allocation2 + $0xff] sm:$0xff] }
 0x603   : > { %14302 = vst [vmem:[#allocation29_spill] sm:$0xff] %v12051_v8  ;;  %14303 = vst [vmem:[#allocation30_spill] sm:$0xff] %v12053_v19  ;;  %9738 = vmatmul.mubr.msk.f32.gmra.mxu0 %vm937_vm3, %v12029_v52  ;;  %9767 = vmatprep.mubr.msk.f32.mxu1 %vm937_vm3, %v3180_v28  ;;  %v12085_v28 = vmul.f32 %v11956_v35, %v12003_v59  ;;  %v2671_v1 = vand.u32 15, %v2527_v34  ;;  %v12088_v52 = vsel %vm3022_vm8, 1.0, %v14285_v33  ;;  %v12106_v34 = vld [vmem:[#allocation2 + $0x6f] sm:$0xff] }
 0x604   : > { %14304 = vst [vmem:[#allocation31_spill] sm:$0xff] %v12062_v44  ;;  %9740 = vmatprep.mubr.msk.f32.mxu0 %vm937_vm3, %v3162_v5  ;;  %14305 = vst [vmem:[#allocation32_spill] sm:$0xff] %v12066_v53  ;;  %v12081_v5 = vld [vmem:[#allocation2 + $0x77] sm:$0xff]  ;;  %v12094_v8 = vmul.f32 %v12001_v49, %v12046_v21 }
 0x605   : > { %14306 = vst [vmem:[#allocation33_spill] sm:$0xff] %v12068_v0  ;;  %14307 = vst [vmem:[#allocation34_spill] sm:$0xff] %v12085_v28  ;;  %v12090_v44 = vld [vmem:[#allocation2 + $0x31] sm:$0xff]  ;;  %v12115_v28 = vld [vmem:[#allocation2 + $0x87] sm:$0xff]  ;;  %vm2943_vm10 = vcmp.ne.s32.totalorder %v2671_v1, 0 }
 0x606   : > { %14308 = vst [vmem:[#allocation35_spill] sm:$0xff] %v12094_v8  ;;  %9768 = vmatmul.mubr.msk.f32.gmra.mxu1 %vm937_vm3, %v12068_v0  ;;  %v12102_v19 = vmul.f32 %v12088_v52, %v12090_v44  ;;  %14310 = vst [vmem:[#allocation37_spill] sm:$0xff] %v12108_v63  ;;  %v3166_v8 = vmul.f32 %v12079_v26, %v12081_v5  ;;  %v12119_v0 = vmul.f32 %v12044_v12, %v12081_v5  ;;  %v12135_v1 = vld [vmem:[#allocation2 + $0x97] sm:$0xff] }
 0x607   : > { %9741 = vmatmul.mubr.msk.f32.gmra.mxu0 %vm937_vm3, %v12066_v53  ;;  %9770 = vmatprep.mubr.msk.f32.mxu1 %vm937_vm3, %v3182_v38  ;;  %v12113_v53 = vsel %vm2941_vm9, 1.0, %v14285_v33 }
 0x608   : > { %14309 = vst [vmem:[#allocation36_spill] sm:$0xff] %v12102_v19  ;;  %9743 = vmatprep.mubr.msk.f32.mxu0 %vm937_vm3, %v3164_v27  ;;  %14311 = vst [vmem:[#allocation38_spill] sm:$0xff] %v12113_v53  ;;  %v12128_v27 = vld [vmem:[#allocation2 + $0x7f] sm:$0xff]  ;;  %v3168_v38 = vmul.f32 %v12113_v53, %v12115_v28  ;;  %v12133_v19 = vsel %vm2943_vm10, 1.0, %v14285_v33 }
 0x609   : > { %14312 = vst [vmem:[#allocation39_spill] sm:$0xff] %v12119_v0  ;;  %14313 = vst [vmem:[#allocation40_spill] sm:$0xff] %v12133_v19  ;;  %v12139_v0 = vmul.f32 %v12079_v26, %v12115_v28 }
 0x60a   : > { %9771 = vmatmul.mubr.msk.f32.gmra.mxu1 %vm937_vm3, %v12108_v63  ;;  %v12154_v63 = vmul.f32 %v12133_v19, %v11891_v46  ;;  %v3828_v46 = vld [vmem:[#allocation2 + $0x8] sm:$0xff] }
 0x60b   : > { %9744 = vmatmul.mubr.msk.f32.gmra.mxu0 %vm937_vm3, %v12106_v34  ;;  %9777 = vmatprep.mubr.msk.f32.mxu1 %vm937_vm3, %v11674_v30  ;;  %v8998_v30 = vld [vmem:[%s14189_s7 + $0x20] sm:$0xff] }
 0x60c   : > { %9746 = vmatprep.mubr.msk.f32.mxu0 %vm937_vm3, %v3166_v8  ;;  %v12143_v8 = vmul.f32 %v12113_v53, %v12135_v1  ;;  %v12159_v53 = vld [vmem:[#allocation2 + $0x8f] sm:$0xff] }
 0x60e   : > { %14314 = vst [vmem:[#allocation41_spill] sm:$0xff] %v12143_v8  ;;  %9778 = vmatmul.mubr.msk.f32.vlgmr.msra.gmra.mxu1 %vm937_vm3, %v11677_v31  ;;  %v3170_v8 = vmul.f32 %v12133_v19, %v12135_v1  ;;  %v12171_v31 = vld [vmem:[%s14189_s7 + $0x58] sm:$0xff] }
 0x60f   : > { %9747 = vmatmul.mubr.msk.f32.gmra.mxu0 %vm937_vm3, %v12128_v27  ;;  %9780 = vmatprep.mubr.msk.f32.mxu1 %vm937_vm3, %v11680_v2  ;;  %v12176_v2 = vld [vmem:[#allocation2 + $0x9f] sm:$0xff] }
 0x610   : > { %9749 = vmatprep.mubr.msk.f32.mxu0 %vm937_vm3, %v3168_v38  ;;  %9878 = vmatpush3.msra.mxu1 %v11983_v24  ;;  %14315 = vst [vmem:[#allocation42_spill] sm:$0xff] %v12176_v2  ;;  %v3830_v24 = vld [vmem:[#allocation2 + $0x18] sm:$0xff]  ;;  %v12200_v38 = vld [vmem:[#allocation2 + $0x28] sm:$0xff] }
 0x611   : > { %9879 = vmatprep.subr.mxu1 %v8998_v30  ;;  %14316 = vst [vmem:[#allocation43_spill] sm:$0xff] %v12200_v38 }
 0x612   : > { %9781 = vmatmul.mubr.msk.f32.gmra.mxu1 %vm937_vm3, %v11683_v3  ;;  %v3829_v3 = vld [vmem:[#allocation2 + $0x10] sm:$0xff] }
 0x613   : > { %9750 = vmatmul.mubr.msk.f32.gmra.mxu0 %vm937_vm3, %v12159_v53  ;;  %9783 = vmatprep.mubr.msk.f32.mxu1 %vm937_vm3, %v11686_v32  ;;  %v9032_v32 = vld [vmem:[%s14189_s7 + $0x30] sm:$0xff] }
 0x614   : > { %9752 = vmatprep.mubr.msk.f32.mxu0 %vm937_vm3, %v3170_v8  ;;  %9880 = vmatpush3.msra.mxu1 %v8998_v30  ;;  %v12311_v8 = vld [vmem:[#allocation2 + $0x21] sm:$0xff] }
 0x615   : > { %9981 = vmatprep.subr.mxu1 %v12171_v31  ;;  %v3856_v30 = vld [vmem:[#allocation2 + $0xe8] sm:$0xff] }
 0x616   : > { %9784 = vmatmul.mubr.msk.f32.gmra.mxu1 %vm937_vm3, %v11689_v37  ;;  %v3831_v37 = vld [vmem:[#allocation2 + $0x20] sm:$0xff] }
 0x617   : > { %9753 = vmatmul.mubr.msk.f32.gmra.mxu0 %vm937_vm3, %v12176_v2  ;;  %9786 = vmatprep.mubr.msk.f32.mxu1 %vm937_vm3, %v11692_v25  ;;  %v12197_v25 = vmul.f32 %v11870_v15, %v11913_v57  ;;  %v12216_v15 = vmul.f32 %v11878_v11, %v11958_v36  ;;  %v3834_v57 = vld [vmem:[#allocation2 + $0x38] sm:$0xff]  ;;  %v3836_v36 = vld [vmem:[#allocation2 + $0x48] sm:$0xff] }
 0x618   : > { %9829 = vmatprep.mubr.msk.f32.mxu0 %vm937_vm3, %v3828_v46  ;;  %v3838_v11 = vld [vmem:[#allocation2 + $0x58] sm:$0xff] }
 0x619   : > { %v12313_v46 = vld [vmem:[#allocation2 + $0x19] sm:$0xff] }
 0x61a   : > { %9787 = vmatmul.mubr.msk.f32.gmra.mxu1 %vm937_vm3, %v11695_v22  ;;  %v12205_v22 = vld [vmem:[%s14189_s7 + $0x68] sm:$0xff] }
 0x61b   : > { %9830 = vmatmul.mubr.msk.f32.vlgmr.msra.gmra.mxu0 %vm937_vm3, %v3829_v3  ;;  %9789 = vmatprep.mubr.msk.f32.mxu1 %vm937_vm3, %v11698_v14  ;;  %v3833_v14 = vld [vmem:[#allocation2 + $0x30] sm:$0xff] }
 0x61c   : > { %9930 = vmatpush3.msra.mxu0 %v11941_v9  ;;  %9832 = vmatprep.mubr.msk.f32.mxu0 %vm937_vm3, %v3830_v24  ;;  %v3844_v9 = vld [vmem:[#allocation2 + $0x88] sm:$0xff] }
 0x61d   : > { %9931 = vmatprep.subr.mxu0 %v9032_v32 }
 0x61e   : > { %9932 = vmatpush3.msra.mxu0 %v9032_v32  ;;  %9790 = vmatmul.mubr.msk.f32.gmra.mxu1 %vm937_vm3, %v11701_v10  ;;  %v3835_v10 = vld [vmem:[#allocation2 + $0x40] sm:$0xff]  ;;  %v9066_v32 = vld [vmem:[%s14189_s7 + $0x50] sm:$0xff] }
 0x61f   : > { %9833 = vmatmul.mubr.msk.f32.gmra.mxu0 %vm937_vm3, %v3831_v37  ;;  %9792 = vmatprep.mubr.msk.f32.mxu1 %vm937_vm3, %v11704_v20  ;;  %v12227_v20 = vmul.f32 %v11896_v39, %v12003_v59  ;;  %v3840_v39 = vld [vmem:[#allocation2 + $0x68] sm:$0xff]  ;;  %v2512_v59 = vadd.s32 24, %v11142_v55  ;;  %v3857_v37 = vld [vmem:[#allocation2 + $0xf0] sm:$0xff] }
 0x620   : > { %9835 = vmatprep.mubr.msk.f32.mxu0 %vm937_vm3, %v12200_v38  ;;  %10033 = vmatprep.subr.mxu0 %v12205_v22  ;;  %v2540_v38 = vadd.s32 248, %v11142_v55 }
 0x622   : > { %9793 = vmatmul.mubr.msk.f32.gmra.mxu1 %vm937_vm3, %v11707_v13  ;;  %v3837_v13 = vld [vmem:[#allocation2 + $0x50] sm:$0xff] }
 0x623   : > { %9836 = vmatmul.mubr.msk.f32.gmra.mxu0 %vm937_vm3, %v3833_v14  ;;  %9795 = vmatprep.mubr.msk.f32.mxu1 %vm937_vm3, %v11710_v4  ;;  %v12237_v4 = vmul.f32 %v11956_v35, %v12046_v21  ;;  %v3842_v35 = vld [vmem:[#allocation2 + $0x78] sm:$0xff]  ;;  %v4216_v21 = vld [vmem:[#allocation2 + $0x9] sm:$0xff] }
 0x624   : > { %9838 = vmatprep.mubr.msk.f32.mxu0 %vm937_vm3, %v3834_v57  ;;  %v3858_v57 = vld [vmem:[#allocation2 + $0xf8] sm:$0xff] }
 0x626   : > { %9796 = vmatmul.mubr.msk.f32.gmra.mxu1 %vm937_vm3, %v11713_v62  ;;  %v3839_v62 = vld [vmem:[#allocation2 + $0x60] sm:$0xff] }
 0x627   : > { %9839 = vmatmul.mubr.msk.f32.gmra.mxu0 %vm937_vm3, %v3835_v10  ;;  %9798 = vmatprep.mubr.msk.f32.mxu1 %vm937_vm3, %v11716_v58  ;;  %v12247_v58 = vmul.f32 %v12001_v49, %v12081_v5  ;;  %v3848_v49 = vld [vmem:[#allocation2 + $0xa8] sm:$0xff] }
 0x628   : > { %9841 = vmatprep.mubr.msk.f32.mxu0 %vm937_vm3, %v3836_v36  ;;  %v12329_v10 = vld [vmem:[#allocation2 + $0x29] sm:$0xff] }
 0x62a   : > { %9799 = vmatmul.mubr.msk.f32.gmra.mxu1 %vm937_vm3, %v11719_v56  ;;  %v3841_v56 = vld [vmem:[#allocation2 + $0x70] sm:$0xff] }
 0x62b   : > { %9842 = vmatmul.mubr.msk.f32.gmra.mxu0 %vm937_vm3, %v3837_v13  ;;  %9801 = vmatprep.mubr.msk.f32.mxu1 %vm937_vm3, %v11722_v48  ;;  %v12257_v48 = vmul.f32 %v12044_v12, %v12115_v28  ;;  %v4217_v12 = vld [vmem:[#allocation2 + $0x11] sm:$0xff]  ;;  %v2516_v28 = vadd.s32 56, %v11142_v55  ;;  %v2520_v13 = vadd.s32 88, %v11142_v55 }
 0x62c   : > { %9844 = vmatprep.mubr.msk.f32.mxu0 %vm937_vm3, %v3838_v11 }
 0x62d   : > { %v2594_v3 = vand.u32 15, %v2516_v28  ;;  %v12408_v28 = vld [vmem:[#allocation2 + $0x71] sm:$0xff] }
 0x62e   : > { %9802 = vmatmul.mubr.msk.f32.gmra.mxu1 %vm937_vm3, %v11725_v47  ;;  %v3843_v47 = vld [vmem:[#allocation2 + $0x80] sm:$0xff] }
 0x62f   : > { %9845 = vmatmul.mubr.msk.f32.gmra.mxu0 %vm937_vm3, %v3839_v62  ;;  %9804 = vmatprep.mubr.msk.f32.mxu1 %vm937_vm3, %v11728_v41  ;;  %v12267_v41 = vmul.f32 %v12079_v26, %v12135_v1  ;;  %v2566_v26 = vand.u32 15, %v2512_v59  ;;  %vm3028_vm13 = vcmp.ne.s32.totalorder %v2594_v3, 15  ;;  %v12340_v62 = vld [vmem:[%s14189_s7 + $0x78] sm:$0xff]  ;;  %v9100_v59 = vld [vmem:[%s14189_s7 + $0x60] sm:$0xff] }
 0x630   : > { %9847 = vmatprep.mubr.msk.f32.mxu0 %vm937_vm3, %v3840_v39  ;;  %v12346_v39 = vsel %vm3028_vm13, 1.0, %v14285_v33  ;;  %v14320_v3 = vld [vmem:[#allocation23_spill] sm:$0xff] }
 0x631   : > { %vm3024_vm11 = vcmp.ne.s32.totalorder %v2566_v26, 15  ;;  %v12384_v26 = vld [vmem:[#allocation2 + $0x61] sm:$0xff] }
 0x632   : > { %9805 = vmatmul.mubr.msk.f32.gmra.mxu1 %vm937_vm3, %v11731_v40  ;;  %v3845_v40 = vld [vmem:[#allocation2 + $0x90] sm:$0xff]  ;;  %v12309_v1 = vsel %vm3024_vm11, 1.0, %v14285_v33 }
 0x633   : > { %9848 = vmatmul.mubr.msk.f32.gmra.mxu0 %vm937_vm3, %v3841_v56  ;;  %9807 = vmatprep.mubr.msk.f32.mxu1 %vm937_vm3, %v11734_v29  ;;  %v3846_v29 = vld [vmem:[#allocation2 + $0x98] sm:$0xff]  ;;  %v4251_v24 = vmul.f32 %v12309_v1, %v12311_v8  ;;  %v12348_v56 = vld [vmem:[#allocation2 + $0x41] sm:$0xff] }
 0x634   : > { %9850 = vmatprep.mubr.msk.f32.mxu0 %vm937_vm3, %v3842_v35  ;;  %v12350_v35 = vld [vmem:[#allocation2 + $0x39] sm:$0xff] }
 0x636   : > { %9808 = vmatmul.mubr.msk.f32.gmra.mxu1 %vm937_vm3, %v11737_v54  ;;  %v3847_v54 = vld [vmem:[#allocation2 + $0xa0] sm:$0xff] }
 0x637   : > { %9851 = vmatmul.mubr.msk.f32.gmra.mxu0 %vm937_vm3, %v3843_v47  ;;  %9810 = vmatprep.mubr.msk.f32.mxu1 %vm937_vm3, %v11740_v43  ;;  %v3849_v43 = vld [vmem:[#allocation2 + $0xb0] sm:$0xff]  ;;  %v2622_v47 = vand.u32 15, %v2520_v13  ;;  %v14321_v13 = vld [vmem:[#allocation27_spill] sm:$0xff] }
 0x638   : > { %9853 = vmatprep.mubr.msk.f32.mxu0 %vm937_vm3, %v3844_v9  ;;  %v2522_v9 = vadd.s32 104, %v11142_v55 }
 0x639   : > { %vm3032_vm15 = vcmp.ne.s32.totalorder %v2622_v47, 15  ;;  %v12443_v47 = vld [vmem:[#allocation2 + $0x91] sm:$0xff] }
 0x63a   : > { %9811 = vmatmul.mubr.msk.f32.gmra.mxu1 %vm937_vm3, %v11743_v42  ;;  %v3850_v42 = vld [vmem:[#allocation2 + $0xb8] sm:$0xff] }
 0x63b   : > { %9854 = vmatmul.mubr.msk.f32.gmra.mxu0 %vm937_vm3, %v3845_v40  ;;  %9813 = vmatprep.mubr.msk.f32.mxu1 %vm937_vm3, %v11746_v51  ;;  %v3851_v51 = vld [vmem:[#allocation2 + $0xc0] sm:$0xff]  ;;  %v4255_v40 = vmul.f32 %v12346_v39, %v12348_v56 }
 0x63c   : > { %9856 = vmatprep.mubr.msk.f32.mxu0 %vm937_vm3, %v3846_v29 }
 0x63e   : > { %9814 = vmatmul.mubr.msk.f32.gmra.mxu1 %vm937_vm3, %v11749_v50  ;;  %v3852_v50 = vld [vmem:[#allocation2 + $0xc8] sm:$0xff] }
 0x63f   : > { %9857 = vmatmul.mubr.msk.f32.gmra.mxu0 %vm937_vm3, %v3847_v54  ;;  %9816 = vmatprep.mubr.msk.f32.mxu1 %vm937_vm3, %v11752_v61  ;;  %v2514_v61 = vadd.s32 40, %v11142_v55  ;;  %v12365_v54 = vld [vmem:[#allocation2 + $0x51] sm:$0xff] }
 0x640   : > { %9859 = vmatprep.mubr.msk.f32.mxu0 %vm937_vm3, %v3848_v49  ;;  %v12367_v49 = vld [vmem:[#allocation2 + $0x49] sm:$0xff] }
 0x641   : > { %v2580_v5 = vand.u32 15, %v2514_v61  ;;  %v12388_v61 = vld [vmem:[#allocation2 + $0x59] sm:$0xff] }
 0x642   : > { %9817 = vmatmul.mubr.msk.f32.gmra.mxu1 %vm937_vm3, %v11755_v60  ;;  %v3853_v60 = vld [vmem:[#allocation2 + $0xd0] sm:$0xff] }
 0x643   : > { %9860 = vmatmul.mubr.msk.f32.gmra.mxu0 %vm937_vm3, %v3849_v43  ;;  %9819 = vmatprep.mubr.msk.f32.mxu1 %vm937_vm3, %v11758_v7  ;;  %v3854_v7 = vld [vmem:[#allocation2 + $0xd8] sm:$0xff]  ;;  %vm3026_vm12 = vcmp.ne.s32.totalorder %v2580_v5, 15  ;;  %v2636_v43 = vand.u32 15, %v2522_v9  ;;  %v12445_v9 = vld [vmem:[#allocation2 + $0x89] sm:$0xff] }
 0x644   : > { %9862 = vmatprep.mubr.msk.f32.mxu0 %vm937_vm3, %v3850_v42  ;;  %v12327_v14 = vsel %vm3026_vm12, 1.0, %v14285_v33  ;;  %v2524_v42 = vadd.s32 120, %v11142_v55 }
 0x645   : > { %v4253_v11 = vmul.f32 %v12327_v14, %v12090_v44  ;;  %vm3034_vm5 = vcmp.ne.s32.totalorder %v2636_v43, 15  ;;  %v2532_v43 = vadd.s32 184, %v11142_v55 }
 0x646   : > { %9820 = vmatmul.mubr.msk.f32.gmra.mxu1 %vm937_vm3, %v11761_v6  ;;  %v4249_v6 = vmul.f32 %v12088_v52, %v4217_v12  ;;  %v2526_v12 = vadd.s32 136, %v11142_v55  ;;  %v12406_v5 = vsel %vm3034_vm5, 1.0, %v14285_v33 }
 0x647   : > { %9863 = vmatmul.mubr.msk.f32.gmra.mxu0 %vm937_vm3, %v3851_v51  ;;  %9822 = vmatprep.mubr.msk.f32.mxu1 %vm937_vm3, %v11764_v17  ;;  %v3855_v17 = vld [vmem:[#allocation2 + $0xe0] sm:$0xff]  ;;  %v14317_v51 = vld [vmem:[#allocation14_spill] sm:$0xff] }
 0x648   : > { %9865 = vmatprep.mubr.msk.f32.mxu0 %vm937_vm3, %v3852_v50  ;;  %v12382_v50 = vsel %vm3032_vm15, 1.0, %v14285_v33 }
 0x64a   : > { %9823 = vmatmul.mubr.msk.f32.gmra.mxu1 %vm937_vm3, %v11767_v16  ;;  %v2518_v16 = vadd.s32 72, %v11142_v55 }
 0x64b   : > { %9866 = vmatmul.mubr.msk.f32.gmra.mxu0 %vm937_vm3, %v3853_v60  ;;  %9881 = vmatprep.mubr.msk.f32.mxu1 %vm937_vm3, %v4216_v21  ;;  %v2650_v60 = vand.u32 15, %v2524_v42  ;;  %v14319_v21 = vld [vmem:[#allocation31_spill] sm:$0xff]  ;;  %v14323_v42 = vld [vmem:[#allocation32_spill] sm:$0xff] }
 0x64c   : > { %9868 = vmatprep.mubr.msk.f32.mxu0 %vm937_vm3, %v3854_v7  ;;  %v2608_v36 = vand.u32 15, %v2518_v16  ;;  %v14318_v7 = vld [vmem:[#allocation19_spill] sm:$0xff]  ;;  %v4261_v16 = vmul.f32 %v12406_v5, %v12408_v28 }
 0x64d   : > { %vm3036_vm6 = vcmp.ne.s32.totalorder %v2650_v60, 15  ;;  %v12460_v60 = vld [vmem:[#allocation2 + $0xa1] sm:$0xff] }
 0x64e   : > { %9882 = vmatmul.mubr.msk.f32.vlgmr.msra.gmra.mxu1 %vm937_vm3, %v4249_v6  ;;  %vm3030_vm14 = vcmp.ne.s32.totalorder %v2608_v36, 15  ;;  %v12410_v6 = vld [vmem:[#allocation2 + $0x69] sm:$0xff]  ;;  %v2530_v36 = vadd.s32 168, %v11142_v55 }
 0x64f   : > { %9869 = vmatmul.mubr.msk.f32.gmra.mxu0 %vm937_vm3, %v3855_v17  ;;  %9884 = vmatprep.mubr.msk.f32.mxu1 %vm937_vm3, %v12313_v46  ;;  %v12363_v29 = vsel %vm3030_vm14, 1.0, %v14285_v33  ;;  %v2664_v17 = vand.u32 15, %v2526_v12  ;;  %v12462_v12 = vld [vmem:[#allocation2 + $0x99] sm:$0xff] }
 0x650   : > { %9871 = vmatprep.mubr.msk.f32.mxu0 %vm937_vm3, %v3856_v30  ;;  %9982 = vmatpush3.msra.mxu1 %v12171_v31  ;;  %v3859_v31 = vld [vmem:[#allocation2 + $0x100] sm:$0xff]  ;;  %v2528_v30 = vadd.s32 152, %v11142_v55 }
 0x651   : > { %9983 = vmatprep.subr.mxu1 %v9066_v32  ;;  %vm3038_vm7 = vcmp.ne.s32.totalorder %v2664_v17, 15 }
 0x652   : > { %9885 = vmatmul.mubr.msk.f32.gmra.mxu1 %vm937_vm3, %v4251_v24  ;;  %v12424_v24 = vsel %vm3036_vm6, 1.0, %v14285_v33 }
 0x653   : > { %9872 = vmatmul.mubr.msk.f32.gmra.mxu0 %vm937_vm3, %v3857_v37  ;;  %9887 = vmatprep.mubr.msk.f32.mxu1 %vm937_vm3, %v12329_v10  ;;  %v12428_v37 = vld [vmem:[#allocation2 + $0x79] sm:$0xff] }
 0x654   : > { %9874 = vmatprep.mubr.msk.f32.mxu0 %vm937_vm3, %v3858_v57  ;;  %9984 = vmatpush3.msra.mxu1 %v9066_v32  ;;  %v12426_v32 = vld [vmem:[#allocation2 + $0x81] sm:$0xff]  ;;  %v2678_v57 = vand.u32 15, %v2528_v30  ;;  %v14325_v30 = vld [vmem:[#allocation39_spill] sm:$0xff] }
 0x655   : > { %10085 = vmatprep.subr.mxu1 %v12340_v62 }
 0x656   : > { %9888 = vmatmul.mubr.msk.f32.gmra.mxu1 %vm937_vm3, %v4253_v11  ;;  %v4263_v11 = vmul.f32 %v12424_v24, %v12426_v32  ;;  %vm3040_vm8 = vcmp.ne.s32.totalorder %v2678_v57, 15  ;;  %v12477_v57 = vld [vmem:[#allocation2 + $0xb1] sm:$0xff] }
 0x657   : > { %9875 = vmatmul.mubr.msk.f32.gmra.mxu0 %vm937_vm3, %v3859_v31  ;;  %9890 = vmatprep.mubr.msk.f32.mxu1 %vm937_vm3, %v12350_v35  ;;  %v12441_v31 = vsel %vm3038_vm7, 1.0, %v14285_v33 }
 0x658   : > { %9933 = vmatprep.mubr.msk.f32.mxu0 %vm937_vm3, %v11996_v23  ;;  %v4257_v23 = vmul.f32 %v12363_v29, %v12365_v54 }
 0x65a   : > { %9891 = vmatmul.mubr.msk.f32.gmra.mxu1 %vm937_vm3, %v4255_v40  ;;  %v2692_v40 = vand.u32 15, %v2530_v36  ;;  %v12479_v36 = vld [vmem:[#allocation2 + $0xa9] sm:$0xff] }
 0x65b   : > { %9934 = vmatmul.mubr.msk.f32.vlgmr.msra.gmra.mxu0 %vm937_vm3, %v14317_v51  ;;  %9893 = vmatprep.mubr.msk.f32.mxu1 %vm937_vm3, %v12367_v49  ;;  %v14324_v51 = vld [vmem:[#allocation35_spill] sm:$0xff] }
 0x65c   : > { %10034 = vmatpush3.msra.mxu0 %v12205_v22  ;;  %9936 = vmatprep.mubr.msk.f32.mxu0 %vm937_vm3, %v12039_v18  ;;  %v12394_v22 = vld [vmem:[%s14189_s7 + $0x88] sm:$0xff]  ;;  %v4259_v18 = vmul.f32 %v12382_v50, %v12384_v26  ;;  %vm3042_vm9 = vcmp.ne.s32.totalorder %v2692_v40, 15 }
 0x65d   : > { %10035 = vmatprep.subr.mxu0 %v9100_v59 }
 0x65e   : > { %10036 = vmatpush3.msra.mxu0 %v9100_v59  ;;  %9894 = vmatmul.mubr.msk.f32.gmra.mxu1 %vm937_vm3, %v4257_v23  ;;  %v4265_v59 = vmul.f32 %v12441_v31, %v12443_v47  ;;  %v12458_v23 = vsel %vm3040_vm8, 1.0, %v14285_v33 }
 0x65f   : > { %9937 = vmatmul.mubr.msk.f32.gmra.mxu0 %vm937_vm3, %v14318_v7  ;;  %9896 = vmatprep.mubr.msk.f32.mxu1 %vm937_vm3, %v12388_v61  ;;  %v4267_v17 = vmul.f32 %v12458_v23, %v12460_v60 }
 0x660   : > { %9939 = vmatprep.mubr.msk.f32.mxu0 %vm937_vm3, %v14319_v21  ;;  %10137 = vmatprep.subr.mxu0 %v12394_v22  ;;  %v2534_v21 = vadd.s32 200, %v11142_v55 }
 0x662   : > { %9897 = vmatmul.mubr.msk.f32.gmra.mxu1 %vm937_vm3, %v4259_v18  ;;  %v2706_v18 = vand.u32 15, %v2532_v43 }
 0x663   : > { %9940 = vmatmul.mubr.msk.f32.gmra.mxu0 %vm937_vm3, %v14320_v3  ;;  %9899 = vmatprep.mubr.msk.f32.mxu1 %vm937_vm3, %v12410_v6 }
 0x664   : > { %9942 = vmatprep.mubr.msk.f32.mxu0 %vm937_vm3, %v12076_v45  ;;  %v14322_v45 = vld [vmem:[#allocation34_spill] sm:$0xff]  ;;  %vm3044_vm10 = vcmp.ne.s32.totalorder %v2706_v18, 15 }
 0x665   : > { %v12492_v43 = vsel %vm3044_vm10, 1.0, %v14285_v33 }
 0x666   : > { %9900 = vmatmul.mubr.msk.f32.gmra.mxu1 %vm937_vm3, %v4261_v16  ;;  %v12475_v16 = vsel %vm3042_vm9, 1.0, %v14285_v33  ;;  %14326 = vst [vmem:[#allocation14_spill] sm:$0xff] %v12492_v43 }
 0x667   : > { %9943 = vmatmul.mubr.msk.f32.gmra.mxu0 %vm937_vm3, %v14321_v13  ;;  %9902 = vmatprep.mubr.msk.f32.mxu1 %vm937_vm3, %v12428_v37  ;;  %v4269_v40 = vmul.f32 %v12475_v16, %v12477_v57 }
 0x668   : > { %9945 = vmatprep.mubr.msk.f32.mxu0 %vm937_vm3, %v14322_v45  ;;  %v2536_v45 = vadd.s32 216, %v11142_v55 }
 0x66a   : > { %9903 = vmatmul.mubr.msk.f32.gmra.mxu1 %vm937_vm3, %v4263_v11  ;;  %v2720_v11 = vand.u32 15, %v2534_v21  ;;  %v2734_v18 = vand.u32 15, %v2536_v45  ;;  %v2538_v21 = vadd.s32 232, %v11142_v55  ;;  %v12513_v45 = vld [vmem:[#allocation2 + $0xc9] sm:$0xff]  ;;  %v12530_v55 = vld [vmem:[#allocation2 + $0xe1] sm:$0xff] }
 0x66b   : > { %9946 = vmatmul.mubr.msk.f32.gmra.mxu0 %vm937_vm3, %v14323_v42  ;;  %9905 = vmatprep.mubr.msk.f32.mxu1 %vm937_vm3, %v12445_v9  ;;  %14330 = vst [vmem:[#allocation23_spill] sm:$0xff] %v12513_v45  ;;  %14334 = vst [vmem:[#allocation34_spill] sm:$0xff] %v12530_v55 }
 0x66c   : > { %9948 = vmatprep.mubr.msk.f32.mxu0 %vm937_vm3, %v14324_v51  ;;  %v12496_v51 = vld [vmem:[#allocation2 + $0xb9] sm:$0xff]  ;;  %vm3046_vm11 = vcmp.ne.s32.totalorder %v2720_v11, 15  ;;  %v12511_v11 = vld [vmem:[#allocation2 + $0xd1] sm:$0xff]  ;;  %vm3048_vm12 = vcmp.ne.s32.totalorder %v2734_v18, 15 }
 0x66d   : > { %14329 = vst [vmem:[#allocation31_spill] sm:$0xff] %v12511_v11 }
 0x66e   : > { %9906 = vmatmul.mubr.msk.f32.gmra.mxu1 %vm937_vm3, %v4265_v59  ;;  %v12494_v59 = vld [vmem:[#allocation2 + $0xc1] sm:$0xff] }
 0x66f   : > { %9949 = vmatmul.mubr.msk.f32.gmra.mxu0 %vm937_vm3, %v12106_v34  ;;  %9908 = vmatprep.mubr.msk.f32.mxu1 %vm937_vm3, %v12462_v12 }
 0x670   : > { %9951 = vmatprep.mubr.msk.f32.mxu0 %vm937_vm3, %v14325_v30  ;;  %v12509_v30 = vsel %vm3046_vm11, 1.0, %v14285_v33 }
 0x671   : > { %14328 = vst [vmem:[#allocation19_spill] sm:$0xff] %v12509_v30  ;;  %v4273_v19 = vmul.f32 %v12509_v30, %v12511_v11  ;;  %v14336_v30 = vld [vmem:[#allocation15_spill] sm:$0xff] }
 0x672   : > { %9909 = vmatmul.mubr.msk.f32.gmra.mxu1 %vm937_vm3, %v4267_v17  ;;  %v4271_v17 = vmul.f32 %v12492_v43, %v12494_v59  ;;  %v14332_v43 = vld [vmem:[#allocation12_spill] sm:$0xff] }
 0x673   : > { %9952 = vmatmul.mubr.msk.f32.gmra.mxu0 %vm937_vm3, %v12128_v27  ;;  %9911 = vmatprep.mubr.msk.f32.mxu1 %vm937_vm3, %v12479_v36 }
 0x674   : > { %9954 = vmatprep.mubr.msk.f32.mxu0 %vm937_vm3, %v12139_v0  ;;  %v14327_v0 = vld [vmem:[#allocation41_spill] sm:$0xff] }
 0x676   : > { %9912 = vmatmul.mubr.msk.f32.gmra.mxu1 %vm937_vm3, %v4269_v40  ;;  %v2748_v40 = vand.u32 15, %v2538_v21  ;;  %v12528_v21 = vsel %vm3048_vm12, 1.0, %v14285_v33 }
 0x677   : > { %9955 = vmatmul.mubr.msk.f32.gmra.mxu0 %vm937_vm3, %v12159_v53  ;;  %9914 = vmatprep.mubr.msk.f32.mxu1 %vm937_vm3, %v12496_v51  ;;  %14333 = vst [vmem:[#allocation27_spill] sm:$0xff] %v12528_v21 }
 0x678   : > { %9957 = vmatprep.mubr.msk.f32.mxu0 %vm937_vm3, %v14327_v0  ;;  %v14331_v0 = vld [vmem:[#allocation16_spill] sm:$0xff]  ;;  %vm3050_vm13 = vcmp.ne.s32.totalorder %v2748_v40, 15 }
 0x679   : > { %v4688_v18 = vmul.f32 %v14332_v43, %v14331_v0  ;;  %v14337_v0 = vld [vmem:[#allocation18_spill] sm:$0xff]  ;;  %v14338_v43 = vld [vmem:[#allocation13_spill] sm:$0xff]  ;;  %v12545_v11 = vsel %vm3050_vm13, 1.0, %v14285_v33 }
 0x67a   : > { %9915 = vmatmul.mubr.msk.f32.gmra.mxu1 %vm937_vm3, %v4271_v17  ;;  %v12532_v17 = vld [vmem:[#allocation2 + $0xd9] sm:$0xff]  ;;  %14339 = vst [vmem:[#allocation35_spill] sm:$0xff] %v12545_v11 }
 0x67b   : > { %9958 = vmatmul.mubr.msk.f32.gmra.mxu0 %vm937_vm3, %v12176_v2  ;;  %9917 = vmatprep.mubr.msk.f32.mxu1 %vm937_vm3, %v12513_v45  ;;  %14335 = vst [vmem:[#allocation32_spill] sm:$0xff] %v12532_v17  ;;  %v2762_v2 = vand.u32 15, %v2540_v38  ;;  %v4690_v45 = vmul.f32 %v14338_v43, %v14337_v0  ;;  %v12547_v38 = vld [vmem:[#allocation2 + $0xf1] sm:$0xff]  ;;  %v14344_v0 = vld [vmem:[#allocation17_spill] sm:$0xff] }
 0x67c   : > { %9960 = vmatprep.mubr.msk.f32.mxu0 %vm937_vm3, %v12154_v63  ;;  %v4275_v63 = vmul.f32 %v12528_v21, %v12530_v55  ;;  %14340 = vst [vmem:[#allocation39_spill] sm:$0xff] %v12547_v38  ;;  %v4277_v40 = vmul.f32 %v12545_v11, %v12547_v38 }
 0x67d   : > { %vm3052_vm14 = vcmp.ne.s32.totalorder %v2762_v2, 15  ;;  %v12564_v2 = vld [vmem:[#allocation2 + $0x101] sm:$0xff] }
 0x67e   : > { %9918 = vmatmul.mubr.msk.f32.gmra.mxu1 %vm937_vm3, %v4273_v19  ;;  %v12549_v19 = vld [vmem:[#allocation2 + $0xe9] sm:$0xff]  ;;  %v12562_v21 = vsel %vm3052_vm14, 1.0, %v14285_v33  ;;  %14346 = vst [vmem:[#allocation15_spill] sm:$0xff] %v12564_v2 }
 0x67f   : > { %9961 = vmatmul.mubr.msk.f32.gmra.mxu0 %vm937_vm3, %v14336_v30  ;;  %9920 = vmatprep.mubr.msk.f32.mxu1 %vm937_vm3, %v12532_v17  ;;  %14341 = vst [vmem:[#allocation41_spill] sm:$0xff] %v12549_v19  ;;  %v14342_v30 = vld [vmem:[#allocation20_spill] sm:$0xff]  ;;  %14345 = vst [vmem:[#allocation16_spill] sm:$0xff] %v12562_v21  ;;  %v4279_v11 = vmul.f32 %v12562_v21, %v12564_v2  ;;  %v14353_v21 = vld [vmem:[#allocation25_spill] sm:$0xff] }
 0x680   : > { %9963 = vmatprep.mubr.msk.f32.mxu0 %vm937_vm3, %v4688_v18  ;;  %v14343_v18 = vld [vmem:[#allocation22_spill] sm:$0xff]  ;;  %v14354_v2 = vld [vmem:[#allocation33_spill] sm:$0xff] }
 0x681   : > { %v4692_v43 = vmul.f32 %v14344_v0, %v14343_v18  ;;  %v14350_v18 = vld [vmem:[#allocation21_spill] sm:$0xff] }
 0x682   : > { %9921 = vmatmul.mubr.msk.f32.gmra.mxu1 %vm937_vm3, %v4275_v63  ;;  %v12566_v63 = vld [vmem:[#allocation2 + $0xf9] sm:$0xff] }
 0x683   : > { %9964 = vmatmul.mubr.msk.f32.gmra.mxu0 %vm937_vm3, %v14342_v30  ;;  %9923 = vmatprep.mubr.msk.f32.mxu1 %vm937_vm3, %v12549_v19  ;;  %14347 = vst [vmem:[#allocation18_spill] sm:$0xff] %v12566_v63  ;;  %v14348_v30 = vld [vmem:[#allocation24_spill] sm:$0xff] }
 0x684   : > { %9966 = vmatprep.mubr.msk.f32.mxu0 %vm937_vm3, %v4690_v45  ;;  %v14349_v45 = vld [vmem:[#allocation26_spill] sm:$0xff]  ;;  %v14351_v19 = vld [vmem:[#allocation28_spill] sm:$0xff] }
 0x685   : > { %v4694_v0 = vmul.f32 %v14350_v18, %v14349_v45 }
 0x686   : > { %9924 = vmatmul.mubr.msk.f32.gmra.mxu1 %vm937_vm3, %v4277_v40  ;;  %v5089_v40 = vmul.f32 %v12088_v52, %v12311_v8  ;;  %v9134_v52 = vld [vmem:[%s14189_s7 + $0x70] sm:$0xff]  ;;  %v14355_v8 = vld [vmem:[#allocation29_spill] sm:$0xff] }
 0x687   : > { %9967 = vmatmul.mubr.msk.f32.gmra.mxu0 %vm937_vm3, %v14348_v30  ;;  %9926 = vmatprep.mubr.msk.f32.mxu1 %vm937_vm3, %v12566_v63  ;;  %v14352_v30 = vld [vmem:[#allocation30_spill] sm:$0xff] }
 0x688   : > { %9969 = vmatprep.mubr.msk.f32.mxu0 %vm937_vm3, %v4692_v43  ;;  %v4696_v63 = vmul.f32 %v14353_v21, %v14352_v30  ;;  %v12588_v43 = vld [vmem:[#allocation2 + $0x107] sm:$0xff]  ;;  %v5097_v30 = vmul.f32 %v12363_v29, %v12384_v26 }
 0x68a   : > { %9927 = vmatmul.mubr.msk.f32.gmra.mxu1 %vm937_vm3, %v4279_v11  ;;  %v5091_v11 = vmul.f32 %v12309_v1, %v12090_v44  ;;  %v5093_v44 = vmul.f32 %v12327_v14, %v12348_v56 }
 0x68b   : > { %9970 = vmatmul.mubr.msk.f32.gmra.mxu0 %vm937_vm3, %v14351_v19  ;;  %9985 = vmatprep.mubr.msk.f32.mxu1 %vm937_vm3, %v12313_v46  ;;  %v4698_v46 = vmul.f32 %v14355_v8, %v12588_v43  ;;  %v5476_v19 = vld [vmem:[#allocation2 + $0x27] sm:$0xff] }
 0x68c   : > { %9972 = vmatprep.mubr.msk.f32.mxu0 %vm937_vm3, %v4694_v0  ;;  %v14356_v0 = vld [vmem:[#allocation37_spill] sm:$0xff] }
 0x68e   : > { %9986 = vmatmul.mubr.msk.f32.vlgmr.msra.gmra.mxu1 %vm937_vm3, %v5089_v40  ;;  %v9168_v40 = vld [vmem:[%s14189_s7 + $0x80] sm:$0xff] }
 0x68f   : > { %9973 = vmatmul.mubr.msk.f32.gmra.mxu0 %vm937_vm3, %v14354_v2  ;;  %9988 = vmatprep.mubr.msk.f32.mxu1 %vm937_vm3, %v12329_v10  ;;  %v12612_v2 = vld [vmem:[#allocation2 + $0x10f] sm:$0xff] }
 0x690   : > { %9975 = vmatprep.mubr.msk.f32.mxu0 %vm937_vm3, %v4696_v63  ;;  %10086 = vmatpush3.msra.mxu1 %v12340_v62  ;;  %v14357_v63 = vld [vmem:[#allocation11_spill] sm:$0xff]  ;;  %v5095_v62 = vmul.f32 %v12346_v39, %v12365_v54 }
 0x691   : > { %10087 = vmatprep.subr.mxu1 %v9134_v52  ;;  %v5508_v45 = vmul.f32 %v14357_v63, %v5476_v19 }
 0x692   : > { %9989 = vmatmul.mubr.msk.f32.gmra.mxu1 %vm937_vm3, %v5091_v11 }
 0x693   : > { %9976 = vmatmul.mubr.msk.f32.gmra.mxu0 %vm937_vm3, %v14356_v0  ;;  %9991 = vmatprep.mubr.msk.f32.mxu1 %vm937_vm3, %v12350_v35  ;;  %v14362_v0 = vld [vmem:[#allocation23_spill] sm:$0xff] }
 0x694   : > { %9978 = vmatprep.mubr.msk.f32.mxu0 %vm937_vm3, %v4698_v46  ;;  %10088 = vmatpush3.msra.mxu1 %v9134_v52  ;;  %v14360_v52 = vld [vmem:[#allocation31_spill] sm:$0xff]  ;;  %v14361_v46 = vld [vmem:[#allocation14_spill] sm:$0xff] }
 0x695   : > { %10189 = vmatprep.subr.mxu1 %v14285_v33  ;;  %v5111_v19 = vmul.f32 %v14361_v46, %v14360_v52 }
 0x696   : > { %9992 = vmatmul.mubr.msk.f32.gmra.mxu1 %vm937_vm3, %v5093_v44  ;;  %v14363_v44 = vld [vmem:[#allocation40_spill] sm:$0xff] }
 0x697   : > { %9979 = vmatmul.mubr.msk.f32.gmra.mxu0 %vm937_vm3, %v12612_v2  ;;  %9994 = vmatprep.mubr.msk.f32.mxu1 %vm937_vm3, %v12367_v49 }
 0x698   : > { %10037 = vmatprep.mubr.msk.f32.mxu0 %vm937_vm3, %v5508_v45 }
 0x69a   : > { %9995 = vmatmul.mubr.msk.f32.gmra.mxu1 %vm937_vm3, %v5095_v62 }
 0x69b   : > { %10038 = vmatmul.mubr.msk.f32.vlgmr.msra.gmra.mxu0 %vm937_vm3, %v14318_v7  ;;  %9997 = vmatprep.mubr.msk.f32.mxu1 %vm937_vm3, %v12388_v61  ;;  %v5099_v7 = vmul.f32 %v12382_v50, %v12408_v28 }
 0x69c   : > { %10138 = vmatpush3.msra.mxu0 %v12394_v22  ;;  %10040 = vmatprep.mubr.msk.f32.mxu0 %vm937_vm3, %v12197_v25  ;;  %v5101_v25 = vmul.f32 %v12406_v5, %v12426_v32 }
 0x69d   : > { %10139 = vmatprep.subr.mxu0 %v9168_v40 }
 0x69e   : > { %10140 = vmatpush3.msra.mxu0 %v9168_v40  ;;  %9998 = vmatmul.mubr.msk.f32.gmra.mxu1 %vm937_vm3, %v5097_v30  ;;  %v5496_v40 = vld [vmem:[#allocation2 + $0xc7] sm:$0xff] }
 0x69f   : > { %10041 = vmatmul.mubr.msk.f32.gmra.mxu0 %vm937_vm3, %v14320_v3  ;;  %10000 = vmatprep.mubr.msk.f32.mxu1 %vm937_vm3, %v12410_v6 }
 0x6a0   : > { %10043 = vmatprep.mubr.msk.f32.mxu0 %vm937_vm3, %v12216_v15  ;;  %7466 = vmatprep.subr.mxu0 %v14285_v33  ;;  %v5103_v15 = vmul.f32 %v12424_v24, %v12443_v47  ;;  %v5500_v33 = vld [vmem:[#allocation2 + $0xe7] sm:$0xff] }
 0x6a2   : > { %10001 = vmatmul.mubr.msk.f32.gmra.mxu1 %vm937_vm3, %v5099_v7 }
 0x6a3   : > { %10044 = vmatmul.mubr.msk.f32.gmra.mxu0 %vm937_vm3, %v14321_v13  ;;  %10003 = vmatprep.mubr.msk.f32.mxu1 %vm937_vm3, %v12428_v37  ;;  %v5494_v13 = vld [vmem:[#allocation2 + $0xb7] sm:$0xff] }
 0x6a4   : > { %10046 = vmatprep.mubr.msk.f32.mxu0 %vm937_vm3, %v12227_v20  ;;  %v5105_v20 = vmul.f32 %v12441_v31, %v12460_v60  ;;  %v5526_v63 = vmul.f32 %v14363_v44, %v5494_v13  ;;  %v14369_v44 = vld [vmem:[#allocation41_spill] sm:$0xff] }
 0x6a6   : > { %10004 = vmatmul.mubr.msk.f32.gmra.mxu1 %vm937_vm3, %v5101_v25  ;;  %v14365_v25 = vld [vmem:[#allocation19_spill] sm:$0xff] }
 0x6a7   : > { %10047 = vmatmul.mubr.msk.f32.gmra.mxu0 %vm937_vm3, %v14323_v42  ;;  %10006 = vmatprep.mubr.msk.f32.mxu1 %vm937_vm3, %v12445_v9 }
 0x6a8   : > { %10049 = vmatprep.mubr.msk.f32.mxu0 %vm937_vm3, %v12237_v4  ;;  %v5107_v4 = vmul.f32 %v12458_v23, %v12477_v57 }
 0x6aa   : > { %10007 = vmatmul.mubr.msk.f32.gmra.mxu1 %vm937_vm3, %v5103_v15  ;;  %v5113_v15 = vmul.f32 %v14365_v25, %v12530_v55 }
 0x6ab   : > { %10050 = vmatmul.mubr.msk.f32.gmra.mxu0 %vm937_vm3, %v12106_v34  ;;  %10009 = vmatprep.mubr.msk.f32.mxu1 %vm937_vm3, %v12462_v12  ;;  %v5492_v34 = vld [vmem:[#allocation2 + $0xa7] sm:$0xff] }
 0x6ac   : > { %10052 = vmatprep.mubr.msk.f32.mxu0 %vm937_vm3, %v12247_v58  ;;  %v14358_v58 = vld [vmem:[#allocation38_spill] sm:$0xff] }
 0x6ad   : > { %v5524_v3 = vmul.f32 %v14358_v58, %v5492_v34 }
 0x6ae   : > { %10010 = vmatmul.mubr.msk.f32.gmra.mxu1 %vm937_vm3, %v5105_v20  ;;  %v5495_v20 = vld [vmem:[#allocation2 + $0xbf] sm:$0xff] }
 0x6af   : > { %10053 = vmatmul.mubr.msk.f32.gmra.mxu0 %vm937_vm3, %v12128_v27  ;;  %10012 = vmatprep.mubr.msk.f32.mxu1 %vm937_vm3, %v12479_v36  ;;  %v5109_v27 = vmul.f32 %v12475_v16, %v12494_v59 }
 0x6b0   : > { %10055 = vmatprep.mubr.msk.f32.mxu0 %vm937_vm3, %v12257_v48 }
 0x6b2   : > { %v12683_v22 = vpop.f32.mrf.mxu0  ;;  %10013 = vmatmul.mubr.msk.f32.gmra.mxu1 %vm937_vm3, %v5107_v4  ;;  %v14366_v4 = vld [vmem:[#allocation12_spill] sm:$0xff] }
 0x6b3   : > { %10056 = vmatmul.mubr.msk.f32.gmra.mxu0 %vm937_vm3, %v12159_v53  ;;  %10015 = vmatprep.mubr.msk.f32.mxu1 %vm937_vm3, %v12496_v51  ;;  %v14359_v53 = vld [vmem:[#allocation42_spill] sm:$0xff]  ;;  %v5528_v34 = vmul.f32 %v14366_v4, %v5496_v40  ;;  %v14370_v40 = vld [vmem:[#allocation13_spill] sm:$0xff] }
 0x6b4   : > { %10058 = vmatprep.mubr.msk.f32.mxu0 %vm937_vm3, %v12267_v41  ;;  %v12695_v48 = vpop.f32.mrf.mxu0  ;;  %v5493_v41 = vld [vmem:[#allocation2 + $0xaf] sm:$0xff] }
 0x6b6   : > { %v12699_v11 = vpop.f32.mrf.mxu1  ;;  %10016 = vmatmul.mubr.msk.f32.gmra.mxu1 %vm937_vm3, %v5109_v27 }
 0x6b7   : > { %v12697_v42 = vpop.f32.mrf.mxu0  ;;  %10059 = vmatmul.mubr.msk.f32.gmra.mxu0 %vm937_vm3, %v14359_v53  ;;  %10018 = vmatprep.mubr.msk.f32.mxu1 %vm937_vm3, %v14362_v0 }
 0x6b8   : > { %10061 = vmatprep.mubr.msk.f32.mxu0 %vm937_vm3, %v5524_v3  ;;  %v12712_v62 = vpop.f32.mrf.mxu1  ;;  %v5498_v3 = vld [vmem:[#allocation2 + $0xd7] sm:$0xff] }
 0x6b9   : > { %v12710_v45 = vpop.f32.mrf.mxu0  ;;  %14364 = vst [vmem:[#allocation20_spill] sm:$0xff] %v12712_v62  ;;  %v5530_v4 = vmul.f32 %v14370_v40, %v5498_v3  ;;  %v5499_v3 = vld [vmem:[#allocation2 + $0xdf] sm:$0xff]  ;;  %v14376_v40 = vld [vmem:[#allocation17_spill] sm:$0xff] }
 0x6ba   : > { %v12716_v7 = vpop.f32.mrf.mxu1  ;;  %10019 = vmatmul.mubr.msk.f32.gmra.mxu1 %vm937_vm3, %v5111_v19  ;;  %v14368_v19 = vld [vmem:[#allocation27_spill] sm:$0xff] }
 0x6bb   : > { %v12714_v30 = vpop.f32.mrf.mxu0  ;;  %10062 = vmatmul.mubr.msk.f32.gmra.mxu0 %vm937_vm3, %v5493_v41  ;;  %10021 = vmatprep.mubr.msk.f32.mxu1 %vm937_vm3, %v12532_v17  ;;  %v5115_v41 = vmul.f32 %v14368_v19, %v12547_v38  ;;  %v14374_v19 = vld [vmem:[#allocation35_spill] sm:$0xff] }
 0x6bc   : > { %10064 = vmatprep.mubr.msk.f32.mxu0 %vm937_vm3, %v5526_v63  ;;  %v12728_v58 = vpop.f32.mrf.mxu1  ;;  %v5497_v63 = vld [vmem:[#allocation2 + $0xcf] sm:$0xff] }
 0x6bd   : > { %v12726_v27 = vpop.f32.mrf.mxu0  ;;  %14367 = vst [vmem:[#allocation22_spill] sm:$0xff] %v12728_v58  ;;  %v12758_v38 = vld [vmem:[#allocation2 + $0x111] sm:$0xff] }
 0x6be   : > { %v12732_v53 = vpop.f32.mrf.mxu1  ;;  %10022 = vmatmul.mubr.msk.f32.gmra.mxu1 %vm937_vm3, %v5113_v15  ;;  %14377 = vst [vmem:[#allocation21_spill] sm:$0xff] %v12758_v38 }
 0x6bf   : > { %v12730_v13 = vpop.f32.mrf.mxu0  ;;  %10065 = vmatmul.mubr.msk.f32.gmra.mxu0 %vm937_vm3, %v5495_v20  ;;  %10024 = vmatprep.mubr.msk.f32.mxu1 %vm937_vm3, %v14369_v44  ;;  %v14373_v20 = vld [vmem:[#allocation15_spill] sm:$0xff] }
 0x6c0   : > { %10067 = vmatprep.mubr.msk.f32.mxu0 %vm937_vm3, %v5528_v34  ;;  %v12744_v62 = vpop.f32.mrf.mxu1  ;;  %v5117_v44 = vmul.f32 %v14374_v19, %v14373_v20  ;;  %v14375_v34 = vld [vmem:[#allocation18_spill] sm:$0xff] }
 0x6c1   : > { %v12742_v58 = vpop.f32.mrf.mxu0  ;;  %14371 = vst [vmem:[#allocation24_spill] sm:$0xff] %v12744_v62  ;;  %v5532_v62 = vmul.f32 %v14376_v40, %v5500_v33  ;;  %v5501_v40 = vld [vmem:[#allocation2 + $0xef] sm:$0xff] }
 0x6c2   : > { %v12748_v15 = vpop.f32.mrf.mxu1  ;;  %10025 = vmatmul.mubr.msk.f32.gmra.mxu1 %vm937_vm3, %v5115_v41  ;;  %v12764_v41 = vld [vmem:[#allocation2 + $0x109] sm:$0xff] }
 0x6c3   : > { %v12746_v25 = vpop.f32.mrf.mxu0  ;;  %14372 = vst [vmem:[#allocation26_spill] sm:$0xff] %v12748_v15  ;;  %10068 = vmatmul.mubr.msk.f32.gmra.mxu0 %vm937_vm3, %v5497_v63  ;;  %10027 = vmatprep.mubr.msk.f32.mxu1 %vm937_vm3, %v14375_v34  ;;  %14379 = vst [vmem:[#allocation30_spill] sm:$0xff] %v12764_v41  ;;  %v5502_v63 = vld [vmem:[#allocation2 + $0xf7] sm:$0xff] }
 0x6c4   : > { %10070 = vmatprep.mubr.msk.f32.mxu0 %vm937_vm3, %v5530_v4  ;;  %v12762_v15 = vpop.f32.mrf.mxu1  ;;  %v14381_v4 = vld [vmem:[#allocation16_spill] sm:$0xff] }
 0x6c5   : > { %v12760_v17 = vpop.f32.mrf.mxu0  ;;  %14378 = vst [vmem:[#allocation28_spill] sm:$0xff] %v12762_v15  ;;  %v5119_v33 = vmul.f32 %v14381_v4, %v12758_v38  ;;  %v5534_v15 = vmul.f32 %v14350_v18, %v5502_v63  ;;  %v5897_v4 = vld [vmem:[#allocation2 + $0x30] sm:$0xff]  ;;  %v5536_v18 = vmul.f32 %v14353_v21, %v12588_v43  ;;  %v5899_v21 = vld [vmem:[#allocation2 + $0x40] sm:$0xff] }
 0x6c6   : > { %v12768_v19 = vpop.f32.mrf.mxu1  ;;  %10028 = vmatmul.mubr.msk.f32.gmra.mxu1 %vm937_vm3, %v5117_v44  ;;  %v5506_v38 = vld [vmem:[#allocation2 + $0x117] sm:$0xff] }
 0x6c7   : > { %v12766_v46 = vpop.f32.mrf.mxu0  ;;  %14380 = vst [vmem:[#allocation25_spill] sm:$0xff] %v12768_v19  ;;  %10071 = vmatmul.mubr.msk.f32.gmra.mxu0 %vm937_vm3, %v5499_v3  ;;  %10030 = vmatprep.mubr.msk.f32.mxu1 %vm937_vm3, %v12764_v41  ;;  %v14384_v3 = vld [vmem:[#allocation43_spill] sm:$0xff]  ;;  %v5538_v43 = vmul.f32 %v14355_v8, %v5506_v38  ;;  %v5901_v8 = vld [vmem:[#allocation2 + $0x50] sm:$0xff] }
 0x6c8   : > { %10073 = vmatprep.mubr.msk.f32.mxu0 %vm937_vm3, %v5532_v62  ;;  %v12780_v20 = vpop.f32.mrf.mxu1  ;;  %v5503_v62 = vld [vmem:[#allocation2 + $0xff] sm:$0xff] }
 0x6c9   : > { %v12778_v34 = vpop.f32.mrf.mxu0  ;;  %14382 = vst [vmem:[#allocation33_spill] sm:$0xff] %v12780_v20  ;;  %v5898_v41 = vld [vmem:[#allocation2 + $0x38] sm:$0xff] }
 0x6ca   : > { %v12784_v44 = vpop.f32.mrf.mxu1  ;;  %10031 = vmatmul.mubr.msk.f32.gmra.mxu1 %vm937_vm3, %v5119_v33  ;;  %v5507_v38 = vld [vmem:[#allocation2 + $0x11f] sm:$0xff] }
 0x6cb   : > { %v12782_v19 = vpop.f32.mrf.mxu0  ;;  %14383 = vst [vmem:[#allocation29_spill] sm:$0xff] %v12784_v44  ;;  %10074 = vmatmul.mubr.msk.f32.gmra.mxu0 %vm937_vm3, %v5501_v40  ;;  %10089 = vmatprep.mubr.msk.f32.mxu1 %vm937_vm3, %v14384_v3 }
 0x6cc   : > { %10076 = vmatprep.mubr.msk.f32.mxu0 %vm937_vm3, %v5534_v15  ;;  %v12795_v20 = vpop.f32.mrf.mxu1 }
 0x6cd   : > { %v12793_v63 = vpop.f32.mrf.mxu0  ;;  %14385 = vst [vmem:[#allocation37_spill] sm:$0xff] %v12795_v20  ;;  %v5900_v20 = vld [vmem:[#allocation2 + $0x48] sm:$0xff] }
 0x6ce   : > { %v9779_v33 = vpop.f32.mrf.mxu1  ;;  %10090 = vmatmul.mubr.msk.f32.vlgmr.msra.gmra.mxu1 %vm937_vm3, %v5897_v4 }
 0x6cf   : > { %v12797_v44 = vpop.f32.mrf.mxu0  ;;  %10077 = vmatmul.mubr.msk.f32.gmra.mxu0 %vm937_vm3, %v5503_v62  ;;  %v3675_v15 = vadd.f32 %v9779_v33, %v12683_v22  ;;  %10092 = vmatprep.mubr.msk.f32.mxu1 %vm937_vm3, %v5898_v41 }
 0x6d0   : > { %10079 = vmatprep.mubr.msk.f32.mxu0 %vm937_vm3, %v5536_v18  ;;  %v3669_v3 = vpop.f32.mrf.mxu1 }
 0x6d1   : > { %v12805_v40 = vpop.f32.mrf.mxu0  ;;  %v3670_v55 = vadd.f32 %v3669_v3, %v12695_v48  ;;  %v5902_v48 = vld [vmem:[#allocation2 + $0x58] sm:$0xff] }
 0x6d2   : > { %v9782_v62 = vpop.f32.mrf.mxu1  ;;  %10093 = vmatmul.mubr.msk.f32.gmra.mxu1 %vm937_vm3, %v5899_v21 }
 0x6d3   : > { %v12808_v0 = vpop.f32.mrf.mxu0  ;;  %10080 = vmatmul.mubr.msk.f32.gmra.mxu0 %vm937_vm3, %v12612_v2  ;;  %v3685_v22 = vadd.f32 %v9782_v62, %v12697_v42  ;;  %10095 = vmatprep.mubr.msk.f32.mxu1 %vm937_vm3, %v5900_v20  ;;  %v5903_v42 = vld [vmem:[#allocation2 + $0x60] sm:$0xff] }
 0x6d4   : > { %10082 = vmatprep.mubr.msk.f32.mxu0 %vm937_vm3, %v5538_v43  ;;  %v3679_v4 = vpop.f32.mrf.mxu1  ;;  %v5904_v43 = vld [vmem:[#allocation2 + $0x68] sm:$0xff] }
 0x6d5   : > { %v12816_v41 = vpop.f32.mrf.mxu0  ;;  %v3680_v18 = vadd.f32 %v3679_v4, %v12710_v45 }
 0x6d6   : > { %14386 = vst [vmem:[#allocation11_spill] sm:$0xff] %v12816_v41  ;;  %v9785_v3 = vpop.f32.mrf.mxu1  ;;  %10096 = vmatmul.mubr.msk.f32.gmra.mxu1 %vm937_vm3, %v5901_v8 }
 0x6d7   : > { %v12819_v33 = vpop.f32.mrf.mxu0  ;;  %10083 = vmatmul.mubr.msk.f32.gmra.mxu0 %vm937_vm3, %v5507_v38  ;;  %v3695_v2 = vadd.f32 %v9785_v3, %v12714_v30  ;;  %10098 = vmatprep.mubr.msk.f32.mxu1 %vm937_vm3, %v5902_v48  ;;  %v14388_v38 = vld [vmem:[#allocation36_spill] sm:$0xff]  ;;  %v6319_v30 = vmul.f32 %v12309_v1, %v12348_v56  ;;  %v6321_v1 = vmul.f32 %v12327_v14, %v12365_v54 }
 0x6d8   : > { %10141 = vmatprep.mubr.msk.f32.mxu0 %vm937_vm3, %v12329_v10  ;;  %v3689_v21 = vpop.f32.mrf.mxu1  ;;  %v6323_v14 = vmul.f32 %v12346_v39, %v12384_v26  ;;  %v6325_v39 = vmul.f32 %v12363_v29, %v12408_v28  ;;  %v6327_v29 = vmul.f32 %v12382_v50, %v12426_v32  ;;  %v6329_v50 = vmul.f32 %v12406_v5, %v12443_v47 }
 0x6d9   : > { %v12827_v20 = vpop.f32.mrf.mxu0  ;;  %v3690_v45 = vadd.f32 %v3689_v21, %v12726_v27  ;;  %v5905_v27 = vld [vmem:[#allocation2 + $0x70] sm:$0xff]  ;;  %v5906_v21 = vld [vmem:[#allocation2 + $0x78] sm:$0xff]  ;;  %v6331_v5 = vmul.f32 %v12424_v24, %v12460_v60  ;;  %v6333_v24 = vmul.f32 %v12441_v31, %v12477_v57  ;;  %v6335_v31 = vmul.f32 %v12458_v23, %v12494_v59 }
 0x6da   : > { %14387 = vst [vmem:[#allocation38_spill] sm:$0xff] %v12827_v20  ;;  %v9788_v62 = vpop.f32.mrf.mxu1  ;;  %10099 = vmatmul.mubr.msk.f32.gmra.mxu1 %vm937_vm3, %v5903_v42  ;;  %v6337_v23 = vmul.f32 %v12475_v16, %v14360_v52  ;;  %v14391_v16 = vld [vmem:[#allocation34_spill] sm:$0xff] }
 0x6db   : > { %v9831_v4 = vpop.f32.mrf.mxu0  ;;  %10142 = vmatmul.mubr.msk.f32.vlgmr.msra.gmra.mxu0 %vm937_vm3, %v14388_v38  ;;  %v3705_v8 = vadd.f32 %v9788_v62, %v12730_v13  ;;  %10101 = vmatprep.mubr.msk.f32.mxu1 %vm937_vm3, %v5904_v43  ;;  %v14392_v52 = vld [vmem:[#allocation14_spill] sm:$0xff] }
 0x6dc   : > { %v12836_v10 = vadd.f32 %v9831_v4, %v3675_v15  ;;  %10144 = vmatprep.mubr.msk.f32.mxu0 %vm937_vm3, %v12350_v35  ;;  %v3699_v48 = vpop.f32.mrf.mxu1  ;;  %v5908_v15 = vld [vmem:[#allocation2 + $0x88] sm:$0xff] }
 0x6dd   : > { %v4025_v3 = vpop.f32.mrf.mxu0  ;;  %v3700_v42 = vadd.f32 %v3699_v48, %v12742_v58 }
 0x6de   : > { %v12842_v20 = vadd.f32 %v4025_v3, %v3670_v55  ;;  %v9791_v38 = vpop.f32.mrf.mxu1  ;;  %10102 = vmatmul.mubr.msk.f32.gmra.mxu1 %vm937_vm3, %v5905_v27  ;;  %v5907_v55 = vld [vmem:[#allocation2 + $0x80] sm:$0xff] }
 0x6df   : > { %v9834_v41 = vpop.f32.mrf.mxu0  ;;  %10145 = vmatmul.mubr.msk.f32.gmra.mxu0 %vm937_vm3, %v6319_v30  ;;  %v3715_v56 = vadd.f32 %v9791_v38, %v12746_v25  ;;  %10104 = vmatprep.mubr.msk.f32.mxu1 %vm937_vm3, %v5906_v21 }
 0x6e0   : > { %v12849_v35 = vadd.f32 %v9834_v41, %v3685_v22  ;;  %10147 = vmatprep.mubr.msk.f32.mxu0 %vm937_vm3, %v12367_v49  ;;  %v3709_v58 = vpop.f32.mrf.mxu1  ;;  %v5910_v41 = vld [vmem:[#allocation2 + $0x98] sm:$0xff] }
 0x6e1   : > { %v4035_v13 = vpop.f32.mrf.mxu0  ;;  %v3710_v43 = vadd.f32 %v3709_v58, %v12760_v17  ;;  %v5909_v17 = vld [vmem:[#allocation2 + $0x90] sm:$0xff] }
 0x6e2   : > { %v12855_v62 = vadd.f32 %v4035_v13, %v3680_v18  ;;  %v9794_v4 = vpop.f32.mrf.mxu1  ;;  %10105 = vmatmul.mubr.msk.f32.gmra.mxu1 %vm937_vm3, %v5907_v55 }
 0x6e3   : > { %v9837_v30 = vpop.f32.mrf.mxu0  ;;  %10148 = vmatmul.mubr.msk.f32.gmra.mxu0 %vm937_vm3, %v6321_v1  ;;  %v3725_v54 = vadd.f32 %v9794_v4, %v12766_v46  ;;  %10107 = vmatprep.mubr.msk.f32.mxu1 %vm937_vm3, %v5908_v15  ;;  %v5911_v46 = vld [vmem:[#allocation2 + $0xa0] sm:$0xff] }
 0x6e4   : > { %v12862_v49 = vadd.f32 %v9837_v30, %v3695_v2  ;;  %10150 = vmatprep.mubr.msk.f32.mxu0 %vm937_vm3, %v12388_v61  ;;  %v3719_v25 = vpop.f32.mrf.mxu1 }
 0x6e5   : > { %v4045_v22 = vpop.f32.mrf.mxu0  ;;  %v3720_v18 = vadd.f32 %v3719_v25, %v12778_v34 }
 0x6e6   : > { %v12868_v27 = vadd.f32 %v4045_v22, %v3690_v45  ;;  %v9797_v48 = vpop.f32.mrf.mxu1  ;;  %10108 = vmatmul.mubr.msk.f32.gmra.mxu1 %vm937_vm3, %v5909_v17  ;;  %v5912_v45 = vld [vmem:[#allocation2 + $0xa8] sm:$0xff]  ;;  %v5918_v22 = vld [vmem:[#allocation2 + $0xd8] sm:$0xff] }
 0x6e7   : > { %v9840_v3 = vpop.f32.mrf.mxu0  ;;  %10151 = vmatmul.mubr.msk.f32.gmra.mxu0 %vm937_vm3, %v6323_v14  ;;  %v3735_v26 = vadd.f32 %v9797_v48, %v12782_v19  ;;  %10110 = vmatprep.mubr.msk.f32.mxu1 %vm937_vm3, %v5910_v41  ;;  %v5913_v19 = vld [vmem:[#allocation2 + $0xb0] sm:$0xff] }
 0x6e8   : > { %v12875_v61 = vadd.f32 %v9840_v3, %v3705_v8  ;;  %10153 = vmatprep.mubr.msk.f32.mxu0 %vm937_vm3, %v12410_v6  ;;  %v3729_v34 = vpop.f32.mrf.mxu1 }
 0x6e9   : > { %v4055_v2 = vpop.f32.mrf.mxu0  ;;  %v3730_v21 = vadd.f32 %v3729_v34, %v12793_v63 }
 0x6ea   : > { %v12881_v38 = vadd.f32 %v4055_v2, %v3700_v42  ;;  %v9800_v1 = vpop.f32.mrf.mxu1  ;;  %10111 = vmatmul.mubr.msk.f32.gmra.mxu1 %vm937_vm3, %v5911_v46  ;;  %v5914_v42 = vld [vmem:[#allocation2 + $0xb8] sm:$0xff] }
 0x6eb   : > { %v9843_v55 = vpop.f32.mrf.mxu0  ;;  %10154 = vmatmul.mubr.msk.f32.gmra.mxu0 %vm937_vm3, %v6325_v39  ;;  %v3745_v28 = vadd.f32 %v9800_v1, %v12797_v44  ;;  %10113 = vmatprep.mubr.msk.f32.mxu1 %vm937_vm3, %v5912_v45  ;;  %v5915_v44 = vld [vmem:[#allocation2 + $0xc0] sm:$0xff]  ;;  %v5922_v1 = vld [vmem:[#allocation2 + $0xf8] sm:$0xff] }
 0x6ec   : > { %v12888_v6 = vadd.f32 %v9843_v55, %v3715_v56  ;;  %10156 = vmatprep.mubr.msk.f32.mxu0 %vm937_vm3, %v12428_v37  ;;  %v3739_v63 = vpop.f32.mrf.mxu1 }
 0x6ed   : > { %v4065_v8 = vpop.f32.mrf.mxu0  ;;  %v3740_v58 = vadd.f32 %v3739_v63, %v12805_v40 }
 0x6ee   : > { %v12894_v13 = vadd.f32 %v4065_v8, %v3710_v43  ;;  %v9803_v15 = vpop.f32.mrf.mxu1  ;;  %10114 = vmatmul.mubr.msk.f32.gmra.mxu1 %vm937_vm3, %v5913_v19  ;;  %v5916_v43 = vld [vmem:[#allocation2 + $0xc8] sm:$0xff] }
 0x6ef   : > { %v9846_v4 = vpop.f32.mrf.mxu0  ;;  %10157 = vmatmul.mubr.msk.f32.gmra.mxu0 %vm937_vm3, %v6327_v29  ;;  %v3755_v32 = vadd.f32 %v9803_v15, %v12808_v0  ;;  %10116 = vmatprep.mubr.msk.f32.mxu1 %vm937_vm3, %v5914_v42  ;;  %v5924_v8 = vld [vmem:[#allocation2 + $0x108] sm:$0xff]  ;;  %v14393_v15 = vld [vmem:[#allocation26_spill] sm:$0xff] }
 0x6f0   : > { %v12901_v37 = vadd.f32 %v9846_v4, %v3725_v54  ;;  %10159 = vmatprep.mubr.msk.f32.mxu0 %vm937_vm3, %v12445_v9  ;;  %v12906_v40 = vpop.f32.mrf.mxu1  ;;  %v5917_v9 = vld [vmem:[#allocation2 + $0xd0] sm:$0xff] }
 0x6f1   : > { %v4075_v56 = vpop.f32.mrf.mxu0 }
 0x6f2   : > { %v12908_v30 = vadd.f32 %v4075_v56, %v3720_v18  ;;  %v9806_v14 = vpop.f32.mrf.mxu1  ;;  %10117 = vmatmul.mubr.msk.f32.gmra.mxu1 %vm937_vm3, %v5915_v44  ;;  %v5925_v44 = vld [vmem:[#allocation2 + $0x110] sm:$0xff] }
 0x6f3   : > { %v9849_v17 = vpop.f32.mrf.mxu0  ;;  %10160 = vmatmul.mubr.msk.f32.gmra.mxu0 %vm937_vm3, %v6329_v50  ;;  %v3765_v47 = vadd.f32 %v9806_v14, %v12819_v33  ;;  %10119 = vmatprep.mubr.msk.f32.mxu1 %vm937_vm3, %v5916_v43  ;;  %v5926_v14 = vld [vmem:[#allocation2 + $0x118] sm:$0xff] }
 0x6f4   : > { %v12915_v0 = vadd.f32 %v9849_v17, %v3735_v26  ;;  %10162 = vmatprep.mubr.msk.f32.mxu0 %vm937_vm3, %v12462_v12  ;;  %v12920_v54 = vpop.f32.mrf.mxu1  ;;  %v5919_v12 = vld [vmem:[#allocation2 + $0xe0] sm:$0xff]  ;;  %v5920_v26 = vld [vmem:[#allocation2 + $0xe8] sm:$0xff] }
 0x6f5   : > { %v4085_v25 = vpop.f32.mrf.mxu0 }
 0x6f6   : > { %v12922_v41 = vadd.f32 %v4085_v25, %v3730_v21  ;;  %v9809_v18 = vpop.f32.mrf.mxu1  ;;  %10120 = vmatmul.mubr.msk.f32.gmra.mxu1 %vm937_vm3, %v5917_v9  ;;  %v14396_v9 = vld [vmem:[#allocation19_spill] sm:$0xff] }
 0x6f7   : > { %v9852_v48 = vpop.f32.mrf.mxu0  ;;  %10163 = vmatmul.mubr.msk.f32.gmra.mxu0 %vm937_vm3, %v6331_v5  ;;  %v3775_v60 = vadd.f32 %v9809_v18, %v12699_v11  ;;  %10122 = vmatprep.mubr.msk.f32.mxu1 %vm937_vm3, %v5918_v22  ;;  %v14397_v22 = vld [vmem:[#allocation25_spill] sm:$0xff] }
 0x6f8   : > { %v12929_v33 = vadd.f32 %v9852_v48, %v3745_v28  ;;  %10165 = vmatprep.mubr.msk.f32.mxu0 %vm937_vm3, %v12479_v36  ;;  %v12934_v3 = vpop.f32.mrf.mxu1  ;;  %v5921_v36 = vld [vmem:[#allocation2 + $0xf0] sm:$0xff]  ;;  %v5923_v28 = vld [vmem:[#allocation2 + $0x100] sm:$0xff] }
 0x6f9   : > { %v4095_v39 = vpop.f32.mrf.mxu0 }
 0x6fa   : > { %v12936_v46 = vadd.f32 %v4095_v39, %v3740_v58  ;;  %v9812_v34 = vpop.f32.mrf.mxu1  ;;  %10123 = vmatmul.mubr.msk.f32.gmra.mxu1 %vm937_vm3, %v5919_v12 }
 0x6fb   : > { %v9855_v2 = vpop.f32.mrf.mxu0  ;;  %10166 = vmatmul.mubr.msk.f32.gmra.mxu0 %vm937_vm3, %v6333_v24  ;;  %v3785_v57 = vadd.f32 %v9812_v34, %v12716_v7  ;;  %10125 = vmatprep.mubr.msk.f32.mxu1 %vm937_vm3, %v5920_v26  ;;  %v14398_v24 = vld [vmem:[#allocation41_spill] sm:$0xff] }
 0x6fc   : > { %14389 = vst [vmem:[#allocation42_spill] sm:$0xff] %v12936_v46  ;;  %v12943_v11 = vadd.f32 %v9855_v2, %v3755_v32  ;;  %10168 = vmatprep.mubr.msk.f32.mxu0 %vm937_vm3, %v12496_v51  ;;  %v12948_v45 = vpop.f32.mrf.mxu1  ;;  %v14390_v51 = vld [vmem:[#allocation23_spill] sm:$0xff]  ;;  %v14394_v32 = vld [vmem:[#allocation32_spill] sm:$0xff] }
 0x6fd   : > { %v12950_v21 = vpop.f32.mrf.mxu0  ;;  %v14399_v2 = vld [vmem:[#allocation15_spill] sm:$0xff] }
 0x6fe   : > { %v9815_v55 = vpop.f32.mrf.mxu1  ;;  %10126 = vmatmul.mubr.msk.f32.gmra.mxu1 %vm937_vm3, %v5921_v36  ;;  %v14401_v36 = vld [vmem:[#allocation29_spill] sm:$0xff] }
 0x6ff   : > { %v9858_v29 = vpop.f32.mrf.mxu0  ;;  %10169 = vmatmul.mubr.msk.f32.gmra.mxu0 %vm937_vm3, %v6335_v31  ;;  %v3795_v59 = vadd.f32 %v9815_v55, %v12732_v53  ;;  %10128 = vmatprep.mubr.msk.f32.mxu1 %vm937_vm3, %v5922_v1  ;;  %v6339_v53 = vmul.f32 %v14392_v52, %v14391_v16  ;;  %v14400_v31 = vld [vmem:[#allocation27_spill] sm:$0xff] }
 0x700   : > { %v12957_v7 = vadd.f32 %v9858_v29, %v3765_v47  ;;  %10171 = vmatprep.mubr.msk.f32.mxu0 %vm937_vm3, %v14390_v51  ;;  %v12962_v19 = vpop.f32.mrf.mxu1  ;;  %v14395_v47 = vld [vmem:[#allocation39_spill] sm:$0xff]  ;;  %v14402_v29 = vld [vmem:[#allocation18_spill] sm:$0xff] }
 0x701   : > { %v12964_v63 = vpop.f32.mrf.mxu0  ;;  %v6341_v25 = vmul.f32 %v14396_v9, %v14395_v47  ;;  %v14405_v16 = vld [vmem:[#allocation35_spill] sm:$0xff]  ;;  %v14407_v9 = vld [vmem:[#allocation16_spill] sm:$0xff] }
 0x702   : > { %v9818_v42 = vpop.f32.mrf.mxu1  ;;  %10129 = vmatmul.mubr.msk.f32.gmra.mxu1 %vm937_vm3, %v5923_v28 }
 0x703   : > { %v9861_v58 = vpop.f32.mrf.mxu0  ;;  %10172 = vmatmul.mubr.msk.f32.gmra.mxu0 %vm937_vm3, %v6337_v23  ;;  %v3805_v4 = vadd.f32 %v9818_v42, %v14393_v15  ;;  %10131 = vmatprep.mubr.msk.f32.mxu1 %vm937_vm3, %v5924_v8  ;;  %v14403_v23 = vmov 0.0   ;;  %v14406_v15 = vld [vmem:[#allocation30_spill] sm:$0xff] }
 0x704   : > { %v12971_v50 = vadd.f32 %v9861_v58, %v3775_v60  ;;  %10174 = vmatprep.mubr.msk.f32.mxu0 %vm937_vm3, %v14394_v32  ;;  %v12976_v56 = vpop.f32.mrf.mxu1  ;;  %v5927_v60 = vld [vmem:[#allocation2 + $0x120] sm:$0xff]  ;;  %v14404_v58 = vld [vmem:[#allocation21_spill] sm:$0xff] }
 0x705   : > { %v12978_v43 = vpop.f32.mrf.mxu0  ;;  %v6345_v52 = vmul.f32 %v14405_v16, %v14404_v58  ;;  %v6315_v32 = vld [vmem:[#allocation2 + $0x121] sm:$0xff] }
 0x706   : > { %v9821_v17 = vpop.f32.mrf.mxu1  ;;  %10132 = vmatmul.mubr.msk.f32.gmra.mxu1 %vm937_vm3, %v5925_v44 }
 0x707   : > { %v9864_v5 = vpop.f32.mrf.mxu0  ;;  %10175 = vmatmul.mubr.msk.f32.gmra.mxu0 %vm937_vm3, %v6339_v53  ;;  %v3815_v18 = vadd.f32 %v9821_v17, %v14397_v22  ;;  %10134 = vmatprep.mubr.msk.f32.mxu1 %vm937_vm3, %v5926_v14  ;;  %v6314_v17 = vld [vmem:[#allocation2 + $0x119] sm:$0xff] }
 0x708   : > { %v12985_v48 = vadd.f32 %v9864_v5, %v3785_v57  ;;  %10177 = vmatprep.mubr.msk.f32.mxu0 %vm937_vm3, %v14398_v24  ;;  %v12990_v12 = vpop.f32.mrf.mxu1  ;;  %v6343_v57 = vmul.f32 %v14400_v31, %v14399_v2 }
 0x709   : > { %v12992_v39 = vpop.f32.mrf.mxu0 }
 0x70a   : > { %v9824_v26 = vpop.f32.mrf.mxu1  ;;  %10135 = vmatmul.mubr.msk.f32.gmra.mxu1 %vm937_vm3, %v5927_v60 }
 0x70b   : > { %v9867_v34 = vpop.f32.mrf.mxu0  ;;  %10178 = vmatmul.mubr.msk.f32.gmra.mxu0 %vm937_vm3, %v6341_v25  ;;  %v3825_v1 = vadd.f32 %v9824_v26, %v14401_v36  ;;  %10193 = vmatprep.mubr.msk.f32.mxu1 %vm10670_vm2, %v14403_v23  ;;  %v6347_v25 = vmul.f32 %v14407_v9, %v6315_v32 }
 0x70c   : > { %v12999_v55 = vadd.f32 %v9867_v34, %v3795_v59  ;;  %10180 = vmatprep.mubr.msk.f32.mxu0 %vm937_vm3, %v14402_v29  ;;  %v13005_v51 = vpop.f32.mrf.mxu1 }
 0x70d   : > { %v13007_v28 = vpop.f32.mrf.mxu0 }
 0x70e   : > { %v9883_v42 = vpop.f32.mrf.mxu1 }
 0x70f   : > { %v9870_v8 = vpop.f32.mrf.mxu0  ;;  %10181 = vmatmul.mubr.msk.f32.gmra.mxu0 %vm937_vm3, %v6343_v57  ;;  %v4605_v59 = vadd.f32 %v9883_v42, %v12836_v10 }
 0x710   : > { %v13012_v53 = vadd.f32 %v9870_v8, %v3805_v4  ;;  %10183 = vmatprep.mubr.msk.f32.mxu0 %vm937_vm3, %v14406_v15  ;;  %v13019_v14 = vpop.f32.mrf.mxu1 }
 0x711   : > { %v13017_v44 = vpop.f32.mrf.mxu0 }
 0x712   : > { %v9886_v47 = vpop.f32.mrf.mxu1 }
 0x713   : > { %v9873_v5 = vpop.f32.mrf.mxu0  ;;  %10184 = vmatmul.mubr.msk.f32.gmra.mxu0 %vm937_vm3, %v6345_v52  ;;  %v4607_v4 = vadd.f32 %v9886_v47, %v12849_v35 }
 0x714   : > { %v13023_v22 = vadd.f32 %v9873_v5, %v3815_v18  ;;  %10186 = vmatprep.mubr.msk.f32.mxu0 %vm937_vm3, %v6314_v17  ;;  %v13029_v24 = vpop.f32.mrf.mxu1 }
 0x715   : > { %v13027_v10 = vpop.f32.mrf.mxu0 }
 0x716   : > { %v9889_v26 = vpop.f32.mrf.mxu1 }
 0x717   : > { %v9876_v60 = vpop.f32.mrf.mxu0  ;;  %10187 = vmatmul.mubr.msk.f32.gmra.mxu0 %vm937_vm3, %v6347_v25  ;;  %v4609_v2 = vadd.f32 %v9889_v26, %v12862_v49 }
 0x718   : > { %v13032_v34 = vadd.f32 %v9876_v60, %v3825_v1  ;;  %v13037_v18 = vpop.f32.mrf.mxu1 }
 0x719   : > { %v13035_v31 = vpop.f32.mrf.mxu0 }
 0x71a   : > { %v9892_v57 = vpop.f32.mrf.mxu1 }
 0x71b   : > { %v9935_v35 = vpop.f32.mrf.mxu0  ;;  %v4611_v36 = vadd.f32 %v9892_v57, %v12875_v61 }
 0x71c   : > { %v13040_v29 = vadd.f32 %v9935_v35, %v4605_v59  ;;  %v13042_v8 = vpop.f32.mrf.mxu1 }
 0x71d   : > { %v13044_v42 = vpop.f32.mrf.mxu0 }
 0x71e   : > { %v9895_v58 = vpop.f32.mrf.mxu1 }
 0x71f   : > { %v9938_v16 = vpop.f32.mrf.mxu0  ;;  %v4613_v1 = vadd.f32 %v9895_v58, %v12888_v6 }
 0x720   : > { %v13047_v52 = vadd.f32 %v9938_v16, %v4607_v4  ;;  %v13049_v49 = vpop.f32.mrf.mxu1 }
 0x721   : > { %v13051_v15 = vpop.f32.mrf.mxu0 }
 0x722   : > { %v9898_v32 = vpop.f32.mrf.mxu1 }
 0x723   : > { %v9941_v17 = vpop.f32.mrf.mxu0  ;;  %v4615_v61 = vadd.f32 %v9898_v32, %v12901_v37 }
 0x724   : > { %v13054_v59 = vadd.f32 %v9941_v17, %v4609_v2  ;;  %v13056_v5 = vpop.f32.mrf.mxu1 }
 0x725   : > { %v13058_v47 = vpop.f32.mrf.mxu0 }
 0x726   : > { %v9901_v9 = vpop.f32.mrf.mxu1 }
 0x727   : > { %v9944_v25 = vpop.f32.mrf.mxu0  ;;  %v4617_v6 = vadd.f32 %v9901_v9, %v12915_v0 }
 0x728   : > { %v13061_v4 = vadd.f32 %v9944_v25, %v4611_v36  ;;  %v13063_v60 = vpop.f32.mrf.mxu1 }
 0x729   : > { %14408 = vst [vmem:[#allocation31_spill] sm:$0xff] %v13063_v60  ;;  %v13065_v26 = vpop.f32.mrf.mxu0 }
 0x72a   : > { %14409 = vst [vmem:[#allocation40_spill] sm:$0xff] %v13065_v26  ;;  %v9904_v57 = vpop.f32.mrf.mxu1 }
 0x72b   : > { %v9947_v35 = vpop.f32.mrf.mxu0  ;;  %v4619_v37 = vadd.f32 %v9904_v57, %v12929_v33 }
 0x72c   : > { %v13068_v2 = vadd.f32 %v9947_v35, %v4613_v1  ;;  %v13070_v58 = vpop.f32.mrf.mxu1 }
 0x72d   : > { %14410 = vst [vmem:[#allocation12_spill] sm:$0xff] %v13070_v58  ;;  %v13072_v16 = vpop.f32.mrf.mxu0 }
 0x72e   : > { %14411 = vst [vmem:[#allocation13_spill] sm:$0xff] %v13072_v16  ;;  %v9907_v32 = vpop.f32.mrf.mxu1 }
 0x72f   : > { %v9950_v17 = vpop.f32.mrf.mxu0  ;;  %v4621_v0 = vadd.f32 %v9907_v32, %v12943_v11 }
 0x730   : > { %v13075_v36 = vadd.f32 %v9950_v17, %v4615_v61  ;;  %v13077_v9 = vpop.f32.mrf.mxu1 }
 0x731   : > { %14412 = vst [vmem:[#allocation17_spill] sm:$0xff] %v13077_v9  ;;  %v13079_v25 = vpop.f32.mrf.mxu0 }
 0x732   : > { %14413 = vst [vmem:[#allocation43_spill] sm:$0xff] %v13079_v25  ;;  %v9910_v46 = vpop.f32.mrf.mxu1 }
 0x733   : > { %v9953_v26 = vpop.f32.mrf.mxu0  ;;  %v4623_v33 = vadd.f32 %v9910_v46, %v12957_v7 }
 0x734   : > { %v13082_v1 = vadd.f32 %v9953_v26, %v4617_v6  ;;  %v13084_v57 = vpop.f32.mrf.mxu1 }
 0x735   : > { %14414 = vst [vmem:[#allocation36_spill] sm:$0xff] %v13084_v57  ;;  %v13086_v35 = vpop.f32.mrf.mxu0 }
 0x736   : > { %14415 = vst [vmem:[#allocation23_spill] sm:$0xff] %v13086_v35  ;;  %v9913_v16 = vpop.f32.mrf.mxu1 }
 0x737   : > { %v9956_v58 = vpop.f32.mrf.mxu0  ;;  %v4625_v11 = vadd.f32 %v9913_v16, %v12971_v50  ;;  %v6916_v50 = vld [vmem:[%s14191_s9 + $0x8] sm:$0xff] }
 0x738   : > { %v13089_v61 = vadd.f32 %v9956_v58, %v4619_v37  ;;  %v13091_v32 = vpop.f32.mrf.mxu1  ;;  %10190 = vmatpush3.msra.mxu1 %v6916_v50 }
 0x739   : > { %14416 = vst [vmem:[#allocation34_spill] sm:$0xff] %v13091_v32  ;;  %v13093_v17 = vpop.f32.mrf.mxu0  ;;  %10191 = vmatprep.subr.mxu1 %v14403_v23 }
 0x73a   : > { %14417 = vst [vmem:[#allocation14_spill] sm:$0xff] %v13093_v17  ;;  %v9916_v25 = vpop.f32.mrf.mxu1 }
 0x73b   : > { %v9959_v9 = vpop.f32.mrf.mxu0  ;;  %v4627_v46 = vadd.f32 %v9916_v25, %v12985_v48 }
 0x73c   : > { %v13096_v7 = vadd.f32 %v9959_v9, %v4621_v0  ;;  %v13098_v6 = vpop.f32.mrf.mxu1 }
 0x73d   : > { %14418 = vst [vmem:[#allocation26_spill] sm:$0xff] %v13098_v6  ;;  %v13100_v26 = vpop.f32.mrf.mxu0 }
 0x73e   : > { %14419 = vst [vmem:[#allocation32_spill] sm:$0xff] %v13100_v26  ;;  %v9919_v35 = vpop.f32.mrf.mxu1 }
 0x73f   : > { %v9962_v57 = vpop.f32.mrf.mxu0  ;;  %v4629_v37 = vadd.f32 %v9919_v35, %v12999_v55 }
 0x740   : > { %v13106_v58 = vadd.f32 %v9962_v57, %v4623_v33  ;;  %v13108_v16 = vpop.f32.mrf.mxu1 }
 0x741   : > { %14420 = vst [vmem:[#allocation39_spill] sm:$0xff] %v13108_v16  ;;  %v13110_v48 = vpop.f32.mrf.mxu0 }
 0x742   : > { %14421 = vst [vmem:[#allocation19_spill] sm:$0xff] %v13110_v48  ;;  %v9922_v0 = vpop.f32.mrf.mxu1 }
 0x743   : > { %v9965_v9 = vpop.f32.mrf.mxu0  ;;  %v4631_v25 = vadd.f32 %v9922_v0, %v13012_v53 }
 0x744   : > { %v13114_v26 = vadd.f32 %v9965_v9, %v4625_v11  ;;  %v13116_v6 = vpop.f32.mrf.mxu1 }
 0x745   : > { %14422 = vst [vmem:[#allocation25_spill] sm:$0xff] %v13116_v6  ;;  %v13118_v17 = vpop.f32.mrf.mxu0 }
 0x746   : > { %14423 = vst [vmem:[#allocation41_spill] sm:$0xff] %v13118_v17  ;;  %v9925_v55 = vpop.f32.mrf.mxu1 }
 0x747   : > { %v9968_v33 = vpop.f32.mrf.mxu0  ;;  %v4633_v57 = vadd.f32 %v9925_v55, %v13023_v22 }
 0x748   : > { %v13121_v35 = vadd.f32 %v9968_v33, %v4627_v46  ;;  %v13123_v50 = vpop.f32.mrf.mxu1 }
 0x749   : > { %14424 = vst [vmem:[#allocation15_spill] sm:$0xff] %v13123_v50  ;;  %v13125_v48 = vpop.f32.mrf.mxu0 }
 0x74a   : > { %14425 = vst [vmem:[#allocation27_spill] sm:$0xff] %v13125_v48  ;;  %v9928_v16 = vpop.f32.mrf.mxu1 }
 0x74b   : > { %v9971_v32 = vpop.f32.mrf.mxu0  ;;  %v4635_v53 = vadd.f32 %v9928_v16, %v13032_v34 }
 0x74c   : > { %v13128_v11 = vadd.f32 %v9971_v32, %v4629_v37  ;;  %v13130_v0 = vpop.f32.mrf.mxu1 }
 0x74d   : > { %14426 = vst [vmem:[#allocation29_spill] sm:$0xff] %v13130_v0  ;;  %v13132_v9 = vpop.f32.mrf.mxu0 }
 0x74e   : > { %14427 = vst [vmem:[#allocation18_spill] sm:$0xff] %v13132_v9  ;;  %v9987_v6 = vpop.f32.mrf.mxu1 }
 0x74f   : > { %v9974_v17 = vpop.f32.mrf.mxu0  ;;  %v5445_v22 = vadd.f32 %v9987_v6, %v13040_v29 }
 0x750   : > { %v13134_v60 = vadd.f32 %v9974_v17, %v4631_v25  ;;  %v13139_v55 = vpop.f32.mrf.mxu1 }
 0x751   : > { %v13137_v46 = vpop.f32.mrf.mxu0 }
 0x752   : > { %14428 = vst [vmem:[#allocation21_spill] sm:$0xff] %v13137_v46  ;;  %v9990_v48 = vpop.f32.mrf.mxu1 }
 0x753   : > { %v9977_v33 = vpop.f32.mrf.mxu0  ;;  %v5447_v34 = vadd.f32 %v9990_v48, %v13047_v52 }
 0x754   : > { %v13141_v50 = vadd.f32 %v9977_v33, %v4633_v57  ;;  %v13146_v37 = vpop.f32.mrf.mxu1 }
 0x755   : > { %v13144_v32 = vpop.f32.mrf.mxu0  ;;  %14430 = vst [vmem:[#allocation30_spill] sm:$0xff] %v13146_v37 }
 0x756   : > { %14429 = vst [vmem:[#allocation35_spill] sm:$0xff] %v13144_v32  ;;  %v9993_v9 = vpop.f32.mrf.mxu1 }
 0x757   : > { %v9980_v16 = vpop.f32.mrf.mxu0  ;;  %v5449_v29 = vadd.f32 %v9993_v9, %v13054_v59 }
 0x758   : > { %v13148_v17 = vadd.f32 %v9980_v16, %v4635_v53  ;;  %v13153_v25 = vpop.f32.mrf.mxu1 }
 0x759   : > { %v13151_v6 = vpop.f32.mrf.mxu0 }
 0x75a   : > { %14431 = vst [vmem:[#allocation16_spill] sm:$0xff] %v13148_v17  ;;  %v9996_v46 = vpop.f32.mrf.mxu1 }
 0x75b   : > { %v10039_v0 = vpop.f32.mrf.mxu0  ;;  %v5451_v57 = vadd.f32 %v9996_v46, %v13061_v4  ;;  %v6915_v4 = vld [vmem:[%s14191_s9] sm:$0xff] }
 0x75c   : > { %v13156_v33 = vadd.f32 %v10039_v0, %v5445_v22  ;;  %v13158_v52 = vpop.f32.mrf.mxu1  ;;  %10192 = vmatpush3.msra.mxu1 %v6915_v4 }
 0x75d   : > { %14432 = vst [vmem:[#allocation44_spill] sm:$0xff] %v13158_v52  ;;  %v13160_v48 = vpop.f32.mrf.mxu0  ;;  %10196 = vmatprep.subr.mxu1 %v14403_v23 }
 0x75e   : > { %v9999_v37 = vpop.f32.mrf.mxu1 }
 0x75f   : > { %v10042_v32 = vpop.f32.mrf.mxu0  ;;  %v5453_v53 = vadd.f32 %v9999_v37, %v13068_v2 }
 0x760   : > { %v13163_v16 = vadd.f32 %v10042_v32, %v5447_v34  ;;  %v13165_v59 = vpop.f32.mrf.mxu1 }
 0x761   : > { %14434 = vst [vmem:[#allocation46_spill] sm:$0xff] %v13165_v59  ;;  %v13167_v9 = vpop.f32.mrf.mxu0 }
 0x762   : > { %14433 = vst [vmem:[#allocation45_spill] sm:$0xff] %v13163_v16  ;;  %14435 = vst [vmem:[#allocation47_spill] sm:$0xff] %v13167_v9  ;;  %v10002_v0 = vpop.f32.mrf.mxu1 }
 0x763   : > { %v10045_v22 = vpop.f32.mrf.mxu0  ;;  %v5455_v46 = vadd.f32 %v10002_v0, %v13075_v36 }
 0x764   : > { %v13174_v17 = vadd.f32 %v10045_v22, %v5449_v29  ;;  %v13176_v2 = vpop.f32.mrf.mxu1 }
 0x765   : > { %v13178_v34 = vpop.f32.mrf.mxu0 }
 0x766   : > { %14436 = vst [vmem:[#allocation48_spill] sm:$0xff] %v13174_v17  ;;  %14437 = vst [vmem:[#allocation49_spill] sm:$0xff] %v13178_v34  ;;  %v10005_v32 = vpop.f32.mrf.mxu1 }
 0x767   : > { %v10048_v37 = vpop.f32.mrf.mxu0  ;;  %v5457_v9 = vadd.f32 %v10005_v32, %v13082_v1 }
 0x768   : > { %v13181_v16 = vadd.f32 %v10048_v37, %v5451_v57  ;;  %v13183_v59 = vpop.f32.mrf.mxu1 }
 0x769   : > { %v13185_v4 = vpop.f32.mrf.mxu0 }
 0x76a   : > { %14438 = vst [vmem:[#allocation50_spill] sm:$0xff] %v13181_v16  ;;  %14439 = vst [vmem:[#allocation51_spill] sm:$0xff] %v13185_v4  ;;  %v10008_v52 = vpop.f32.mrf.mxu1 }
 0x76b   : > { %v10051_v23 = vpop.f32.mrf.mxu0  ;;  %v5459_v36 = vadd.f32 %v10008_v52, %v13089_v61 }
 0x76c   : > { %v13188_v29 = vadd.f32 %v10051_v23, %v5453_v53  ;;  %v13190_v0 = vpop.f32.mrf.mxu1 }
 0x76d   : > { %v13192_v22 = vpop.f32.mrf.mxu0 }
 0x76e   : > { %14440 = vst [vmem:[#allocation52_spill] sm:$0xff] %v13188_v29  ;;  %14441 = vst [vmem:[#allocation53_spill] sm:$0xff] %v13192_v22  ;;  %v10011_v17 = vpop.f32.mrf.mxu1 }
 0x76f   : > { %v10054_v34 = vpop.f32.mrf.mxu0  ;;  %v5461_v1 = vadd.f32 %v10011_v17, %v13096_v7 }
 0x770   : > { %v13195_v57 = vadd.f32 %v10054_v34, %v5455_v46  ;;  %v13197_v32 = vpop.f32.mrf.mxu1 }
 0x771   : > { %v13199_v37 = vpop.f32.mrf.mxu0 }
 0x772   : > { %14442 = vst [vmem:[#allocation54_spill] sm:$0xff] %v13195_v57  ;;  %14443 = vst [vmem:[#allocation55_spill] sm:$0xff] %v13199_v37  ;;  %v10014_v16 = vpop.f32.mrf.mxu1 }
 0x773   : > { %v10057_v4 = vpop.f32.mrf.mxu0  ;;  %v5463_v61 = vadd.f32 %v10014_v16, %v13106_v58 }
 0x774   : > { %v13202_v23 = vadd.f32 %v10057_v4, %v5457_v9  ;;  %v13204_v52 = vpop.f32.mrf.mxu1 }
 0x775   : > { %v13206_v53 = vpop.f32.mrf.mxu0 }
 0x776   : > { %14444 = vst [vmem:[#allocation56_spill] sm:$0xff] %v13202_v23  ;;  %14445 = vst [vmem:[#allocation57_spill] sm:$0xff] %v13206_v53  ;;  %v10017_v29 = vpop.f32.mrf.mxu1 }
 0x777   : > { %v10060_v22 = vpop.f32.mrf.mxu0  ;;  %v5465_v7 = vadd.f32 %v10017_v29, %v13114_v26 }
 0x778   : > { %v13209_v17 = vadd.f32 %v10060_v22, %v5459_v36  ;;  %v13211_v46 = vpop.f32.mrf.mxu1 }
 0x779   : > { %v13213_v34 = vpop.f32.mrf.mxu0 }
 0x77a   : > { %14446 = vst [vmem:[#allocation58_spill] sm:$0xff] %v13209_v17  ;;  %14447 = vst [vmem:[#allocation59_spill] sm:$0xff] %v13213_v34  ;;  %v10020_v57 = vpop.f32.mrf.mxu1 }
 0x77b   : > { %v10063_v37 = vpop.f32.mrf.mxu0  ;;  %v5467_v58 = vadd.f32 %v10020_v57, %v13121_v35 }
 0x77c   : > { %v13216_v16 = vadd.f32 %v10063_v37, %v5461_v1  ;;  %v13218_v9 = vpop.f32.mrf.mxu1 }
 0x77d   : > { %v13220_v4 = vpop.f32.mrf.mxu0 }
 0x77e   : > { %14448 = vst [vmem:[#allocation60_spill] sm:$0xff] %v13216_v16  ;;  %14449 = vst [vmem:[#allocation61_spill] sm:$0xff] %v13220_v4  ;;  %v10023_v23 = vpop.f32.mrf.mxu1 }
 0x77f   : > { %v10066_v53 = vpop.f32.mrf.mxu0  ;;  %v5469_v26 = vadd.f32 %v10023_v23, %v13128_v11 }
 0x780   : > { %v13223_v36 = vadd.f32 %v10066_v53, %v5463_v61  ;;  %v13225_v29 = vpop.f32.mrf.mxu1 }
 0x781   : > { %v13227_v22 = vpop.f32.mrf.mxu0 }
 0x782   : > { %14450 = vst [vmem:[#allocation62_spill] sm:$0xff] %v13223_v36  ;;  %14451 = vst [vmem:[#allocation63_spill] sm:$0xff] %v13227_v22  ;;  %v10026_v17 = vpop.f32.mrf.mxu1 }
 0x783   : > { %v10069_v34 = vpop.f32.mrf.mxu0  ;;  %v5471_v35 = vadd.f32 %v10026_v17, %v13134_v60 }
 0x784   : > { %v13230_v1 = vadd.f32 %v10069_v34, %v5465_v7  ;;  %v13232_v57 = vpop.f32.mrf.mxu1  ;;  %v14461_v34 = vld [vmem:[#allocation11_spill] sm:$0xff] }
 0x785   : > { %v13234_v37 = vpop.f32.mrf.mxu0 }
 0x786   : > { %14452 = vst [vmem:[#allocation64_spill] sm:$0xff] %v13230_v1  ;;  %14453 = vst [vmem:[#allocation65_spill] sm:$0xff] %v13234_v37  ;;  %v10029_v16 = vpop.f32.mrf.mxu1  ;;  %v3750_v1 = vadd.f32 %v12906_v40, %v14461_v34  ;;  %v14467_v34 = vld [vmem:[#allocation33_spill] sm:$0xff] }
 0x787   : > { %v10072_v4 = vpop.f32.mrf.mxu0  ;;  %v5473_v11 = vadd.f32 %v10029_v16, %v13141_v50 }
 0x788   : > { %v13237_v61 = vadd.f32 %v10072_v4, %v5467_v58  ;;  %v13239_v23 = vpop.f32.mrf.mxu1  ;;  %v14462_v58 = vld [vmem:[#allocation38_spill] sm:$0xff]  ;;  %v14463_v4 = vld [vmem:[#allocation20_spill] sm:$0xff] }
 0x789   : > { %14455 = vst [vmem:[#allocation67_spill] sm:$0xff] %v13239_v23  ;;  %v13241_v53 = vpop.f32.mrf.mxu0  ;;  %v3760_v16 = vadd.f32 %v12920_v54, %v14462_v58  ;;  %v3810_v23 = vadd.f32 %v12990_v12, %v14467_v34 }
 0x78a   : > { %14454 = vst [vmem:[#allocation66_spill] sm:$0xff] %v13237_v61  ;;  %14456 = vst [vmem:[#allocation68_spill] sm:$0xff] %v13241_v53  ;;  %v13243_v36 = vpop.f32.mrf.mxu1  ;;  %v3770_v61 = vadd.f32 %v12934_v3, %v14463_v4  ;;  %v14464_v53 = vld [vmem:[#allocation22_spill] sm:$0xff] }
 0x78b   : > { %14457 = vst [vmem:[#allocation69_spill] sm:$0xff] %v13243_v36  ;;  %v10075_v22 = vpop.f32.mrf.mxu0  ;;  %v3780_v36 = vadd.f32 %v12948_v45, %v14464_v53  ;;  %v4202_v3 = vadd.f32 %v12964_v63, %v3760_v16  ;;  %v4212_v12 = vadd.f32 %v13027_v10, %v3810_v23  ;;  %v4606_v63 = vadd.f32 %v13029_v24, %v12855_v62 }
 0x78c   : > { %v13245_v60 = vadd.f32 %v10075_v22, %v5469_v26  ;;  %v13247_v7 = vpop.f32.mrf.mxu1  ;;  %v4200_v22 = vadd.f32 %v12950_v21, %v3750_v1  ;;  %v4204_v45 = vadd.f32 %v12978_v43, %v3770_v61  ;;  %v4608_v43 = vadd.f32 %v13037_v18, %v12868_v27  ;;  %v14473_v61 = vld [vmem:[#allocation13_spill] sm:$0xff] }
 0x78d   : > { %14459 = vst [vmem:[#allocation71_spill] sm:$0xff] %v13247_v7  ;;  %v13249_v17 = vpop.f32.mrf.mxu0  ;;  %v14466_v7 = vld [vmem:[#allocation28_spill] sm:$0xff]  ;;  %v5026_v27 = vadd.f32 %v13051_v15, %v4606_v63 }
 0x78e   : > { %14458 = vst [vmem:[#allocation70_spill] sm:$0xff] %v13245_v60  ;;  %14460 = vst [vmem:[#allocation72_spill] sm:$0xff] %v13249_v17  ;;  %v10091_v50 = vpop.f32.mrf.mxu1  ;;  %v14465_v60 = vld [vmem:[#allocation24_spill] sm:$0xff]  ;;  %v3800_v40 = vadd.f32 %v12976_v56, %v14466_v7  ;;  %v4604_v56 = vadd.f32 %v13019_v14, %v12842_v20  ;;  %v4612_v20 = vadd.f32 %v13049_v49, %v12894_v13  ;;  %v14474_v49 = vld [vmem:[#allocation17_spill] sm:$0xff] }
 0x78f   : > { %v10078_v37 = vpop.f32.mrf.mxu0  ;;  %v3790_v17 = vadd.f32 %v12962_v19, %v14465_v60  ;;  %v4614_v14 = vadd.f32 %v13056_v5, %v12908_v30  ;;  %v5028_v24 = vadd.f32 %v13058_v47, %v4608_v43  ;;  %v4620_v23 = vadd.f32 %v14474_v49, %v4200_v22  ;;  %v14475_v30 = vld [vmem:[#allocation43_spill] sm:$0xff]  ;;  %v14476_v15 = vld [vmem:[#allocation36_spill] sm:$0xff]  ;;  %v14488_v49 = vld [vmem:[#allocation29_spill] sm:$0xff] }
 0x790   : > { %v13259_v26 = vadd.f32 %v10078_v37, %v5471_v35  ;;  %v6093_v58 = vpop.f32.mrf.mxu1  ;;  %v4206_v35 = vadd.f32 %v12992_v39, %v3780_v36  ;;  %v14468_v37 = vld [vmem:[#allocation37_spill] sm:$0xff]  ;;  %v4210_v1 = vadd.f32 %v13017_v44, %v3800_v40  ;;  %v4610_v39 = vadd.f32 %v13042_v8, %v12881_v38  ;;  %v14469_v38 = vld [vmem:[#allocation31_spill] sm:$0xff]  ;;  %v14470_v8 = vld [vmem:[#allocation40_spill] sm:$0xff] }
 0x791   : > { %v13268_v54 = vpop.f32.mrf.mxu0  ;;  %v3820_v21 = vadd.f32 %v13005_v51, %v14468_v37  ;;  %v4208_v19 = vadd.f32 %v13007_v28, %v3790_v17  ;;  %v5024_v44 = vadd.f32 %v13044_v42, %v4604_v56  ;;  %v4616_v18 = vadd.f32 %v14469_v38, %v12922_v41  ;;  %v14471_v36 = vld [vmem:[#allocation42_spill] sm:$0xff]  ;;  %v14472_v42 = vld [vmem:[#allocation12_spill] sm:$0xff]  ;;  %v14477_v47 = vld [vmem:[#allocation23_spill] sm:$0xff] }
 0x792   : > { %v10094_v60 = vpop.f32.mrf.mxu1  ;;  %v5032_v13 = vadd.f32 %v14473_v61, %v4612_v20  ;;  %v5034_v5 = vadd.f32 %v14475_v30, %v4614_v14  ;;  %v4622_v16 = vadd.f32 %v14476_v15, %v4202_v3  ;;  %v14478_v40 = vld [vmem:[#allocation34_spill] sm:$0xff]  ;;  %v14481_v63 = vld [vmem:[#allocation32_spill] sm:$0xff]  ;;  %v14482_v22 = vld [vmem:[#allocation39_spill] sm:$0xff] }
 0x793   : > { %v10081_v53 = vpop.f32.mrf.mxu0  ;;  %v4214_v28 = vadd.f32 %v13035_v31, %v3820_v21  ;;  %v5030_v31 = vadd.f32 %v14470_v8, %v4610_v39  ;;  %v5036_v4 = vadd.f32 %v14477_v47, %v4616_v18  ;;  %v4624_v41 = vadd.f32 %v14478_v40, %v4204_v45  ;;  %v14479_v37 = vld [vmem:[#allocation14_spill] sm:$0xff]  ;;  %v14483_v38 = vld [vmem:[#allocation19_spill] sm:$0xff]  ;;  %v14484_v3 = vld [vmem:[#allocation25_spill] sm:$0xff] }
 0x794   : > { %v13286_v51 = vadd.f32 %v10081_v53, %v5473_v11  ;;  %v6103_v62 = vpop.f32.mrf.mxu1  ;;  %v4618_v11 = vadd.f32 %v14472_v42, %v14471_v36  ;;  %v5444_v34 = vadd.f32 %v13139_v55, %v5024_v44  ;;  %v14480_v56 = vld [vmem:[#allocation26_spill] sm:$0xff]  ;;  %v5040_v43 = vadd.f32 %v14481_v63, %v4620_v23  ;;  %v14485_v55 = vld [vmem:[#allocation41_spill] sm:$0xff]  ;;  %v14486_v42 = vld [vmem:[#allocation15_spill] sm:$0xff] }
 0x795   : > { %v13294_v10 = vpop.f32.mrf.mxu0  ;;  %v4626_v53 = vadd.f32 %v14480_v56, %v4206_v35  ;;  %v4628_v39 = vadd.f32 %v14482_v22, %v4208_v19  ;;  %v5042_v8 = vadd.f32 %v14483_v38, %v4622_v16  ;;  %v4630_v36 = vadd.f32 %v14484_v3, %v4210_v1  ;;  %v14487_v35 = vld [vmem:[#allocation27_spill] sm:$0xff]  ;;  %v14489_v15 = vld [vmem:[#allocation18_spill] sm:$0xff]  ;;  %v14490_v40 = vld [vmem:[#allocation21_spill] sm:$0xff] }
 0x796   : > { %v10097_v17 = vpop.f32.mrf.mxu1  ;;  %v5038_v21 = vadd.f32 %v14479_v37, %v4618_v11  ;;  %v5864_v18 = vadd.f32 %v13160_v48, %v5444_v34  ;;  %v6253_v45 = vadd.f32 %v10091_v50, %v13156_v33  ;;  %v5044_v44 = vadd.f32 %v14485_v55, %v4624_v41  ;;  %v13331_v33 = vld [vmem:[%s14190_s8] ss:$0 sm:$0xff]  ;;  %v14491_v48 = vld [vmem:[#allocation35_spill] sm:$0xff]  ;;  %v14495_v38 = vld [vmem:[#allocation45_spill] sm:$0xff] }
 0x797   : > { %v13306_v7 = vpop.f32.mrf.mxu0  ;;  %v4632_v11 = vadd.f32 %v14486_v42, %v4212_v12  ;;  %v5046_v61 = vadd.f32 %v14487_v35, %v4626_v53  ;;  %v4634_v23 = vadd.f32 %v14488_v49, %v4214_v28  ;;  %v5048_v47 = vadd.f32 %v14489_v15, %v4628_v39  ;;  %v14492_v12 = vld [vmem:[#allocation30_spill] sm:$0xff]  ;;  %v14493_v63 = vld [vmem:[#allocation44_spill] sm:$0xff]  ;;  %v14497_v42 = vld [vmem:[#allocation49_spill] sm:$0xff] }
 0x798   : > { %v6113_v14 = vpop.f32.mrf.mxu1  ;;  %v5050_v16 = vadd.f32 %v14490_v40, %v4630_v36  ;;  %v6252_v37 = vadd.f32 %v6093_v58, %v5864_v18  ;;  %v5446_v41 = vadd.f32 %v14492_v12, %v5026_v27  ;;  %v5448_v28 = vadd.f32 %v13153_v25, %v5028_v24  ;;  %v14494_v58 = vld [vmem:[#allocation46_spill] sm:$0xff]  ;;  %v14496_v18 = vld [vmem:[#allocation47_spill] sm:$0xff] }
 0x799   : > { %v13316_v20 = vpop.f32.mrf.mxu0  ;;  %v5052_v50 = vadd.f32 %v14491_v48, %v4632_v11  ;;  %v13336_v34 = vadd.f32 %v13151_v6, %v4634_v23  ;;  %v5450_v22 = vadd.f32 %v14493_v63, %v5030_v31  ;;  %v5452_v39 = vadd.f32 %v14494_v58, %v5032_v13  ;;  %v14498_v24 = vld [vmem:[#allocation51_spill] sm:$0xff]  ;;  %v14499_v23 = vld [vmem:[#allocation53_spill] sm:$0xff] }
 0x79a   : > { %v10100_v19 = vpop.f32.mrf.mxu1  ;;  %v6255_v3 = vadd.f32 %v10094_v60, %v14495_v38  ;;  %v5454_v55 = vadd.f32 %v13176_v2, %v5034_v5  ;;  %v5868_v27 = vadd.f32 %v14497_v42, %v5448_v28  ;;  %v5456_v25 = vadd.f32 %v13183_v59, %v5036_v4  ;;  %v14501_v59 = vld [vmem:[#allocation57_spill] sm:$0xff]  ;;  %v14503_v63 = vld [vmem:[#allocation59_spill] sm:$0xff] }
 0x79b   : > { %v10143_v30 = vpop.f32.mrf.mxu0  ;;  %v5870_v49 = vadd.f32 %v14498_v24, %v5450_v22  ;;  %v5458_v60 = vadd.f32 %v13190_v0, %v5038_v21  ;;  %v5460_v15 = vadd.f32 %v13197_v32, %v5040_v43  ;;  %v5462_v48 = vadd.f32 %v13204_v52, %v5042_v8  ;;  %v14504_v58 = vld [vmem:[#allocation61_spill] sm:$0xff] }
 0x79c   : > { %v6673_v1 = vadd.f32 %v10143_v30, %v6253_v45  ;;  %v6123_v56 = vpop.f32.mrf.mxu1  ;;  %v5866_v45 = vadd.f32 %v14496_v18, %v5446_v41  ;;  %v5872_v30 = vadd.f32 %v14499_v23, %v5452_v39  ;;  %v13357_v4 = vadd.f32 %v14501_v59, %v5456_v25  ;;  %v14502_v41 = vld [vmem:[#allocation48_spill] sm:$0xff] }
 0x79d   : > { %v6513_v53 = vpop.f32.mrf.mxu0  ;;  %v6257_v28 = vadd.f32 %v10097_v17, %v14502_v41  ;;  %v13367_v22 = vadd.f32 %v14503_v63, %v5458_v60  ;;  %v5466_v52 = vadd.f32 %v13218_v9, %v5046_v61  ;;  %v6256_v8 = vadd.f32 %v6113_v14, %v5868_v27  ;;  %v14508_v60 = vld [vmem:[#allocation67_spill] sm:$0xff]  ;;  %v14510_v41 = vld [vmem:[#allocation16_spill] sm:$0xff] }
 0x79e   : > { %v6672_v36 = vadd.f32 %v6513_v53, %v6252_v37  ;;  %v6712_v6 = vadd.f32 %v13331_v33, %v6673_v1  ;;  %v10103_v11 = vpop.f32.mrf.mxu1  ;;  %v6254_v2 = vadd.f32 %v6103_v62, %v5866_v45  ;;  %v14500_v37 = vld [vmem:[#allocation55_spill] sm:$0xff]  ;;  %v5464_v53 = vadd.f32 %v13211_v46, %v5044_v44  ;;  %v14512_v63 = vld [vmem:[#allocation52_spill] sm:$0xff] }
 0x79f   : > { %v10146_v35 = vpop.f32.mrf.mxu0  ;;  %v13353_v1 = vadd.f32 %v14500_v37, %v5454_v55  ;;  %v13371_v39 = vadd.f32 %v14504_v58, %v5460_v15  ;;  %v5468_v45 = vadd.f32 %v13225_v29, %v5048_v47  ;;  %v14505_v46 = vld [vmem:[#allocation63_spill] sm:$0xff]  ;;  %v14506_v55 = vld [vmem:[#allocation50_spill] sm:$0xff]  ;;  %v5470_v29 = vadd.f32 %v13232_v57, %v5050_v16  ;;  %v14511_v57 = vld [vmem:[#allocation69_spill] sm:$0xff] }
 0x7a0   : > { %v6711_v31 = vadd.f32 %v13331_v33, %v6672_v36  ;;  %v6675_v13 = vadd.f32 %v10146_v35, %v6255_v3  ;;  %v6133_v5 = vpop.f32.mrf.mxu1  ;;  %v13362_v0 = vmax.f32 %v6712_v6, 0.0  ;;  %v13378_v44 = vadd.f32 %v14505_v46, %v5462_v48  ;;  %v14509_v48 = vld [vmem:[#allocation68_spill] sm:$0xff] }
 0x7a1   : > { %v6523_v40 = vpop.f32.mrf.mxu0  ;;  %v6259_v42 = vadd.f32 %v10100_v19, %v14506_v55  ;;  %v14507_v19 = vld [vmem:[#allocation65_spill] sm:$0xff]  ;;  %v5472_v23 = vadd.f32 %v14508_v60, %v5052_v50  ;;  %v6258_v15 = vadd.f32 %v6123_v56, %v5870_v49  ;;  %v13399_v59 = vadd.f32 %v14509_v48, %v5466_v52 }
 0x7a2   : > { %v13359_v12 = vmax.f32 %v6711_v31, 0.0  ;;  %v6714_v21 = vadd.f32 %v13331_v33, %v6675_v13  ;;  %v6674_v32 = vadd.f32 %v6523_v40, %v6254_v2  ;;  %v10106_v62 = vpop.f32.mrf.mxu1  ;;  %v6776_v14 = vsel %vm937_vm3, %v13362_v0, 0.0 }
 0x7a3   : > { %v10149_v43 = vpop.f32.mrf.mxu0  ;;  %v13393_v13 = vadd.f32 %v14507_v19, %v5464_v53  ;;  %v5475_v16 = vadd.f32 %v14511_v57, %v14510_v41  ;;  %v6260_v52 = vadd.f32 %v6133_v5, %v5872_v30  ;;  %v13419_v55 = vadd.f32 %v13268_v54, %v5470_v29 }
 0x7a4   : > { %v6775_v17 = vsel %vm937_vm3, %v13359_v12, 0.0  ;;  %v6713_v38 = vadd.f32 %v13331_v33, %v6674_v32  ;;  %v6677_v3 = vadd.f32 %v10149_v43, %v6257_v28  ;;  %v6143_v36 = vpop.f32.mrf.mxu1  ;;  %v13383_v61 = vmax.f32 %v6714_v21, 0.0 }
 0x7a5   : > { %v6533_v18 = vpop.f32.mrf.mxu0  ;;  %v6777_v47 = vadd.f32 %v6776_v14, %v6775_v17 }
 0x7a6   : > { %v6676_v9 = vadd.f32 %v6533_v18, %v6256_v8  ;;  %v13385_v27 = vmax.f32 %v6713_v38, 0.0  ;;  %v6716_v6 = vadd.f32 %v13331_v33, %v6677_v3  ;;  %v13388_v35 = vpop.f32.mrf.mxu1  ;;  %v6780_v32 = vsel %vm937_vm3, %v13383_v61, 0.0  ;;  %v14513_v38 = vld [vmem:[#allocation71_spill] sm:$0xff]  ;;  %v14514_v18 = vld [vmem:[#allocation72_spill] sm:$0xff] }
 0x7a7   : > { %v10152_v25 = vpop.f32.mrf.mxu0  ;;  %v6261_v8 = vadd.f32 %v10103_v11, %v14512_v63  ;;  %v5474_v3 = vadd.f32 %v14513_v38, %v13336_v34  ;;  %v13416_v46 = vadd.f32 %v14514_v18, %v5468_v45  ;;  %v13423_v11 = vadd.f32 %v13294_v10, %v5472_v23 }
 0x7a8   : > { %v6715_v24 = vadd.f32 %v13331_v33, %v6676_v9  ;;  %v6679_v31 = vadd.f32 %v10152_v25, %v6259_v42  ;;  %v6778_v2 = vsel %vm937_vm3, %v13385_v27, 0.0  ;;  %v6153_v40 = vpop.f32.mrf.mxu1  ;;  %v13407_v43 = vmax.f32 %v6716_v6, 0.0  ;;  %v14515_v25 = vld [vmem:[#allocation54_spill] sm:$0xff] }
 0x7a9   : > { %v6543_v37 = vpop.f32.mrf.mxu0  ;;  %v6779_v28 = vadd.f32 %v6778_v2, %v6777_v47  ;;  %v6263_v47 = vadd.f32 %v10106_v62, %v14515_v25  ;;  %v13438_v23 = vadd.f32 %v13316_v20, %v5474_v3  ;;  %v6262_v62 = vadd.f32 %v6143_v36, %v13353_v1 }
 0x7aa   : > { %v13403_v21 = vmax.f32 %v6715_v24, 0.0  ;;  %v6718_v50 = vadd.f32 %v13331_v33, %v6679_v31  ;;  %v6678_v56 = vadd.f32 %v6543_v37, %v6258_v15  ;;  %v10112_v49 = vpop.f32.mrf.mxu1  ;;  %v6784_v34 = vsel %vm937_vm3, %v13407_v43, 0.0 }
 0x7ab   : > { %v10155_v53 = vpop.f32.mrf.mxu0  ;;  %v6781_v58 = vadd.f32 %v6780_v32, %v6779_v28  ;;  %v13433_v31 = vadd.f32 %v13306_v7, %v5475_v16  ;;  %v6846_v7 = vsel %vm937_vm3, %v13362_v0, -inf  ;;  %v6851_v41 = vsel %vm937_vm3, %v13407_v43, -inf }
 0x7ac   : > { %v6782_v17 = vsel %vm937_vm3, %v13403_v21, 0.0  ;;  %v6717_v42 = vadd.f32 %v13331_v33, %v6678_v56  ;;  %v6163_v9 = vpop.f32.mrf.mxu1  ;;  %v6681_v5 = vadd.f32 %v10155_v53, %v6261_v8  ;;  %v13428_v45 = vmax.f32 %v6718_v50, 0.0  ;;  %v14516_v53 = vld [vmem:[#allocation56_spill] sm:$0xff] }
 0x7ad   : > { %v6553_v14 = vpop.f32.mrf.mxu0  ;;  %v6783_v30 = vadd.f32 %v6782_v17, %v6781_v58  ;;  %v13456_v56 = vsel %vm937_vm3, %v13359_v12, -inf  ;;  %v6265_v63 = vadd.f32 %v13388_v35, %v14516_v53  ;;  %v13464_v58 = vsel %vm937_vm3, %v13383_v61, -inf }
 0x7ae   : > { %v6680_v6 = vadd.f32 %v6553_v14, %v6260_v52  ;;  %v13430_v24 = vmax.f32 %v6717_v42, 0.0  ;;  %v10115_v54 = vpop.f32.mrf.mxu1  ;;  %v6720_v10 = vadd.f32 %v13331_v33, %v6681_v5  ;;  %v6788_v20 = vsel %vm937_vm3, %v13428_v45, 0.0 }
 0x7af   : > { %v10158_v29 = vpop.f32.mrf.mxu0  ;;  %v6785_v19 = vadd.f32 %v6784_v34, %v6783_v30  ;;  %v13468_v17 = vsel %vm937_vm3, %v13385_v27, -inf  ;;  %v6264_v38 = vadd.f32 %v6153_v40, %v13357_v4  ;;  %v6852_v14 = vmax.f32 %v6846_v7, %v6851_v41 }
 0x7b0   : > { %v6719_v60 = vadd.f32 %v13331_v33, %v6680_v6  ;;  %v6786_v15 = vsel %vm937_vm3, %v13430_v24, 0.0  ;;  %v6683_v2 = vadd.f32 %v10158_v29, %v6263_v47  ;;  %v6173_v37 = vpop.f32.mrf.mxu1  ;;  %v13451_v28 = vmax.f32 %v6720_v10, 0.0  ;;  %v14517_v6 = vld [vmem:[#allocation58_spill] sm:$0xff] }
 0x7b1   : > { %v6563_v48 = vpop.f32.mrf.mxu0  ;;  %v6787_v57 = vadd.f32 %v6786_v15, %v6785_v19  ;;  %v6849_v35 = vsel %vm937_vm3, %v13403_v21, -inf  ;;  %v6267_v25 = vadd.f32 %v10112_v49, %v14517_v6  ;;  %v6855_v19 = vsel %vm937_vm3, %v13428_v45, -inf }
 0x7b2   : > { %v13447_v16 = vmax.f32 %v6719_v60, 0.0  ;;  %v6722_v1 = vadd.f32 %v13331_v33, %v6683_v2  ;;  %v6682_v36 = vadd.f32 %v6563_v48, %v6262_v62  ;;  %v10118_v32 = vpop.f32.mrf.mxu1  ;;  %v6792_v47 = vsel %vm937_vm3, %v13451_v28, 0.0 }
 0x7b3   : > { %v10161_v50 = vpop.f32.mrf.mxu0  ;;  %v6789_v8 = vadd.f32 %v6788_v20, %v6787_v57  ;;  %v6850_v15 = vmax.f32 %v13456_v56, %v6849_v35  ;;  %v6266_v49 = vadd.f32 %v6163_v9, %v13367_v22  ;;  %v6853_v57 = vsel %vm937_vm3, %v13430_v24, -inf }
 0x7b4   : > { %v6790_v52 = vsel %vm937_vm3, %v13447_v16, 0.0  ;;  %v6721_v3 = vadd.f32 %v13331_v33, %v6682_v36  ;;  %v6183_v18 = vpop.f32.mrf.mxu1  ;;  %v6685_v5 = vadd.f32 %v10161_v50, %v6265_v63  ;;  %v13477_v34 = vmax.f32 %v6722_v1, 0.0 }
 0x7b5   : > { %v6573_v42 = vpop.f32.mrf.mxu0  ;;  %v6791_v30 = vadd.f32 %v6790_v52, %v6789_v8  ;;  %v6859_v20 = vsel %vm937_vm3, %v13451_v28, -inf  ;;  %v6856_v50 = vmax.f32 %v13464_v58, %v6855_v19  ;;  %v14518_v8 = vld [vmem:[#allocation60_spill] sm:$0xff]  ;;  %v6854_v35 = vmax.f32 %v13468_v17, %v6853_v57 }
 0x7b6   : > { %v13479_v29 = vmax.f32 %v6721_v3, 0.0  ;;  %v10121_v4 = vpop.f32.mrf.mxu1  ;;  %v6724_v60 = vadd.f32 %v13331_v33, %v6685_v5  ;;  %v6684_v62 = vadd.f32 %v6573_v42, %v6264_v38  ;;  %v6796_v22 = vsel %vm937_vm3, %v13477_v34, 0.0 }
 0x7b7   : > { %v10164_v40 = vpop.f32.mrf.mxu0  ;;  %v6793_v10 = vadd.f32 %v6792_v47, %v6791_v30  ;;  %v6269_v52 = vadd.f32 %v10115_v54, %v14518_v8  ;;  %v13503_v30 = vmax.f32 %v6852_v14, %v6859_v20  ;;  %v6268_v58 = vadd.f32 %v6173_v37, %v13371_v39 }
 0x7b8   : > { %v6794_v2 = vsel %vm937_vm3, %v13479_v29, 0.0  ;;  %v6687_v48 = vadd.f32 %v10164_v40, %v6267_v25  ;;  %v6193_v7 = vpop.f32.mrf.mxu1  ;;  %v6723_v36 = vadd.f32 %v13331_v33, %v6684_v62  ;;  %v13498_v38 = vmax.f32 %v6724_v60, 0.0  ;;  %v14519_v40 = vld [vmem:[#allocation62_spill] sm:$0xff] }
 0x7b9   : > { %v6583_v41 = vpop.f32.mrf.mxu0  ;;  %v6795_v1 = vadd.f32 %v6794_v2, %v6793_v10  ;;  %v6857_v47 = vsel %vm937_vm3, %v13447_v16, -inf  ;;  %v6271_v54 = vadd.f32 %v10118_v32, %v14519_v40  ;;  %v6863_v17 = vsel %vm937_vm3, %v13477_v34, -inf }
 0x7ba   : > { %v6726_v9 = vadd.f32 %v13331_v33, %v6687_v48  ;;  %v6686_v56 = vadd.f32 %v6583_v41, %v6266_v49  ;;  %v10124_v53 = vpop.f32.mrf.mxu1  ;;  %v13500_v3 = vmax.f32 %v6723_v36, 0.0  ;;  %v6861_v14 = vsel %vm937_vm3, %v13479_v29, -inf }
 0x7bb   : > { %v10167_v63 = vpop.f32.mrf.mxu0  ;;  %v6797_v42 = vadd.f32 %v6796_v22, %v6795_v1  ;;  %v6800_v49 = vsel %vm937_vm3, %v13498_v38, 0.0  ;;  %v13523_v41 = vmax.f32 %v6850_v15, %v6857_v47  ;;  %v6270_v57 = vadd.f32 %v6183_v18, %v13378_v44  ;;  %v14520_v15 = vld [vmem:[#allocation64_spill] sm:$0xff] }
 0x7bc   : > { %v6725_v5 = vadd.f32 %v13331_v33, %v6686_v56  ;;  %v6203_v6 = vpop.f32.mrf.mxu1  ;;  %v6798_v19 = vsel %vm937_vm3, %v13500_v3, 0.0  ;;  %v6689_v10 = vadd.f32 %v10167_v63, %v6269_v52  ;;  %v13516_v37 = vmax.f32 %v6726_v9, 0.0 }
 0x7bd   : > { %v6593_v25 = vpop.f32.mrf.mxu0  ;;  %v6799_v39 = vadd.f32 %v6798_v19, %v6797_v42  ;;  %v13526_v9 = vmax.f32 %v6856_v50, %v6863_v17  ;;  %v6867_v56 = vsel %vm937_vm3, %v13498_v38, -inf  ;;  %v13533_v52 = vmax.f32 %v6854_v35, %v6861_v14  ;;  %v14521_v19 = vld [vmem:[#allocation66_spill] sm:$0xff] }
 0x7be   : > { %v10127_v60 = vpop.f32.mrf.mxu1  ;;  %v13520_v2 = vmax.f32 %v6725_v5, 0.0  ;;  %v6728_v32 = vadd.f32 %v13331_v33, %v6689_v10  ;;  %v6688_v48 = vadd.f32 %v6593_v25, %v6268_v58  ;;  %v6273_v42 = vadd.f32 %v10121_v4, %v14520_v15 }
 0x7bf   : > { %v10170_v62 = vpop.f32.mrf.mxu0  ;;  %v6801_v20 = vadd.f32 %v6800_v49, %v6799_v39  ;;  %v6804_v44 = vsel %vm937_vm3, %v13516_v37, 0.0  ;;  %v6272_v35 = vadd.f32 %v6193_v7, %v13393_v13  ;;  %v6275_v10 = vadd.f32 %v10124_v53, %v14521_v19 }
 0x7c0   : > { %v6691_v1 = vadd.f32 %v10170_v62, %v6271_v54  ;;  %v6213_v36 = vpop.f32.mrf.mxu1  ;;  %v6802_v63 = vsel %vm937_vm3, %v13520_v2, 0.0  ;;  %v6727_v8 = vadd.f32 %v13331_v33, %v6688_v48  ;;  %v13538_v50 = vmax.f32 %v6728_v32, 0.0 }
 0x7c1   : > { %v6603_v22 = vpop.f32.mrf.mxu0  ;;  %v6803_v18 = vadd.f32 %v6802_v63, %v6801_v20  ;;  %v6868_v54 = vmax.f32 %v13503_v30, %v6867_v56  ;;  %v6865_v39 = vsel %vm937_vm3, %v13500_v3, -inf  ;;  %v6871_v48 = vsel %vm937_vm3, %v13516_v37, -inf }
 0x7c2   : > { %v10130_v58 = vpop.f32.mrf.mxu1  ;;  %v13540_v25 = vmax.f32 %v6727_v8, 0.0  ;;  %v6730_v47 = vadd.f32 %v13331_v33, %v6691_v1  ;;  %v6690_v40 = vadd.f32 %v6603_v22, %v6270_v57  ;;  %v6869_v13 = vsel %vm937_vm3, %v13520_v2, -inf }
 0x7c3   : > { %v10173_v5 = vpop.f32.mrf.mxu0  ;;  %v6805_v4 = vadd.f32 %v6804_v44, %v6803_v18  ;;  %v6274_v7 = vadd.f32 %v6203_v6, %v13399_v59  ;;  %v6808_v57 = vsel %vm937_vm3, %v13538_v50, 0.0  ;;  %v6866_v56 = vmax.f32 %v13523_v41, %v6865_v39  ;;  %v14522_v18 = vld [vmem:[#allocation70_spill] sm:$0xff] }
 0x7c4   : > { %v6223_v17 = vpop.f32.mrf.mxu1  ;;  %v6806_v62 = vsel %vm937_vm3, %v13540_v25, 0.0  ;;  %v6729_v49 = vadd.f32 %v13331_v33, %v6690_v40  ;;  %v6693_v32 = vadd.f32 %v10173_v5, %v6273_v42  ;;  %v13558_v20 = vmax.f32 %v6730_v47, 0.0 }
 0x7c5   : > { %v6613_v14 = vpop.f32.mrf.mxu0  ;;  %v6807_v53 = vadd.f32 %v6806_v62, %v6805_v4  ;;  %v6872_v59 = vmax.f32 %v13526_v9, %v6871_v48  ;;  %v6875_v6 = vsel %vm937_vm3, %v13538_v50, -inf  ;;  %v6277_v5 = vadd.f32 %v10127_v60, %v14522_v18 }
 0x7c6   : > { %v13560_v1 = vmax.f32 %v6729_v49, 0.0  ;;  %v6732_v22 = vadd.f32 %v13331_v33, %v6693_v32  ;;  %v6692_v8 = vadd.f32 %v6613_v14, %v6272_v35  ;;  %v10133_v15 = vpop.f32.mrf.mxu1  ;;  %v6870_v40 = vmax.f32 %v13533_v52, %v6869_v13 }
 0x7c7   : > { %v10176_v30 = vpop.f32.mrf.mxu0  ;;  %v6809_v63 = vadd.f32 %v6808_v57, %v6807_v53  ;;  %v6276_v19 = vadd.f32 %v6213_v36, %v13416_v46  ;;  %v6812_v9 = vsel %vm937_vm3, %v13558_v20, 0.0  ;;  %v13579_v39 = vmax.f32 %v6868_v54, %v6875_v6 }
 0x7c8   : > { %v6695_v42 = vadd.f32 %v10176_v30, %v6275_v10  ;;  %v6810_v47 = vsel %vm937_vm3, %v13560_v1, 0.0  ;;  %v6731_v35 = vadd.f32 %v13331_v33, %v6692_v8  ;;  %v6873_v10 = vsel %vm937_vm3, %v13540_v25, -inf  ;;  %v6233_v36 = vpop.f32.mrf.mxu1 }
 0x7c9   : > { %v6623_v44 = vpop.f32.mrf.mxu0  ;;  %v6811_v41 = vadd.f32 %v6810_v47, %v6809_v63  ;;  %v13577_v14 = vmax.f32 %v6732_v22, 0.0  ;;  %v6279_v32 = vadd.f32 %v10130_v58, %v13259_v26  ;;  %v13586_v30 = vmax.f32 %v6866_v56, %v6873_v10 }
 0x7ca   : > { %v6694_v60 = vadd.f32 %v6623_v44, %v6274_v7  ;;  %v13581_v62 = vmax.f32 %v6731_v35, 0.0  ;;  %v6734_v46 = vadd.f32 %v13331_v33, %v6695_v42  ;;  %v6879_v7 = vsel %vm937_vm3, %v13558_v20, -inf  ;;  %v10136_v42 = vpop.f32.mrf.mxu1 }
 0x7cb   : > { %v10179_v4 = vpop.f32.mrf.mxu0  ;;  %v6813_v52 = vadd.f32 %v6812_v9, %v6811_v41  ;;  %v6278_v54 = vadd.f32 %v6223_v17, %v13419_v55  ;;  %v6877_v63 = vsel %vm937_vm3, %v13560_v1, -inf  ;;  %v6816_v26 = vsel %vm937_vm3, %v13577_v14, 0.0 }
 0x7cc   : > { %v6733_v48 = vadd.f32 %v13331_v33, %v6694_v60  ;;  %v6697_v13 = vadd.f32 %v10179_v4, %v6277_v5  ;;  %v6814_v57 = vsel %vm937_vm3, %v13581_v62, 0.0  ;;  %v13599_v56 = vmax.f32 %v6734_v46, 0.0 }
 0x7cd   : > { %v6633_v49 = vpop.f32.mrf.mxu0  ;;  %v6815_v58 = vadd.f32 %v6814_v57, %v6813_v52  ;;  %v6281_v18 = vadd.f32 %v10133_v15, %v13286_v51  ;;  %v6880_v41 = vmax.f32 %v6872_v59, %v6879_v7  ;;  %v6883_v35 = vsel %vm937_vm3, %v13577_v14, -inf }
 0x7ce   : > { %v6696_v53 = vadd.f32 %v6633_v49, %v6276_v19  ;;  %v13597_v8 = vmax.f32 %v6733_v48, 0.0  ;;  %v6736_v44 = vadd.f32 %v13331_v33, %v6697_v13  ;;  %v6280_v4 = vadd.f32 %v6233_v36, %v13423_v11 }
 0x7cf   : > { %v10182_v22 = vpop.f32.mrf.mxu0  ;;  %v6817_v5 = vadd.f32 %v6816_v26, %v6815_v58  ;;  %v6878_v60 = vmax.f32 %v6870_v40, %v6877_v63  ;;  %v6820_v51 = vsel %vm937_vm3, %v13599_v56, 0.0  ;;  %v6884_v36 = vmax.f32 %v13579_v39, %v6883_v35 }
 0x7d0   : > { %v6735_v55 = vadd.f32 %v13331_v33, %v6696_v53  ;;  %v6699_v17 = vadd.f32 %v10182_v22, %v6279_v32  ;;  %v6818_v47 = vsel %vm937_vm3, %v13597_v8, 0.0  ;;  %v13614_v15 = vmax.f32 %v6736_v44, 0.0  ;;  %v6243_v32 = vpop.f32.mrf.mxu1 }
 0x7d1   : > { %v6643_v6 = vpop.f32.mrf.mxu0  ;;  %v6819_v52 = vadd.f32 %v6818_v47, %v6817_v5  ;;  %v6881_v40 = vsel %vm937_vm3, %v13581_v62, -inf  ;;  %v6283_v13 = vadd.f32 %v10136_v42, %v13433_v31  ;;  %v6887_v7 = vsel %vm937_vm3, %v13599_v56, -inf }
 0x7d2   : > { %v6698_v19 = vadd.f32 %v6643_v6, %v6278_v54  ;;  %v13609_v10 = vmax.f32 %v6735_v55, 0.0  ;;  %v6738_v48 = vadd.f32 %v13331_v33, %v6699_v17  ;;  %v6885_v26 = vsel %vm937_vm3, %v13597_v8, -inf }
 0x7d3   : > { %v10185_v9 = vpop.f32.mrf.mxu0  ;;  %v6821_v53 = vadd.f32 %v6820_v51, %v6819_v52  ;;  %v6282_v39 = vadd.f32 %v6243_v32, %v13438_v23  ;;  %v6882_v55 = vmax.f32 %v13586_v30, %v6881_v40  ;;  %v6824_v31 = vsel %vm937_vm3, %v13614_v15, 0.0 }
 0x7d4   : > { %v6737_v46 = vadd.f32 %v13331_v33, %v6698_v19  ;;  %v6701_v49 = vadd.f32 %v10185_v9, %v6281_v18  ;;  %v6822_v59 = vsel %vm937_vm3, %v13609_v10, 0.0  ;;  %v13634_v42 = vmax.f32 %v6738_v48, 0.0 }
 0x7d5   : > { %v6653_v11 = vpop.f32.mrf.mxu0  ;;  %v6823_v58 = vadd.f32 %v6822_v59, %v6821_v53  ;;  %v6888_v18 = vmax.f32 %v6880_v41, %v6887_v7  ;;  %v6886_v23 = vmax.f32 %v6878_v60, %v6885_v26  ;;  %v6889_v35 = vsel %vm937_vm3, %v13609_v10, -inf }
 0x7d6   : > { %v13625_v54 = vmax.f32 %v6737_v46, 0.0  ;;  %v6740_v57 = vadd.f32 %v13331_v33, %v6701_v49  ;;  %v6700_v22 = vadd.f32 %v6653_v11, %v6280_v4  ;;  %v6891_v9 = vsel %vm937_vm3, %v13614_v15, -inf }
 0x7d7   : > { %v10188_v63 = vpop.f32.mrf.mxu0  ;;  %v6825_v5 = vadd.f32 %v6824_v31, %v6823_v58  ;;  %v6828_v41 = vsel %vm937_vm3, %v13634_v42, 0.0  ;;  %v6895_v60 = vsel %vm937_vm3, %v13634_v42, -inf  ;;  %v6890_v59 = vmax.f32 %v6882_v55, %v6889_v35 }
 0x7d8   : > { %v6703_v44 = vadd.f32 %v10188_v63, %v6283_v13  ;;  %v6826_v17 = vsel %vm937_vm3, %v13625_v54, 0.0  ;;  %v6739_v47 = vadd.f32 %v13331_v33, %v6700_v22  ;;  %v13642_v30 = vmax.f32 %v6740_v57, 0.0 }
 0x7d9   : > { %v6663_v6 = vpop.f32.mrf.mxu0  ;;  %v6827_v52 = vadd.f32 %v6826_v17, %v6825_v5  ;;  %v6893_v51 = vsel %vm937_vm3, %v13625_v54, -inf  ;;  %v6892_v13 = vmax.f32 %v6884_v36, %v6891_v9  ;;  %v6896_v22 = vmax.f32 %v6888_v18, %v6895_v60 }
 0x7da   : > { %v6742_v19 = vadd.f32 %v13331_v33, %v6703_v44  ;;  %v6702_v4 = vadd.f32 %v6663_v6, %v6282_v39  ;;  %v13646_v46 = vmax.f32 %v6739_v47, 0.0  ;;  %v6899_v53 = vsel %vm937_vm3, %v13642_v30, -inf }
 0x7db   : > { %v6829_v48 = vadd.f32 %v6828_v41, %v6827_v52  ;;  %v6894_v63 = vmax.f32 %v6886_v23, %v6893_v51  ;;  %v6832_v39 = vsel %vm937_vm3, %v13642_v30, 0.0  ;;  %v6900_v44 = vmax.f32 %v6892_v13, %v6899_v53  ;;  %v14523_v53 = vld [vmem:[#allocation10_spill] sm:$0xff] }
 0x7dc   : > { %v13648_v49 = vmax.f32 %v6742_v19, 0.0  ;;  %v6741_v32 = vadd.f32 %v13331_v33, %v6702_v4  ;;  %v6830_v11 = vsel %vm937_vm3, %v13646_v46, 0.0  ;;  %v6897_v40 = vsel %vm937_vm3, %v13646_v46, -inf }
 0x7dd   : > { %v6831_v33 = vadd.f32 %v6830_v11, %v6829_v48  ;;  %v6898_v26 = vmax.f32 %v6890_v59, %v6897_v40 }
 0x7de   : > { %v6903_v7 = vsel %vm937_vm3, %v13648_v49, -inf  ;;  %v13665_v57 = vmax.f32 %v6741_v32, 0.0  ;;  %v6836_v18 = vsel %vm937_vm3, %v13648_v49, 0.0 }
 0x7df   : > { %v6904_v55 = vmax.f32 %v6896_v22, %v6903_v7  ;;  %v6833_v31 = vadd.f32 %v6832_v39, %v6831_v33  ;;  %v6905_v6 = vmax.f32 %v6898_v26, %v6900_v44  ;;  %v14524_v22 = vmov 0.0  }
 0x7e0   : > { %v6834_v58 = vsel %vm937_vm3, %v13665_v57, 0.0  ;;  %v6901_v36 = vsel %vm937_vm3, %v13665_v57, -inf }
 0x7e1   : > { %v6902_v17 = vmax.f32 %v6894_v63, %v6901_v36  ;;  %v6835_v5 = vadd.f32 %v6834_v58, %v6833_v31  ;;  %v6991_v63 = vld [vmem:[%s14192_s10] sm:$0xf] }
 0x7e3   : > { %v6906_v47 = vmax.f32 %v6902_v17, %v6904_v55  ;;  %v6837_v19 = vadd.f32 %v6836_v18, %v6835_v5 }
 0x7e5   : > { %v6907_v23 = vmax.f32 %v6905_v6, %v6906_v47  ;;  %v6838_v35 = vrot.slane %v6837_v19, 4  ;;  %v14525_v47 = vsub.s32 0, %v14523_v53 }
 0x7e7   : > { %v6908_v4 = vrot.slane %v6907_v23, 4  ;;  %v6839_v9 = vadd.f32 %v6838_v35, %v6837_v19 }
 0x7e9   : > { %v6909_v52 = vmax.f32 %v6907_v23, %v6908_v4  ;;  %v6840_v41 = vrot.slane %v6839_v9, 2 }
 0x7eb   : > { %v6910_v60 = vrot.slane %v6909_v52, 2  ;;  %v6841_v51 = vadd.f32 %v6840_v41, %v6839_v9 }
 0x7ed   : > { %v6911_v32 = vmax.f32 %v6909_v52, %v6910_v60  ;;  %v6842_v59 = vrot.slane %v6841_v51, 1 }
 0x7ef   : > { %v6912_v48 = vrot.slane %v6911_v32, 1  ;;  %v6843_v11 = vadd.f32 %v6842_v59, %v6841_v51 }
 0x7f1   : > { %v6913_v40 = vmax.f32 %v6911_v32, %v6912_v48  ;;  %v6844_v13 = vmul.f32 0.00390625, %v6843_v11 }
 0x7f3   : > { %v6914_v7 = vsel %vm1080_vm4, %v6844_v13, %v6913_v40 }
 0x7f4   : > { %10194 = vmatmul.mubr.msk.f32.vlgmr.msra.gmra.mxu1 %vm937_vm3, %v6914_v7 }
 0x7f5   : > { %10198 = vmatprep.mubr.msk.f32.mxu1 %vm10670_vm2, %v14524_v22  ;;  %10197 = vmatpush3.msk.msra.mxu1 %vm676_vm0, %v6991_v63 }
 0x7f6   : > { %7691 = vmatprep.subr.mxu1 %v14524_v22 }
 0x8b4   : > { %v6986_v33 = vpop.f32.mrf.mxu1 }
 0x8b5   : > { %v6990_v26 = vmax.f32 %v6986_v33, 0.0 }
 0x8b6   : > { %v10195_v39 = vpop.f32.mrf.mxu1 }
 0x8b7   : > { %10199 = vmatmul.mubr.msk.f32.vlgmr.msra.gmra.mxu1 %vm579_vm1, %v6990_v26 }
 0x977   : > { %v7064_v58 = vpop.f32.mrf.mxu1 }
 0x978   : > { %v7069_v36 = vrot.slane %v7064_v58, 1 }
 0x979   : > { %v10200_v44 = vpop.f32.mrf.mxu1 }
 0x97a   : > { %v7071_v55 = vadd.f32 %v7069_v36, %v7064_v58 }
 0x97c   : > { %v9206_v31 = vmul.f32 -1.442695, %v7071_v55 }
 0x97e   : > { %10438 = vpow2.f32 %v9206_v31 }
 0x98b   : > { %v10439_v17 = vpop.eup %10438 }
 0x98c   : > { %v7075_v6 = vadd.f32 1.0, %v10439_v17 }
 0x98e   : > { %10440 = vrcp.f32 %v7075_v6 }
 0x99b   : > { %v10441_v5 = vpop.eup %10440 }
 0x99c   : > { %v13688_v18 = vrot.slane %v10441_v5, %v14525_v47 }
 0x99e   : > { %v13692_v19 = vmul.f32 %v13688_v18, %v13516_v37  ;;  %v13700_v4 = vmul.f32 %v13688_v18, %v13520_v2  ;;  %v13704_v9 = vmul.f32 %v13688_v18, %v13498_v38  ;;  %v13712_v41 = vmul.f32 %v13688_v18, %v13500_v3 }
 0x99f   : > { %v13720_v60 = vmul.f32 %v13688_v18, %v13477_v34  ;;  %v13728_v32 = vmul.f32 %v13688_v18, %v13479_v29  ;;  %v13736_v48 = vmul.f32 %v13688_v18, %v13451_v28  ;;  %v13744_v40 = vmul.f32 %v13688_v18, %v13447_v16 }
 0x9a0   : > { %v7287_v23 = vsel %vm937_vm3, %v13692_v19, -inf  ;;  %v7159_v35 = vsel %vm937_vm3, %v13692_v19, 0.0  ;;  %v7156_v37 = vsel %vm937_vm3, %v13700_v4, 0.0  ;;  %v7153_v52 = vsel %vm937_vm3, %v13704_v9, 0.0 }
 0x9a1   : > { %7288 = vmax.xlane.f32.xlu1 %v7287_v23  ;;  %7160 = vadd.xlane.f32.xlu0 %v7159_v35  ;;  %v7284_v2 = vsel %vm937_vm3, %v13700_v4, -inf  ;;  %v7150_v38 = vsel %vm937_vm3, %v13712_v41, 0.0  ;;  %v7281_v51 = vsel %vm937_vm3, %v13704_v9, -inf  ;;  %v7147_v3 = vsel %vm937_vm3, %v13720_v60, 0.0 }
 0x9a2   : > { %v7278_v59 = vsel %vm937_vm3, %v13712_v41, -inf  ;;  %v7144_v34 = vsel %vm937_vm3, %v13728_v32, 0.0  ;;  %v7275_v11 = vsel %vm937_vm3, %v13720_v60, -inf  ;;  %v7141_v29 = vsel %vm937_vm3, %v13736_v48, 0.0 }
 0x9a3   : > { %v7272_v13 = vsel %vm937_vm3, %v13728_v32, -inf  ;;  %v7138_v28 = vsel %vm937_vm3, %v13744_v40, 0.0  ;;  %v13752_v53 = vmul.f32 %v13688_v18, %v13428_v45  ;;  %v7269_v7 = vsel %vm937_vm3, %v13736_v48, -inf }
 0x9a4   : > { %v13760_v63 = vmul.f32 %v13688_v18, %v13430_v24  ;;  %v7266_v33 = vsel %vm937_vm3, %v13744_v40, -inf  ;;  %v13768_v26 = vmul.f32 %v13688_v18, %v13407_v43  ;;  %v13776_v58 = vmul.f32 %v13688_v18, %v13403_v21 }
 0x9a5   : > { %7157 = vadd.xlane.f32.xlu0 %v7156_v37  ;;  %7154 = vadd.xlane.f32.xlu1 %v7153_v52  ;;  %v7135_v16 = vsel %vm937_vm3, %v13752_v53, 0.0  ;;  %v7263_v39 = vsel %vm937_vm3, %v13752_v53, -inf  ;;  %v13784_v44 = vmul.f32 %v13688_v18, %v13383_v61  ;;  %v13792_v31 = vmul.f32 %v13688_v18, %v13385_v27 }
 0x9a6   : > { %v7132_v45 = vsel %vm937_vm3, %v13760_v63, 0.0  ;;  %v7129_v24 = vsel %vm937_vm3, %v13768_v26, 0.0  ;;  %v7260_v36 = vsel %vm937_vm3, %v13760_v63, -inf  ;;  %v7126_v43 = vsel %vm937_vm3, %v13776_v58, 0.0 }
 0x9a7   : > { %v7257_v55 = vsel %vm937_vm3, %v13768_v26, -inf  ;;  %v7123_v21 = vsel %vm937_vm3, %v13784_v44, 0.0  ;;  %v7254_v17 = vsel %vm937_vm3, %v13776_v58, -inf  ;;  %v7120_v61 = vsel %vm937_vm3, %v13792_v31, 0.0 }
 0x9a8   : > { %v13800_v6 = vmul.f32 %v13688_v18, %v13362_v0  ;;  %v7251_v5 = vsel %vm937_vm3, %v13784_v44, -inf  ;;  %v13808_v47 = vmul.f32 %v13688_v18, %v13359_v12  ;;  %v7248_v23 = vsel %vm937_vm3, %v13792_v31, -inf }
 0x9a9   : > { %7285 = vmax.xlane.f32.xlu0 %v7284_v2  ;;  %7151 = vadd.xlane.f32.xlu1 %v7150_v38  ;;  %v13816_v35 = vmul.f32 %v13688_v18, %v13648_v49  ;;  %v13824_v52 = vmul.f32 %v13688_v18, %v13665_v57  ;;  %v13832_v38 = vmul.f32 %v13688_v18, %v13642_v30 }
 0x9aa   : > { %v7117_v27 = vsel %vm937_vm3, %v13800_v6, 0.0  ;;  %v7114_v0 = vsel %vm937_vm3, %v13808_v47, 0.0  ;;  %v7245_v37 = vsel %vm937_vm3, %v13800_v6, -inf  ;;  %v7242_v2 = vsel %vm937_vm3, %v13808_v47, -inf }
 0x9ab   : > { %v7207_v12 = vsel %vm937_vm3, %v13816_v35, 0.0  ;;  %v7204_v49 = vsel %vm937_vm3, %v13824_v52, 0.0  ;;  %v7201_v57 = vsel %vm937_vm3, %v13832_v38, 0.0 }
 0x9ad   : > { %7282 = vmax.xlane.f32.xlu0 %v7281_v51  ;;  %7148 = vadd.xlane.f32.xlu1 %v7147_v3  ;;  %v7335_v51 = vsel %vm937_vm3, %v13816_v35, -inf  ;;  %v13840_v3 = vmul.f32 %v13688_v18, %v13646_v46 }
 0x9af   : > { %v7198_v30 = vsel %vm937_vm3, %v13840_v3, 0.0 }
 0x9b1   : > { %7279 = vmax.xlane.f32.xlu0 %v7278_v59  ;;  %7145 = vadd.xlane.f32.xlu1 %v7144_v34  ;;  %v7332_v59 = vsel %vm937_vm3, %v13824_v52, -inf  ;;  %v13848_v34 = vmul.f32 %v13688_v18, %v13634_v42 }
 0x9b3   : > { %v7195_v46 = vsel %vm937_vm3, %v13848_v34, 0.0 }
 0x9b5   : > { %7276 = vmax.xlane.f32.xlu0 %v7275_v11  ;;  %7142 = vadd.xlane.f32.xlu1 %v7141_v29  ;;  %v7329_v11 = vsel %vm937_vm3, %v13832_v38, -inf  ;;  %v13856_v29 = vmul.f32 %v13688_v18, %v13625_v54 }
 0x9b7   : > { %v7192_v42 = vsel %vm937_vm3, %v13856_v29, 0.0 }
 0x9b9   : > { %7273 = vmax.xlane.f32.xlu0 %v7272_v13  ;;  %7139 = vadd.xlane.f32.xlu1 %v7138_v28  ;;  %v7326_v13 = vsel %vm937_vm3, %v13840_v3, -inf  ;;  %v13864_v28 = vmul.f32 %v13688_v18, %v13614_v15 }
 0x9bb   : > { %v7189_v54 = vsel %vm937_vm3, %v13864_v28, 0.0 }
 0x9bd   : > { %7270 = vmax.xlane.f32.xlu0 %v7269_v7  ;;  %7136 = vadd.xlane.f32.xlu1 %v7135_v16  ;;  %v7323_v7 = vsel %vm937_vm3, %v13848_v34, -inf  ;;  %v13872_v16 = vmul.f32 %v13688_v18, %v13609_v10 }
 0x9bf   : > { %v7186_v15 = vsel %vm937_vm3, %v13872_v16, 0.0 }
 0x9c1   : > { %7267 = vmax.xlane.f32.xlu0 %v7266_v33  ;;  %7133 = vadd.xlane.f32.xlu1 %v7132_v45  ;;  %v7320_v33 = vsel %vm937_vm3, %v13856_v29, -inf  ;;  %v13880_v45 = vmul.f32 %v13688_v18, %v13599_v56 }
 0x9c3   : > { %v7183_v10 = vsel %vm937_vm3, %v13880_v45, 0.0 }
 0x9c5   : > { %7264 = vmax.xlane.f32.xlu0 %v7263_v39  ;;  %7130 = vadd.xlane.f32.xlu1 %v7129_v24  ;;  %v7317_v39 = vsel %vm937_vm3, %v13864_v28, -inf  ;;  %v13888_v24 = vmul.f32 %v13688_v18, %v13597_v8 }
 0x9c7   : > { %v7180_v56 = vsel %vm937_vm3, %v13888_v24, 0.0 }
 0x9c9   : > { %7261 = vmax.xlane.f32.xlu0 %v7260_v36  ;;  %7127 = vadd.xlane.f32.xlu1 %v7126_v43  ;;  %v7314_v36 = vsel %vm937_vm3, %v13872_v16, -inf  ;;  %v13896_v43 = vmul.f32 %v13688_v18, %v13577_v14 }
 0x9cb   : > { %v7177_v8 = vsel %vm937_vm3, %v13896_v43, 0.0 }
 0x9cd   : > { %7258 = vmax.xlane.f32.xlu0 %v7257_v55  ;;  %7124 = vadd.xlane.f32.xlu1 %v7123_v21  ;;  %v7311_v55 = vsel %vm937_vm3, %v13880_v45, -inf  ;;  %v13904_v21 = vmul.f32 %v13688_v18, %v13581_v62 }
 0x9cf   : > { %v7174_v14 = vsel %vm937_vm3, %v13904_v21, 0.0 }
 0x9d1   : > { %7255 = vmax.xlane.f32.xlu0 %v7254_v17  ;;  %7121 = vadd.xlane.f32.xlu1 %v7120_v61  ;;  %v7308_v17 = vsel %vm937_vm3, %v13888_v24, -inf  ;;  %v13912_v61 = vmul.f32 %v13688_v18, %v13558_v20 }
 0x9d3   : > { %v7171_v62 = vsel %vm937_vm3, %v13912_v61, 0.0 }
 0x9d5   : > { %7252 = vmax.xlane.f32.xlu0 %v7251_v5  ;;  %7118 = vadd.xlane.f32.xlu1 %v7117_v27  ;;  %v7305_v5 = vsel %vm937_vm3, %v13896_v43, -inf  ;;  %v13920_v27 = vmul.f32 %v13688_v18, %v13560_v1 }
 0x9d7   : > { %v7168_v20 = vsel %vm937_vm3, %v13920_v27, 0.0 }
 0x9d9   : > { %7249 = vmax.xlane.f32.xlu0 %v7248_v23  ;;  %7115 = vadd.xlane.f32.xlu1 %v7114_v0  ;;  %v7302_v23 = vsel %vm937_vm3, %v13904_v21, -inf  ;;  %v13928_v0 = vmul.f32 %v13688_v18, %v13538_v50 }
 0x9db   : > { %v7165_v1 = vsel %vm937_vm3, %v13928_v0, 0.0 }
 0x9dd   : > { %7246 = vmax.xlane.f32.xlu0 %v7245_v37  ;;  %7208 = vadd.xlane.f32.xlu1 %v7207_v12  ;;  %v7299_v37 = vsel %vm937_vm3, %v13912_v61, -inf  ;;  %v13936_v12 = vmul.f32 %v13688_v18, %v13540_v25  ;;  %v7339_v25 = vld [vmem:[#allocation5 + $0x8] sm:$0xff] }
 0x9de   : > { %7755 = vmatprep.mubr.f32.mxu1 %v7339_v25  ;;  %v7403_v18 = vld [vmem:[#allocation7 + $0x8] sm:$0xff] }
 0x9df   : > { %v7162_v50 = vsel %vm937_vm3, %v13936_v12, 0.0  ;;  %7530 = vmatprep.mubr.f32.mxu0 %v7403_v18 }
 0x9e1   : > { %7243 = vmax.xlane.f32.xlu0 %v7242_v2  ;;  %7205 = vadd.xlane.f32.xlu1 %v7204_v49  ;;  %v7296_v2 = vsel %vm937_vm3, %v13920_v27, -inf  ;;  %v7293_v49 = vsel %vm937_vm3, %v13928_v0, -inf }
 0x9e5   : > { %7336 = vmax.xlane.f32.xlu0 %v7335_v51  ;;  %7202 = vadd.xlane.f32.xlu1 %v7201_v57  ;;  %v7290_v51 = vsel %vm937_vm3, %v13936_v12, -inf }
 0x9e9   : > { %7333 = vmax.xlane.f32.xlu0 %v7332_v59  ;;  %7199 = vadd.xlane.f32.xlu1 %v7198_v30 }
 0x9ed   : > { %7330 = vmax.xlane.f32.xlu0 %v7329_v11  ;;  %7196 = vadd.xlane.f32.xlu1 %v7195_v46 }
 0x9f1   : > { %7327 = vmax.xlane.f32.xlu0 %v7326_v13  ;;  %7193 = vadd.xlane.f32.xlu1 %v7192_v42 }
 0x9f5   : > { %7324 = vmax.xlane.f32.xlu0 %v7323_v7  ;;  %7190 = vadd.xlane.f32.xlu1 %v7189_v54 }
 0x9f9   : > { %7321 = vmax.xlane.f32.xlu0 %v7320_v33  ;;  %7187 = vadd.xlane.f32.xlu1 %v7186_v15 }
 0x9fd   : > { %7318 = vmax.xlane.f32.xlu0 %v7317_v39  ;;  %7184 = vadd.xlane.f32.xlu1 %v7183_v10 }
 0xa01   : > { %7315 = vmax.xlane.f32.xlu0 %v7314_v36  ;;  %7181 = vadd.xlane.f32.xlu1 %v7180_v56 }
 0xa05   : > { %7312 = vmax.xlane.f32.xlu0 %v7311_v55  ;;  %7178 = vadd.xlane.f32.xlu1 %v7177_v8 }
 0xa09   : > { %7309 = vmax.xlane.f32.xlu0 %v7308_v17  ;;  %7175 = vadd.xlane.f32.xlu1 %v7174_v14 }
 0xa0d   : > { %7306 = vmax.xlane.f32.xlu0 %v7305_v5  ;;  %7172 = vadd.xlane.f32.xlu1 %v7171_v62 }
 0xa11   : > { %7303 = vmax.xlane.f32.xlu0 %v7302_v23  ;;  %7169 = vadd.xlane.f32.xlu1 %v7168_v20 }
 0xa15   : > { %7300 = vmax.xlane.f32.xlu0 %v7299_v37  ;;  %7166 = vadd.xlane.f32.xlu1 %v7165_v1 }
 0xa19   : > { %7297 = vmax.xlane.f32.xlu0 %v7296_v2  ;;  %7163 = vadd.xlane.f32.xlu1 %v7162_v50 }
 0xa1d   : > { %7294 = vmax.xlane.f32.xlu0 %v7293_v49  ;;  %7291 = vmax.xlane.f32.xlu1 %v7290_v51 }
 0xa2a   : > { %v7289_v57 = vpop.xlane.xlu1 %7288  ;;  %v7161_v59 = vpop.xlane.xlu0 %7160 }
 0xa2b   : > { %v7225_v30 = vmul.f32 0.0625, %v7161_v59  ;;  %7467 = vmatpush1.msra.mxu0 %v7289_v57 }
 0xa2c   : > { %7468 = vmatprep.subr.mxu0 %v14524_v22 }
 0xa2d   : > { %7692 = vmatpush1.msra.mxu1 %v7225_v30 }
 0xa2e   : > { %v7158_v11 = vpop.xlane.xlu0 %7157  ;;  %v7155_v46 = vpop.xlane.xlu1 %7154  ;;  %7693 = vmatprep.subr.mxu1 %v14524_v22 }
 0xa2f   : > { %v7224_v13 = vmul.f32 0.0625, %v7158_v11  ;;  %v7223_v42 = vmul.f32 0.0625, %v7155_v46 }
 0xa31   : > { %7694 = vmatpush1.msra.mxu1 %v7224_v13 }
 0xa32   : > { %7695 = vmatprep.subr.mxu1 %v14524_v22  ;;  %v7286_v7 = vpop.xlane.xlu0 %7285  ;;  %v7152_v54 = vpop.xlane.xlu1 %7151 }
 0xa33   : > { %v7222_v33 = vmul.f32 0.0625, %v7152_v54  ;;  %7469 = vmatpush1.msra.mxu0 %v7286_v7  ;;  %7696 = vmatpush1.msra.mxu1 %v7223_v42 }
 0xa34   : > { %7697 = vmatprep.subr.mxu1 %v14524_v22  ;;  %7470 = vmatprep.subr.mxu0 %v14524_v22 }
 0xa35   : > { %7698 = vmatpush1.msra.mxu1 %v7222_v33 }
 0xa36   : > { %v7283_v15 = vpop.xlane.xlu0 %7282  ;;  %v7149_v39 = vpop.xlane.xlu1 %7148  ;;  %7699 = vmatprep.subr.mxu1 %v14524_v22 }
 0xa37   : > { %v7221_v10 = vmul.f32 0.0625, %v7149_v39  ;;  %7471 = vmatpush1.msra.mxu0 %v7283_v15 }
 0xa38   : > { %7472 = vmatprep.subr.mxu0 %v14524_v22 }
 0xa39   : > { %7700 = vmatpush1.msra.mxu1 %v7221_v10 }
 0xa3a   : > { %v7280_v36 = vpop.xlane.xlu0 %7279  ;;  %v7146_v56 = vpop.xlane.xlu1 %7145  ;;  %7701 = vmatprep.subr.mxu1 %v14524_v22 }
 0xa3b   : > { %v7220_v55 = vmul.f32 0.0625, %v7146_v56  ;;  %7473 = vmatpush1.msra.mxu0 %v7280_v36 }
 0xa3c   : > { %7474 = vmatprep.subr.mxu0 %v14524_v22 }
 0xa3d   : > { %7702 = vmatpush1.msra.mxu1 %v7220_v55 }
 0xa3e   : > { %v7277_v8 = vpop.xlane.xlu0 %7276  ;;  %v7143_v17 = vpop.xlane.xlu1 %7142  ;;  %7703 = vmatprep.subr.mxu1 %v14524_v22 }
 0xa3f   : > { %v7219_v14 = vmul.f32 0.0625, %v7143_v17  ;;  %7475 = vmatpush1.msra.mxu0 %v7277_v8 }
 0xa40   : > { %7476 = vmatprep.subr.mxu0 %v14524_v22 }
 0xa41   : > { %7704 = vmatpush1.msra.mxu1 %v7219_v14 }
 0xa42   : > { %v7274_v5 = vpop.xlane.xlu0 %7273  ;;  %v7140_v62 = vpop.xlane.xlu1 %7139  ;;  %7705 = vmatprep.subr.mxu1 %v14524_v22 }
 0xa43   : > { %v7218_v23 = vmul.f32 0.0625, %v7140_v62  ;;  %7477 = vmatpush1.msra.mxu0 %v7274_v5 }
 0xa44   : > { %7478 = vmatprep.subr.mxu0 %v14524_v22 }
 0xa45   : > { %7706 = vmatpush1.msra.mxu1 %v7218_v23 }
 0xa46   : > { %v7271_v20 = vpop.xlane.xlu0 %7270  ;;  %v7137_v37 = vpop.xlane.xlu1 %7136  ;;  %7707 = vmatprep.subr.mxu1 %v14524_v22 }
 0xa47   : > { %v7217_v1 = vmul.f32 0.0625, %v7137_v37  ;;  %7479 = vmatpush1.msra.mxu0 %v7271_v20 }
 0xa48   : > { %7480 = vmatprep.subr.mxu0 %v14524_v22 }
 0xa49   : > { %7708 = vmatpush1.msra.mxu1 %v7217_v1 }
 0xa4a   : > { %v7268_v2 = vpop.xlane.xlu0 %7267  ;;  %v7134_v50 = vpop.xlane.xlu1 %7133  ;;  %7709 = vmatprep.subr.mxu1 %v14524_v22 }
 0xa4b   : > { %v7216_v49 = vmul.f32 0.0625, %v7134_v50  ;;  %7481 = vmatpush1.msra.mxu0 %v7268_v2 }
 0xa4c   : > { %7482 = vmatprep.subr.mxu0 %v14524_v22 }
 0xa4d   : > { %7710 = vmatpush1.msra.mxu1 %v7216_v49 }
 0xa4e   : > { %v7265_v51 = vpop.xlane.xlu0 %7264  ;;  %v7131_v25 = vpop.xlane.xlu1 %7130  ;;  %7711 = vmatprep.subr.mxu1 %v14524_v22 }
 0xa4f   : > { %v7215_v18 = vmul.f32 0.0625, %v7131_v25  ;;  %7483 = vmatpush1.msra.mxu0 %v7265_v51 }
 0xa50   : > { %7484 = vmatprep.subr.mxu0 %v14524_v22 }
 0xa51   : > { %7712 = vmatpush1.msra.mxu1 %v7215_v18 }
 0xa52   : > { %v7262_v57 = vpop.xlane.xlu0 %7261  ;;  %v7128_v59 = vpop.xlane.xlu1 %7127  ;;  %7713 = vmatprep.subr.mxu1 %v14524_v22 }
 0xa53   : > { %v7214_v30 = vmul.f32 0.0625, %v7128_v59  ;;  %7485 = vmatpush1.msra.mxu0 %v7262_v57 }
 0xa54   : > { %7486 = vmatprep.subr.mxu0 %v14524_v22 }
 0xa55   : > { %7714 = vmatpush1.msra.mxu1 %v7214_v30 }
 0xa56   : > { %v7259_v11 = vpop.xlane.xlu0 %7258  ;;  %v7125_v46 = vpop.xlane.xlu1 %7124  ;;  %7715 = vmatprep.subr.mxu1 %v14524_v22 }
 0xa57   : > { %v7213_v13 = vmul.f32 0.0625, %v7125_v46  ;;  %7487 = vmatpush1.msra.mxu0 %v7259_v11 }
 0xa58   : > { %7488 = vmatprep.subr.mxu0 %v14524_v22 }
 0xa59   : > { %7716 = vmatpush1.msra.mxu1 %v7213_v13 }
 0xa5a   : > { %v7256_v42 = vpop.xlane.xlu0 %7255  ;;  %v7122_v7 = vpop.xlane.xlu1 %7121  ;;  %7717 = vmatprep.subr.mxu1 %v14524_v22 }
 0xa5b   : > { %v7212_v54 = vmul.f32 0.0625, %v7122_v7  ;;  %7489 = vmatpush1.msra.mxu0 %v7256_v42 }
 0xa5c   : > { %7490 = vmatprep.subr.mxu0 %v14524_v22 }
 0xa5d   : > { %7718 = vmatpush1.msra.mxu1 %v7212_v54 }
 0xa5e   : > { %v7253_v33 = vpop.xlane.xlu0 %7252  ;;  %v7119_v15 = vpop.xlane.xlu1 %7118  ;;  %7719 = vmatprep.subr.mxu1 %v14524_v22 }
 0xa5f   : > { %v7211_v39 = vmul.f32 0.0625, %v7119_v15  ;;  %7491 = vmatpush1.msra.mxu0 %v7253_v33 }
 0xa60   : > { %7492 = vmatprep.subr.mxu0 %v14524_v22 }
 0xa61   : > { %7720 = vmatpush1.msra.mxu1 %v7211_v39 }
 0xa62   : > { %v7250_v10 = vpop.xlane.xlu0 %7249  ;;  %v7116_v36 = vpop.xlane.xlu1 %7115  ;;  %7721 = vmatprep.subr.mxu1 %v14524_v22 }
 0xa63   : > { %v7210_v56 = vmul.f32 0.0625, %v7116_v36  ;;  %7493 = vmatpush1.msra.mxu0 %v7250_v10 }
 0xa64   : > { %7494 = vmatprep.subr.mxu0 %v14524_v22 }
 0xa65   : > { %7722 = vmatpush1.msra.mxu1 %v7210_v56 }
 0xa66   : > { %v7247_v55 = vpop.xlane.xlu0 %7246  ;;  %v7209_v8 = vpop.xlane.xlu1 %7208  ;;  %7723 = vmatprep.subr.mxu1 %v14524_v22 }
 0xa67   : > { %v7241_v17 = vmul.f32 0.0625, %v7209_v8  ;;  %7495 = vmatpush1.msra.mxu0 %v7247_v55 }
 0xa68   : > { %7496 = vmatprep.subr.mxu0 %v14524_v22 }
 0xa69   : > { %7724 = vmatpush2.msra.mxu1 %v7241_v17 }
 0xa6a   : > { %v7244_v14 = vpop.xlane.xlu0 %7243  ;;  %v7206_v5 = vpop.xlane.xlu1 %7205  ;;  %7725 = vmatprep.subr.mxu1 %v14524_v22 }
 0xa6b   : > { %v7240_v62 = vmul.f32 0.0625, %v7206_v5  ;;  %7497 = vmatpush1.msra.mxu0 %v7244_v14 }
 0xa6c   : > { %7498 = vmatprep.subr.mxu0 %v14524_v22 }
 0xa6d   : > { %7726 = vmatpush2.msra.mxu1 %v7240_v62 }
 0xa6e   : > { %v7337_v23 = vpop.xlane.xlu0 %7336  ;;  %v7203_v20 = vpop.xlane.xlu1 %7202  ;;  %7727 = vmatprep.subr.mxu1 %v14524_v22 }
 0xa6f   : > { %v7239_v37 = vmul.f32 0.0625, %v7203_v20  ;;  %7499 = vmatpush2.msra.mxu0 %v7337_v23 }
 0xa70   : > { %7500 = vmatprep.subr.mxu0 %v14524_v22 }
 0xa71   : > { %7728 = vmatpush2.msra.mxu1 %v7239_v37 }
 0xa72   : > { %v7334_v1 = vpop.xlane.xlu0 %7333  ;;  %v7200_v2 = vpop.xlane.xlu1 %7199  ;;  %7729 = vmatprep.subr.mxu1 %v14524_v22 }
 0xa73   : > { %v7238_v50 = vmul.f32 0.0625, %v7200_v2  ;;  %7501 = vmatpush2.msra.mxu0 %v7334_v1 }
 0xa74   : > { %7502 = vmatprep.subr.mxu0 %v14524_v22 }
 0xa75   : > { %7730 = vmatpush2.msra.mxu1 %v7238_v50 }
 0xa76   : > { %v7331_v49 = vpop.xlane.xlu0 %7330  ;;  %v7197_v51 = vpop.xlane.xlu1 %7196  ;;  %7731 = vmatprep.subr.mxu1 %v14524_v22 }
 0xa77   : > { %v7237_v25 = vmul.f32 0.0625, %v7197_v51  ;;  %7503 = vmatpush2.msra.mxu0 %v7331_v49 }
 0xa78   : > { %7504 = vmatprep.subr.mxu0 %v14524_v22 }
 0xa79   : > { %7732 = vmatpush2.msra.mxu1 %v7237_v25 }
 0xa7a   : > { %v7328_v18 = vpop.xlane.xlu0 %7327  ;;  %v7194_v57 = vpop.xlane.xlu1 %7193  ;;  %7733 = vmatprep.subr.mxu1 %v14524_v22 }
 0xa7b   : > { %v7236_v59 = vmul.f32 0.0625, %v7194_v57  ;;  %7505 = vmatpush2.msra.mxu0 %v7328_v18 }
 0xa7c   : > { %7506 = vmatprep.subr.mxu0 %v14524_v22 }
 0xa7d   : > { %7734 = vmatpush2.msra.mxu1 %v7236_v59  ;;  %v7338_v59 = vld [vmem:[#allocation5] sm:$0xff] }
 0xa7e   : > { %v7325_v30 = vpop.xlane.xlu0 %7324  ;;  %v7191_v11 = vpop.xlane.xlu1 %7190  ;;  %7735 = vmatprep.subr.mxu1 %v14524_v22 }
 0xa7f   : > { %v7235_v46 = vmul.f32 0.0625, %v7191_v11  ;;  %7507 = vmatpush2.msra.mxu0 %v7325_v30  ;;  %v7341_v30 = vld [vmem:[#allocation5 + $0x18] sm:$0xff] }
 0xa80   : > { %7508 = vmatprep.subr.mxu0 %v14524_v22 }
 0xa81   : > { %7736 = vmatpush2.msra.mxu1 %v7235_v46  ;;  %v7402_v46 = vld [vmem:[#allocation7] sm:$0xff] }
 0xa82   : > { %v7322_v13 = vpop.xlane.xlu0 %7321  ;;  %v7188_v42 = vpop.xlane.xlu1 %7187  ;;  %7737 = vmatprep.subr.mxu1 %v14524_v22 }
 0xa83   : > { %v7234_v7 = vmul.f32 0.0625, %v7188_v42  ;;  %7509 = vmatpush2.msra.mxu0 %v7322_v13  ;;  %v7340_v13 = vld [vmem:[#allocation5 + $0x10] sm:$0xff] }
 0xa84   : > { %7510 = vmatprep.subr.mxu0 %v14524_v22 }
 0xa85   : > { %7738 = vmatpush2.msra.mxu1 %v7234_v7  ;;  %v7405_v7 = vld [vmem:[#allocation7 + $0x18] sm:$0xff] }
 0xa86   : > { %v7319_v54 = vpop.xlane.xlu0 %7318  ;;  %v7185_v33 = vpop.xlane.xlu1 %7184  ;;  %7739 = vmatprep.subr.mxu1 %v14524_v22 }
 0xa87   : > { %v7233_v15 = vmul.f32 0.0625, %v7185_v33  ;;  %7511 = vmatpush2.msra.mxu0 %v7319_v54  ;;  %v7343_v54 = vld [vmem:[#allocation5 + $0x28] sm:$0xff]  ;;  %v7404_v33 = vld [vmem:[#allocation7 + $0x10] sm:$0xff] }
 0xa88   : > { %7512 = vmatprep.subr.mxu0 %v14524_v22 }
 0xa89   : > { %7740 = vmatpush2.msra.mxu1 %v7233_v15  ;;  %v7342_v15 = vld [vmem:[#allocation5 + $0x20] sm:$0xff] }
 0xa8a   : > { %v7316_v39 = vpop.xlane.xlu0 %7315  ;;  %v7182_v10 = vpop.xlane.xlu1 %7181  ;;  %7741 = vmatprep.subr.mxu1 %v14524_v22 }
 0xa8b   : > { %v7232_v36 = vmul.f32 0.0625, %v7182_v10  ;;  %7513 = vmatpush2.msra.mxu0 %v7316_v39  ;;  %v7407_v39 = vld [vmem:[#allocation7 + $0x28] sm:$0xff]  ;;  %v7345_v10 = vld [vmem:[#allocation5 + $0x38] sm:$0xff] }
 0xa8c   : > { %7514 = vmatprep.subr.mxu0 %v14524_v22 }
 0xa8d   : > { %7742 = vmatpush2.msra.mxu1 %v7232_v36  ;;  %v7406_v36 = vld [vmem:[#allocation7 + $0x20] sm:$0xff] }
 0xa8e   : > { %v7313_v56 = vpop.xlane.xlu0 %7312  ;;  %v7179_v55 = vpop.xlane.xlu1 %7178  ;;  %7743 = vmatprep.subr.mxu1 %v14524_v22 }
 0xa8f   : > { %v7231_v8 = vmul.f32 0.0625, %v7179_v55  ;;  %7515 = vmatpush2.msra.mxu0 %v7313_v56  ;;  %v7344_v56 = vld [vmem:[#allocation5 + $0x30] sm:$0xff]  ;;  %v7409_v55 = vld [vmem:[#allocation7 + $0x38] sm:$0xff] }
 0xa90   : > { %7516 = vmatprep.subr.mxu0 %v14524_v22 }
 0xa91   : > { %7744 = vmatpush2.msra.mxu1 %v7231_v8  ;;  %v7347_v8 = vld [vmem:[#allocation5 + $0x48] sm:$0xff] }
 0xa92   : > { %v7310_v17 = vpop.xlane.xlu0 %7309  ;;  %v7176_v14 = vpop.xlane.xlu1 %7175  ;;  %7745 = vmatprep.subr.mxu1 %v14524_v22 }
 0xa93   : > { %v7230_v5 = vmul.f32 0.0625, %v7176_v14  ;;  %7517 = vmatpush2.msra.mxu0 %v7310_v17  ;;  %v7346_v17 = vld [vmem:[#allocation5 + $0x40] sm:$0xff]  ;;  %v7411_v14 = vld [vmem:[#allocation7 + $0x48] sm:$0xff] }
 0xa94   : > { %7518 = vmatprep.subr.mxu0 %v14524_v22 }
 0xa95   : > { %7746 = vmatpush2.msra.mxu1 %v7230_v5  ;;  %v7349_v5 = vld [vmem:[#allocation5 + $0x58] sm:$0xff] }
 0xa96   : > { %v7307_v62 = vpop.xlane.xlu0 %7306  ;;  %v7173_v23 = vpop.xlane.xlu1 %7172  ;;  %7747 = vmatprep.subr.mxu1 %v14524_v22 }
 0xa97   : > { %v7229_v20 = vmul.f32 0.0625, %v7173_v23  ;;  %7519 = vmatpush2.msra.mxu0 %v7307_v62  ;;  %v7410_v62 = vld [vmem:[#allocation7 + $0x40] sm:$0xff]  ;;  %v7348_v23 = vld [vmem:[#allocation5 + $0x50] sm:$0xff] }
 0xa98   : > { %7520 = vmatprep.subr.mxu0 %v14524_v22 }
 0xa99   : > { %7748 = vmatpush2.msra.mxu1 %v7229_v20  ;;  %v7413_v20 = vld [vmem:[#allocation7 + $0x58] sm:$0xff] }
 0xa9a   : > { %v7304_v37 = vpop.xlane.xlu0 %7303  ;;  %v7170_v1 = vpop.xlane.xlu1 %7169  ;;  %7749 = vmatprep.subr.mxu1 %v14524_v22 }
 0xa9b   : > { %v7228_v2 = vmul.f32 0.0625, %v7170_v1  ;;  %7521 = vmatpush2.msra.mxu0 %v7304_v37  ;;  %v7351_v37 = vld [vmem:[#allocation5 + $0x68] sm:$0xff]  ;;  %v7412_v1 = vld [vmem:[#allocation7 + $0x50] sm:$0xff] }
 0xa9c   : > { %7522 = vmatprep.subr.mxu0 %v14524_v22 }
 0xa9d   : > { %7750 = vmatpush2.msra.mxu1 %v7228_v2  ;;  %v7350_v2 = vld [vmem:[#allocation5 + $0x60] sm:$0xff] }
 0xa9e   : > { %v7301_v50 = vpop.xlane.xlu0 %7300  ;;  %v7167_v49 = vpop.xlane.xlu1 %7166  ;;  %7751 = vmatprep.subr.mxu1 %v14524_v22 }
 0xa9f   : > { %v7227_v51 = vmul.f32 0.0625, %v7167_v49  ;;  %7523 = vmatpush2.msra.mxu0 %v7301_v50  ;;  %v7415_v50 = vld [vmem:[#allocation7 + $0x68] sm:$0xff]  ;;  %v7353_v49 = vld [vmem:[#allocation5 + $0x78] sm:$0xff] }
 0xaa0   : > { %7524 = vmatprep.subr.mxu0 %v14524_v22 }
 0xaa1   : > { %7752 = vmatpush2.msra.mxu1 %v7227_v51  ;;  %v7414_v51 = vld [vmem:[#allocation7 + $0x60] sm:$0xff] }
 0xaa2   : > { %v7298_v25 = vpop.xlane.xlu0 %7297  ;;  %v7164_v18 = vpop.xlane.xlu1 %7163  ;;  %7753 = vmatprep.subr.mxu1 %v14524_v22 }
 0xaa3   : > { %v7226_v57 = vmul.f32 0.0625, %v7164_v18  ;;  %7525 = vmatpush2.msra.mxu0 %v7298_v25  ;;  %v7352_v25 = vld [vmem:[#allocation5 + $0x70] sm:$0xff]  ;;  %v7417_v18 = vld [vmem:[#allocation7 + $0x78] sm:$0xff] }
 0xaa4   : > { %7526 = vmatprep.subr.mxu0 %v14524_v22 }
 0xaa5   : > { %7754 = vmatpush2.msra.mxu1 %v7226_v57  ;;  %v7355_v57 = vld [vmem:[#allocation5 + $0x88] sm:$0xff] }
 0xaa6   : > { %v7295_v11 = vpop.xlane.xlu0 %7294  ;;  %7756 = vmatmul.mubr.f32.vlgmr.msra.gmra.mxu1 %v7338_v59  ;;  %v7292_v42 = vpop.xlane.xlu1 %7291  ;;  %v7416_v59 = vld [vmem:[#allocation7 + $0x70] sm:$0xff] }
 0xaa7   : > { %7527 = vmatpush2.msra.mxu0 %v7295_v11  ;;  %7760 = vmatprep.mubr.f32.mxu1 %v7341_v30  ;;  %v7354_v30 = vld [vmem:[#allocation5 + $0x80] sm:$0xff]  ;;  %v7419_v11 = vld [vmem:[#allocation7 + $0x88] sm:$0xff] }
 0xaa8   : > { %7528 = vmatprep.subr.mxu0 %v14524_v22  ;;  %v7408_v22 = vld [vmem:[#allocation7 + $0x30] sm:$0xff] }
 0xaa9   : > { %7529 = vmatpush2.msra.mxu0 %v7292_v42  ;;  %v7356_v42 = vld [vmem:[#allocation5 + $0x90] sm:$0xff] }
 0xaaa   : > { %7531 = vmatmul.mubr.f32.vlgmr.msra.gmra.mxu0 %v7402_v46  ;;  %7761 = vmatmul.mubr.f32.gmra.mxu1 %v7340_v13  ;;  %v7357_v46 = vld [vmem:[#allocation5 + $0x98] sm:$0xff]  ;;  %v7418_v13 = vld [vmem:[#allocation7 + $0x80] sm:$0xff] }
 0xaab   : > { %7535 = vmatprep.mubr.f32.mxu0 %v7405_v7  ;;  %7765 = vmatprep.mubr.f32.mxu1 %v7343_v54  ;;  %v7421_v7 = vld [vmem:[#allocation7 + $0x98] sm:$0xff]  ;;  %v7359_v54 = vld [vmem:[#allocation5 + $0xa8] sm:$0xff] }
 0xaae   : > { %7536 = vmatmul.mubr.f32.gmra.mxu0 %v7404_v33  ;;  %7766 = vmatmul.mubr.f32.gmra.mxu1 %v7342_v15  ;;  %v7420_v33 = vld [vmem:[#allocation7 + $0x90] sm:$0xff]  ;;  %v7358_v15 = vld [vmem:[#allocation5 + $0xa0] sm:$0xff] }
 0xaaf   : > { %7540 = vmatprep.mubr.f32.mxu0 %v7407_v39  ;;  %7770 = vmatprep.mubr.f32.mxu1 %v7345_v10  ;;  %v7423_v39 = vld [vmem:[#allocation7 + $0xa8] sm:$0xff]  ;;  %v7361_v10 = vld [vmem:[#allocation5 + $0xb8] sm:$0xff] }
 0xab2   : > { %7541 = vmatmul.mubr.f32.gmra.mxu0 %v7406_v36  ;;  %7771 = vmatmul.mubr.f32.gmra.mxu1 %v7344_v56  ;;  %v7422_v36 = vld [vmem:[#allocation7 + $0xa0] sm:$0xff]  ;;  %v7360_v56 = vld [vmem:[#allocation5 + $0xb0] sm:$0xff] }
 0xab3   : > { %7545 = vmatprep.mubr.f32.mxu0 %v7409_v55  ;;  %7775 = vmatprep.mubr.f32.mxu1 %v7347_v8  ;;  %v7425_v55 = vld [vmem:[#allocation7 + $0xb8] sm:$0xff]  ;;  %v7363_v8 = vld [vmem:[#allocation5 + $0xc8] sm:$0xff] }
 0xab6   : > { %7546 = vmatmul.mubr.f32.gmra.mxu0 %v7408_v22  ;;  %7776 = vmatmul.mubr.f32.gmra.mxu1 %v7346_v17  ;;  %v7424_v22 = vld [vmem:[#allocation7 + $0xb0] sm:$0xff]  ;;  %v7362_v17 = vld [vmem:[#allocation5 + $0xc0] sm:$0xff] }
 0xab7   : > { %7550 = vmatprep.mubr.f32.mxu0 %v7411_v14  ;;  %7780 = vmatprep.mubr.f32.mxu1 %v7349_v5  ;;  %v7427_v14 = vld [vmem:[#allocation7 + $0xc8] sm:$0xff]  ;;  %v7365_v5 = vld [vmem:[#allocation5 + $0xd8] sm:$0xff] }
 0xaba   : > { %7551 = vmatmul.mubr.f32.gmra.mxu0 %v7410_v62  ;;  %7781 = vmatmul.mubr.f32.gmra.mxu1 %v7348_v23  ;;  %v7426_v62 = vld [vmem:[#allocation7 + $0xc0] sm:$0xff]  ;;  %v7364_v23 = vld [vmem:[#allocation5 + $0xd0] sm:$0xff] }
 0xabb   : > { %7555 = vmatprep.mubr.f32.mxu0 %v7413_v20  ;;  %7785 = vmatprep.mubr.f32.mxu1 %v7351_v37  ;;  %v7429_v20 = vld [vmem:[#allocation7 + $0xd8] sm:$0xff]  ;;  %v7367_v37 = vld [vmem:[#allocation5 + $0xe8] sm:$0xff] }
 0xabe   : > { %7556 = vmatmul.mubr.f32.gmra.mxu0 %v7412_v1  ;;  %7786 = vmatmul.mubr.f32.gmra.mxu1 %v7350_v2  ;;  %v7428_v1 = vld [vmem:[#allocation7 + $0xd0] sm:$0xff]  ;;  %v7366_v2 = vld [vmem:[#allocation5 + $0xe0] sm:$0xff] }
 0xabf   : > { %7560 = vmatprep.mubr.f32.mxu0 %v7415_v50  ;;  %7790 = vmatprep.mubr.f32.mxu1 %v7353_v49  ;;  %v7431_v50 = vld [vmem:[#allocation7 + $0xe8] sm:$0xff]  ;;  %v7369_v49 = vld [vmem:[#allocation5 + $0xf8] sm:$0xff] }
 0xac2   : > { %7561 = vmatmul.mubr.f32.gmra.mxu0 %v7414_v51  ;;  %7791 = vmatmul.mubr.f32.gmra.mxu1 %v7352_v25  ;;  %v7430_v51 = vld [vmem:[#allocation7 + $0xe0] sm:$0xff]  ;;  %v7368_v25 = vld [vmem:[#allocation5 + $0xf0] sm:$0xff] }
 0xac3   : > { %7565 = vmatprep.mubr.f32.mxu0 %v7417_v18  ;;  %7795 = vmatprep.mubr.f32.mxu1 %v7355_v57  ;;  %v7433_v18 = vld [vmem:[#allocation7 + $0xf8] sm:$0xff]  ;;  %v7371_v57 = vld [vmem:[#allocation5 + $0x108] sm:$0xff] }
 0xac6   : > { %7566 = vmatmul.mubr.f32.gmra.mxu0 %v7416_v59  ;;  %7796 = vmatmul.mubr.f32.gmra.mxu1 %v7354_v30  ;;  %v7432_v59 = vld [vmem:[#allocation7 + $0xf0] sm:$0xff]  ;;  %v7370_v30 = vld [vmem:[#allocation5 + $0x100] sm:$0xff] }
 0xac7   : > { %7570 = vmatprep.mubr.f32.mxu0 %v7419_v11  ;;  %7800 = vmatprep.mubr.f32.mxu1 %v7357_v46  ;;  %v7435_v11 = vld [vmem:[#allocation7 + $0x108] sm:$0xff]  ;;  %v7373_v46 = vld [vmem:[#allocation5 + $0x118] sm:$0xff] }
 0xaca   : > { %7571 = vmatmul.mubr.f32.gmra.mxu0 %v7418_v13  ;;  %7801 = vmatmul.mubr.f32.gmra.mxu1 %v7356_v42  ;;  %v7434_v13 = vld [vmem:[#allocation7 + $0x100] sm:$0xff]  ;;  %v7372_v42 = vld [vmem:[#allocation5 + $0x110] sm:$0xff] }
 0xacb   : > { %7575 = vmatprep.mubr.f32.mxu0 %v7421_v7  ;;  %7805 = vmatprep.mubr.f32.mxu1 %v7359_v54  ;;  %v7437_v7 = vld [vmem:[#allocation7 + $0x118] sm:$0xff]  ;;  %v7375_v54 = vld [vmem:[#allocation5 + $0x128] sm:$0xff] }
 0xace   : > { %7576 = vmatmul.mubr.f32.gmra.mxu0 %v7420_v33  ;;  %7806 = vmatmul.mubr.f32.gmra.mxu1 %v7358_v15  ;;  %v7436_v33 = vld [vmem:[#allocation7 + $0x110] sm:$0xff]  ;;  %v7374_v15 = vld [vmem:[#allocation5 + $0x120] sm:$0xff] }
 0xacf   : > { %7580 = vmatprep.mubr.f32.mxu0 %v7423_v39  ;;  %7810 = vmatprep.mubr.f32.mxu1 %v7361_v10  ;;  %v7439_v39 = vld [vmem:[#allocation7 + $0x128] sm:$0xff]  ;;  %v7377_v10 = vld [vmem:[#allocation5 + $0x138] sm:$0xff] }
 0xad2   : > { %7581 = vmatmul.mubr.f32.gmra.mxu0 %v7422_v36  ;;  %7811 = vmatmul.mubr.f32.gmra.mxu1 %v7360_v56  ;;  %v7438_v36 = vld [vmem:[#allocation7 + $0x120] sm:$0xff]  ;;  %v7376_v56 = vld [vmem:[#allocation5 + $0x130] sm:$0xff] }
 0xad3   : > { %7585 = vmatprep.mubr.f32.mxu0 %v7425_v55  ;;  %7815 = vmatprep.mubr.f32.mxu1 %v7363_v8  ;;  %v7441_v55 = vld [vmem:[#allocation7 + $0x138] sm:$0xff]  ;;  %v7379_v8 = vld [vmem:[#allocation5 + $0x148] sm:$0xff] }
 0xad6   : > { %7586 = vmatmul.mubr.f32.gmra.mxu0 %v7424_v22  ;;  %7816 = vmatmul.mubr.f32.gmra.mxu1 %v7362_v17  ;;  %v7440_v22 = vld [vmem:[#allocation7 + $0x130] sm:$0xff]  ;;  %v7378_v17 = vld [vmem:[#allocation5 + $0x140] sm:$0xff] }
 0xad7   : > { %7590 = vmatprep.mubr.f32.mxu0 %v7427_v14  ;;  %7820 = vmatprep.mubr.f32.mxu1 %v7365_v5  ;;  %v7443_v14 = vld [vmem:[#allocation7 + $0x148] sm:$0xff]  ;;  %v7381_v5 = vld [vmem:[#allocation5 + $0x158] sm:$0xff] }
 0xada   : > { %7591 = vmatmul.mubr.f32.gmra.mxu0 %v7426_v62  ;;  %7821 = vmatmul.mubr.f32.gmra.mxu1 %v7364_v23  ;;  %v7442_v62 = vld [vmem:[#allocation7 + $0x140] sm:$0xff]  ;;  %v7380_v23 = vld [vmem:[#allocation5 + $0x150] sm:$0xff] }
 0xadb   : > { %7595 = vmatprep.mubr.f32.mxu0 %v7429_v20  ;;  %7825 = vmatprep.mubr.f32.mxu1 %v7367_v37  ;;  %v7445_v20 = vld [vmem:[#allocation7 + $0x158] sm:$0xff]  ;;  %v7383_v37 = vld [vmem:[#allocation5 + $0x168] sm:$0xff] }
 0xade   : > { %7596 = vmatmul.mubr.f32.gmra.mxu0 %v7428_v1  ;;  %7826 = vmatmul.mubr.f32.gmra.mxu1 %v7366_v2  ;;  %v7444_v1 = vld [vmem:[#allocation7 + $0x150] sm:$0xff]  ;;  %v7382_v2 = vld [vmem:[#allocation5 + $0x160] sm:$0xff] }
 0xadf   : > { %7600 = vmatprep.mubr.f32.mxu0 %v7431_v50  ;;  %7830 = vmatprep.mubr.f32.mxu1 %v7369_v49  ;;  %v7447_v50 = vld [vmem:[#allocation7 + $0x168] sm:$0xff]  ;;  %v7385_v49 = vld [vmem:[#allocation5 + $0x178] sm:$0xff] }
 0xae2   : > { %7601 = vmatmul.mubr.f32.gmra.mxu0 %v7430_v51  ;;  %7831 = vmatmul.mubr.f32.gmra.mxu1 %v7368_v25  ;;  %v7446_v51 = vld [vmem:[#allocation7 + $0x160] sm:$0xff]  ;;  %v7384_v25 = vld [vmem:[#allocation5 + $0x170] sm:$0xff] }
 0xae3   : > { %7605 = vmatprep.mubr.f32.mxu0 %v7433_v18  ;;  %7835 = vmatprep.mubr.f32.mxu1 %v7371_v57  ;;  %v7449_v18 = vld [vmem:[#allocation7 + $0x178] sm:$0xff]  ;;  %v7387_v57 = vld [vmem:[#allocation5 + $0x188] sm:$0xff] }
 0xae6   : > { %7606 = vmatmul.mubr.f32.gmra.mxu0 %v7432_v59  ;;  %7836 = vmatmul.mubr.f32.gmra.mxu1 %v7370_v30  ;;  %v7448_v59 = vld [vmem:[#allocation7 + $0x170] sm:$0xff]  ;;  %v7386_v30 = vld [vmem:[#allocation5 + $0x180] sm:$0xff] }
 0xae7   : > { %7610 = vmatprep.mubr.f32.mxu0 %v7435_v11  ;;  %7840 = vmatprep.mubr.f32.mxu1 %v7373_v46  ;;  %v7451_v11 = vld [vmem:[#allocation7 + $0x188] sm:$0xff]  ;;  %v7389_v46 = vld [vmem:[#allocation5 + $0x198] sm:$0xff] }
 0xaea   : > { %7611 = vmatmul.mubr.f32.gmra.mxu0 %v7434_v13  ;;  %7841 = vmatmul.mubr.f32.gmra.mxu1 %v7372_v42  ;;  %v7450_v13 = vld [vmem:[#allocation7 + $0x180] sm:$0xff]  ;;  %v7388_v42 = vld [vmem:[#allocation5 + $0x190] sm:$0xff] }
 0xaeb   : > { %7615 = vmatprep.mubr.f32.mxu0 %v7437_v7  ;;  %7845 = vmatprep.mubr.f32.mxu1 %v7375_v54  ;;  %v7453_v7 = vld [vmem:[#allocation7 + $0x198] sm:$0xff]  ;;  %v7391_v54 = vld [vmem:[#allocation5 + $0x1a8] sm:$0xff] }
 0xaee   : > { %7616 = vmatmul.mubr.f32.gmra.mxu0 %v7436_v33  ;;  %7846 = vmatmul.mubr.f32.gmra.mxu1 %v7374_v15  ;;  %v7452_v33 = vld [vmem:[#allocation7 + $0x190] sm:$0xff]  ;;  %v7390_v15 = vld [vmem:[#allocation5 + $0x1a0] sm:$0xff] }
 0xaef   : > { %7620 = vmatprep.mubr.f32.mxu0 %v7439_v39  ;;  %7850 = vmatprep.mubr.f32.mxu1 %v7377_v10  ;;  %v7455_v39 = vld [vmem:[#allocation7 + $0x1a8] sm:$0xff]  ;;  %v7393_v10 = vld [vmem:[#allocation5 + $0x1b8] sm:$0xff] }
 0xaf2   : > { %7621 = vmatmul.mubr.f32.gmra.mxu0 %v7438_v36  ;;  %7851 = vmatmul.mubr.f32.gmra.mxu1 %v7376_v56  ;;  %v7454_v36 = vld [vmem:[#allocation7 + $0x1a0] sm:$0xff]  ;;  %v7392_v56 = vld [vmem:[#allocation5 + $0x1b0] sm:$0xff] }
 0xaf3   : > { %7625 = vmatprep.mubr.f32.mxu0 %v7441_v55  ;;  %7855 = vmatprep.mubr.f32.mxu1 %v7379_v8  ;;  %v7457_v55 = vld [vmem:[#allocation7 + $0x1b8] sm:$0xff]  ;;  %v7395_v8 = vld [vmem:[#allocation5 + $0x1c8] sm:$0xff] }
 0xaf6   : > { %7626 = vmatmul.mubr.f32.gmra.mxu0 %v7440_v22  ;;  %7856 = vmatmul.mubr.f32.gmra.mxu1 %v7378_v17  ;;  %v7456_v22 = vld [vmem:[#allocation7 + $0x1b0] sm:$0xff]  ;;  %v7394_v17 = vld [vmem:[#allocation5 + $0x1c0] sm:$0xff] }
 0xaf7   : > { %7630 = vmatprep.mubr.f32.mxu0 %v7443_v14  ;;  %7860 = vmatprep.mubr.f32.mxu1 %v7381_v5  ;;  %v7459_v14 = vld [vmem:[#allocation7 + $0x1c8] sm:$0xff]  ;;  %v7397_v5 = vld [vmem:[#allocation5 + $0x1d8] sm:$0xff] }
 0xafa   : > { %7631 = vmatmul.mubr.f32.gmra.mxu0 %v7442_v62  ;;  %7861 = vmatmul.mubr.f32.gmra.mxu1 %v7380_v23  ;;  %v7458_v62 = vld [vmem:[#allocation7 + $0x1c0] sm:$0xff]  ;;  %v7396_v23 = vld [vmem:[#allocation5 + $0x1d0] sm:$0xff] }
 0xafb   : > { %7635 = vmatprep.mubr.f32.mxu0 %v7445_v20  ;;  %7865 = vmatprep.mubr.f32.mxu1 %v7383_v37  ;;  %v7461_v20 = vld [vmem:[#allocation7 + $0x1d8] sm:$0xff]  ;;  %v7399_v37 = vld [vmem:[#allocation5 + $0x1e8] sm:$0xff] }
 0xafe   : > { %7636 = vmatmul.mubr.f32.gmra.mxu0 %v7444_v1  ;;  %7866 = vmatmul.mubr.f32.gmra.mxu1 %v7382_v2  ;;  %v7460_v1 = vld [vmem:[#allocation7 + $0x1d0] sm:$0xff]  ;;  %v7398_v2 = vld [vmem:[#allocation5 + $0x1e0] sm:$0xff] }
 0xaff   : > { %7640 = vmatprep.mubr.f32.mxu0 %v7447_v50  ;;  %7870 = vmatprep.mubr.f32.mxu1 %v7385_v49  ;;  %v7463_v50 = vld [vmem:[#allocation7 + $0x1e8] sm:$0xff]  ;;  %v7401_v49 = vld [vmem:[#allocation5 + $0x1f8] sm:$0xff] }
 0xb02   : > { %7641 = vmatmul.mubr.f32.gmra.mxu0 %v7446_v51  ;;  %7871 = vmatmul.mubr.f32.gmra.mxu1 %v7384_v25  ;;  %v7462_v51 = vld [vmem:[#allocation7 + $0x1e0] sm:$0xff]  ;;  %v7400_v25 = vld [vmem:[#allocation5 + $0x1f0] sm:$0xff] }
 0xb03   : > { %7645 = vmatprep.mubr.f32.mxu0 %v7449_v18  ;;  %7875 = vmatprep.mubr.f32.mxu1 %v7387_v57  ;;  %v7465_v18 = vld [vmem:[#allocation7 + $0x1f8] sm:$0xff]  ;;  %v7464_v57 = vld [vmem:[#allocation7 + $0x1f0] sm:$0xff] }
 0xb06   : > { %7646 = vmatmul.mubr.f32.gmra.mxu0 %v7448_v59  ;;  %7876 = vmatmul.mubr.f32.gmra.mxu1 %v7386_v30  ;;  %v8301_v59 = vld [vmem:[%s14195_s13 + $0x8] sm:$0xff] }
 0xb07   : > { %7650 = vmatprep.mubr.f32.mxu0 %v7451_v11  ;;  %7880 = vmatprep.mubr.f32.mxu1 %v7389_v46 }
 0xb08   : > { %10201 = vmatprep.subr.mxu0 %v8301_v59 }
 0xb09   : > { %10202 = vmatpush3.msra.mxu0 %v8301_v59 }
 0xb0a   : > { %7651 = vmatmul.mubr.f32.gmra.mxu0 %v7450_v13  ;;  %7881 = vmatmul.mubr.f32.gmra.mxu1 %v7388_v42 }
 0xb0b   : > { %7655 = vmatprep.mubr.f32.mxu0 %v7453_v7  ;;  %7885 = vmatprep.mubr.f32.mxu1 %v7391_v54 }
 0xb0e   : > { %7656 = vmatmul.mubr.f32.gmra.mxu0 %v7452_v33  ;;  %7886 = vmatmul.mubr.f32.gmra.mxu1 %v7390_v15 }
 0xb0f   : > { %7660 = vmatprep.mubr.f32.mxu0 %v7455_v39  ;;  %7890 = vmatprep.mubr.f32.mxu1 %v7393_v10 }
 0xb12   : > { %7661 = vmatmul.mubr.f32.gmra.mxu0 %v7454_v36  ;;  %7891 = vmatmul.mubr.f32.gmra.mxu1 %v7392_v56 }
 0xb13   : > { %7665 = vmatprep.mubr.f32.mxu0 %v7457_v55  ;;  %7895 = vmatprep.mubr.f32.mxu1 %v7395_v8 }
 0xb16   : > { %7666 = vmatmul.mubr.f32.gmra.mxu0 %v7456_v22  ;;  %7896 = vmatmul.mubr.f32.gmra.mxu1 %v7394_v17 }
 0xb17   : > { %7670 = vmatprep.mubr.f32.mxu0 %v7459_v14  ;;  %7900 = vmatprep.mubr.f32.mxu1 %v7397_v5 }
 0xb1a   : > { %7671 = vmatmul.mubr.f32.gmra.mxu0 %v7458_v62  ;;  %7901 = vmatmul.mubr.f32.gmra.mxu1 %v7396_v23 }
 0xb1b   : > { %7675 = vmatprep.mubr.f32.mxu0 %v7461_v20  ;;  %7905 = vmatprep.mubr.f32.mxu1 %v7399_v37 }
 0xb1e   : > { %7676 = vmatmul.mubr.f32.gmra.mxu0 %v7460_v1  ;;  %7906 = vmatmul.mubr.f32.gmra.mxu1 %v7398_v2 }
 0xb1f   : > { %7680 = vmatprep.mubr.f32.mxu0 %v7463_v50  ;;  %7910 = vmatprep.mubr.f32.mxu1 %v7401_v49 }
 0xb22   : > { %7681 = vmatmul.mubr.f32.gmra.mxu0 %v7462_v51  ;;  %7911 = vmatmul.mubr.f32.gmra.mxu1 %v7400_v25 }
 0xb23   : > { %7685 = vmatprep.mubr.f32.mxu0 %v7465_v18 }
 0xb26   : > { %7686 = vmatmul.mubr.f32.gmra.mxu0 %v7464_v57 }
 0xb66   : > { %v7757_v30 = vpop.f32.mrf.mxu1 }
 0xb68   : > { %v7759_v11 = vpop.f32.mrf.mxu1 }
 0xb6a   : > { %v7532_v46 = vpop.f32.mrf.mxu0  ;;  %v7762_v13 = vpop.f32.mrf.mxu1 }
 0xb6b   : > { %v7758_v42 = vadd.f32 %v7757_v30, %v7532_v46 }
 0xb6c   : > { %v7534_v7 = vpop.f32.mrf.mxu0  ;;  %v7764_v54 = vpop.f32.mrf.mxu1 }
 0xb6d   : > { %v9207_v33 = vmul.f32 -1.442695, %v7758_v42 }
 0xb6e   : > { %v7537_v15 = vpop.f32.mrf.mxu0  ;;  %v7767_v39 = vpop.f32.mrf.mxu1 }
 0xb6f   : > { %10442 = vpow2.f32 %v9207_v33  ;;  %v7763_v10 = vadd.f32 %v7762_v13, %v7537_v15 }
 0xb70   : > { %v7539_v36 = vpop.f32.mrf.mxu0  ;;  %v7769_v56 = vpop.f32.mrf.mxu1 }
 0xb71   : > { %v9208_v55 = vmul.f32 -1.442695, %v7763_v10 }
 0xb72   : > { %v7542_v8 = vpop.f32.mrf.mxu0  ;;  %v7772_v22 = vpop.f32.mrf.mxu1 }
 0xb73   : > { %10444 = vpow2.f32 %v9208_v55  ;;  %v7768_v17 = vadd.f32 %v7767_v39, %v7542_v8 }
 0xb74   : > { %v7544_v14 = vpop.f32.mrf.mxu0  ;;  %v7774_v5 = vpop.f32.mrf.mxu1 }
 0xb75   : > { %v9209_v62 = vmul.f32 -1.442695, %v7768_v17 }
 0xb76   : > { %v7547_v23 = vpop.f32.mrf.mxu0  ;;  %v7777_v20 = vpop.f32.mrf.mxu1 }
 0xb77   : > { %10446 = vpow2.f32 %v9209_v62  ;;  %v7773_v37 = vadd.f32 %v7772_v22, %v7547_v23 }
 0xb78   : > { %v7549_v1 = vpop.f32.mrf.mxu0  ;;  %v7779_v2 = vpop.f32.mrf.mxu1 }
 0xb79   : > { %v9210_v50 = vmul.f32 -1.442695, %v7773_v37 }
 0xb7a   : > { %v7552_v49 = vpop.f32.mrf.mxu0  ;;  %v7782_v51 = vpop.f32.mrf.mxu1 }
 0xb7b   : > { %10448 = vpow2.f32 %v9210_v50  ;;  %v7778_v25 = vadd.f32 %v7777_v20, %v7552_v49 }
 0xb7c   : > { %v10443_v18 = vpop.eup %10442  ;;  %v7554_v57 = vpop.f32.mrf.mxu0 }
 0xb7d   : > { %v7784_v59 = vpop.f32.mrf.mxu1  ;;  %v8012_v30 = vadd.f32 1.0, %v10443_v18  ;;  %v9211_v11 = vmul.f32 -1.442695, %v7778_v25  ;;  %v8300_v25 = vld [vmem:[%s14195_s13] sm:$0xff] }
 0xb7e   : > { %v7557_v46 = vpop.f32.mrf.mxu0  ;;  %10203 = vmatprep.subr.mxu0 %v8300_v25 }
 0xb7f   : > { %v7787_v13 = vpop.f32.mrf.mxu1  ;;  %10450 = vrcp.f32 %v8012_v30  ;;  %v7783_v42 = vadd.f32 %v7782_v51, %v7557_v46  ;;  %10204 = vmatpush3.msra.mxu0 %v8300_v25 }
 0xb80   : > { %v10445_v7 = vpop.eup %10444  ;;  %10452 = vpow2.f32 %v9211_v11  ;;  %v7559_v54 = vpop.f32.mrf.mxu0 }
 0xb81   : > { %v7789_v33 = vpop.f32.mrf.mxu1  ;;  %v8013_v15 = vadd.f32 1.0, %v10445_v7  ;;  %v9212_v39 = vmul.f32 -1.442695, %v7783_v42 }
 0xb82   : > { %v7562_v10 = vpop.f32.mrf.mxu0 }
 0xb83   : > { %v7792_v36 = vpop.f32.mrf.mxu1  ;;  %10454 = vrcp.f32 %v8013_v15  ;;  %v7788_v56 = vadd.f32 %v7787_v13, %v7562_v10 }
 0xb84   : > { %v10447_v55 = vpop.eup %10446  ;;  %10456 = vpow2.f32 %v9212_v39  ;;  %v7564_v8 = vpop.f32.mrf.mxu0 }
 0xb85   : > { %v7794_v22 = vpop.f32.mrf.mxu1  ;;  %v8014_v17 = vadd.f32 1.0, %v10447_v55  ;;  %v9213_v14 = vmul.f32 -1.442695, %v7788_v56 }
 0xb86   : > { %v7567_v5 = vpop.f32.mrf.mxu0 }
 0xb87   : > { %v7797_v62 = vpop.f32.mrf.mxu1  ;;  %10458 = vrcp.f32 %v8014_v17  ;;  %v7793_v23 = vadd.f32 %v7792_v36, %v7567_v5 }
 0xb88   : > { %v10449_v20 = vpop.eup %10448  ;;  %10460 = vpow2.f32 %v9213_v14  ;;  %v7569_v37 = vpop.f32.mrf.mxu0 }
 0xb89   : > { %v7799_v1 = vpop.f32.mrf.mxu1  ;;  %v8015_v2 = vadd.f32 1.0, %v10449_v20  ;;  %v9214_v50 = vmul.f32 -1.442695, %v7793_v23 }
 0xb8a   : > { %v7572_v49 = vpop.f32.mrf.mxu0 }
 0xb8b   : > { %v7802_v51 = vpop.f32.mrf.mxu1  ;;  %10462 = vrcp.f32 %v8015_v2  ;;  %v7798_v18 = vadd.f32 %v7797_v62, %v7572_v49 }
 0xb8c   : > { %v10451_v57 = vpop.eup %10450  ;;  %10464 = vpow2.f32 %v9214_v50  ;;  %v7574_v59 = vpop.f32.mrf.mxu0 }
 0xb8d   : > { %v7804_v30 = vpop.f32.mrf.mxu1  ;;  %v10453_v11 = vpop.eup %10452  ;;  %v9215_v46 = vmul.f32 -1.442695, %v7798_v18  ;;  %8110 = vperm.xlu0 %10436, %v10451_v57  }
 0xb8e   : > { %v8016_v13 = vadd.f32 1.0, %v10453_v11  ;;  %v7577_v42 = vpop.f32.mrf.mxu0 }
 0xb8f   : > { %v7807_v7 = vpop.f32.mrf.mxu1  ;;  %10466 = vpow2.f32 %v9215_v46  ;;  %v7803_v54 = vadd.f32 %v7802_v51, %v7577_v42 }
 0xb90   : > { %v10455_v33 = vpop.eup %10454  ;;  %10468 = vrcp.f32 %v8016_v13  ;;  %v7579_v15 = vpop.f32.mrf.mxu0 }
 0xb91   : > { %v7809_v39 = vpop.f32.mrf.mxu1  ;;  %v10457_v10 = vpop.eup %10456  ;;  %v9216_v36 = vmul.f32 -1.442695, %v7803_v54  ;;  %8115 = vperm.xlu1 %10437, %v10455_v33  }
 0xb92   : > { %v8017_v56 = vadd.f32 1.0, %v10457_v10  ;;  %v7582_v55 = vpop.f32.mrf.mxu0 }
 0xb93   : > { %v7812_v8 = vpop.f32.mrf.mxu1  ;;  %10470 = vpow2.f32 %v9216_v36  ;;  %v7808_v22 = vadd.f32 %v7807_v7, %v7582_v55 }
 0xb94   : > { %v10459_v17 = vpop.eup %10458  ;;  %10472 = vrcp.f32 %v8017_v56  ;;  %v7584_v14 = vpop.f32.mrf.mxu0 }
 0xb95   : > { %v7814_v5 = vpop.f32.mrf.mxu1  ;;  %v10461_v62 = vpop.eup %10460  ;;  %v9217_v23 = vmul.f32 -1.442695, %v7808_v22  ;;  %8120 = vperm.xlu1 %10437, %v10459_v17  }
 0xb96   : > { %v8018_v20 = vadd.f32 1.0, %v10461_v62  ;;  %v7587_v37 = vpop.f32.mrf.mxu0 }
 0xb97   : > { %v7817_v1 = vpop.f32.mrf.mxu1  ;;  %10474 = vpow2.f32 %v9217_v23  ;;  %v7813_v2 = vadd.f32 %v7812_v8, %v7587_v37 }
 0xb98   : > { %v10463_v50 = vpop.eup %10462  ;;  %10476 = vrcp.f32 %v8018_v20  ;;  %v7589_v49 = vpop.f32.mrf.mxu0 }
 0xb99   : > { %v7819_v51 = vpop.f32.mrf.mxu1  ;;  %v10465_v25 = vpop.eup %10464  ;;  %v9218_v18 = vmul.f32 -1.442695, %v7813_v2  ;;  %8125 = vperm.xlu1 %10437, %v10463_v50  }
 0xb9a   : > { %v8019_v57 = vadd.f32 1.0, %v10465_v25  ;;  %v7592_v59 = vpop.f32.mrf.mxu0 }
 0xb9b   : > { %v7822_v30 = vpop.f32.mrf.mxu1  ;;  %10478 = vpow2.f32 %v9218_v18  ;;  %v7818_v11 = vadd.f32 %v7817_v1, %v7592_v59 }
 0xb9c   : > { %v10467_v46 = vpop.eup %10466  ;;  %10480 = vrcp.f32 %v8019_v57  ;;  %v7594_v13 = vpop.f32.mrf.mxu0 }
 0xb9d   : > { %v7824_v42 = vpop.f32.mrf.mxu1  ;;  %v10469_v7 = vpop.eup %10468  ;;  %v8020_v54 = vadd.f32 1.0, %v10467_v46  ;;  %v9219_v33 = vmul.f32 -1.442695, %v7818_v11 }
 0xb9e   : > { %8130 = vperm.xlu1 %10437, %v10469_v7   ;;  %v7597_v15 = vpop.f32.mrf.mxu0 }
 0xb9f   : > { %v7827_v39 = vpop.f32.mrf.mxu1  ;;  %10482 = vrcp.f32 %v8020_v54  ;;  %v7823_v10 = vadd.f32 %v7822_v30, %v7597_v15 }
 0xba0   : > { %v10471_v36 = vpop.eup %10470  ;;  %10484 = vpow2.f32 %v9219_v33  ;;  %v7599_v56 = vpop.f32.mrf.mxu0 }
 0xba1   : > { %v7829_v55 = vpop.f32.mrf.mxu1  ;;  %v10473_v8 = vpop.eup %10472  ;;  %v8021_v22 = vadd.f32 1.0, %v10471_v36  ;;  %v9220_v17 = vmul.f32 -1.442695, %v7823_v10 }
 0xba2   : > { %8135 = vperm.xlu1 %10437, %v10473_v8   ;;  %v7602_v14 = vpop.f32.mrf.mxu0 }
 0xba3   : > { %v7832_v5 = vpop.f32.mrf.mxu1  ;;  %10486 = vrcp.f32 %v8021_v22  ;;  %v7828_v62 = vadd.f32 %v7827_v39, %v7602_v14 }
 0xba4   : > { %v10475_v23 = vpop.eup %10474  ;;  %10488 = vpow2.f32 %v9220_v17  ;;  %v7604_v20 = vpop.f32.mrf.mxu0 }
 0xba5   : > { %v7834_v37 = vpop.f32.mrf.mxu1  ;;  %v10477_v1 = vpop.eup %10476  ;;  %v8022_v2 = vadd.f32 1.0, %v10475_v23  ;;  %v9221_v50 = vmul.f32 -1.442695, %v7828_v62 }
 0xba6   : > { %8140 = vperm.xlu1 %10437, %v10477_v1   ;;  %v7607_v49 = vpop.f32.mrf.mxu0 }
 0xba7   : > { %v7837_v51 = vpop.f32.mrf.mxu1  ;;  %10490 = vrcp.f32 %v8022_v2  ;;  %v7833_v25 = vadd.f32 %v7832_v5, %v7607_v49 }
 0xba8   : > { %v10479_v18 = vpop.eup %10478  ;;  %10492 = vpow2.f32 %v9221_v50  ;;  %v7609_v57 = vpop.f32.mrf.mxu0 }
 0xba9   : > { %v7839_v59 = vpop.f32.mrf.mxu1  ;;  %v10481_v30 = vpop.eup %10480  ;;  %v8023_v11 = vadd.f32 1.0, %v10479_v18  ;;  %v9222_v46 = vmul.f32 -1.442695, %v7833_v25 }
 0xbaa   : > { %8145 = vperm.xlu1 %10437, %v10481_v30   ;;  %v7612_v13 = vpop.f32.mrf.mxu0 }
 0xbab   : > { %v7842_v42 = vpop.f32.mrf.mxu1  ;;  %10494 = vrcp.f32 %v8023_v11  ;;  %v7838_v7 = vadd.f32 %v7837_v51, %v7612_v13 }
 0xbac   : > { %v10483_v54 = vpop.eup %10482  ;;  %10496 = vpow2.f32 %v9222_v46  ;;  %v7614_v33 = vpop.f32.mrf.mxu0 }
 0xbad   : > { %v7844_v15 = vpop.f32.mrf.mxu1  ;;  %v10485_v39 = vpop.eup %10484  ;;  %v9223_v10 = vmul.f32 -1.442695, %v7838_v7 }
 0xbae   : > { %v8024_v36 = vadd.f32 1.0, %v10485_v39  ;;  %8150 = vperm.xlu1 %10437, %v10483_v54   ;;  %v7617_v56 = vpop.f32.mrf.mxu0 }
 0xbaf   : > { %v7847_v55 = vpop.f32.mrf.mxu1  ;;  %10498 = vpow2.f32 %v9223_v10  ;;  %v7843_v8 = vadd.f32 %v7842_v42, %v7617_v56 }
 0xbb0   : > { %v10487_v22 = vpop.eup %10486  ;;  %10500 = vrcp.f32 %v8024_v36  ;;  %v7619_v17 = vpop.f32.mrf.mxu0 }
 0xbb1   : > { %v7849_v14 = vpop.f32.mrf.mxu1  ;;  %v10489_v5 = vpop.eup %10488  ;;  %v9224_v62 = vmul.f32 -1.442695, %v7843_v8  ;;  %8155 = vperm.xlu0 %10436, %v10487_v22  }
 0xbb2   : > { %v8025_v23 = vadd.f32 1.0, %v10489_v5  ;;  %v7622_v20 = vpop.f32.mrf.mxu0 }
 0xbb3   : > { %v7852_v37 = vpop.f32.mrf.mxu1  ;;  %10502 = vpow2.f32 %v9224_v62  ;;  %v7848_v1 = vadd.f32 %v7847_v55, %v7622_v20 }
 0xbb4   : > { %v10491_v2 = vpop.eup %10490  ;;  %10504 = vrcp.f32 %v8025_v23  ;;  %v7624_v50 = vpop.f32.mrf.mxu0 }
 0xbb5   : > { %v7854_v49 = vpop.f32.mrf.mxu1  ;;  %v10493_v51 = vpop.eup %10492  ;;  %v9225_v25 = vmul.f32 -1.442695, %v7848_v1  ;;  %8160 = vperm.xlu1 %10437, %v10491_v2  }
 0xbb6   : > { %v8026_v18 = vadd.f32 1.0, %v10493_v51  ;;  %v7627_v57 = vpop.f32.mrf.mxu0 }
 0xbb7   : > { %v7857_v59 = vpop.f32.mrf.mxu1  ;;  %10506 = vpow2.f32 %v9225_v25  ;;  %v7853_v30 = vadd.f32 %v7852_v37, %v7627_v57 }
 0xbb8   : > { %v10495_v11 = vpop.eup %10494  ;;  %10508 = vrcp.f32 %v8026_v18  ;;  %v7629_v46 = vpop.f32.mrf.mxu0 }
 0xbb9   : > { %v7859_v13 = vpop.f32.mrf.mxu1  ;;  %v10497_v42 = vpop.eup %10496  ;;  %v9226_v7 = vmul.f32 -1.442695, %v7853_v30  ;;  %8165 = vperm.xlu0 %10436, %v10495_v11  }
 0xbba   : > { %v8027_v54 = vadd.f32 1.0, %v10497_v42  ;;  %v7632_v33 = vpop.f32.mrf.mxu0 }
 0xbbb   : > { %v7862_v15 = vpop.f32.mrf.mxu1  ;;  %10510 = vpow2.f32 %v9226_v7  ;;  %v7858_v39 = vadd.f32 %v7857_v59, %v7632_v33 }
 0xbbc   : > { %v10499_v10 = vpop.eup %10498  ;;  %10512 = vrcp.f32 %v8027_v54  ;;  %v7634_v36 = vpop.f32.mrf.mxu0 }
 0xbbd   : > { %v7864_v56 = vpop.f32.mrf.mxu1  ;;  %v10501_v55 = vpop.eup %10500  ;;  %v8028_v8 = vadd.f32 1.0, %v10499_v10  ;;  %v9227_v22 = vmul.f32 -1.442695, %v7858_v39 }
 0xbbe   : > { %8170 = vperm.xlu1 %10437, %v10501_v55   ;;  %v7637_v17 = vpop.f32.mrf.mxu0 }
 0xbbf   : > { %v7867_v14 = vpop.f32.mrf.mxu1  ;;  %10514 = vrcp.f32 %v8028_v8  ;;  %v7863_v5 = vadd.f32 %v7862_v15, %v7637_v17 }
 0xbc0   : > { %v10503_v62 = vpop.eup %10502  ;;  %10516 = vpow2.f32 %v9227_v22  ;;  %v7639_v23 = vpop.f32.mrf.mxu0 }
 0xbc1   : > { %v7869_v20 = vpop.f32.mrf.mxu1  ;;  %v10505_v37 = vpop.eup %10504  ;;  %v8029_v1 = vadd.f32 1.0, %v10503_v62  ;;  %v9228_v2 = vmul.f32 -1.442695, %v7863_v5 }
 0xbc2   : > { %8175 = vperm.xlu0 %10436, %v10505_v37   ;;  %v7642_v50 = vpop.f32.mrf.mxu0 }
 0xbc3   : > { %v7872_v49 = vpop.f32.mrf.mxu1  ;;  %10518 = vrcp.f32 %v8029_v1  ;;  %v7868_v51 = vadd.f32 %v7867_v14, %v7642_v50 }
 0xbc4   : > { %v10507_v25 = vpop.eup %10506  ;;  %10520 = vpow2.f32 %v9228_v2  ;;  %v7644_v18 = vpop.f32.mrf.mxu0 }
 0xbc5   : > { %v7874_v57 = vpop.f32.mrf.mxu1  ;;  %v10509_v59 = vpop.eup %10508  ;;  %v8030_v30 = vadd.f32 1.0, %v10507_v25  ;;  %v9229_v11 = vmul.f32 -1.442695, %v7868_v51 }
 0xbc6   : > { %8180 = vperm.xlu1 %10437, %v10509_v59   ;;  %v7647_v46 = vpop.f32.mrf.mxu0 }
 0xbc7   : > { %v7877_v13 = vpop.f32.mrf.mxu1  ;;  %10522 = vrcp.f32 %v8030_v30  ;;  %v7873_v42 = vadd.f32 %v7872_v49, %v7647_v46 }
 0xbc8   : > { %v10511_v7 = vpop.eup %10510  ;;  %10524 = vpow2.f32 %v9229_v11  ;;  %v7649_v54 = vpop.f32.mrf.mxu0 }
 0xbc9   : > { %v7879_v33 = vpop.f32.mrf.mxu1  ;;  %v10513_v15 = vpop.eup %10512  ;;  %v8031_v39 = vadd.f32 1.0, %v10511_v7  ;;  %v9230_v10 = vmul.f32 -1.442695, %v7873_v42 }
 0xbca   : > { %8185 = vperm.xlu0 %10436, %v10513_v15   ;;  %v7652_v36 = vpop.f32.mrf.mxu0 }
 0xbcb   : > { %v7882_v56 = vpop.f32.mrf.mxu1  ;;  %10526 = vrcp.f32 %v8031_v39  ;;  %v7878_v55 = vadd.f32 %v7877_v13, %v7652_v36 }
 0xbcc   : > { %v10515_v8 = vpop.eup %10514  ;;  %10528 = vpow2.f32 %v9230_v10  ;;  %v7654_v22 = vpop.f32.mrf.mxu0 }
 0xbcd   : > { %v7884_v17 = vpop.f32.mrf.mxu1  ;;  %v10517_v14 = vpop.eup %10516  ;;  %v9231_v5 = vmul.f32 -1.442695, %v7878_v55  ;;  %8190 = vperm.xlu1 %10437, %v10515_v8  }
 0xbce   : > { %v8032_v62 = vadd.f32 1.0, %v10517_v14  ;;  %v7657_v23 = vpop.f32.mrf.mxu0 }
 0xbcf   : > { %v7887_v20 = vpop.f32.mrf.mxu1  ;;  %10530 = vpow2.f32 %v9231_v5  ;;  %v7883_v37 = vadd.f32 %v7882_v56, %v7657_v23 }
 0xbd0   : > { %v10519_v1 = vpop.eup %10518  ;;  %10532 = vrcp.f32 %v8032_v62  ;;  %v7659_v2 = vpop.f32.mrf.mxu0 }
 0xbd1   : > { %v7889_v50 = vpop.f32.mrf.mxu1  ;;  %v10521_v49 = vpop.eup %10520  ;;  %v9232_v51 = vmul.f32 -1.442695, %v7883_v37  ;;  %8195 = vperm.xlu0 %10436, %v10519_v1  }
 0xbd2   : > { %v8033_v25 = vadd.f32 1.0, %v10521_v49  ;;  %v7662_v18 = vpop.f32.mrf.mxu0 }
 0xbd3   : > { %v7892_v57 = vpop.f32.mrf.mxu1  ;;  %10534 = vpow2.f32 %v9232_v51  ;;  %v7888_v59 = vadd.f32 %v7887_v20, %v7662_v18 }
 0xbd4   : > { %v10523_v30 = vpop.eup %10522  ;;  %10536 = vrcp.f32 %v8033_v25  ;;  %v7664_v11 = vpop.f32.mrf.mxu0 }
 0xbd5   : > { %v7894_v46 = vpop.f32.mrf.mxu1  ;;  %v10525_v13 = vpop.eup %10524  ;;  %v9233_v42 = vmul.f32 -1.442695, %v7888_v59  ;;  %8200 = vperm.xlu1 %10437, %v10523_v30  }
 0xbd6   : > { %v8034_v7 = vadd.f32 1.0, %v10525_v13  ;;  %v7667_v54 = vpop.f32.mrf.mxu0 }
 0xbd7   : > { %v7897_v33 = vpop.f32.mrf.mxu1  ;;  %10538 = vpow2.f32 %v9233_v42  ;;  %v7893_v15 = vadd.f32 %v7892_v57, %v7667_v54 }
 0xbd8   : > { %v10527_v39 = vpop.eup %10526  ;;  %10540 = vrcp.f32 %v8034_v7  ;;  %v7669_v10 = vpop.f32.mrf.mxu0 }
 0xbd9   : > { %v7899_v36 = vpop.f32.mrf.mxu1  ;;  %v10529_v56 = vpop.eup %10528  ;;  %v9234_v55 = vmul.f32 -1.442695, %v7893_v15  ;;  %8205 = vperm.xlu0 %10436, %v10527_v39  }
 0xbda   : > { %v8035_v8 = vadd.f32 1.0, %v10529_v56  ;;  %v7672_v22 = vpop.f32.mrf.mxu0 }
 0xbdb   : > { %v7902_v17 = vpop.f32.mrf.mxu1  ;;  %10542 = vpow2.f32 %v9234_v55  ;;  %v7898_v14 = vadd.f32 %v7897_v33, %v7672_v22 }
 0xbdc   : > { %v10531_v5 = vpop.eup %10530  ;;  %10544 = vrcp.f32 %v8035_v8  ;;  %v7674_v62 = vpop.f32.mrf.mxu0 }
 0xbdd   : > { %v7904_v23 = vpop.f32.mrf.mxu1  ;;  %v10533_v20 = vpop.eup %10532  ;;  %v8036_v37 = vadd.f32 1.0, %v10531_v5  ;;  %v9235_v1 = vmul.f32 -1.442695, %v7898_v14 }
 0xbde   : > { %8210 = vperm.xlu1 %10437, %v10533_v20   ;;  %v7677_v2 = vpop.f32.mrf.mxu0 }
 0xbdf   : > { %v7907_v50 = vpop.f32.mrf.mxu1  ;;  %10546 = vrcp.f32 %v8036_v37  ;;  %v7903_v49 = vadd.f32 %v7902_v17, %v7677_v2 }
 0xbe0   : > { %v10535_v51 = vpop.eup %10534  ;;  %10548 = vpow2.f32 %v9235_v1  ;;  %v7679_v25 = vpop.f32.mrf.mxu0 }
 0xbe1   : > { %v7909_v18 = vpop.f32.mrf.mxu1  ;;  %v10537_v57 = vpop.eup %10536  ;;  %v8037_v59 = vadd.f32 1.0, %v10535_v51  ;;  %v9236_v30 = vmul.f32 -1.442695, %v7903_v49 }
 0xbe2   : > { %8215 = vperm.xlu0 %10436, %v10537_v57   ;;  %v7682_v11 = vpop.f32.mrf.mxu0 }
 0xbe3   : > { %v7912_v46 = vpop.f32.mrf.mxu1  ;;  %10550 = vrcp.f32 %v8037_v59  ;;  %v7908_v13 = vadd.f32 %v7907_v50, %v7682_v11 }
 0xbe4   : > { %v10539_v42 = vpop.eup %10538  ;;  %10552 = vpow2.f32 %v9236_v30  ;;  %v7684_v7 = vpop.f32.mrf.mxu0 }
 0xbe5   : > { %v7914_v54 = vpop.f32.mrf.mxu1  ;;  %v10541_v33 = vpop.eup %10540  ;;  %v8038_v15 = vadd.f32 1.0, %v10539_v42  ;;  %v9237_v39 = vmul.f32 -1.442695, %v7908_v13 }
 0xbe6   : > { %8220 = vperm.xlu1 %10437, %v10541_v33   ;;  %v7687_v10 = vpop.f32.mrf.mxu0 }
 0xbe7   : > { %10554 = vrcp.f32 %v8038_v15  ;;  %v7913_v36 = vadd.f32 %v7912_v46, %v7687_v10 }
 0xbe8   : > { %v10543_v56 = vpop.eup %10542  ;;  %10556 = vpow2.f32 %v9237_v39  ;;  %v7689_v55 = vpop.f32.mrf.mxu0 }
 0xbe9   : > { %v10545_v8 = vpop.eup %10544  ;;  %v8039_v22 = vadd.f32 1.0, %v10543_v56  ;;  %v9238_v17 = vmul.f32 -1.442695, %v7913_v36 }
 0xbea   : > { %8225 = vperm.xlu0 %10436, %v10545_v8  }
 0xbeb   : > { %10558 = vrcp.f32 %v8039_v22 }
 0xbec   : > { %v10547_v14 = vpop.eup %10546  ;;  %10560 = vpow2.f32 %v9238_v17 }
 0xbed   : > { %v10549_v5 = vpop.eup %10548  ;;  %8230 = vperm.xlu1 %10437, %v10547_v14  }
 0xbee   : > { %v8040_v62 = vadd.f32 1.0, %v10549_v5 }
 0xbf0   : > { %v10551_v23 = vpop.eup %10550  ;;  %10562 = vrcp.f32 %v8040_v62 }
 0xbf1   : > { %v10553_v20 = vpop.eup %10552  ;;  %8235 = vperm.xlu0 %10436, %v10551_v23  }
 0xbf2   : > { %v8041_v37 = vadd.f32 1.0, %v10553_v20 }
 0xbf4   : > { %v10555_v1 = vpop.eup %10554  ;;  %10564 = vrcp.f32 %v8041_v37 }
 0xbf5   : > { %v10557_v2 = vpop.eup %10556  ;;  %8240 = vperm.xlu1 %10437, %v10555_v1  }
 0xbf6   : > { %v8042_v50 = vadd.f32 1.0, %v10557_v2 }
 0xbf8   : > { %v10559_v49 = vpop.eup %10558  ;;  %10566 = vrcp.f32 %v8042_v50 }
 0xbf9   : > { %v10561_v51 = vpop.eup %10560  ;;  %8245 = vperm.xlu0 %10436, %v10559_v49  }
 0xbfa   : > { %v8043_v25 = vadd.f32 1.0, %v10561_v51 }
 0xbfc   : > { %10568 = vrcp.f32 %v8043_v25 }
 0xbfd   : > { %v10563_v18 = vpop.eup %10562 }
 0xbfe   : > { %8250 = vperm.xlu1 %10437, %v10563_v18  }
 0xc01   : > { %v10565_v57 = vpop.eup %10564 }
 0xc02   : > { %8255 = vperm.xlu0 %10436, %v10565_v57  }
 0xc05   : > { %v10567_v59 = vpop.eup %10566 }
 0xc06   : > { %8260 = vperm.xlu1 %10437, %v10567_v59  }
 0xc08   : > { %v8111_v30 = vpop.permute.xlu0 %8110 }
 0xc09   : > { %v10569_v11 = vpop.eup %10568  ;;  %v8268_v46 = vmul.f32 %v8111_v30, %v13808_v47 }
 0xc0a   : > { %8265 = vperm.xlu0 %10436, %v10569_v11  }
 0xc0b   : > { %10205 = vmatprep.mubr.msk.f32.mxu0 %vm937_vm3, %v8268_v46 }
 0xc0c   : > { %v8116_v13 = vpop.permute.xlu1 %8115 }
 0xc0d   : > { %v8269_v42 = vmul.f32 %v8116_v13, %v13800_v6 }
 0xc0f   : > { %10206 = vmatmul.mubr.msk.f32.vlgmr.msra.gmra.mxu0 %vm937_vm3, %v8269_v42 }
 0xc10   : > { %v8121_v7 = vpop.permute.xlu1 %8120 }
 0xc11   : > { %v8270_v54 = vmul.f32 %v8121_v7, %v13792_v31 }
 0xc13   : > { %10208 = vmatprep.mubr.msk.f32.mxu0 %vm937_vm3, %v8270_v54 }
 0xc14   : > { %v8126_v33 = vpop.permute.xlu1 %8125 }
 0xc15   : > { %v8271_v15 = vmul.f32 %v8126_v33, %v13784_v44 }
 0xc17   : > { %10209 = vmatmul.mubr.msk.f32.gmra.mxu0 %vm937_vm3, %v8271_v15 }
 0xc19   : > { %v8131_v39 = vpop.permute.xlu1 %8130 }
 0xc1a   : > { %v8272_v47 = vmul.f32 %v8131_v39, %v13776_v58 }
 0xc1c   : > { %10211 = vmatprep.mubr.msk.f32.mxu0 %vm937_vm3, %v8272_v47 }
 0xc1d   : > { %v8136_v10 = vpop.permute.xlu1 %8135 }
 0xc1e   : > { %v8273_v6 = vmul.f32 %v8136_v10, %v13768_v26 }
 0xc20   : > { %10212 = vmatmul.mubr.msk.f32.gmra.mxu0 %vm937_vm3, %v8273_v6 }
 0xc21   : > { %v8141_v36 = vpop.permute.xlu1 %8140 }
 0xc22   : > { %v8274_v31 = vmul.f32 %v8141_v36, %v13760_v63 }
 0xc24   : > { %10214 = vmatprep.mubr.msk.f32.mxu0 %vm937_vm3, %v8274_v31 }
 0xc25   : > { %v8146_v56 = vpop.permute.xlu1 %8145 }
 0xc26   : > { %v8275_v44 = vmul.f32 %v8146_v56, %v13752_v53 }
 0xc28   : > { %10215 = vmatmul.mubr.msk.f32.gmra.mxu0 %vm937_vm3, %v8275_v44 }
 0xc29   : > { %v8151_v55 = vpop.permute.xlu1 %8150 }
 0xc2a   : > { %v8276_v58 = vmul.f32 %v8151_v55, %v13744_v40 }
 0xc2c   : > { %10217 = vmatprep.mubr.msk.f32.mxu0 %vm937_vm3, %v8276_v58  ;;  %v8156_v8 = vpop.permute.xlu0 %8155 }
 0xc2d   : > { %v8277_v26 = vmul.f32 %v8156_v8, %v13736_v48 }
 0xc2f   : > { %10218 = vmatmul.mubr.msk.f32.gmra.mxu0 %vm937_vm3, %v8277_v26 }
 0xc30   : > { %v8161_v22 = vpop.permute.xlu1 %8160 }
 0xc31   : > { %v8278_v63 = vmul.f32 %v8161_v22, %v13728_v32 }
 0xc33   : > { %10220 = vmatprep.mubr.msk.f32.mxu0 %vm937_vm3, %v8278_v63 }
 0xc34   : > { %v8166_v17 = vpop.permute.xlu0 %8165 }
 0xc35   : > { %v8279_v53 = vmul.f32 %v8166_v17, %v13720_v60 }
 0xc37   : > { %10221 = vmatmul.mubr.msk.f32.gmra.mxu0 %vm937_vm3, %v8279_v53 }
 0xc39   : > { %v8171_v14 = vpop.permute.xlu1 %8170 }
 0xc3a   : > { %v8280_v40 = vmul.f32 %v8171_v14, %v13712_v41 }
 0xc3c   : > { %10223 = vmatprep.mubr.msk.f32.mxu0 %vm937_vm3, %v8280_v40 }
 0xc3d   : > { %v8176_v5 = vpop.permute.xlu0 %8175 }
 0xc3e   : > { %v8281_v48 = vmul.f32 %v8176_v5, %v13704_v9 }
 0xc40   : > { %10224 = vmatmul.mubr.msk.f32.gmra.mxu0 %vm937_vm3, %v8281_v48 }
 0xc41   : > { %v8181_v62 = vpop.permute.xlu1 %8180 }
 0xc42   : > { %v8282_v32 = vmul.f32 %v8181_v62, %v13700_v4 }
 0xc44   : > { %10226 = vmatprep.mubr.msk.f32.mxu0 %vm937_vm3, %v8282_v32 }
 0xc45   : > { %v8186_v23 = vpop.permute.xlu0 %8185 }
 0xc46   : > { %v8283_v60 = vmul.f32 %v8186_v23, %v13692_v19 }
 0xc48   : > { %10227 = vmatmul.mubr.msk.f32.gmra.mxu0 %vm937_vm3, %v8283_v60  ;;  %v8191_v20 = vpop.permute.xlu1 %8190 }
 0xc49   : > { %v8284_v41 = vmul.f32 %v8191_v20, %v13936_v12 }
 0xc4b   : > { %10229 = vmatprep.mubr.msk.f32.mxu0 %vm937_vm3, %v8284_v41 }
 0xc4c   : > { %v8196_v37 = vpop.permute.xlu0 %8195 }
 0xc4d   : > { %v8285_v9 = vmul.f32 %v8196_v37, %v13928_v0 }
 0xc4f   : > { %10230 = vmatmul.mubr.msk.f32.gmra.mxu0 %vm937_vm3, %v8285_v9 }
 0xc50   : > { %v8201_v1 = vpop.permute.xlu1 %8200 }
 0xc51   : > { %v8286_v4 = vmul.f32 %v8201_v1, %v13920_v27 }
 0xc53   : > { %10232 = vmatprep.mubr.msk.f32.mxu0 %vm937_vm3, %v8286_v4 }
 0xc54   : > { %v8206_v2 = vpop.permute.xlu0 %8205 }
 0xc55   : > { %v8287_v19 = vmul.f32 %v8206_v2, %v13912_v61 }
 0xc57   : > { %10233 = vmatmul.mubr.msk.f32.gmra.mxu0 %vm937_vm3, %v8287_v19 }
 0xc59   : > { %v8211_v50 = vpop.permute.xlu1 %8210 }
 0xc5a   : > { %v8288_v12 = vmul.f32 %v8211_v50, %v13904_v21 }
 0xc5c   : > { %10235 = vmatprep.mubr.msk.f32.mxu0 %vm937_vm3, %v8288_v12 }
 0xc5d   : > { %v8216_v49 = vpop.permute.xlu0 %8215 }
 0xc5e   : > { %v8289_v0 = vmul.f32 %v8216_v49, %v13896_v43 }
 0xc60   : > { %10236 = vmatmul.mubr.msk.f32.gmra.mxu0 %vm937_vm3, %v8289_v0 }
 0xc61   : > { %v8221_v51 = vpop.permute.xlu1 %8220 }
 0xc62   : > { %v8290_v27 = vmul.f32 %v8221_v51, %v13888_v24 }
 0xc64   : > { %10238 = vmatprep.mubr.msk.f32.mxu0 %vm937_vm3, %v8290_v27 }
 0xc65   : > { %v8226_v25 = vpop.permute.xlu0 %8225 }
 0xc66   : > { %v8291_v61 = vmul.f32 %v8226_v25, %v13880_v45 }
 0xc68   : > { %10239 = vmatmul.mubr.msk.f32.gmra.mxu0 %vm937_vm3, %v8291_v61  ;;  %v8231_v18 = vpop.permute.xlu1 %8230 }
 0xc69   : > { %v8292_v21 = vmul.f32 %v8231_v18, %v13872_v16 }
 0xc6b   : > { %10241 = vmatprep.mubr.msk.f32.mxu0 %vm937_vm3, %v8292_v21 }
 0xc6c   : > { %v8236_v57 = vpop.permute.xlu0 %8235 }
 0xc6d   : > { %v8293_v43 = vmul.f32 %v8236_v57, %v13864_v28 }
 0xc6f   : > { %10242 = vmatmul.mubr.msk.f32.gmra.mxu0 %vm937_vm3, %v8293_v43 }
 0xc70   : > { %v8241_v59 = vpop.permute.xlu1 %8240 }
 0xc71   : > { %v8294_v24 = vmul.f32 %v8241_v59, %v13856_v29 }
 0xc73   : > { %10244 = vmatprep.mubr.msk.f32.mxu0 %vm937_vm3, %v8294_v24 }
 0xc74   : > { %v8246_v30 = vpop.permute.xlu0 %8245 }
 0xc75   : > { %v8295_v45 = vmul.f32 %v8246_v30, %v13848_v34 }
 0xc77   : > { %10245 = vmatmul.mubr.msk.f32.gmra.mxu0 %vm937_vm3, %v8295_v45 }
 0xc79   : > { %v8251_v11 = vpop.permute.xlu1 %8250 }
 0xc7a   : > { %v8296_v16 = vmul.f32 %v8251_v11, %v13840_v3  ;;  %v14081_v3 = vld [vmem:[%s14196_s14] ss:$0 sm:$0xff] }
 0xc7c   : > { %10247 = vmatprep.mubr.msk.f32.mxu0 %vm937_vm3, %v8296_v16 }
 0xc7d   : > { %v8256_v46 = vpop.permute.xlu0 %8255 }
 0xc7e   : > { %v8297_v28 = vmul.f32 %v8256_v46, %v13832_v38 }
 0xc80   : > { %10248 = vmatmul.mubr.msk.f32.gmra.mxu0 %vm937_vm3, %v8297_v28 }
 0xc81   : > { %v8261_v29 = vpop.permute.xlu1 %8260 }
 0xc82   : > { %v8298_v13 = vmul.f32 %v8261_v29, %v13824_v52 }
 0xc84   : > { %10250 = vmatprep.mubr.msk.f32.mxu0 %vm937_vm3, %v8298_v13 }
 0xc85   : > { %v8266_v34 = vpop.permute.xlu0 %8265 }
 0xc86   : > { %v8299_v42 = vmul.f32 %v8266_v34, %v13816_v35 }
 0xc88   : > { %10251 = vmatmul.mubr.msk.f32.gmra.mxu0 %vm937_vm3, %v8299_v42 }
 0xccf   : > { %v10207_v38 = vpop.f32.mrf.mxu0 }
 0xcd0   : > { %v8477_v7 = vadd.f32 %v10207_v38, %v14081_v3 }
 0xcd1   : > { %v8471_v54 = vpop.f32.mrf.mxu0 }
 0xcd2   : > { %v8631_v33 = vmax.f32 %v8477_v7, 0.0  ;;  %v8472_v52 = vadd.f32 %v14081_v3, %v8471_v54 }
 0xcd4   : > { %8663 = vst.msk [vmem:[%s10830_s21 + $0x8] sm:$0xff] %vm937_vm3, %v8631_v33  ;;  %v8630_v35 = vmax.f32 %v8472_v52, 0.0 }
 0xcd6   : > { %8662 = vst.msk [vmem:[%s10830_s21] sm:$0xff] %vm937_vm3, %v8630_v35 }
 0xcd7   : > { %v10210_v15 = vpop.f32.mrf.mxu0 }
 0xcd8   : > { %v8487_v39 = vadd.f32 %v10210_v15, %v14081_v3 }
 0xcd9   : > { %v8481_v47 = vpop.f32.mrf.mxu0 }
 0xcda   : > { %v8633_v10 = vmax.f32 %v8487_v39, 0.0  ;;  %v8482_v6 = vadd.f32 %v14081_v3, %v8481_v47 }
 0xcdc   : > { %8665 = vst.msk [vmem:[%s10830_s21 + $0x18] sm:$0xff] %vm937_vm3, %v8633_v10  ;;  %v8632_v36 = vmax.f32 %v8482_v6, 0.0 }
 0xcde   : > { %8664 = vst.msk [vmem:[%s10830_s21 + $0x10] sm:$0xff] %vm937_vm3, %v8632_v36 }
 0xce0   : > { %v10213_v31 = vpop.f32.mrf.mxu0 }
 0xce1   : > { %v8497_v56 = vadd.f32 %v10213_v31, %v14081_v3 }
 0xce2   : > { %v8491_v44 = vpop.f32.mrf.mxu0 }
 0xce3   : > { %v8635_v55 = vmax.f32 %v8497_v56, 0.0  ;;  %v8492_v58 = vadd.f32 %v14081_v3, %v8491_v44 }
 0xce5   : > { %8667 = vst.msk [vmem:[%s10830_s21 + $0x28] sm:$0xff] %vm937_vm3, %v8635_v55  ;;  %v8634_v8 = vmax.f32 %v8492_v58, 0.0 }
 0xce7   : > { %8666 = vst.msk [vmem:[%s10830_s21 + $0x20] sm:$0xff] %vm937_vm3, %v8634_v8 }
 0xce8   : > { %v10216_v26 = vpop.f32.mrf.mxu0 }
 0xce9   : > { %v8507_v22 = vadd.f32 %v10216_v26, %v14081_v3 }
 0xcea   : > { %v8501_v63 = vpop.f32.mrf.mxu0 }
 0xceb   : > { %v8637_v17 = vmax.f32 %v8507_v22, 0.0  ;;  %v8502_v53 = vadd.f32 %v14081_v3, %v8501_v63 }
 0xced   : > { %8669 = vst.msk [vmem:[%s10830_s21 + $0x38] sm:$0xff] %vm937_vm3, %v8637_v17  ;;  %v8636_v14 = vmax.f32 %v8502_v53, 0.0 }
 0xcef   : > { %8668 = vst.msk [vmem:[%s10830_s21 + $0x30] sm:$0xff] %vm937_vm3, %v8636_v14  ;;  %v10219_v40 = vpop.f32.mrf.mxu0 }
 0xcf0   : > { %v8517_v5 = vadd.f32 %v10219_v40, %v14081_v3 }
 0xcf1   : > { %v8511_v48 = vpop.f32.mrf.mxu0 }
 0xcf2   : > { %v8639_v62 = vmax.f32 %v8517_v5, 0.0  ;;  %v8512_v32 = vadd.f32 %v14081_v3, %v8511_v48 }
 0xcf4   : > { %8671 = vst.msk [vmem:[%s10830_s21 + $0x48] sm:$0xff] %vm937_vm3, %v8639_v62  ;;  %v8638_v23 = vmax.f32 %v8512_v32, 0.0 }
 0xcf6   : > { %8670 = vst.msk [vmem:[%s10830_s21 + $0x40] sm:$0xff] %vm937_vm3, %v8638_v23 }
 0xcf7   : > { %v10222_v60 = vpop.f32.mrf.mxu0 }
 0xcf8   : > { %v8527_v20 = vadd.f32 %v10222_v60, %v14081_v3 }
 0xcf9   : > { %v8521_v41 = vpop.f32.mrf.mxu0 }
 0xcfa   : > { %v8641_v37 = vmax.f32 %v8527_v20, 0.0  ;;  %v8522_v9 = vadd.f32 %v14081_v3, %v8521_v41 }
 0xcfc   : > { %8673 = vst.msk [vmem:[%s10830_s21 + $0x58] sm:$0xff] %vm937_vm3, %v8641_v37  ;;  %v8640_v1 = vmax.f32 %v8522_v9, 0.0 }
 0xcfe   : > { %8672 = vst.msk [vmem:[%s10830_s21 + $0x50] sm:$0xff] %vm937_vm3, %v8640_v1 }
 0xd00   : > { %v10225_v4 = vpop.f32.mrf.mxu0 }
 0xd01   : > { %v8537_v2 = vadd.f32 %v10225_v4, %v14081_v3 }
 0xd02   : > { %v8531_v19 = vpop.f32.mrf.mxu0 }
 0xd03   : > { %v8643_v50 = vmax.f32 %v8537_v2, 0.0  ;;  %v8532_v12 = vadd.f32 %v14081_v3, %v8531_v19 }
 0xd05   : > { %8675 = vst.msk [vmem:[%s10830_s21 + $0x68] sm:$0xff] %vm937_vm3, %v8643_v50  ;;  %v8642_v49 = vmax.f32 %v8532_v12, 0.0 }
 0xd07   : > { %8674 = vst.msk [vmem:[%s10830_s21 + $0x60] sm:$0xff] %vm937_vm3, %v8642_v49 }
 0xd08   : > { %v10228_v0 = vpop.f32.mrf.mxu0 }
 0xd09   : > { %v8547_v51 = vadd.f32 %v10228_v0, %v14081_v3 }
 0xd0a   : > { %v8541_v27 = vpop.f32.mrf.mxu0 }
 0xd0b   : > { %v8645_v25 = vmax.f32 %v8547_v51, 0.0  ;;  %v8542_v61 = vadd.f32 %v14081_v3, %v8541_v27 }
 0xd0d   : > { %8677 = vst.msk [vmem:[%s10830_s21 + $0x78] sm:$0xff] %vm937_vm3, %v8645_v25  ;;  %v8644_v18 = vmax.f32 %v8542_v61, 0.0 }
 0xd0f   : > { %8676 = vst.msk [vmem:[%s10830_s21 + $0x70] sm:$0xff] %vm937_vm3, %v8644_v18  ;;  %v10231_v21 = vpop.f32.mrf.mxu0 }
 0xd10   : > { %v8557_v57 = vadd.f32 %v10231_v21, %v14081_v3 }
 0xd11   : > { %v8551_v43 = vpop.f32.mrf.mxu0 }
 0xd12   : > { %v8647_v59 = vmax.f32 %v8557_v57, 0.0  ;;  %v8552_v24 = vadd.f32 %v14081_v3, %v8551_v43 }
 0xd14   : > { %8679 = vst.msk [vmem:[%s10830_s21 + $0x88] sm:$0xff] %vm937_vm3, %v8647_v59  ;;  %v8646_v30 = vmax.f32 %v8552_v24, 0.0 }
 0xd16   : > { %8678 = vst.msk [vmem:[%s10830_s21 + $0x80] sm:$0xff] %vm937_vm3, %v8646_v30 }
 0xd17   : > { %v10234_v45 = vpop.f32.mrf.mxu0 }
 0xd18   : > { %v8567_v11 = vadd.f32 %v10234_v45, %v14081_v3 }
 0xd19   : > { %v8561_v16 = vpop.f32.mrf.mxu0 }
 0xd1a   : > { %v8649_v46 = vmax.f32 %v8567_v11, 0.0  ;;  %v8562_v28 = vadd.f32 %v14081_v3, %v8561_v16 }
 0xd1c   : > { %8681 = vst.msk [vmem:[%s10830_s21 + $0x98] sm:$0xff] %vm937_vm3, %v8649_v46  ;;  %v8648_v29 = vmax.f32 %v8562_v28, 0.0 }
 0xd1e   : > { %8680 = vst.msk [vmem:[%s10830_s21 + $0x90] sm:$0xff] %vm937_vm3, %v8648_v29 }
 0xd20   : > { %v10237_v13 = vpop.f32.mrf.mxu0 }
 0xd21   : > { %v8577_v34 = vadd.f32 %v10237_v13, %v14081_v3 }
 0xd22   : > { %v8571_v42 = vpop.f32.mrf.mxu0 }
 0xd23   : > { %v8651_v38 = vmax.f32 %v8577_v34, 0.0  ;;  %v8572_v7 = vadd.f32 %v14081_v3, %v8571_v42 }
 0xd25   : > { %8683 = vst.msk [vmem:[%s10830_s21 + $0xa8] sm:$0xff] %vm937_vm3, %v8651_v38  ;;  %v8650_v54 = vmax.f32 %v8572_v7, 0.0 }
 0xd27   : > { %8682 = vst.msk [vmem:[%s10830_s21 + $0xa0] sm:$0xff] %vm937_vm3, %v8650_v54 }
 0xd28   : > { %v10240_v33 = vpop.f32.mrf.mxu0 }
 0xd29   : > { %v8587_v52 = vadd.f32 %v10240_v33, %v14081_v3 }
 0xd2a   : > { %v8581_v35 = vpop.f32.mrf.mxu0 }
 0xd2b   : > { %v8653_v15 = vmax.f32 %v8587_v52, 0.0  ;;  %v8582_v39 = vadd.f32 %v14081_v3, %v8581_v35 }
 0xd2d   : > { %8685 = vst.msk [vmem:[%s10830_s21 + $0xb8] sm:$0xff] %vm937_vm3, %v8653_v15  ;;  %v8652_v47 = vmax.f32 %v8582_v39, 0.0 }
 0xd2f   : > { %8684 = vst.msk [vmem:[%s10830_s21 + $0xb0] sm:$0xff] %vm937_vm3, %v8652_v47  ;;  %v10243_v10 = vpop.f32.mrf.mxu0 }
 0xd30   : > { %v8597_v6 = vadd.f32 %v10243_v10, %v14081_v3 }
 0xd31   : > { %v8591_v36 = vpop.f32.mrf.mxu0 }
 0xd32   : > { %v8655_v31 = vmax.f32 %v8597_v6, 0.0  ;;  %v8592_v56 = vadd.f32 %v14081_v3, %v8591_v36 }
 0xd34   : > { %8687 = vst.msk [vmem:[%s10830_s21 + $0xc8] sm:$0xff] %vm937_vm3, %v8655_v31  ;;  %v8654_v44 = vmax.f32 %v8592_v56, 0.0 }
 0xd36   : > { %8686 = vst.msk [vmem:[%s10830_s21 + $0xc0] sm:$0xff] %vm937_vm3, %v8654_v44 }
 0xd37   : > { %v10246_v55 = vpop.f32.mrf.mxu0 }
 0xd38   : > { %v8607_v58 = vadd.f32 %v10246_v55, %v14081_v3 }
 0xd39   : > { %v8601_v8 = vpop.f32.mrf.mxu0 }
 0xd3a   : > { %v8657_v26 = vmax.f32 %v8607_v58, 0.0  ;;  %v8602_v22 = vadd.f32 %v14081_v3, %v8601_v8 }
 0xd3c   : > { %8689 = vst.msk [vmem:[%s10830_s21 + $0xd8] sm:$0xff] %vm937_vm3, %v8657_v26  ;;  %v8656_v63 = vmax.f32 %v8602_v22, 0.0 }
 0xd3e   : > { %8688 = vst.msk [vmem:[%s10830_s21 + $0xd0] sm:$0xff] %vm937_vm3, %v8656_v63 }
 0xd40   : > { %v10249_v17 = vpop.f32.mrf.mxu0 }
 0xd41   : > { %v8617_v53 = vadd.f32 %v10249_v17, %v14081_v3 }
 0xd42   : > { %v8611_v14 = vpop.f32.mrf.mxu0 }
 0xd43   : > { %v8659_v40 = vmax.f32 %v8617_v53, 0.0  ;;  %v8612_v5 = vadd.f32 %v14081_v3, %v8611_v14 }
 0xd45   : > { %8691 = vst.msk [vmem:[%s10830_s21 + $0xe8] sm:$0xff] %vm937_vm3, %v8659_v40  ;;  %v8658_v48 = vmax.f32 %v8612_v5, 0.0 }
 0xd47   : > { %8690 = vst.msk [vmem:[%s10830_s21 + $0xe0] sm:$0xff] %vm937_vm3, %v8658_v48 }
 0xd48   : > { %v10252_v62 = vpop.f32.mrf.mxu0 }
 0xd49   : > { %v8627_v32 = vadd.f32 %v10252_v62, %v14081_v3 }
 0xd4a   : > { %v8621_v23 = vpop.f32.mrf.mxu0 }
 0xd4b   : > { %v8661_v60 = vmax.f32 %v8627_v32, 0.0  ;;  %v8622_v20 = vadd.f32 %v14081_v3, %v8621_v23 }
 0xd4d   : > { %8693 = vst.msk [vmem:[%s10830_s21 + $0xf8] sm:$0xff] %vm937_vm3, %v8661_v60  ;;  %v8660_v41 = vmax.f32 %v8622_v20, 0.0 }
 0xd4f   : > { %8692 = vst.msk [vmem:[%s10830_s21 + $0xf0] sm:$0xff] %vm937_vm3, %v8660_v41 }
 0xd50 PF: > { %s27_s18 = sadd.s32 1, %s10662_s18  }
 0xd51   : > { %p24_p4 = scmp.ge.s32.totalorder %s27_s18, 4  }
 0xd53   :  { %26 = sbr.rel (!%p24_p4) target bundleno = 2 (0x2), region = 135 }
 0xd58   :  { %8715 = vsyncpa [#allocation4], 1 }
 0xd59   :  { %8717 = vsyncpa [#allocation4 + $0x1], 1 }
 0xd5a   :  { %8718 = vsyncpa [#allocation6], 1 }

</bundles_post_ra>
